<compile_context>
chip_gen: v5e
topology: v5e:2x2
jax: 0.10.0
libtpu: 0.0.40
codegen_flags: <defaults>
</compile_context>

<pallas_src>
import functools

import numpy as np

import jax
import jax.numpy as jnp
from jax.experimental import pallas as pl
from jax.experimental.pallas import tpu as pltpu


# ----------------------------------------------------------------------------
# host-side precomputed constants (built once at trace time, passed as inputs)
# ----------------------------------------------------------------------------
def _conv_masks(h, w):
    """(8, h*w) f32 validity masks for the 8 off-centre 3x3 taps (raster order)."""
    row = np.arange(h * w) // w
    col = np.arange(h * w) % w
    rows = []
    for kh in range(3):
        for kw in range(3):
            dy, dx = kh - 1, kw - 1
            if dy == 0 and dx == 0:
                continue
            valid = ((row + dy >= 0) & (row + dy < h) &
                     (col + dx >= 0) & (col + dx < w))
            rows.append(valid.astype(np.float32))
    return np.stack(rows, axis=0)


def _pool_sel(h, w):
    """(h*w, (h/2)*(w/2)) 0/1 gather matrix picking the even-(row,col) anchors."""
    ho, wo = h // 2, w // 2
    sel = np.zeros((h * w, ho * wo), np.float32)
    q = np.arange(ho * wo)
    src = 2 * (q // wo) * w + 2 * (q % wo)
    sel[src, q] = 1.0
    return sel


def _deconv_scat(h, w):
    """(4, h*w, 4*h*w) 0/1 scatter matrices for ConvTranspose2d(k=2, s=2)."""
    wo = 2 * w
    scat = np.zeros((4, h * w, 4 * h * w), np.float32)
    p = np.arange(h * w)
    ph, pw = p // w, p % w
    for kh in range(2):
        for kw in range(2):
            dst = (2 * ph + kh) * wo + (2 * pw + kw)
            scat[kh * 2 + kw, p, dst] = 1.0
    return scat


# ----------------------------------------------------------------------------
# in-kernel building blocks (activations are (C, H*W) f32 values)
# ----------------------------------------------------------------------------
def _conv3x3(a, w_ref, b_ref, mask, H, W, relu):
    """3x3 same-pad conv.  a: (Cin, H*W) f32.
    w_ref: (3, Cout, 3*Cin) bf16 with w_ref[kh][o, kw*Cin + i] == W_pt[o, i, kh, kw]
    b_ref: (Cout, 1) f32.  mask: (8, H*W) f32, off-centre taps in raster order.
    Split into 3 accumulating MXU matmuls (one per kh row, K = 3*Cin)."""
    Cin, HW = a.shape
    cast_early = (Cin % 16 == 0)      # per-tap bf16 cast only if sublane-aligned
    acc = None
    t = 0
    for kh in range(3):
        taps = []
        for kw in range(3):
            dy, dx = kh - 1, kw - 1
            if dy == 0 and dx == 0:
                tap = a
            else:
                shift = (-(dy * W + dx)) % HW
                shifted = pltpu.roll(a, shift, axis=1)
                tap = shifted * mask[t:t + 1, :]        # (1,HW) row broadcast
                t += 1
            taps.append(tap.astype(jnp.bfloat16) if cast_early else tap)
        patch = jnp.concatenate(taps, axis=0)           # (3*Cin, HW)
        if not cast_early:
            patch = patch.astype(jnp.bfloat16)
        part = jnp.dot(w_ref[kh], patch, preferred_element_type=jnp.float32)
        acc = part if acc is None else acc + part
    acc = acc + b_ref[...]
    return jnp.maximum(acc, 0.0) if relu else acc


def _maxpool2x2(a, sel_ref, W):
    """2x2 stride-2 max pool.  a: (C, H*W) f32, sel_ref: (H*W, H*W/4) bf16."""
    C, HW = a.shape
    m1 = jnp.maximum(a, pltpu.roll(a, HW - 1, axis=1))    # max(a[p], a[p+1])
    m2 = jnp.maximum(m1, pltpu.roll(m1, HW - W, axis=1))  # full 2x2 max at p
    return jnp.dot(m2.astype(jnp.bfloat16), sel_ref[...],
                   preferred_element_type=jnp.float32)


def _deconv2x2(x, w_ref, b_ref, scat_ref, Cout):
    """ConvTranspose2d k=2 s=2 (no overlap).  x: (Cin, HW_in) f32.
    w_ref: (4*Cout, Cin) bf16 with row (kh*2+kw)*Cout + o == W_pt[i, o, kh, kw]
    b_ref: (Cout, 1) f32.  scat_ref: (4, HW_in, 4*HW_in) bf16 precomputed."""
    y = jnp.dot(w_ref[...], x.astype(jnp.bfloat16),
                preferred_element_type=jnp.float32)       # (4*Cout, HW_in)
    out = None
    for k in range(4):
        yk = y[k * Cout:(k + 1) * Cout, :].astype(jnp.bfloat16)
        part = jnp.dot(yk, scat_ref[k], preferred_element_type=jnp.float32)
        out = part if out is None else out + part
    return out + b_ref[...]


# ----------------------------------------------------------------------------
# fused UNet kernel: one grid step == one full forward pass for one sample
# ----------------------------------------------------------------------------
def _unet_kernel(x_ref,
                 ew1, eb1, ew2, eb2, mw1, mb1, mw2, mb2,
                 u1w, u1b, c1w, c1b, u2w, u2b,
                 mask_a, mask_b, sel_a, sel_b, scat1, scat2,
                 o_ref, *, H, W):
    H1, W1 = H // 2, W // 2
    ma = mask_a[...]                                     # (8, H*W)
    mb = mask_b[...]                                     # (8, H1*W1)

    # encoder @ (H, W): Conv(3->64)+ReLU, Conv(64->64)+ReLU, MaxPool2
    h = _conv3x3(x_ref[0], ew1, eb1, ma, H, W, relu=True)
    h = _conv3x3(h, ew2, eb2, ma, H, W, relu=True)
    x1 = _maxpool2x2(h, sel_a, W)                        # (64, H1*W1)

    # middle @ (H/2, W/2): Conv(64->128)+ReLU, Conv(128->128)+ReLU, MaxPool2
    h = _conv3x3(x1, mw1, mb1, mb, H1, W1, relu=True)
    h = _conv3x3(h, mw2, mb2, mb, H1, W1, relu=True)
    x2 = _maxpool2x2(h, sel_b, W1)                       # (128, H2*W2)

    # decoder
    x3 = _deconv2x2(x2, u1w, u1b, scat1, Cout=64)        # (64, H1*W1)
    xcat = jnp.concatenate([x3, x1], axis=0)             # torch.cat([x3,x1],1)
    x4 = _conv3x3(xcat, c1w, c1b, mb, H1, W1, relu=False)

    # up2: ConvTranspose(64->1), fully interleaved to (1, H*W) (lane-dense)
    y = _deconv2x2(x4, u2w, u2b, scat2, Cout=1)          # (1, H*W)
    y = pl.reciprocal(1.0 + jnp.exp(-y), approx=True)    # sigmoid (EUP)
    o_ref[0] = y


# ----------------------------------------------------------------------------
# wrapper
# ----------------------------------------------------------------------------
def unet_forward(x_nchw, params):
    N, Cin, H, W = x_nchw.shape
    assert Cin == 3 and H % 4 == 0 and W % 4 == 0
    HW = H * W
    H1, W1 = H // 2, W // 2
    H2, W2 = H // 4, W // 4

    x = x_nchw.astype(jnp.float32).reshape(N, Cin, HW)

    # constants precomputed on host (trace-time), passed as kernel operands
    mask_a = jnp.asarray(_conv_masks(H, W))
    mask_b = jnp.asarray(_conv_masks(H1, W1))
    sel_a = jnp.asarray(_pool_sel(H, W), dtype=jnp.bfloat16)
    sel_b = jnp.asarray(_pool_sel(H1, W1), dtype=jnp.bfloat16)
    scat1 = jnp.asarray(_deconv_scat(H2, W2), dtype=jnp.bfloat16)
    scat2 = jnp.asarray(_deconv_scat(H1, W1), dtype=jnp.bfloat16)

    wnames = ("enc_w1", "enc_b1", "enc_w2", "enc_b2",
              "mid_w1", "mid_b1", "mid_w2", "mid_b2",
              "up1_w", "up1_b", "conv1_w", "conv1_b", "up2_w", "up2_b")
    wargs = [params[k] for k in wnames]
    consts = [mask_a, mask_b, sel_a, sel_b, scat1, scat2]

    def _const_spec(a):
        nd = a.ndim
        return pl.BlockSpec(a.shape, lambda n, _nd=nd: (0,) * _nd)

    out = pl.pallas_call(
        functools.partial(_unet_kernel, H=H, W=W),
        out_shape=jax.ShapeDtypeStruct((N, 1, HW), jnp.float32),
        grid_spec=pltpu.PrefetchScalarGridSpec(
            num_scalar_prefetch=0,
            grid=(N,),
            in_specs=[pl.BlockSpec((1, Cin, HW), lambda n: (n, 0, 0))]
                     + [_const_spec(a) for a in (wargs + consts)],
            out_specs=pl.BlockSpec((1, 1, HW), lambda n: (n, 0, 0)),
        ),
        compiler_params=pltpu.CompilerParams(
            dimension_semantics=("parallel",)),
    )(x, *wargs, *consts)

    return out.reshape(N, 1, H, W)                       # NCHW, Cout=1


def init_params(key):
    """Deterministic synthetic parameters, pre-laid-out for the kernel:
      conv3x3 weight : (3, Cout, 3*Cin) bf16
                       == W_pt.transpose(2, 0, 3, 1).reshape(3, Cout, 3*Cin)
      deconv  weight : (4*Cout, Cin) bf16
                       == W_pt.transpose(2, 3, 1, 0).reshape(4*Cout, Cin)
      biases         : (Cout, 1) f32
    """
    ks = jax.random.split(key, 14)

    def w(k, shape, scale=0.05):
        return (scale * jax.random.normal(k, shape, dtype=jnp.float32)
                ).astype(jnp.bfloat16)

    def b(k, cout, scale=0.05):
        return scale * jax.random.normal(k, (cout, 1), dtype=jnp.float32)

    return {
        "enc_w1": w(ks[0], (3, 64, 9)),     "enc_b1": b(ks[1], 64),
        "enc_w2": w(ks[2], (3, 64, 192)),   "enc_b2": b(ks[3], 64),
        "mid_w1": w(ks[4], (3, 128, 192)),  "mid_b1": b(ks[5], 128),
        "mid_w2": w(ks[6], (3, 128, 384)),  "mid_b2": b(ks[7], 128),
        "up1_w":  w(ks[8], (256, 128)),     "up1_b":  b(ks[9], 64),
        "conv1_w": w(ks[10], (3, 64, 384)), "conv1_b": b(ks[11], 64),
        "up2_w":  w(ks[12], (4, 64)),       "up2_b":  b(ks[13], 1),
    }


if __name__ == "__main__":
    key = jax.random.PRNGKey(0)
    pkey, xkey = jax.random.split(key)
    params = init_params(pkey)

    # small shapes: batch=2, channels=3 (RGB), spatial=16x16
    x = jax.random.normal(xkey, (2, 3, 16, 16), dtype=jnp.float32)

    y = jax.jit(unet_forward)(x, params)
    y = jax.block_until_ready(y)

    assert y.shape == (2, 1, 16, 16), y.shape
    assert bool(jnp.all(jnp.isfinite(y)))
    # sigmoid output range; small slack for pl.reciprocal(approx=True)
    assert bool(jnp.all((y >= 0.0) & (y <= 1.0 + 1e-2)))
    print("KERNEL_OK")
</pallas_src>

<mosaic_0001>
module attributes {stable_mosaic.version = 11 : i64} {
  func.func @_unet_kernel(%arg0: i32, %arg1: memref<1x3x256xf32, #tpu.memory_space<vmem>>, %arg2: memref<3x64x9xbf16, #tpu.memory_space<vmem>>, %arg3: memref<64x1xf32, #tpu.memory_space<vmem>>, %arg4: memref<3x64x192xbf16, #tpu.memory_space<vmem>>, %arg5: memref<64x1xf32, #tpu.memory_space<vmem>>, %arg6: memref<3x128x192xbf16, #tpu.memory_space<vmem>>, %arg7: memref<128x1xf32, #tpu.memory_space<vmem>>, %arg8: memref<3x128x384xbf16, #tpu.memory_space<vmem>>, %arg9: memref<128x1xf32, #tpu.memory_space<vmem>>, %arg10: memref<256x128xbf16, #tpu.memory_space<vmem>>, %arg11: memref<64x1xf32, #tpu.memory_space<vmem>>, %arg12: memref<3x64x384xbf16, #tpu.memory_space<vmem>>, %arg13: memref<64x1xf32, #tpu.memory_space<vmem>>, %arg14: memref<4x64xbf16, #tpu.memory_space<vmem>>, %arg15: memref<1x1xf32, #tpu.memory_space<vmem>>, %arg16: memref<8x256xf32, #tpu.memory_space<vmem>>, %arg17: memref<8x64xf32, #tpu.memory_space<vmem>>, %arg18: memref<256x64xbf16, #tpu.memory_space<vmem>>, %arg19: memref<64x16xbf16, #tpu.memory_space<vmem>>, %arg20: memref<4x16x64xbf16, #tpu.memory_space<vmem>>, %arg21: memref<4x64x256xbf16, #tpu.memory_space<vmem>>, %arg22: memref<1x1x256xf32, #tpu.memory_space<vmem>>) attributes {dimension_semantics = [#tpu.dimension_semantics<parallel>], iteration_bounds = array<i64: 2>, scalar_prefetch = 0 : i64, scratch_operands = 0 : i64, tpu.core_type = #tpu.core_type<tc>, window_params = [{transform_indices = @transform_0, window_bounds = array<i64: 1, 3, 256>}, {pipeline_mode = #tpu.pipeline_mode<synchronous>, transform_indices = @transform_1, window_bounds = array<i64: 3, 64, 9>}, {pipeline_mode = #tpu.pipeline_mode<synchronous>, transform_indices = @transform_2, window_bounds = array<i64: 64, 1>}, {pipeline_mode = #tpu.pipeline_mode<synchronous>, transform_indices = @transform_3, window_bounds = array<i64: 3, 64, 192>}, {pipeline_mode = #tpu.pipeline_mode<synchronous>, transform_indices = @transform_4, window_bounds = array<i64: 64, 1>}, {pipeline_mode = #tpu.pipeline_mode<synchronous>, transform_indices = @transform_5, window_bounds = array<i64: 3, 128, 192>}, {pipeline_mode = #tpu.pipeline_mode<synchronous>, transform_indices = @transform_6, window_bounds = array<i64: 128, 1>}, {pipeline_mode = #tpu.pipeline_mode<synchronous>, transform_indices = @transform_7, window_bounds = array<i64: 3, 128, 384>}, {pipeline_mode = #tpu.pipeline_mode<synchronous>, transform_indices = @transform_8, window_bounds = array<i64: 128, 1>}, {pipeline_mode = #tpu.pipeline_mode<synchronous>, transform_indices = @transform_9, window_bounds = array<i64: 256, 128>}, {pipeline_mode = #tpu.pipeline_mode<synchronous>, transform_indices = @transform_10, window_bounds = array<i64: 64, 1>}, {pipeline_mode = #tpu.pipeline_mode<synchronous>, transform_indices = @transform_11, window_bounds = array<i64: 3, 64, 384>}, {pipeline_mode = #tpu.pipeline_mode<synchronous>, transform_indices = @transform_12, window_bounds = array<i64: 64, 1>}, {pipeline_mode = #tpu.pipeline_mode<synchronous>, transform_indices = @transform_13, window_bounds = array<i64: 4, 64>}, {pipeline_mode = #tpu.pipeline_mode<synchronous>, transform_indices = @transform_14, window_bounds = array<i64: 1, 1>}, {pipeline_mode = #tpu.pipeline_mode<synchronous>, transform_indices = @transform_15, window_bounds = array<i64: 8, 256>}, {pipeline_mode = #tpu.pipeline_mode<synchronous>, transform_indices = @transform_16, window_bounds = array<i64: 8, 64>}, {pipeline_mode = #tpu.pipeline_mode<synchronous>, transform_indices = @transform_17, window_bounds = array<i64: 256, 64>}, {pipeline_mode = #tpu.pipeline_mode<synchronous>, transform_indices = @transform_18, window_bounds = array<i64: 64, 16>}, {pipeline_mode = #tpu.pipeline_mode<synchronous>, transform_indices = @transform_19, window_bounds = array<i64: 4, 16, 64>}, {pipeline_mode = #tpu.pipeline_mode<synchronous>, transform_indices = @transform_20, window_bounds = array<i64: 4, 64, 256>}, {transform_indices = @transform_21, window_bounds = array<i64: 1, 1, 256>}]} {
    %c0 = arith.constant 0 : index
    %c0_0 = arith.constant 0 : index
    %0 = vector.load %arg16[%c0, %c0_0] : memref<8x256xf32, #tpu.memory_space<vmem>>, vector<8x256xf32>
    %c0_1 = arith.constant 0 : index
    %c0_2 = arith.constant 0 : index
    %1 = vector.load %arg17[%c0_1, %c0_2] : memref<8x64xf32, #tpu.memory_space<vmem>>, vector<8x64xf32>
    %c0_3 = arith.constant 0 : index
    %c0_4 = arith.constant 0 : index
    %c0_5 = arith.constant 0 : index
    %2 = vector.load %arg1[%c0_3, %c0_4, %c0_5] : memref<1x3x256xf32, #tpu.memory_space<vmem>>, vector<1x3x256xf32>
    %3 = vector.shape_cast %2 : vector<1x3x256xf32> to vector<3x256xf32>
    %c17_i32 = arith.constant 17 : i32
    %4 = tpu.dynamic_rotate %3 by %c17_i32 dim 1 : vector<3x256xf32>, i32 -> vector<3x256xf32>
    %5 = vector.extract_strided_slice %0 {offsets = [0, 0], sizes = [1, 256], strides = [1, 1]} : vector<8x256xf32> to vector<1x256xf32>
    %6 = vector.broadcast %5 : vector<1x256xf32> to vector<3x256xf32>
    %7 = arith.mulf %4, %6 : vector<3x256xf32>
    %c16_i32 = arith.constant 16 : i32
    %8 = tpu.dynamic_rotate %3 by %c16_i32 dim 1 : vector<3x256xf32>, i32 -> vector<3x256xf32>
    %9 = vector.extract_strided_slice %0 {offsets = [1, 0], sizes = [1, 256], strides = [1, 1]} : vector<8x256xf32> to vector<1x256xf32>
    %10 = vector.broadcast %9 : vector<1x256xf32> to vector<3x256xf32>
    %11 = arith.mulf %8, %10 : vector<3x256xf32>
    %c15_i32 = arith.constant 15 : i32
    %12 = tpu.dynamic_rotate %3 by %c15_i32 dim 1 : vector<3x256xf32>, i32 -> vector<3x256xf32>
    %13 = vector.extract_strided_slice %0 {offsets = [2, 0], sizes = [1, 256], strides = [1, 1]} : vector<8x256xf32> to vector<1x256xf32>
    %14 = vector.broadcast %13 : vector<1x256xf32> to vector<3x256xf32>
    %15 = arith.mulf %12, %14 : vector<3x256xf32>
    %16 = tpu.concatenate %7, %11, %15 in 0 : vector<3x256xf32>, vector<3x256xf32>, vector<3x256xf32> -> vector<9x256xf32>
    %17 = arith.truncf %16 : vector<9x256xf32> to vector<9x256xbf16>
    %c0_6 = arith.constant 0 : index
    %c0_7 = arith.constant 0 : index
    %c0_8 = arith.constant 0 : index
    %18 = vector.load %arg2[%c0_6, %c0_7, %c0_8] : memref<3x64x9xbf16, #tpu.memory_space<vmem>>, vector<1x64x9xbf16>
    %19 = vector.shape_cast %18 : vector<1x64x9xbf16> to vector<64x9xbf16>
    %cst = arith.constant dense<0.000000e+00> : vector<64x256xf32>
    %20 = tpu.matmul %19, %17, %cst {dimension_numbers = #tpu.dot_dimension_numbers<[1], [0], [0], [1], [0, 0, 1, 1], [], []>} : vector<64x9xbf16>, vector<9x256xbf16>, vector<64x256xf32> -> vector<64x256xf32>
    %c1_i32 = arith.constant 1 : i32
    %21 = tpu.dynamic_rotate %3 by %c1_i32 dim 1 : vector<3x256xf32>, i32 -> vector<3x256xf32>
    %22 = vector.extract_strided_slice %0 {offsets = [3, 0], sizes = [1, 256], strides = [1, 1]} : vector<8x256xf32> to vector<1x256xf32>
    %23 = vector.broadcast %22 : vector<1x256xf32> to vector<3x256xf32>
    %24 = arith.mulf %21, %23 : vector<3x256xf32>
    %c255_i32 = arith.constant 255 : i32
    %25 = tpu.dynamic_rotate %3 by %c255_i32 dim 1 : vector<3x256xf32>, i32 -> vector<3x256xf32>
    %26 = vector.extract_strided_slice %0 {offsets = [4, 0], sizes = [1, 256], strides = [1, 1]} : vector<8x256xf32> to vector<1x256xf32>
    %27 = vector.broadcast %26 : vector<1x256xf32> to vector<3x256xf32>
    %28 = arith.mulf %25, %27 : vector<3x256xf32>
    %29 = tpu.concatenate %24, %3, %28 in 0 : vector<3x256xf32>, vector<3x256xf32>, vector<3x256xf32> -> vector<9x256xf32>
    %30 = arith.truncf %29 : vector<9x256xf32> to vector<9x256xbf16>
    %c1 = arith.constant 1 : index
    %c0_9 = arith.constant 0 : index
    %c0_10 = arith.constant 0 : index
    %31 = vector.load %arg2[%c1, %c0_9, %c0_10] : memref<3x64x9xbf16, #tpu.memory_space<vmem>>, vector<1x64x9xbf16>
    %32 = vector.shape_cast %31 : vector<1x64x9xbf16> to vector<64x9xbf16>
    %cst_11 = arith.constant dense<0.000000e+00> : vector<64x256xf32>
    %33 = tpu.matmul %32, %30, %cst_11 {dimension_numbers = #tpu.dot_dimension_numbers<[1], [0], [0], [1], [0, 0, 1, 1], [], []>} : vector<64x9xbf16>, vector<9x256xbf16>, vector<64x256xf32> -> vector<64x256xf32>
    %34 = arith.addf %20, %33 : vector<64x256xf32>
    %c241_i32 = arith.constant 241 : i32
    %35 = tpu.dynamic_rotate %3 by %c241_i32 dim 1 : vector<3x256xf32>, i32 -> vector<3x256xf32>
    %36 = vector.extract_strided_slice %0 {offsets = [5, 0], sizes = [1, 256], strides = [1, 1]} : vector<8x256xf32> to vector<1x256xf32>
    %37 = vector.broadcast %36 : vector<1x256xf32> to vector<3x256xf32>
    %38 = arith.mulf %35, %37 : vector<3x256xf32>
    %c240_i32 = arith.constant 240 : i32
    %39 = tpu.dynamic_rotate %3 by %c240_i32 dim 1 : vector<3x256xf32>, i32 -> vector<3x256xf32>
    %40 = vector.extract_strided_slice %0 {offsets = [6, 0], sizes = [1, 256], strides = [1, 1]} : vector<8x256xf32> to vector<1x256xf32>
    %41 = vector.broadcast %40 : vector<1x256xf32> to vector<3x256xf32>
    %42 = arith.mulf %39, %41 : vector<3x256xf32>
    %c239_i32 = arith.constant 239 : i32
    %43 = tpu.dynamic_rotate %3 by %c239_i32 dim 1 : vector<3x256xf32>, i32 -> vector<3x256xf32>
    %44 = vector.extract_strided_slice %0 {offsets = [7, 0], sizes = [1, 256], strides = [1, 1]} : vector<8x256xf32> to vector<1x256xf32>
    %45 = vector.broadcast %44 : vector<1x256xf32> to vector<3x256xf32>
    %46 = arith.mulf %43, %45 : vector<3x256xf32>
    %47 = tpu.concatenate %38, %42, %46 in 0 : vector<3x256xf32>, vector<3x256xf32>, vector<3x256xf32> -> vector<9x256xf32>
    %48 = arith.truncf %47 : vector<9x256xf32> to vector<9x256xbf16>
    %c2 = arith.constant 2 : index
    %c0_12 = arith.constant 0 : index
    %c0_13 = arith.constant 0 : index
    %49 = vector.load %arg2[%c2, %c0_12, %c0_13] : memref<3x64x9xbf16, #tpu.memory_space<vmem>>, vector<1x64x9xbf16>
    %50 = vector.shape_cast %49 : vector<1x64x9xbf16> to vector<64x9xbf16>
    %cst_14 = arith.constant dense<0.000000e+00> : vector<64x256xf32>
    %51 = tpu.matmul %50, %48, %cst_14 {dimension_numbers = #tpu.dot_dimension_numbers<[1], [0], [0], [1], [0, 0, 1, 1], [], []>} : vector<64x9xbf16>, vector<9x256xbf16>, vector<64x256xf32> -> vector<64x256xf32>
    %52 = arith.addf %34, %51 : vector<64x256xf32>
    %c0_15 = arith.constant 0 : index
    %c0_16 = arith.constant 0 : index
    %53 = vector.load %arg3[%c0_15, %c0_16] : memref<64x1xf32, #tpu.memory_space<vmem>>, vector<64x1xf32>
    %54 = vector.broadcast %53 : vector<64x1xf32> to vector<64x256xf32>
    %55 = arith.addf %52, %54 : vector<64x256xf32>
    %cst_17 = arith.constant 0.000000e+00 : f32
    %56 = vector.broadcast %cst_17 : f32 to vector<64x256xf32>
    %57 = arith.maximumf %55, %56 : vector<64x256xf32>
    %c17_i32_18 = arith.constant 17 : i32
    %58 = tpu.dynamic_rotate %57 by %c17_i32_18 dim 1 : vector<64x256xf32>, i32 -> vector<64x256xf32>
    %59 = vector.extract_strided_slice %0 {offsets = [0, 0], sizes = [1, 256], strides = [1, 1]} : vector<8x256xf32> to vector<1x256xf32>
    %60 = vector.broadcast %59 : vector<1x256xf32> to vector<64x256xf32>
    %61 = arith.mulf %58, %60 : vector<64x256xf32>
    %62 = arith.truncf %61 : vector<64x256xf32> to vector<64x256xbf16>
    %c16_i32_19 = arith.constant 16 : i32
    %63 = tpu.dynamic_rotate %57 by %c16_i32_19 dim 1 : vector<64x256xf32>, i32 -> vector<64x256xf32>
    %64 = vector.extract_strided_slice %0 {offsets = [1, 0], sizes = [1, 256], strides = [1, 1]} : vector<8x256xf32> to vector<1x256xf32>
    %65 = vector.broadcast %64 : vector<1x256xf32> to vector<64x256xf32>
    %66 = arith.mulf %63, %65 : vector<64x256xf32>
    %67 = arith.truncf %66 : vector<64x256xf32> to vector<64x256xbf16>
    %c15_i32_20 = arith.constant 15 : i32
    %68 = tpu.dynamic_rotate %57 by %c15_i32_20 dim 1 : vector<64x256xf32>, i32 -> vector<64x256xf32>
    %69 = vector.extract_strided_slice %0 {offsets = [2, 0], sizes = [1, 256], strides = [1, 1]} : vector<8x256xf32> to vector<1x256xf32>
    %70 = vector.broadcast %69 : vector<1x256xf32> to vector<64x256xf32>
    %71 = arith.mulf %68, %70 : vector<64x256xf32>
    %72 = arith.truncf %71 : vector<64x256xf32> to vector<64x256xbf16>
    %73 = tpu.concatenate %62, %67, %72 in 0 : vector<64x256xbf16>, vector<64x256xbf16>, vector<64x256xbf16> -> vector<192x256xbf16>
    %c0_21 = arith.constant 0 : index
    %c0_22 = arith.constant 0 : index
    %c0_23 = arith.constant 0 : index
    %74 = vector.load %arg4[%c0_21, %c0_22, %c0_23] : memref<3x64x192xbf16, #tpu.memory_space<vmem>>, vector<1x64x192xbf16>
    %75 = vector.shape_cast %74 : vector<1x64x192xbf16> to vector<64x192xbf16>
    %cst_24 = arith.constant dense<0.000000e+00> : vector<64x256xf32>
    %76 = tpu.matmul %75, %73, %cst_24 {dimension_numbers = #tpu.dot_dimension_numbers<[1], [0], [0], [1], [0, 0, 1, 1], [], []>} : vector<64x192xbf16>, vector<192x256xbf16>, vector<64x256xf32> -> vector<64x256xf32>
    %c1_i32_25 = arith.constant 1 : i32
    %77 = tpu.dynamic_rotate %57 by %c1_i32_25 dim 1 : vector<64x256xf32>, i32 -> vector<64x256xf32>
    %78 = vector.extract_strided_slice %0 {offsets = [3, 0], sizes = [1, 256], strides = [1, 1]} : vector<8x256xf32> to vector<1x256xf32>
    %79 = vector.broadcast %78 : vector<1x256xf32> to vector<64x256xf32>
    %80 = arith.mulf %77, %79 : vector<64x256xf32>
    %81 = arith.truncf %80 : vector<64x256xf32> to vector<64x256xbf16>
    %82 = arith.truncf %57 : vector<64x256xf32> to vector<64x256xbf16>
    %c255_i32_26 = arith.constant 255 : i32
    %83 = tpu.dynamic_rotate %57 by %c255_i32_26 dim 1 : vector<64x256xf32>, i32 -> vector<64x256xf32>
    %84 = vector.extract_strided_slice %0 {offsets = [4, 0], sizes = [1, 256], strides = [1, 1]} : vector<8x256xf32> to vector<1x256xf32>
    %85 = vector.broadcast %84 : vector<1x256xf32> to vector<64x256xf32>
    %86 = arith.mulf %83, %85 : vector<64x256xf32>
    %87 = arith.truncf %86 : vector<64x256xf32> to vector<64x256xbf16>
    %88 = tpu.concatenate %81, %82, %87 in 0 : vector<64x256xbf16>, vector<64x256xbf16>, vector<64x256xbf16> -> vector<192x256xbf16>
    %c1_27 = arith.constant 1 : index
    %c0_28 = arith.constant 0 : index
    %c0_29 = arith.constant 0 : index
    %89 = vector.load %arg4[%c1_27, %c0_28, %c0_29] : memref<3x64x192xbf16, #tpu.memory_space<vmem>>, vector<1x64x192xbf16>
    %90 = vector.shape_cast %89 : vector<1x64x192xbf16> to vector<64x192xbf16>
    %cst_30 = arith.constant dense<0.000000e+00> : vector<64x256xf32>
    %91 = tpu.matmul %90, %88, %cst_30 {dimension_numbers = #tpu.dot_dimension_numbers<[1], [0], [0], [1], [0, 0, 1, 1], [], []>} : vector<64x192xbf16>, vector<192x256xbf16>, vector<64x256xf32> -> vector<64x256xf32>
    %92 = arith.addf %76, %91 : vector<64x256xf32>
    %c241_i32_31 = arith.constant 241 : i32
    %93 = tpu.dynamic_rotate %57 by %c241_i32_31 dim 1 : vector<64x256xf32>, i32 -> vector<64x256xf32>
    %94 = vector.extract_strided_slice %0 {offsets = [5, 0], sizes = [1, 256], strides = [1, 1]} : vector<8x256xf32> to vector<1x256xf32>
    %95 = vector.broadcast %94 : vector<1x256xf32> to vector<64x256xf32>
    %96 = arith.mulf %93, %95 : vector<64x256xf32>
    %97 = arith.truncf %96 : vector<64x256xf32> to vector<64x256xbf16>
    %c240_i32_32 = arith.constant 240 : i32
    %98 = tpu.dynamic_rotate %57 by %c240_i32_32 dim 1 : vector<64x256xf32>, i32 -> vector<64x256xf32>
    %99 = vector.extract_strided_slice %0 {offsets = [6, 0], sizes = [1, 256], strides = [1, 1]} : vector<8x256xf32> to vector<1x256xf32>
    %100 = vector.broadcast %99 : vector<1x256xf32> to vector<64x256xf32>
    %101 = arith.mulf %98, %100 : vector<64x256xf32>
    %102 = arith.truncf %101 : vector<64x256xf32> to vector<64x256xbf16>
    %c239_i32_33 = arith.constant 239 : i32
    %103 = tpu.dynamic_rotate %57 by %c239_i32_33 dim 1 : vector<64x256xf32>, i32 -> vector<64x256xf32>
    %104 = vector.extract_strided_slice %0 {offsets = [7, 0], sizes = [1, 256], strides = [1, 1]} : vector<8x256xf32> to vector<1x256xf32>
    %105 = vector.broadcast %104 : vector<1x256xf32> to vector<64x256xf32>
    %106 = arith.mulf %103, %105 : vector<64x256xf32>
    %107 = arith.truncf %106 : vector<64x256xf32> to vector<64x256xbf16>
    %108 = tpu.concatenate %97, %102, %107 in 0 : vector<64x256xbf16>, vector<64x256xbf16>, vector<64x256xbf16> -> vector<192x256xbf16>
    %c2_34 = arith.constant 2 : index
    %c0_35 = arith.constant 0 : index
    %c0_36 = arith.constant 0 : index
    %109 = vector.load %arg4[%c2_34, %c0_35, %c0_36] : memref<3x64x192xbf16, #tpu.memory_space<vmem>>, vector<1x64x192xbf16>
    %110 = vector.shape_cast %109 : vector<1x64x192xbf16> to vector<64x192xbf16>
    %cst_37 = arith.constant dense<0.000000e+00> : vector<64x256xf32>
    %111 = tpu.matmul %110, %108, %cst_37 {dimension_numbers = #tpu.dot_dimension_numbers<[1], [0], [0], [1], [0, 0, 1, 1], [], []>} : vector<64x192xbf16>, vector<192x256xbf16>, vector<64x256xf32> -> vector<64x256xf32>
    %112 = arith.addf %92, %111 : vector<64x256xf32>
    %c0_38 = arith.constant 0 : index
    %c0_39 = arith.constant 0 : index
    %113 = vector.load %arg5[%c0_38, %c0_39] : memref<64x1xf32, #tpu.memory_space<vmem>>, vector<64x1xf32>
    %114 = vector.broadcast %113 : vector<64x1xf32> to vector<64x256xf32>
    %115 = arith.addf %112, %114 : vector<64x256xf32>
    %cst_40 = arith.constant 0.000000e+00 : f32
    %116 = vector.broadcast %cst_40 : f32 to vector<64x256xf32>
    %117 = arith.maximumf %115, %116 : vector<64x256xf32>
    %c255_i32_41 = arith.constant 255 : i32
    %118 = tpu.dynamic_rotate %117 by %c255_i32_41 dim 1 : vector<64x256xf32>, i32 -> vector<64x256xf32>
    %119 = arith.maximumf %117, %118 : vector<64x256xf32>
    %c240_i32_42 = arith.constant 240 : i32
    %120 = tpu.dynamic_rotate %119 by %c240_i32_42 dim 1 : vector<64x256xf32>, i32 -> vector<64x256xf32>
    %121 = arith.maximumf %119, %120 : vector<64x256xf32>
    %122 = arith.truncf %121 : vector<64x256xf32> to vector<64x256xbf16>
    %c0_43 = arith.constant 0 : index
    %c0_44 = arith.constant 0 : index
    %123 = vector.load %arg18[%c0_43, %c0_44] : memref<256x64xbf16, #tpu.memory_space<vmem>>, vector<256x64xbf16>
    %cst_45 = arith.constant dense<0.000000e+00> : vector<64x64xf32>
    %124 = tpu.matmul %122, %123, %cst_45 {dimension_numbers = #tpu.dot_dimension_numbers<[1], [0], [0], [1], [0, 0, 1, 1], [], []>} : vector<64x256xbf16>, vector<256x64xbf16>, vector<64x64xf32> -> vector<64x64xf32>
    %c9_i32 = arith.constant 9 : i32
    %125 = tpu.dynamic_rotate %124 by %c9_i32 dim 1 : vector<64x64xf32>, i32 -> vector<64x64xf32>
    %126 = vector.extract_strided_slice %1 {offsets = [0, 0], sizes = [1, 64], strides = [1, 1]} : vector<8x64xf32> to vector<1x64xf32>
    %127 = vector.broadcast %126 : vector<1x64xf32> to vector<64x64xf32>
    %128 = arith.mulf %125, %127 : vector<64x64xf32>
    %129 = arith.truncf %128 : vector<64x64xf32> to vector<64x64xbf16>
    %c8_i32 = arith.constant 8 : i32
    %130 = tpu.dynamic_rotate %124 by %c8_i32 dim 1 : vector<64x64xf32>, i32 -> vector<64x64xf32>
    %131 = vector.extract_strided_slice %1 {offsets = [1, 0], sizes = [1, 64], strides = [1, 1]} : vector<8x64xf32> to vector<1x64xf32>
    %132 = vector.broadcast %131 : vector<1x64xf32> to vector<64x64xf32>
    %133 = arith.mulf %130, %132 : vector<64x64xf32>
    %134 = arith.truncf %133 : vector<64x64xf32> to vector<64x64xbf16>
    %c7_i32 = arith.constant 7 : i32
    %135 = tpu.dynamic_rotate %124 by %c7_i32 dim 1 : vector<64x64xf32>, i32 -> vector<64x64xf32>
    %136 = vector.extract_strided_slice %1 {offsets = [2, 0], sizes = [1, 64], strides = [1, 1]} : vector<8x64xf32> to vector<1x64xf32>
    %137 = vector.broadcast %136 : vector<1x64xf32> to vector<64x64xf32>
    %138 = arith.mulf %135, %137 : vector<64x64xf32>
    %139 = arith.truncf %138 : vector<64x64xf32> to vector<64x64xbf16>
    %140 = tpu.concatenate %129, %134, %139 in 0 : vector<64x64xbf16>, vector<64x64xbf16>, vector<64x64xbf16> -> vector<192x64xbf16>
    %c0_46 = arith.constant 0 : index
    %c0_47 = arith.constant 0 : index
    %c0_48 = arith.constant 0 : index
    %141 = vector.load %arg6[%c0_46, %c0_47, %c0_48] : memref<3x128x192xbf16, #tpu.memory_space<vmem>>, vector<1x128x192xbf16>
    %142 = vector.shape_cast %141 : vector<1x128x192xbf16> to vector<128x192xbf16>
    %cst_49 = arith.constant dense<0.000000e+00> : vector<128x64xf32>
    %143 = tpu.matmul %142, %140, %cst_49 {dimension_numbers = #tpu.dot_dimension_numbers<[1], [0], [0], [1], [0, 0, 1, 1], [], []>} : vector<128x192xbf16>, vector<192x64xbf16>, vector<128x64xf32> -> vector<128x64xf32>
    %c1_i32_50 = arith.constant 1 : i32
    %144 = tpu.dynamic_rotate %124 by %c1_i32_50 dim 1 : vector<64x64xf32>, i32 -> vector<64x64xf32>
    %145 = vector.extract_strided_slice %1 {offsets = [3, 0], sizes = [1, 64], strides = [1, 1]} : vector<8x64xf32> to vector<1x64xf32>
    %146 = vector.broadcast %145 : vector<1x64xf32> to vector<64x64xf32>
    %147 = arith.mulf %144, %146 : vector<64x64xf32>
    %148 = arith.truncf %147 : vector<64x64xf32> to vector<64x64xbf16>
    %149 = arith.truncf %124 : vector<64x64xf32> to vector<64x64xbf16>
    %c63_i32 = arith.constant 63 : i32
    %150 = tpu.dynamic_rotate %124 by %c63_i32 dim 1 : vector<64x64xf32>, i32 -> vector<64x64xf32>
    %151 = vector.extract_strided_slice %1 {offsets = [4, 0], sizes = [1, 64], strides = [1, 1]} : vector<8x64xf32> to vector<1x64xf32>
    %152 = vector.broadcast %151 : vector<1x64xf32> to vector<64x64xf32>
    %153 = arith.mulf %150, %152 : vector<64x64xf32>
    %154 = arith.truncf %153 : vector<64x64xf32> to vector<64x64xbf16>
    %155 = tpu.concatenate %148, %149, %154 in 0 : vector<64x64xbf16>, vector<64x64xbf16>, vector<64x64xbf16> -> vector<192x64xbf16>
    %c1_51 = arith.constant 1 : index
    %c0_52 = arith.constant 0 : index
    %c0_53 = arith.constant 0 : index
    %156 = vector.load %arg6[%c1_51, %c0_52, %c0_53] : memref<3x128x192xbf16, #tpu.memory_space<vmem>>, vector<1x128x192xbf16>
    %157 = vector.shape_cast %156 : vector<1x128x192xbf16> to vector<128x192xbf16>
    %cst_54 = arith.constant dense<0.000000e+00> : vector<128x64xf32>
    %158 = tpu.matmul %157, %155, %cst_54 {dimension_numbers = #tpu.dot_dimension_numbers<[1], [0], [0], [1], [0, 0, 1, 1], [], []>} : vector<128x192xbf16>, vector<192x64xbf16>, vector<128x64xf32> -> vector<128x64xf32>
    %159 = arith.addf %143, %158 : vector<128x64xf32>
    %c57_i32 = arith.constant 57 : i32
    %160 = tpu.dynamic_rotate %124 by %c57_i32 dim 1 : vector<64x64xf32>, i32 -> vector<64x64xf32>
    %161 = vector.extract_strided_slice %1 {offsets = [5, 0], sizes = [1, 64], strides = [1, 1]} : vector<8x64xf32> to vector<1x64xf32>
    %162 = vector.broadcast %161 : vector<1x64xf32> to vector<64x64xf32>
    %163 = arith.mulf %160, %162 : vector<64x64xf32>
    %164 = arith.truncf %163 : vector<64x64xf32> to vector<64x64xbf16>
    %c56_i32 = arith.constant 56 : i32
    %165 = tpu.dynamic_rotate %124 by %c56_i32 dim 1 : vector<64x64xf32>, i32 -> vector<64x64xf32>
    %166 = vector.extract_strided_slice %1 {offsets = [6, 0], sizes = [1, 64], strides = [1, 1]} : vector<8x64xf32> to vector<1x64xf32>
    %167 = vector.broadcast %166 : vector<1x64xf32> to vector<64x64xf32>
    %168 = arith.mulf %165, %167 : vector<64x64xf32>
    %169 = arith.truncf %168 : vector<64x64xf32> to vector<64x64xbf16>
    %c55_i32 = arith.constant 55 : i32
    %170 = tpu.dynamic_rotate %124 by %c55_i32 dim 1 : vector<64x64xf32>, i32 -> vector<64x64xf32>
    %171 = vector.extract_strided_slice %1 {offsets = [7, 0], sizes = [1, 64], strides = [1, 1]} : vector<8x64xf32> to vector<1x64xf32>
    %172 = vector.broadcast %171 : vector<1x64xf32> to vector<64x64xf32>
    %173 = arith.mulf %170, %172 : vector<64x64xf32>
    %174 = arith.truncf %173 : vector<64x64xf32> to vector<64x64xbf16>
    %175 = tpu.concatenate %164, %169, %174 in 0 : vector<64x64xbf16>, vector<64x64xbf16>, vector<64x64xbf16> -> vector<192x64xbf16>
    %c2_55 = arith.constant 2 : index
    %c0_56 = arith.constant 0 : index
    %c0_57 = arith.constant 0 : index
    %176 = vector.load %arg6[%c2_55, %c0_56, %c0_57] : memref<3x128x192xbf16, #tpu.memory_space<vmem>>, vector<1x128x192xbf16>
    %177 = vector.shape_cast %176 : vector<1x128x192xbf16> to vector<128x192xbf16>
    %cst_58 = arith.constant dense<0.000000e+00> : vector<128x64xf32>
    %178 = tpu.matmul %177, %175, %cst_58 {dimension_numbers = #tpu.dot_dimension_numbers<[1], [0], [0], [1], [0, 0, 1, 1], [], []>} : vector<128x192xbf16>, vector<192x64xbf16>, vector<128x64xf32> -> vector<128x64xf32>
    %179 = arith.addf %159, %178 : vector<128x64xf32>
    %c0_59 = arith.constant 0 : index
    %c0_60 = arith.constant 0 : index
    %180 = vector.load %arg7[%c0_59, %c0_60] : memref<128x1xf32, #tpu.memory_space<vmem>>, vector<128x1xf32>
    %181 = vector.broadcast %180 : vector<128x1xf32> to vector<128x64xf32>
    %182 = arith.addf %179, %181 : vector<128x64xf32>
    %cst_61 = arith.constant 0.000000e+00 : f32
    %183 = vector.broadcast %cst_61 : f32 to vector<128x64xf32>
    %184 = arith.maximumf %182, %183 : vector<128x64xf32>
    %c9_i32_62 = arith.constant 9 : i32
    %185 = tpu.dynamic_rotate %184 by %c9_i32_62 dim 1 : vector<128x64xf32>, i32 -> vector<128x64xf32>
    %186 = vector.extract_strided_slice %1 {offsets = [0, 0], sizes = [1, 64], strides = [1, 1]} : vector<8x64xf32> to vector<1x64xf32>
    %187 = vector.broadcast %186 : vector<1x64xf32> to vector<128x64xf32>
    %188 = arith.mulf %185, %187 : vector<128x64xf32>
    %189 = arith.truncf %188 : vector<128x64xf32> to vector<128x64xbf16>
    %c8_i32_63 = arith.constant 8 : i32
    %190 = tpu.dynamic_rotate %184 by %c8_i32_63 dim 1 : vector<128x64xf32>, i32 -> vector<128x64xf32>
    %191 = vector.extract_strided_slice %1 {offsets = [1, 0], sizes = [1, 64], strides = [1, 1]} : vector<8x64xf32> to vector<1x64xf32>
    %192 = vector.broadcast %191 : vector<1x64xf32> to vector<128x64xf32>
    %193 = arith.mulf %190, %192 : vector<128x64xf32>
    %194 = arith.truncf %193 : vector<128x64xf32> to vector<128x64xbf16>
    %c7_i32_64 = arith.constant 7 : i32
    %195 = tpu.dynamic_rotate %184 by %c7_i32_64 dim 1 : vector<128x64xf32>, i32 -> vector<128x64xf32>
    %196 = vector.extract_strided_slice %1 {offsets = [2, 0], sizes = [1, 64], strides = [1, 1]} : vector<8x64xf32> to vector<1x64xf32>
    %197 = vector.broadcast %196 : vector<1x64xf32> to vector<128x64xf32>
    %198 = arith.mulf %195, %197 : vector<128x64xf32>
    %199 = arith.truncf %198 : vector<128x64xf32> to vector<128x64xbf16>
    %200 = tpu.concatenate %189, %194, %199 in 0 : vector<128x64xbf16>, vector<128x64xbf16>, vector<128x64xbf16> -> vector<384x64xbf16>
    %c0_65 = arith.constant 0 : index
    %c0_66 = arith.constant 0 : index
    %c0_67 = arith.constant 0 : index
    %201 = vector.load %arg8[%c0_65, %c0_66, %c0_67] : memref<3x128x384xbf16, #tpu.memory_space<vmem>>, vector<1x128x384xbf16>
    %202 = vector.shape_cast %201 : vector<1x128x384xbf16> to vector<128x384xbf16>
    %cst_68 = arith.constant dense<0.000000e+00> : vector<128x64xf32>
    %203 = tpu.matmul %202, %200, %cst_68 {dimension_numbers = #tpu.dot_dimension_numbers<[1], [0], [0], [1], [0, 0, 1, 1], [], []>} : vector<128x384xbf16>, vector<384x64xbf16>, vector<128x64xf32> -> vector<128x64xf32>
    %c1_i32_69 = arith.constant 1 : i32
    %204 = tpu.dynamic_rotate %184 by %c1_i32_69 dim 1 : vector<128x64xf32>, i32 -> vector<128x64xf32>
    %205 = vector.extract_strided_slice %1 {offsets = [3, 0], sizes = [1, 64], strides = [1, 1]} : vector<8x64xf32> to vector<1x64xf32>
    %206 = vector.broadcast %205 : vector<1x64xf32> to vector<128x64xf32>
    %207 = arith.mulf %204, %206 : vector<128x64xf32>
    %208 = arith.truncf %207 : vector<128x64xf32> to vector<128x64xbf16>
    %209 = arith.truncf %184 : vector<128x64xf32> to vector<128x64xbf16>
    %c63_i32_70 = arith.constant 63 : i32
    %210 = tpu.dynamic_rotate %184 by %c63_i32_70 dim 1 : vector<128x64xf32>, i32 -> vector<128x64xf32>
    %211 = vector.extract_strided_slice %1 {offsets = [4, 0], sizes = [1, 64], strides = [1, 1]} : vector<8x64xf32> to vector<1x64xf32>
    %212 = vector.broadcast %211 : vector<1x64xf32> to vector<128x64xf32>
    %213 = arith.mulf %210, %212 : vector<128x64xf32>
    %214 = arith.truncf %213 : vector<128x64xf32> to vector<128x64xbf16>
    %215 = tpu.concatenate %208, %209, %214 in 0 : vector<128x64xbf16>, vector<128x64xbf16>, vector<128x64xbf16> -> vector<384x64xbf16>
    %c1_71 = arith.constant 1 : index
    %c0_72 = arith.constant 0 : index
    %c0_73 = arith.constant 0 : index
    %216 = vector.load %arg8[%c1_71, %c0_72, %c0_73] : memref<3x128x384xbf16, #tpu.memory_space<vmem>>, vector<1x128x384xbf16>
    %217 = vector.shape_cast %216 : vector<1x128x384xbf16> to vector<128x384xbf16>
    %cst_74 = arith.constant dense<0.000000e+00> : vector<128x64xf32>
    %218 = tpu.matmul %217, %215, %cst_74 {dimension_numbers = #tpu.dot_dimension_numbers<[1], [0], [0], [1], [0, 0, 1, 1], [], []>} : vector<128x384xbf16>, vector<384x64xbf16>, vector<128x64xf32> -> vector<128x64xf32>
    %219 = arith.addf %203, %218 : vector<128x64xf32>
    %c57_i32_75 = arith.constant 57 : i32
    %220 = tpu.dynamic_rotate %184 by %c57_i32_75 dim 1 : vector<128x64xf32>, i32 -> vector<128x64xf32>
    %221 = vector.extract_strided_slice %1 {offsets = [5, 0], sizes = [1, 64], strides = [1, 1]} : vector<8x64xf32> to vector<1x64xf32>
    %222 = vector.broadcast %221 : vector<1x64xf32> to vector<128x64xf32>
    %223 = arith.mulf %220, %222 : vector<128x64xf32>
    %224 = arith.truncf %223 : vector<128x64xf32> to vector<128x64xbf16>
    %c56_i32_76 = arith.constant 56 : i32
    %225 = tpu.dynamic_rotate %184 by %c56_i32_76 dim 1 : vector<128x64xf32>, i32 -> vector<128x64xf32>
    %226 = vector.extract_strided_slice %1 {offsets = [6, 0], sizes = [1, 64], strides = [1, 1]} : vector<8x64xf32> to vector<1x64xf32>
    %227 = vector.broadcast %226 : vector<1x64xf32> to vector<128x64xf32>
    %228 = arith.mulf %225, %227 : vector<128x64xf32>
    %229 = arith.truncf %228 : vector<128x64xf32> to vector<128x64xbf16>
    %c55_i32_77 = arith.constant 55 : i32
    %230 = tpu.dynamic_rotate %184 by %c55_i32_77 dim 1 : vector<128x64xf32>, i32 -> vector<128x64xf32>
    %231 = vector.extract_strided_slice %1 {offsets = [7, 0], sizes = [1, 64], strides = [1, 1]} : vector<8x64xf32> to vector<1x64xf32>
    %232 = vector.broadcast %231 : vector<1x64xf32> to vector<128x64xf32>
    %233 = arith.mulf %230, %232 : vector<128x64xf32>
    %234 = arith.truncf %233 : vector<128x64xf32> to vector<128x64xbf16>
    %235 = tpu.concatenate %224, %229, %234 in 0 : vector<128x64xbf16>, vector<128x64xbf16>, vector<128x64xbf16> -> vector<384x64xbf16>
    %c2_78 = arith.constant 2 : index
    %c0_79 = arith.constant 0 : index
    %c0_80 = arith.constant 0 : index
    %236 = vector.load %arg8[%c2_78, %c0_79, %c0_80] : memref<3x128x384xbf16, #tpu.memory_space<vmem>>, vector<1x128x384xbf16>
    %237 = vector.shape_cast %236 : vector<1x128x384xbf16> to vector<128x384xbf16>
    %cst_81 = arith.constant dense<0.000000e+00> : vector<128x64xf32>
    %238 = tpu.matmul %237, %235, %cst_81 {dimension_numbers = #tpu.dot_dimension_numbers<[1], [0], [0], [1], [0, 0, 1, 1], [], []>} : vector<128x384xbf16>, vector<384x64xbf16>, vector<128x64xf32> -> vector<128x64xf32>
    %239 = arith.addf %219, %238 : vector<128x64xf32>
    %c0_82 = arith.constant 0 : index
    %c0_83 = arith.constant 0 : index
    %240 = vector.load %arg9[%c0_82, %c0_83] : memref<128x1xf32, #tpu.memory_space<vmem>>, vector<128x1xf32>
    %241 = vector.broadcast %240 : vector<128x1xf32> to vector<128x64xf32>
    %242 = arith.addf %239, %241 : vector<128x64xf32>
    %cst_84 = arith.constant 0.000000e+00 : f32
    %243 = vector.broadcast %cst_84 : f32 to vector<128x64xf32>
    %244 = arith.maximumf %242, %243 : vector<128x64xf32>
    %c63_i32_85 = arith.constant 63 : i32
    %245 = tpu.dynamic_rotate %244 by %c63_i32_85 dim 1 : vector<128x64xf32>, i32 -> vector<128x64xf32>
    %246 = arith.maximumf %244, %245 : vector<128x64xf32>
    %c56_i32_86 = arith.constant 56 : i32
    %247 = tpu.dynamic_rotate %246 by %c56_i32_86 dim 1 : vector<128x64xf32>, i32 -> vector<128x64xf32>
    %248 = arith.maximumf %246, %247 : vector<128x64xf32>
    %249 = arith.truncf %248 : vector<128x64xf32> to vector<128x64xbf16>
    %c0_87 = arith.constant 0 : index
    %c0_88 = arith.constant 0 : index
    %250 = vector.load %arg19[%c0_87, %c0_88] : memref<64x16xbf16, #tpu.memory_space<vmem>>, vector<64x16xbf16>
    %cst_89 = arith.constant dense<0.000000e+00> : vector<128x16xf32>
    %251 = tpu.matmul %249, %250, %cst_89 {dimension_numbers = #tpu.dot_dimension_numbers<[1], [0], [0], [1], [0, 0, 1, 1], [], []>} : vector<128x64xbf16>, vector<64x16xbf16>, vector<128x16xf32> -> vector<128x16xf32>
    %c0_90 = arith.constant 0 : index
    %c0_91 = arith.constant 0 : index
    %252 = vector.load %arg10[%c0_90, %c0_91] : memref<256x128xbf16, #tpu.memory_space<vmem>>, vector<256x128xbf16>
    %253 = arith.truncf %251 : vector<128x16xf32> to vector<128x16xbf16>
    %cst_92 = arith.constant dense<0.000000e+00> : vector<256x16xf32>
    %254 = tpu.matmul %252, %253, %cst_92 {dimension_numbers = #tpu.dot_dimension_numbers<[1], [0], [0], [1], [0, 0, 1, 1], [], []>} : vector<256x128xbf16>, vector<128x16xbf16>, vector<256x16xf32> -> vector<256x16xf32>
    %255 = vector.extract_strided_slice %254 {offsets = [0, 0], sizes = [64, 16], strides = [1, 1]} : vector<256x16xf32> to vector<64x16xf32>
    %256 = arith.truncf %255 : vector<64x16xf32> to vector<64x16xbf16>
    %c0_93 = arith.constant 0 : index
    %c0_94 = arith.constant 0 : index
    %c0_95 = arith.constant 0 : index
    %257 = vector.load %arg20[%c0_93, %c0_94, %c0_95] : memref<4x16x64xbf16, #tpu.memory_space<vmem>>, vector<1x16x64xbf16>
    %258 = vector.shape_cast %257 : vector<1x16x64xbf16> to vector<16x64xbf16>
    %cst_96 = arith.constant dense<0.000000e+00> : vector<64x64xf32>
    %259 = tpu.matmul %256, %258, %cst_96 {dimension_numbers = #tpu.dot_dimension_numbers<[1], [0], [0], [1], [0, 0, 1, 1], [], []>} : vector<64x16xbf16>, vector<16x64xbf16>, vector<64x64xf32> -> vector<64x64xf32>
    %260 = vector.extract_strided_slice %254 {offsets = [64, 0], sizes = [64, 16], strides = [1, 1]} : vector<256x16xf32> to vector<64x16xf32>
    %261 = arith.truncf %260 : vector<64x16xf32> to vector<64x16xbf16>
    %c1_97 = arith.constant 1 : index
    %c0_98 = arith.constant 0 : index
    %c0_99 = arith.constant 0 : index
    %262 = vector.load %arg20[%c1_97, %c0_98, %c0_99] : memref<4x16x64xbf16, #tpu.memory_space<vmem>>, vector<1x16x64xbf16>
    %263 = vector.shape_cast %262 : vector<1x16x64xbf16> to vector<16x64xbf16>
    %cst_100 = arith.constant dense<0.000000e+00> : vector<64x64xf32>
    %264 = tpu.matmul %261, %263, %cst_100 {dimension_numbers = #tpu.dot_dimension_numbers<[1], [0], [0], [1], [0, 0, 1, 1], [], []>} : vector<64x16xbf16>, vector<16x64xbf16>, vector<64x64xf32> -> vector<64x64xf32>
    %265 = arith.addf %259, %264 : vector<64x64xf32>
    %266 = vector.extract_strided_slice %254 {offsets = [128, 0], sizes = [64, 16], strides = [1, 1]} : vector<256x16xf32> to vector<64x16xf32>
    %267 = arith.truncf %266 : vector<64x16xf32> to vector<64x16xbf16>
    %c2_101 = arith.constant 2 : index
    %c0_102 = arith.constant 0 : index
    %c0_103 = arith.constant 0 : index
    %268 = vector.load %arg20[%c2_101, %c0_102, %c0_103] : memref<4x16x64xbf16, #tpu.memory_space<vmem>>, vector<1x16x64xbf16>
    %269 = vector.shape_cast %268 : vector<1x16x64xbf16> to vector<16x64xbf16>
    %cst_104 = arith.constant dense<0.000000e+00> : vector<64x64xf32>
    %270 = tpu.matmul %267, %269, %cst_104 {dimension_numbers = #tpu.dot_dimension_numbers<[1], [0], [0], [1], [0, 0, 1, 1], [], []>} : vector<64x16xbf16>, vector<16x64xbf16>, vector<64x64xf32> -> vector<64x64xf32>
    %271 = arith.addf %265, %270 : vector<64x64xf32>
    %272 = vector.extract_strided_slice %254 {offsets = [192, 0], sizes = [64, 16], strides = [1, 1]} : vector<256x16xf32> to vector<64x16xf32>
    %273 = arith.truncf %272 : vector<64x16xf32> to vector<64x16xbf16>
    %c3 = arith.constant 3 : index
    %c0_105 = arith.constant 0 : index
    %c0_106 = arith.constant 0 : index
    %274 = vector.load %arg20[%c3, %c0_105, %c0_106] : memref<4x16x64xbf16, #tpu.memory_space<vmem>>, vector<1x16x64xbf16>
    %275 = vector.shape_cast %274 : vector<1x16x64xbf16> to vector<16x64xbf16>
    %cst_107 = arith.constant dense<0.000000e+00> : vector<64x64xf32>
    %276 = tpu.matmul %273, %275, %cst_107 {dimension_numbers = #tpu.dot_dimension_numbers<[1], [0], [0], [1], [0, 0, 1, 1], [], []>} : vector<64x16xbf16>, vector<16x64xbf16>, vector<64x64xf32> -> vector<64x64xf32>
    %277 = arith.addf %271, %276 : vector<64x64xf32>
    %c0_108 = arith.constant 0 : index
    %c0_109 = arith.constant 0 : index
    %278 = vector.load %arg11[%c0_108, %c0_109] : memref<64x1xf32, #tpu.memory_space<vmem>>, vector<64x1xf32>
    %279 = vector.broadcast %278 : vector<64x1xf32> to vector<64x64xf32>
    %280 = arith.addf %277, %279 : vector<64x64xf32>
    %281 = tpu.concatenate %280, %124 in 0 : vector<64x64xf32>, vector<64x64xf32> -> vector<128x64xf32>
    %c9_i32_110 = arith.constant 9 : i32
    %282 = tpu.dynamic_rotate %281 by %c9_i32_110 dim 1 : vector<128x64xf32>, i32 -> vector<128x64xf32>
    %283 = vector.extract_strided_slice %1 {offsets = [0, 0], sizes = [1, 64], strides = [1, 1]} : vector<8x64xf32> to vector<1x64xf32>
    %284 = vector.broadcast %283 : vector<1x64xf32> to vector<128x64xf32>
    %285 = arith.mulf %282, %284 : vector<128x64xf32>
    %286 = arith.truncf %285 : vector<128x64xf32> to vector<128x64xbf16>
    %c8_i32_111 = arith.constant 8 : i32
    %287 = tpu.dynamic_rotate %281 by %c8_i32_111 dim 1 : vector<128x64xf32>, i32 -> vector<128x64xf32>
    %288 = vector.extract_strided_slice %1 {offsets = [1, 0], sizes = [1, 64], strides = [1, 1]} : vector<8x64xf32> to vector<1x64xf32>
    %289 = vector.broadcast %288 : vector<1x64xf32> to vector<128x64xf32>
    %290 = arith.mulf %287, %289 : vector<128x64xf32>
    %291 = arith.truncf %290 : vector<128x64xf32> to vector<128x64xbf16>
    %c7_i32_112 = arith.constant 7 : i32
    %292 = tpu.dynamic_rotate %281 by %c7_i32_112 dim 1 : vector<128x64xf32>, i32 -> vector<128x64xf32>
    %293 = vector.extract_strided_slice %1 {offsets = [2, 0], sizes = [1, 64], strides = [1, 1]} : vector<8x64xf32> to vector<1x64xf32>
    %294 = vector.broadcast %293 : vector<1x64xf32> to vector<128x64xf32>
    %295 = arith.mulf %292, %294 : vector<128x64xf32>
    %296 = arith.truncf %295 : vector<128x64xf32> to vector<128x64xbf16>
    %297 = tpu.concatenate %286, %291, %296 in 0 : vector<128x64xbf16>, vector<128x64xbf16>, vector<128x64xbf16> -> vector<384x64xbf16>
    %c0_113 = arith.constant 0 : index
    %c0_114 = arith.constant 0 : index
    %c0_115 = arith.constant 0 : index
    %298 = vector.load %arg12[%c0_113, %c0_114, %c0_115] : memref<3x64x384xbf16, #tpu.memory_space<vmem>>, vector<1x64x384xbf16>
    %299 = vector.shape_cast %298 : vector<1x64x384xbf16> to vector<64x384xbf16>
    %cst_116 = arith.constant dense<0.000000e+00> : vector<64x64xf32>
    %300 = tpu.matmul %299, %297, %cst_116 {dimension_numbers = #tpu.dot_dimension_numbers<[1], [0], [0], [1], [0, 0, 1, 1], [], []>} : vector<64x384xbf16>, vector<384x64xbf16>, vector<64x64xf32> -> vector<64x64xf32>
    %c1_i32_117 = arith.constant 1 : i32
    %301 = tpu.dynamic_rotate %281 by %c1_i32_117 dim 1 : vector<128x64xf32>, i32 -> vector<128x64xf32>
    %302 = vector.extract_strided_slice %1 {offsets = [3, 0], sizes = [1, 64], strides = [1, 1]} : vector<8x64xf32> to vector<1x64xf32>
    %303 = vector.broadcast %302 : vector<1x64xf32> to vector<128x64xf32>
    %304 = arith.mulf %301, %303 : vector<128x64xf32>
    %305 = arith.truncf %304 : vector<128x64xf32> to vector<128x64xbf16>
    %306 = arith.truncf %281 : vector<128x64xf32> to vector<128x64xbf16>
    %c63_i32_118 = arith.constant 63 : i32
    %307 = tpu.dynamic_rotate %281 by %c63_i32_118 dim 1 : vector<128x64xf32>, i32 -> vector<128x64xf32>
    %308 = vector.extract_strided_slice %1 {offsets = [4, 0], sizes = [1, 64], strides = [1, 1]} : vector<8x64xf32> to vector<1x64xf32>
    %309 = vector.broadcast %308 : vector<1x64xf32> to vector<128x64xf32>
    %310 = arith.mulf %307, %309 : vector<128x64xf32>
    %311 = arith.truncf %310 : vector<128x64xf32> to vector<128x64xbf16>
    %312 = tpu.concatenate %305, %306, %311 in 0 : vector<128x64xbf16>, vector<128x64xbf16>, vector<128x64xbf16> -> vector<384x64xbf16>
    %c1_119 = arith.constant 1 : index
    %c0_120 = arith.constant 0 : index
    %c0_121 = arith.constant 0 : index
    %313 = vector.load %arg12[%c1_119, %c0_120, %c0_121] : memref<3x64x384xbf16, #tpu.memory_space<vmem>>, vector<1x64x384xbf16>
    %314 = vector.shape_cast %313 : vector<1x64x384xbf16> to vector<64x384xbf16>
    %cst_122 = arith.constant dense<0.000000e+00> : vector<64x64xf32>
    %315 = tpu.matmul %314, %312, %cst_122 {dimension_numbers = #tpu.dot_dimension_numbers<[1], [0], [0], [1], [0, 0, 1, 1], [], []>} : vector<64x384xbf16>, vector<384x64xbf16>, vector<64x64xf32> -> vector<64x64xf32>
    %316 = arith.addf %300, %315 : vector<64x64xf32>
    %c57_i32_123 = arith.constant 57 : i32
    %317 = tpu.dynamic_rotate %281 by %c57_i32_123 dim 1 : vector<128x64xf32>, i32 -> vector<128x64xf32>
    %318 = vector.extract_strided_slice %1 {offsets = [5, 0], sizes = [1, 64], strides = [1, 1]} : vector<8x64xf32> to vector<1x64xf32>
    %319 = vector.broadcast %318 : vector<1x64xf32> to vector<128x64xf32>
    %320 = arith.mulf %317, %319 : vector<128x64xf32>
    %321 = arith.truncf %320 : vector<128x64xf32> to vector<128x64xbf16>
    %c56_i32_124 = arith.constant 56 : i32
    %322 = tpu.dynamic_rotate %281 by %c56_i32_124 dim 1 : vector<128x64xf32>, i32 -> vector<128x64xf32>
    %323 = vector.extract_strided_slice %1 {offsets = [6, 0], sizes = [1, 64], strides = [1, 1]} : vector<8x64xf32> to vector<1x64xf32>
    %324 = vector.broadcast %323 : vector<1x64xf32> to vector<128x64xf32>
    %325 = arith.mulf %322, %324 : vector<128x64xf32>
    %326 = arith.truncf %325 : vector<128x64xf32> to vector<128x64xbf16>
    %c55_i32_125 = arith.constant 55 : i32
    %327 = tpu.dynamic_rotate %281 by %c55_i32_125 dim 1 : vector<128x64xf32>, i32 -> vector<128x64xf32>
    %328 = vector.extract_strided_slice %1 {offsets = [7, 0], sizes = [1, 64], strides = [1, 1]} : vector<8x64xf32> to vector<1x64xf32>
    %329 = vector.broadcast %328 : vector<1x64xf32> to vector<128x64xf32>
    %330 = arith.mulf %327, %329 : vector<128x64xf32>
    %331 = arith.truncf %330 : vector<128x64xf32> to vector<128x64xbf16>
    %332 = tpu.concatenate %321, %326, %331 in 0 : vector<128x64xbf16>, vector<128x64xbf16>, vector<128x64xbf16> -> vector<384x64xbf16>
    %c2_126 = arith.constant 2 : index
    %c0_127 = arith.constant 0 : index
    %c0_128 = arith.constant 0 : index
    %333 = vector.load %arg12[%c2_126, %c0_127, %c0_128] : memref<3x64x384xbf16, #tpu.memory_space<vmem>>, vector<1x64x384xbf16>
    %334 = vector.shape_cast %333 : vector<1x64x384xbf16> to vector<64x384xbf16>
    %cst_129 = arith.constant dense<0.000000e+00> : vector<64x64xf32>
    %335 = tpu.matmul %334, %332, %cst_129 {dimension_numbers = #tpu.dot_dimension_numbers<[1], [0], [0], [1], [0, 0, 1, 1], [], []>} : vector<64x384xbf16>, vector<384x64xbf16>, vector<64x64xf32> -> vector<64x64xf32>
    %336 = arith.addf %316, %335 : vector<64x64xf32>
    %c0_130 = arith.constant 0 : index
    %c0_131 = arith.constant 0 : index
    %337 = vector.load %arg13[%c0_130, %c0_131] : memref<64x1xf32, #tpu.memory_space<vmem>>, vector<64x1xf32>
    %338 = vector.broadcast %337 : vector<64x1xf32> to vector<64x64xf32>
    %339 = arith.addf %336, %338 : vector<64x64xf32>
    %c0_132 = arith.constant 0 : index
    %c0_133 = arith.constant 0 : index
    %340 = vector.load %arg14[%c0_132, %c0_133] : memref<4x64xbf16, #tpu.memory_space<vmem>>, vector<4x64xbf16>
    %341 = arith.truncf %339 : vector<64x64xf32> to vector<64x64xbf16>
    %cst_134 = arith.constant dense<0.000000e+00> : vector<4x64xf32>
    %342 = tpu.matmul %340, %341, %cst_134 {dimension_numbers = #tpu.dot_dimension_numbers<[1], [0], [0], [1], [0, 0, 1, 1], [], []>} : vector<4x64xbf16>, vector<64x64xbf16>, vector<4x64xf32> -> vector<4x64xf32>
    %343 = vector.extract_strided_slice %342 {offsets = [0, 0], sizes = [1, 64], strides = [1, 1]} : vector<4x64xf32> to vector<1x64xf32>
    %344 = arith.truncf %343 : vector<1x64xf32> to vector<1x64xbf16>
    %c0_135 = arith.constant 0 : index
    %c0_136 = arith.constant 0 : index
    %c0_137 = arith.constant 0 : index
    %345 = vector.load %arg21[%c0_135, %c0_136, %c0_137] : memref<4x64x256xbf16, #tpu.memory_space<vmem>>, vector<1x64x256xbf16>
    %346 = vector.shape_cast %345 : vector<1x64x256xbf16> to vector<64x256xbf16>
    %cst_138 = arith.constant dense<0.000000e+00> : vector<1x256xf32>
    %347 = tpu.matmul %344, %346, %cst_138 {dimension_numbers = #tpu.dot_dimension_numbers<[1], [0], [0], [1], [0, 0, 1, 1], [], []>} : vector<1x64xbf16>, vector<64x256xbf16>, vector<1x256xf32> -> vector<1x256xf32>
    %348 = vector.extract_strided_slice %342 {offsets = [1, 0], sizes = [1, 64], strides = [1, 1]} : vector<4x64xf32> to vector<1x64xf32>
    %349 = arith.truncf %348 : vector<1x64xf32> to vector<1x64xbf16>
    %c1_139 = arith.constant 1 : index
    %c0_140 = arith.constant 0 : index
    %c0_141 = arith.constant 0 : index
    %350 = vector.load %arg21[%c1_139, %c0_140, %c0_141] : memref<4x64x256xbf16, #tpu.memory_space<vmem>>, vector<1x64x256xbf16>
    %351 = vector.shape_cast %350 : vector<1x64x256xbf16> to vector<64x256xbf16>
    %cst_142 = arith.constant dense<0.000000e+00> : vector<1x256xf32>
    %352 = tpu.matmul %349, %351, %cst_142 {dimension_numbers = #tpu.dot_dimension_numbers<[1], [0], [0], [1], [0, 0, 1, 1], [], []>} : vector<1x64xbf16>, vector<64x256xbf16>, vector<1x256xf32> -> vector<1x256xf32>
    %353 = arith.addf %347, %352 : vector<1x256xf32>
    %354 = vector.extract_strided_slice %342 {offsets = [2, 0], sizes = [1, 64], strides = [1, 1]} : vector<4x64xf32> to vector<1x64xf32>
    %355 = arith.truncf %354 : vector<1x64xf32> to vector<1x64xbf16>
    %c2_143 = arith.constant 2 : index
    %c0_144 = arith.constant 0 : index
    %c0_145 = arith.constant 0 : index
    %356 = vector.load %arg21[%c2_143, %c0_144, %c0_145] : memref<4x64x256xbf16, #tpu.memory_space<vmem>>, vector<1x64x256xbf16>
    %357 = vector.shape_cast %356 : vector<1x64x256xbf16> to vector<64x256xbf16>
    %cst_146 = arith.constant dense<0.000000e+00> : vector<1x256xf32>
    %358 = tpu.matmul %355, %357, %cst_146 {dimension_numbers = #tpu.dot_dimension_numbers<[1], [0], [0], [1], [0, 0, 1, 1], [], []>} : vector<1x64xbf16>, vector<64x256xbf16>, vector<1x256xf32> -> vector<1x256xf32>
    %359 = arith.addf %353, %358 : vector<1x256xf32>
    %360 = vector.extract_strided_slice %342 {offsets = [3, 0], sizes = [1, 64], strides = [1, 1]} : vector<4x64xf32> to vector<1x64xf32>
    %361 = arith.truncf %360 : vector<1x64xf32> to vector<1x64xbf16>
    %c3_147 = arith.constant 3 : index
    %c0_148 = arith.constant 0 : index
    %c0_149 = arith.constant 0 : index
    %362 = vector.load %arg21[%c3_147, %c0_148, %c0_149] : memref<4x64x256xbf16, #tpu.memory_space<vmem>>, vector<1x64x256xbf16>
    %363 = vector.shape_cast %362 : vector<1x64x256xbf16> to vector<64x256xbf16>
    %cst_150 = arith.constant dense<0.000000e+00> : vector<1x256xf32>
    %364 = tpu.matmul %361, %363, %cst_150 {dimension_numbers = #tpu.dot_dimension_numbers<[1], [0], [0], [1], [0, 0, 1, 1], [], []>} : vector<1x64xbf16>, vector<64x256xbf16>, vector<1x256xf32> -> vector<1x256xf32>
    %365 = arith.addf %359, %364 : vector<1x256xf32>
    %c0_151 = arith.constant 0 : index
    %c0_152 = arith.constant 0 : index
    %366 = vector.load %arg15[%c0_151, %c0_152] : memref<1x1xf32, #tpu.memory_space<vmem>>, vector<1x1xf32>
    %367 = vector.broadcast %366 : vector<1x1xf32> to vector<1x256xf32>
    %368 = arith.addf %365, %367 : vector<1x256xf32>
    %cst_153 = arith.constant 0.000000e+00 : f32
    %369 = vector.broadcast %cst_153 : f32 to vector<1x256xf32>
    %370 = arith.subf %369, %368 : vector<1x256xf32>
    %371 = math.exp %370 : vector<1x256xf32>
    %cst_154 = arith.constant 1.000000e+00 : f32
    %372 = vector.broadcast %cst_154 : f32 to vector<1x256xf32>
    %373 = arith.addf %372, %371 : vector<1x256xf32>
    %374 = tpu.reciprocal %373 {approx = true} : vector<1x256xf32> -> vector<1x256xf32>
    %c0_155 = arith.constant 0 : index
    %c0_156 = arith.constant 0 : index
    %c0_157 = arith.constant 0 : index
    %375 = vector.load %arg22[%c0_155, %c0_156, %c0_157] : memref<1x1x256xf32, #tpu.memory_space<vmem>>, vector<1x1x256xf32>
    %376 = vector.shape_cast %375 : vector<1x1x256xf32> to vector<1x256xf32>
    %377 = vector.shape_cast %374 : vector<1x256xf32> to vector<1x1x256xf32>
    tpu.vector_store %arg22[%c0_155, %c0_156, %c0_157], %377 {strides = array<i32>} : memref<1x1x256xf32, #tpu.memory_space<vmem>>, vector<1x1x256xf32>,
    return
  }
  func.func @transform_0(%arg0: i32) -> (i32, i32, i32) {
    %c0_i32 = arith.constant 0 : i32
    %c0_i32_0 = arith.constant 0 : i32
    %c0_i32_1 = arith.constant 0 : i32
    return %arg0, %c0_i32, %c0_i32_0 : i32, i32, i32
  }
  func.func @transform_1(%arg0: i32) -> (i32, i32, i32) {
    %c0_i32 = arith.constant 0 : i32
    %c0_i32_0 = arith.constant 0 : i32
    %c0_i32_1 = arith.constant 0 : i32
    %c0_i32_2 = arith.constant 0 : i32
    return %c0_i32, %c0_i32_0, %c0_i32_1 : i32, i32, i32
  }
  func.func @transform_2(%arg0: i32) -> (i32, i32) {
    %c0_i32 = arith.constant 0 : i32
    %c0_i32_0 = arith.constant 0 : i32
    %c0_i32_1 = arith.constant 0 : i32
    return %c0_i32, %c0_i32_0 : i32, i32
  }
  func.func @transform_3(%arg0: i32) -> (i32, i32, i32) {
    %c0_i32 = arith.constant 0 : i32
    %c0_i32_0 = arith.constant 0 : i32
    %c0_i32_1 = arith.constant 0 : i32
    %c0_i32_2 = arith.constant 0 : i32
    return %c0_i32, %c0_i32_0, %c0_i32_1 : i32, i32, i32
  }
  func.func @transform_4(%arg0: i32) -> (i32, i32) {
    %c0_i32 = arith.constant 0 : i32
    %c0_i32_0 = arith.constant 0 : i32
    %c0_i32_1 = arith.constant 0 : i32
    return %c0_i32, %c0_i32_0 : i32, i32
  }
  func.func @transform_5(%arg0: i32) -> (i32, i32, i32) {
    %c0_i32 = arith.constant 0 : i32
    %c0_i32_0 = arith.constant 0 : i32
    %c0_i32_1 = arith.constant 0 : i32
    %c0_i32_2 = arith.constant 0 : i32
    return %c0_i32, %c0_i32_0, %c0_i32_1 : i32, i32, i32
  }
  func.func @transform_6(%arg0: i32) -> (i32, i32) {
    %c0_i32 = arith.constant 0 : i32
    %c0_i32_0 = arith.constant 0 : i32
    %c0_i32_1 = arith.constant 0 : i32
    return %c0_i32, %c0_i32_0 : i32, i32
  }
  func.func @transform_7(%arg0: i32) -> (i32, i32, i32) {
    %c0_i32 = arith.constant 0 : i32
    %c0_i32_0 = arith.constant 0 : i32
    %c0_i32_1 = arith.constant 0 : i32
    %c0_i32_2 = arith.constant 0 : i32
    return %c0_i32, %c0_i32_0, %c0_i32_1 : i32, i32, i32
  }
  func.func @transform_8(%arg0: i32) -> (i32, i32) {
    %c0_i32 = arith.constant 0 : i32
    %c0_i32_0 = arith.constant 0 : i32
    %c0_i32_1 = arith.constant 0 : i32
    return %c0_i32, %c0_i32_0 : i32, i32
  }
  func.func @transform_9(%arg0: i32) -> (i32, i32) {
    %c0_i32 = arith.constant 0 : i32
    %c0_i32_0 = arith.constant 0 : i32
    %c0_i32_1 = arith.constant 0 : i32
    return %c0_i32, %c0_i32_0 : i32, i32
  }
  func.func @transform_10(%arg0: i32) -> (i32, i32) {
    %c0_i32 = arith.constant 0 : i32
    %c0_i32_0 = arith.constant 0 : i32
    %c0_i32_1 = arith.constant 0 : i32
    return %c0_i32, %c0_i32_0 : i32, i32
  }
  func.func @transform_11(%arg0: i32) -> (i32, i32, i32) {
    %c0_i32 = arith.constant 0 : i32
    %c0_i32_0 = arith.constant 0 : i32
    %c0_i32_1 = arith.constant 0 : i32
    %c0_i32_2 = arith.constant 0 : i32
    return %c0_i32, %c0_i32_0, %c0_i32_1 : i32, i32, i32
  }
  func.func @transform_12(%arg0: i32) -> (i32, i32) {
    %c0_i32 = arith.constant 0 : i32
    %c0_i32_0 = arith.constant 0 : i32
    %c0_i32_1 = arith.constant 0 : i32
    return %c0_i32, %c0_i32_0 : i32, i32
  }
  func.func @transform_13(%arg0: i32) -> (i32, i32) {
    %c0_i32 = arith.constant 0 : i32
    %c0_i32_0 = arith.constant 0 : i32
    %c0_i32_1 = arith.constant 0 : i32
    return %c0_i32, %c0_i32_0 : i32, i32
  }
  func.func @transform_14(%arg0: i32) -> (i32, i32) {
    %c0_i32 = arith.constant 0 : i32
    %c0_i32_0 = arith.constant 0 : i32
    %c0_i32_1 = arith.constant 0 : i32
    return %c0_i32, %c0_i32_0 : i32, i32
  }
  func.func @transform_15(%arg0: i32) -> (i32, i32) {
    %c0_i32 = arith.constant 0 : i32
    %c0_i32_0 = arith.constant 0 : i32
    %c0_i32_1 = arith.constant 0 : i32
    return %c0_i32, %c0_i32_0 : i32, i32
  }
  func.func @transform_16(%arg0: i32) -> (i32, i32) {
    %c0_i32 = arith.constant 0 : i32
    %c0_i32_0 = arith.constant 0 : i32
    %c0_i32_1 = arith.constant 0 : i32
    return %c0_i32, %c0_i32_0 : i32, i32
  }
  func.func @transform_17(%arg0: i32) -> (i32, i32) {
    %c0_i32 = arith.constant 0 : i32
    %c0_i32_0 = arith.constant 0 : i32
    %c0_i32_1 = arith.constant 0 : i32
    return %c0_i32, %c0_i32_0 : i32, i32
  }
  func.func @transform_18(%arg0: i32) -> (i32, i32) {
    %c0_i32 = arith.constant 0 : i32
    %c0_i32_0 = arith.constant 0 : i32
    %c0_i32_1 = arith.constant 0 : i32
    return %c0_i32, %c0_i32_0 : i32, i32
  }
  func.func @transform_19(%arg0: i32) -> (i32, i32, i32) {
    %c0_i32 = arith.constant 0 : i32
    %c0_i32_0 = arith.constant 0 : i32
    %c0_i32_1 = arith.constant 0 : i32
    %c0_i32_2 = arith.constant 0 : i32
    return %c0_i32, %c0_i32_0, %c0_i32_1 : i32, i32, i32
  }
  func.func @transform_20(%arg0: i32) -> (i32, i32, i32) {
    %c0_i32 = arith.constant 0 : i32
    %c0_i32_0 = arith.constant 0 : i32
    %c0_i32_1 = arith.constant 0 : i32
    %c0_i32_2 = arith.constant 0 : i32
    return %c0_i32, %c0_i32_0, %c0_i32_1 : i32, i32, i32
  }
  func.func @transform_21(%arg0: i32) -> (i32, i32, i32) {
    %c0_i32 = arith.constant 0 : i32
    %c0_i32_0 = arith.constant 0 : i32
    %c0_i32_1 = arith.constant 0 : i32
    return %arg0, %c0_i32, %c0_i32_0 : i32, i32, i32
  }
}

</mosaic_0001>

<bundles_post_ra>
// kernel: unet_forward.1
= control target key start
LH: loop header
LB: loop body
LE: loop exit
PB: predicated region body
PF: predicated region fallthrough
CT: control target
= control target key end

     0   :  { %s16806_s0 = inlined_call_operand.vmem [shape: f32[2,3,256], index: 0, kind: input, shape index: {}]   ;;  %s16807_s1 = inlined_call_operand.vmem [shape: bf16[3,64,9], index: 1, kind: input, shape index: {}]   ;;  %s16808_s2 = inlined_call_operand.vmem [shape: f32[64,1], index: 2, kind: input, shape index: {}]   ;;  %s16809_s3 = inlined_call_operand.hbm [shape: bf16[3,64,192], index: 3, kind: input, shape index: {}]   ;;  %s16810_s4 = inlined_call_operand.vmem [shape: f32[64,1], index: 4, kind: input, shape index: {}]   ;;  %s16811_s5 = inlined_call_operand.vmem [shape: bf16[3,128,192], index: 5, kind: input, shape index: {}]   ;;  %s16812_s6 = inlined_call_operand.vmem [shape: f32[128,1], index: 6, kind: input, shape index: {}]   ;;  %s16813_s7 = inlined_call_operand.vmem [shape: bf16[3,128,384], index: 7, kind: input, shape index: {}]   ;;  %s16814_s8 = inlined_call_operand.vmem [shape: f32[128,1], index: 8, kind: input, shape index: {}]   ;;  %s16815_s9 = inlined_call_operand.vmem [shape: bf16[256,128], index: 9, kind: input, shape index: {}]   ;;  %s16816_s10 = inlined_call_operand.vmem [shape: f32[64,1], index: 10, kind: input, shape index: {}]   ;;  %s16817_s11 = inlined_call_operand.vmem [shape: bf16[3,64,384], index: 11, kind: input, shape index: {}]   ;;  %s16818_s12 = inlined_call_operand.vmem [shape: f32[64,1], index: 12, kind: input, shape index: {}]   ;;  %s16819_s13 = inlined_call_operand.vmem [shape: bf16[4,64], index: 13, kind: input, shape index: {}]   ;;  %s16820_s14 = inlined_call_operand.<no memory space> [shape: f32[1,1], index: 14, kind: input, shape index: {}]   ;;  %s16821_s15 = inlined_call_operand.vmem [shape: f32[8,256], index: 15, kind: input, shape index: {}]   ;;  %s16822_s16 = inlined_call_operand.vmem [shape: f32[8,64], index: 16, kind: input, shape index: {}]   ;;  %s16823_s17 = inlined_call_operand.hbm [shape: bf16[256,64], index: 17, kind: input, shape index: {}]   ;;  %s16824_s18 = inlined_call_operand.vmem [shape: bf16[64,16], index: 18, kind: input, shape index: {}]   ;;  %s16825_s19 = inlined_call_operand.vmem [shape: bf16[4,16,64], index: 19, kind: input, shape index: {}]   ;;  %s16826_s20 = inlined_call_operand.hbm [shape: bf16[4,64,256], index: 20, kind: input, shape index: {}]   ;;  %s16827_s21 = inlined_call_operand.vmem [shape: f32[2,1,256], index: 21, kind: output, shape index: {}]  }
   0x1   :  { %16971 = sst [smem:[#allocation56_spill]] %s16806_s0  ;;  %v26_v0 = vstv %s16820_s14 }
   0x2   :  { %16972 = sst [smem:[#allocation57_spill]] %s16807_s1  ;;  %27 = vst [vmem:[#allocation2] sm:$0x1] %v26_v0 }
   0x3   :  { %16973 = sst [smem:[#allocation58_spill]] %s16808_s2 }
   0x4   :  { %16974 = sst [smem:[#allocation59_spill]] %s16809_s3 }
   0x5   :  { %16975 = sst [smem:[#allocation60_spill]] %s16810_s4 }
   0x6   :  { %16976 = sst [smem:[#allocation61_spill]] %s16811_s5 }
   0x7   :  { %16977 = sst [smem:[#allocation62_spill]] %s16812_s6 }
   0x8   :  { %16978 = sst [smem:[#allocation63_spill]] %s16821_s15 }
   0x9   :  { %16979 = sst [smem:[#allocation64_spill]] %s16822_s16 }
   0xa   :  { %16980 = sst [smem:[#allocation65_spill]] %s16823_s17 }
   0xb   :  { %28 = vsyncpa [#allocation4], 0 }
   0xc   :  { %29 = vsyncpa [#allocation6], 0  ;;  %s11401_s26 = smov 0  }
   0xd LB: > { %16981 = sst [smem:[#allocation10_spill]] %s11255_s26  ;;  %s11410_s29 = sadd.s32 4294967295, %s11255_s26   ;;  %s11255_s26 = sphi %s11401_s26, %s35_s26  }
   0xe   : > { %s16982_s17 = sld [smem:[#allocation65_spill]]  ;;  %p9163_p0 = scmp.ge.s32.totalorder %s11255_s26, 1 }
   0xf   : > { %p512_p1 = scmp.lt.s32.totalorder %s11255_s26, 3  ;;  %p10775_p2 = scmp.eq.s32.totalorder %s11410_s29, 0 }
  0x10   : > { %s11257_s0 = smov [#allocation5]   ;;  %s16984_s22 = sld [smem:[#allocation59_spill]] }
  0x11   : > { %p11415_p3 = pnand %p9163_p0, %p512_p1  ;;  %s584_s4 = sshll.u32 %s11257_s0, 4  ;;  %s585_s4 = int_to_ptr.vmem [resolvable:$true] %s584_s4 }
  0x12   : > { %s11258_s24 = smov [#allocation3]   ;;  %s11259_s25 = smov 64  }
  0x13   : > { %p10765_p4 = pneg %p11415_p3  ;;  %s531_s2 = sshll.u32 %s11258_s24, 4  ;;  %s532_s2 = int_to_ptr.vmem [resolvable:$true] %s531_s2 }
  0x14   : > { %s582_s28 = sshll.u32 %s16982_s17, 4  ;;  %s11260_s27 = smov 4   ;;  %s583_s28 = int_to_ptr.hbm [resolvable:$true] %s582_s28 }
  0x15   : > { %p11426_p5 = pnand %p10775_p2, %p10765_p4  ;;  %s602_s30 = sshll.u32 %s16826_s20, 4  ;;  %s603_s30 = int_to_ptr.hbm [resolvable:$true] %s602_s30 }
  0x16   : > { %s529_s23 = sshll.u32 %s16984_s22, 4  ;;  %s11261_s5 = smov 128   ;;  %s530_s23 = int_to_ptr.hbm [resolvable:$true] %s529_s23 }
  0x17   : > { %10771 = dma.hbm_to_vmem [thread:$0]  (!%p11426_p5), %s583_s28, 2048, %s585_s4, [#allocation6], %s11259_s25, %s11259_s25, %s11260_s27  }
  0x18   : > { %s11262_s22 = smov 8   ;;  %s11263_s17 = smov [#allocation7]  }
  0x19   : > { %10768 = dma.hbm_to_vmem [thread:$0]  (!%p11426_p5), %s530_s23, 3072, %s532_s2, [#allocation4], %s11261_s5, %s11261_s5, %s11262_s22  }
  0x1a   : > { %s604_s26 = sshll.u32 %s11263_s17, 4  ;;  %628 = sbr.rel (%p11415_p3) target bundleno = 6368 (0x18e0), region = 104  ;;  %s605_s26 = int_to_ptr.vmem [resolvable:$true] %s604_s26 }
  0x1b   : > { %10774 = dma.hbm_to_vmem [thread:$0]  (!%p11426_p5), %s603_s30, 4096, %s605_s26, [#allocation6], %s11261_s5, %s11261_s5, %s11262_s22  }
  0x1f   : > { %11246 = dma.done.wait (%p10775_p2), [#allocation4], 3072  }
  0x20   : > { %11248 = vsyncadd (%p10775_p2), [#allocation4], 4294964224 }
  0x21   : > { %11250 = dma.done.wait (%p10775_p2), [#allocation6], 6144  }
  0x22   : > { %11252 = vsyncadd (%p10775_p2), [#allocation6], 4294961152  ;;  %p698_p6 = scmp.lt.s32.totalorder %s11410_s29, 1  ;;  %s16986_s14 = sld [smem:[#allocation56_spill]]  ;;  %v16841_v21 = vlaneseq  ;;  %vm884_vm2 = vcmask 1043456   ;;  %vm775_vm3 = vcmask 1042432  }
  0x23   : > { %s11264_s23 = smov 16   ;;  %s11265_s1 = smov 1   ;;  %vm778_vm4 = vcmask 1045504   ;;  %vm885_vm5 = vcmask 1044480   ;;  %v11272_v44 = vmov 65535   ;;  %vm871_vm8 = vcmask 72704  }
  0x24   : > { %s17210_s29 = smov (!%p698_p6, %s11410_s29), 1  ;;  %s11266_s24 = smov 17   ;;  %v11474_v22 = vand.u32 127, %v16841_v21  ;;  %v886_v45 = vsel %vm884_vm2, 4294967295, %v11272_v44  ;;  %vm1976_vm13 = vcmask 523264   ;;  %vm3196_vm14 = vcmask 1048064  }
  0x25   : > { %s10488_s17 = sshll.u32 %s17210_s29, 3  ;;  %s16903_s2 = smov 127   ;;  %v11516_v51 = vsel %vm885_vm5, %v886_v45, 0  ;;  %vm7349_vm15 = vcmask 130048  }
  0x26   : > { %s16839_s25 = smov 15   ;;  %s16837_s27 = smov 112   ;;  %vm800_vm0 = vcmp.lt.s32.totalorder %v11474_v22, 1  ;;  %vm816_vm1 = vcmp.lt.s32.totalorder %v11474_v22, 127  ;;  %vm740_vm6 = vcmp.lt.s32.totalorder %v11474_v22, 16  ;;  %vm756_vm7 = vcmp.lt.s32.totalorder %v11474_v22, 15 }
  0x27   : > { %s16833_s3 = smov 111   ;;  %s16835_s0 = smov 113   ;;  %vm724_vm9 = vcmp.lt.s32.totalorder %v11474_v22, 17  ;;  %vm1073_vm10 = vcmp.lt.s32.totalorder %v11474_v22, 112  ;;  %vm1089_vm11 = vcmp.lt.s32.totalorder %v11474_v22, 111  ;;  %vm1057_vm12 = vcmp.lt.s32.totalorder %v11474_v22, 113 }
  0x28   : > { %s702_s4 = scalar_lea.vmem %s16986_s14, %s10488_s17  ;;  %s16987_s15 = sld [smem:[#allocation63_spill]] }
  0x29   : > { %v711_v1 = vld [vmem:[%s702_s4] sm:$0x77]  ;;  %s16989_s14 = sld [smem:[#allocation57_spill]]  ;;  %s16999_s17 = smov 15  }
  0x2a   : > { %713 = vst [vmem:[#allocation1] ss:$2 sm:$0xff] %v711_v1  ;;  %s16998_s22 = sld [smem:[#allocation58_spill]]  ;;  %s17012_s26 = smov 112  }
  0x2b   : > { %s17021_s28 = smov 113   ;;  %s17024_s4 = smov 111  }
  0x2c   : > { %s17094_s16 = sld [smem:[#allocation64_spill]]  ;;  %s11283_s30 = smov 7  }
  0x2d   : > { %s16899_s5 = smov 126   ;;  %s17116_s6 = sld [smem:[#allocation62_spill]] }
  0x2e   : > { %v11479_v25 = vld [vmem:[%s16987_s15] sm:$0xff]  ;;  %v11484_v26 = vld [vmem:[%s16987_s15 + $0x8] sm:$0xff] }
  0x2f   : > { %v11488_v28 = vperm.slane %v11479_v25, 3  ;;  %v11491_v29 = vperm.slane %v11484_v26, 3  ;;  %v11499_v32 = vperm.slane %v11479_v25, 4  ;;  %v11502_v33 = vperm.slane %v11484_v26, 4 }
  0x30   : > { %v11525_v58 = vperm.slane %v11479_v25, 1  ;;  %v11528_v59 = vperm.slane %v11484_v26, 1  ;;  %v11533_v63 = vperm.slane %v11479_v25, 2  ;;  %v11536_v0 = vperm.slane %v11484_v26, 2 }
  0x31   : > { %v714_v2 = vld.sshfl [vmem:[#allocation1] sm:$0xff pattern:$0x75316420]  ;;  %v715_v3 = vld.sshfl [vmem:[#allocation1 + $0x8] sm:$0xff pattern:$0x75316420] }
  0x32   : > { %731 = vst [vmem:[#allocation1] ss:$2 sm:$0xff] %v711_v1  ;;  %v11586_v45 = vperm.slane %v11479_v25, 7 }
  0x33   : > { %16988 = vst [vmem:[#allocation11_spill] sm:$0xff] %v11536_v0 }
  0x34   : > { %16994 = vst [vmem:[#allocation16_spill] sm:$0xff] %v11586_v45 }
  0x39   : > { %v732_v4 = vld.sshfl [vmem:[#allocation1] sm:$0xff pattern:$0x75316420]  ;;  %v733_v5 = vld.sshfl [vmem:[#allocation1 + $0x8] sm:$0xff pattern:$0x75316420] }
  0x3a   : > { %747 = vst [vmem:[#allocation1] ss:$2 sm:$0xff] %v711_v1  ;;  %736 = vrot.lane.b32.xlu2 %v732_v4, %s11264_s23 }
  0x41   : > { %v748_v6 = vld.sshfl [vmem:[#allocation1] sm:$0xff pattern:$0x75316420]  ;;  %v749_v7 = vld.sshfl [vmem:[#allocation1 + $0x8] sm:$0xff pattern:$0x75316420] }
  0x42   : > { %791 = vst [vmem:[#allocation1] ss:$2 sm:$0xff] %v711_v1  ;;  %738 = vrot.lane.b32.xlu2 %v733_v5, %s11264_s23 }
  0x49   : > { %v792_v8 = vld.sshfl [vmem:[#allocation1] sm:$0xff pattern:$0x75316420]  ;;  %v793_v9 = vld.sshfl [vmem:[#allocation1 + $0x8] sm:$0xff pattern:$0x75316420] }
  0x4a   : > { %796 = vrot.lane.b32.xlu1 %v792_v8, %s11265_s1  ;;  %807 = vst [vmem:[#allocation1] ss:$2 sm:$0xff] %v711_v1  ;;  %718 = vrot.lane.b32.xlu2 %v714_v2, %s11266_s24 }
  0x51   : > { %v808_v10 = vld.sshfl [vmem:[#allocation1] sm:$0xff pattern:$0x75316420]  ;;  %v809_v11 = vld.sshfl [vmem:[#allocation1 + $0x8] sm:$0xff pattern:$0x75316420] }
  0x52   : > { %812 = vrot.lane.b32.xlu0 %v808_v10, %s16903_s2  ;;  %798 = vrot.lane.b32.xlu1 %v793_v9, %s11265_s1  ;;  %823 = vst [vmem:[#allocation1] ss:$2 sm:$0xff] %v711_v1  ;;  %v11553_v9 = vperm.slane %v11479_v25, 0  ;;  %v11556_v10 = vperm.slane %v11484_v26, 0 }
  0x54   : > { %16990 = vst [vmem:[#allocation12_spill] sm:$0xff] %v11553_v9 }
  0x55   : > { %16991 = vst [vmem:[#allocation13_spill] sm:$0xff] %v11556_v10 }
  0x59   : > { %v824_v12 = vld.sshfl [vmem:[#allocation1] sm:$0xff pattern:$0x75316420]  ;;  %v825_v13 = vld.sshfl [vmem:[#allocation1 + $0x8] sm:$0xff pattern:$0x75316420] }
  0x5a   : > { %814 = vrot.lane.b32.xlu0 %v809_v11, %s16903_s2  ;;  %1048 = vst [vmem:[#allocation1] ss:$2 sm:$0xff] %v711_v1  ;;  %754 = vrot.lane.b32.xlu1 %v749_v7, %s16839_s25  ;;  %v826_v35 = vrot.slane %v824_v12, 5  ;;  %v827_v36 = vrot.slane %v825_v13, 5 }
  0x61   : > { %v1049_v14 = vld.sshfl [vmem:[#allocation1] sm:$0xff pattern:$0x75316420]  ;;  %v1050_v15 = vld.sshfl [vmem:[#allocation1 + $0x8] sm:$0xff pattern:$0x75316420] }
  0x62   : > { %1064 = vst [vmem:[#allocation1] ss:$2 sm:$0xff] %v711_v1  ;;  %752 = vrot.lane.b32.xlu0 %v748_v6, %s16839_s25  ;;  %s11280_s25 = smov 9  }
  0x69   : > { %v1065_v16 = vld.sshfl [vmem:[#allocation1] sm:$0xff pattern:$0x75316420]  ;;  %v1066_v17 = vld.sshfl [vmem:[#allocation1 + $0x8] sm:$0xff pattern:$0x75316420] }
  0x6a   : > { %720 = vrot.lane.b32.xlu0 %v715_v3, %s11266_s24  ;;  %1069 = vrot.lane.b32.xlu1 %v1065_v16, %s16837_s27  ;;  %1080 = vst [vmem:[#allocation1] ss:$2 sm:$0xff] %v711_v1  ;;  %v10493_v1 = vld [vmem:[%s16989_s14 + $0x20] sm:$0xff] }
  0x6b   : > { %1071 = vrot.lane.b32.xlu2 %v1066_v17, %s16837_s27  ;;  %s11281_s27 = smov 57  }
  0x71   : > { %v1081_v18 = vld.sshfl [vmem:[#allocation1] sm:$0xff pattern:$0x75316420]  ;;  %v1082_v19 = vld.sshfl [vmem:[#allocation1 + $0x8] sm:$0xff pattern:$0x75316420] }
  0x72   : > { %1085 = vrot.lane.b32.xlu0 %v1081_v18, %s16833_s3  ;;  %1087 = vrot.lane.b32.xlu1 %v1082_v19, %s16833_s3  ;;  %s17040_s3 = sld [smem:[#allocation60_spill]] }
  0x73   : > { %1053 = vrot.lane.b32.xlu2 %v1049_v14, %s16835_s0 }
  0x7a   : > { %1055 = vrot.lane.b32.xlu0 %v1050_v15, %s16835_s0  ;;  %s11282_s0 = smov 55  }
  0x94   : > { %v737_v24 = vpop.permute.xlu2 %736 }
  0x9c   : > { %v739_v41 = vpop.permute.xlu2 %738 }
  0x9d   : > { %v741_v56 = vsel %vm740_vm6, %v737_v24, %v739_v41  ;;  %v742_v57 = vsel %vm740_vm6, %v739_v41, %v737_v24 }
  0x9e   : > { %v745_v4 = vmul.f32 %v11525_v58, %v742_v57  ;;  %v746_v5 = vmul.f32 %v11528_v59, %v741_v56  ;;  %v11608_v56 = vperm.slane %v11479_v25, 5  ;;  %v11611_v57 = vperm.slane %v11484_v26, 5 }
  0xa0   : > { %v765_v11 = vrot.slane %v745_v4, 5  ;;  %v766_v12 = vrot.slane %v746_v5, 5  ;;  %16996 = vst [vmem:[#allocation18_spill] sm:$0xff] %v11608_v56 }
  0xa1   : > { %16997 = vst [vmem:[#allocation19_spill] sm:$0xff] %v11611_v57 }
  0xa4   : > { %v719_v6 = vpop.permute.xlu2 %718 }
  0xbc   : > { %v797_v20 = vpop.permute.xlu1 %796 }
  0xc4   : > { %v813_v23 = vpop.permute.xlu0 %812  ;;  %v799_v27 = vpop.permute.xlu1 %798 }
  0xc5   : > { %v801_v30 = vsel %vm800_vm0, %v797_v20, %v799_v27  ;;  %v802_v31 = vsel %vm800_vm0, %v799_v27, %v797_v20  ;;  %v1072_v27 = vpop.permute.xlu2 %1071 }
  0xc6   : > { %v805_v37 = vmul.f32 %v11488_v28, %v802_v31  ;;  %v806_v38 = vmul.f32 %v11491_v29, %v801_v30 }
  0xc8   : > { %v836_v48 = vsel %vm775_vm3, %v805_v37, %v826_v35  ;;  %v837_v49 = vsel %vm775_vm3, %v806_v38, %v827_v36  ;;  %v11573_v38 = vperm.slane %v11479_v25, 6 }
  0xca   : > { %16992 = vst [vmem:[#allocation14_spill] sm:$0xff] %v11573_v38 }
  0xcc   : > { %v815_v34 = vpop.permute.xlu0 %814  ;;  %v755_v55 = vpop.permute.xlu1 %754 }
  0xcd   : > { %v817_v39 = vsel %vm816_vm1, %v813_v23, %v815_v34  ;;  %v818_v40 = vsel %vm816_vm1, %v815_v34, %v813_v23 }
  0xce   : > { %v821_v42 = vmul.f32 %v11499_v32, %v817_v39  ;;  %v822_v43 = vmul.f32 %v11502_v33, %v818_v40  ;;  %v11576_v39 = vperm.slane %v11484_v26, 6 }
  0xd0   : > { %v832_v46 = vrot.slane %v821_v42, 2  ;;  %v833_v47 = vrot.slane %v822_v43, 2  ;;  %16993 = vst [vmem:[#allocation15_spill] sm:$0xff] %v11576_v39  ;;  %v10489_v42 = vld [vmem:[%s16989_s14] sm:$0xff] }
  0xd2   : > { %v838_v50 = vsel %vm778_vm4, %v836_v48, %v832_v46  ;;  %v839_v52 = vsel %vm778_vm4, %v837_v49, %v833_v47 }
  0xd3   : > { %v840_v53 = vpack.c.bf16 %v832_v46, %v838_v50  ;;  %v841_v54 = vpack.c.bf16 %v833_v47, %v839_v52  ;;  %v11589_v46 = vperm.slane %v11484_v26, 7  ;;  %v10494_v47 = vld [vmem:[%s16989_s14 + $0x28] sm:$0xff] }
  0xd4   : > { %v753_v60 = vpop.permute.xlu0 %752 }
  0xd5   : > { %v889_v61 = vand.u32 %v11516_v51, %v840_v53  ;;  %v892_v62 = vand.u32 %v11516_v51, %v841_v54  ;;  %v757_v2 = vsel %vm756_vm7, %v753_v60, %v755_v55  ;;  %v758_v3 = vsel %vm756_vm7, %v755_v55, %v753_v60  ;;  %16995 = vst [vmem:[#allocation17_spill] sm:$0xff] %v11589_v46  ;;  %v1054_v55 = vpop.permute.xlu2 %1053 }
  0xd6   : > { %v761_v7 = vmul.f32 %v11533_v63, %v758_v3  ;;  %v762_v8 = vmul.f32 %v11536_v0, %v757_v2 }
  0xd7   : > { %901 = vmatpush.bf16.msra.mxu0 %v889_v61  ;;  %930 = vmatpush.bf16.msra.mxu1 %v892_v62 }
  0xd8   : > { %v771_v17 = vrot.slane %v761_v7, 2  ;;  %v772_v18 = vrot.slane %v762_v8, 2 }
  0xda   : > { %9199 = vmatmul.msk.bf16.vlgmr.msra.gmra.mxu0 %vm871_vm8, %v10493_v1  ;;  %9203 = vmatmul.msk.bf16.vlgmr.msra.gmra.mxu1 %vm871_vm8, %v10493_v1 }
  0xdc   : > { %v721_v13 = vpop.permute.xlu0 %720  ;;  %v1070_v14 = vpop.permute.xlu1 %1069 }
  0xdd   : > { %v725_v15 = vsel %vm724_vm9, %v719_v6, %v721_v13  ;;  %v726_v16 = vsel %vm724_vm9, %v721_v13, %v719_v6  ;;  %v1074_v43 = vsel %vm1073_vm10, %v1070_v14, %v1072_v27  ;;  %v1075_v44 = vsel %vm1073_vm10, %v1072_v27, %v1070_v14  ;;  %v1241_v27 = vld [vmem:[%s16998_s22 + $0x30] sm:$0xff] }
  0xde   : > { %v729_v19 = vmul.f32 %v11553_v9, %v726_v16  ;;  %v730_v20 = vmul.f32 %v11556_v10, %v725_v15  ;;  %v1078_v50 = vmul.f32 %v11573_v38, %v1074_v43  ;;  %v1079_v52 = vmul.f32 %v11576_v39, %v1075_v44  ;;  %v10490_v15 = vld [vmem:[%s16989_s14 + $0x8] sm:$0xff]  ;;  %v10495_v16 = vld [vmem:[%s16989_s14 + $0x30] sm:$0xff] }
  0xe0   : > { %v776_v23 = vsel %vm775_vm3, %v729_v19, %v765_v11  ;;  %v777_v24 = vsel %vm775_vm3, %v730_v20, %v766_v12  ;;  %v1098_v60 = vrot.slane %v1078_v50, 5  ;;  %v1099_v61 = vrot.slane %v1079_v52, 5  ;;  %v1237_v19 = vld [vmem:[%s16998_s22 + $0x10] sm:$0xff] }
  0xe1   : > { %v779_v30 = vsel %vm778_vm4, %v776_v23, %v771_v17  ;;  %v780_v31 = vsel %vm778_vm4, %v777_v24, %v772_v18  ;;  %v10491_v20 = vld [vmem:[%s16989_s14 + $0x10] sm:$0xff]  ;;  %v10496_v23 = vld [vmem:[%s16989_s14 + $0x38] sm:$0xff]  ;;  %v1235_v24 = vld [vmem:[%s16998_s22] sm:$0xff] }
  0xe2   : > { %v781_v34 = vpack.c.bf16 %v771_v17, %v779_v30  ;;  %v782_v35 = vpack.c.bf16 %v772_v18, %v780_v31  ;;  %v1239_v17 = vld [vmem:[%s16998_s22 + $0x20] sm:$0xff]  ;;  %v11273_v18 = vmov 0   ;;  %v1236_v30 = vld [vmem:[%s16998_s22 + $0x8] sm:$0xff] }
  0xe3   : > { %10821 = vset.pattern.permute.xlu2 %v11273_v18  ;;  %10822 = vset.pattern.permute.xlu0 %v11273_v18  ;;  %v1240_v31 = vld [vmem:[%s16998_s22 + $0x28] sm:$0xff] }
  0xe4   : > { %v985_v36 = vand.u32 %v11516_v51, %v781_v34  ;;  %v988_v37 = vand.u32 %v11516_v51, %v782_v35  ;;  %v1086_v40 = vpop.permute.xlu0 %1085  ;;  %v1088_v41 = vpop.permute.xlu1 %1087  ;;  %1265 = vperm.xlu0 %10822, %v1239_v17   ;;  %10820 = vset.pattern.permute.xlu1 %v11273_v18  ;;  %v10492_v34 = vld [vmem:[%s16989_s14 + $0x18] sm:$0xff]  ;;  %v10497_v35 = vld [vmem:[%s16989_s14 + $0x40] sm:$0xff] }
  0xe5   : > { %v1090_v48 = vsel %vm1089_vm11, %v1086_v40, %v1088_v41  ;;  %v1091_v49 = vsel %vm1089_vm11, %v1088_v41, %v1086_v40  ;;  %1275 = vperm.xlu1 %10820, %v1241_v27   ;;  %v10499_v40 = vld [vmem:[%s16989_s14 + $0x50] sm:$0xff]  ;;  %v10500_v41 = vld [vmem:[%s16989_s14 + $0x58] sm:$0xff] }
  0xe6   : > { %997 = vmatpush.bf16.msra.mxu2 %v985_v36  ;;  %1026 = vmatpush.bf16.msra.mxu3 %v988_v37  ;;  %v1094_v53 = vmul.f32 %v11586_v45, %v1090_v48  ;;  %v1095_v54 = vmul.f32 %v11589_v46, %v1091_v49  ;;  %v1238_v36 = vld [vmem:[%s16998_s22 + $0x18] sm:$0xff]  ;;  %v10498_v37 = vld [vmem:[%s16989_s14 + $0x48] sm:$0xff]  ;;  %s11287_s14 = smov 120  }
  0xe8   : > { %v1104_v1 = vrot.slane %v1094_v53, 2  ;;  %v1105_v2 = vrot.slane %v1095_v54, 2 }
  0xe9   : > { %9223 = vmatmul.msk.bf16.vlgmr.msra.gmra.mxu2 %vm871_vm8, %v10489_v42  ;;  %9227 = vmatmul.msk.bf16.vlgmr.msra.gmra.mxu3 %vm871_vm8, %v10489_v42 }
  0xea   : > { %9200 = vmatmul.msk.bf16.gmra.mxu0 %vm871_vm8, %v10494_v47  ;;  %9204 = vmatmul.msk.bf16.gmra.mxu1 %vm871_vm8, %v10494_v47 }
  0xec   : > { %v1056_v62 = vpop.permute.xlu0 %1055  ;;  %1250 = vperm.xlu0 %10822, %v1236_v30  }
  0xed   : > { %v1058_v3 = vsel %vm1057_vm12, %v1054_v55, %v1056_v62  ;;  %v1059_v4 = vsel %vm1057_vm12, %v1056_v62, %v1054_v55  ;;  %1270 = vperm.xlu1 %10820, %v1240_v31  }
  0xee   : > { %v1062_v5 = vmul.f32 %v11608_v56, %v1058_v3  ;;  %v1063_v6 = vmul.f32 %v11611_v57, %v1059_v4 }
  0xf0   : > { %v1108_v25 = vsel %vm775_vm3, %v1062_v5, %v1098_v60  ;;  %v1109_v26 = vsel %vm775_vm3, %v1063_v6, %v1099_v61 }
  0xf1   : > { %v1110_v7 = vsel %vm778_vm4, %v1108_v25, %v1104_v1  ;;  %v1111_v8 = vsel %vm778_vm4, %v1109_v26, %v1105_v2 }
  0xf2   : > { %v1112_v11 = vpack.c.bf16 %v1104_v1, %v1110_v7  ;;  %v1113_v12 = vpack.c.bf16 %v1105_v2, %v1111_v8 }
  0xf4   : > { %v1156_v13 = vand.u32 %v1112_v11, %v11516_v51  ;;  %v1159_v14 = vand.u32 %v1113_v12, %v11516_v51  ;;  %v1242_v51 = vld [vmem:[%s16998_s22 + $0x38] sm:$0xff] }
  0xf5   : > { %1280 = vperm.xlu2 %10821, %v1242_v51   ;;  %1260 = vperm.xlu1 %10820, %v1238_v36  }
  0xf6   : > { %1168 = vmatpush.bf16.msrb.mxu0 %v1156_v13  ;;  %1197 = vmatpush.bf16.msrb.mxu1 %v1159_v14 }
  0xf9   : > { %9224 = vmatmul.msk.bf16.gmra.mxu2 %vm871_vm8, %v10490_v15  ;;  %9228 = vmatmul.msk.bf16.gmra.mxu3 %vm871_vm8, %v10490_v15 }
  0xfa   : > { %9201 = vmatmul.msk.bf16.gmra.mxu0 %vm871_vm8, %v10495_v16  ;;  %9205 = vmatmul.msk.bf16.gmra.mxu1 %vm871_vm8, %v10495_v16 }
  0xfd   : > { %1255 = vperm.xlu2 %10821, %v1237_v19  }
 0x105   : > { %1245 = vperm.xlu2 %10821, %v1235_v24  }
 0x109   : > { %9225 = vmatmul.msk.bf16.gmra.mxu2 %vm871_vm8, %v10491_v20  ;;  %9229 = vmatmul.msk.bf16.gmra.mxu3 %vm871_vm8, %v10491_v20 }
 0x10a   : > { %9202 = vmatmul.msk.bf16.gmra.mxu0 %vm871_vm8, %v10496_v23  ;;  %9206 = vmatmul.msk.bf16.gmra.mxu1 %vm871_vm8, %v10496_v23 }
 0x119   : > { %9226 = vmatmul.msk.bf16.gmra.mxu2 %vm871_vm8, %v10492_v34  ;;  %9230 = vmatmul.msk.bf16.gmra.mxu3 %vm871_vm8, %v10492_v34 }
 0x11a   : > { %9255 = vmatmul.msk.bf16.vlgmr.msrb.gmra.mxu0 %vm871_vm8, %v10497_v35  ;;  %9259 = vmatmul.msk.bf16.vlgmr.msrb.gmra.mxu1 %vm871_vm8, %v10497_v35 }
 0x12a   : > { %9256 = vmatmul.msk.bf16.gmra.mxu0 %vm871_vm8, %v10498_v37  ;;  %9260 = vmatmul.msk.bf16.gmra.mxu1 %vm871_vm8, %v10498_v37 }
 0x13a   : > { %9257 = vmatmul.msk.bf16.gmra.mxu0 %vm871_vm8, %v10499_v40  ;;  %9261 = vmatmul.msk.bf16.gmra.mxu1 %vm871_vm8, %v10499_v40 }
 0x14a   : > { %9258 = vmatmul.msk.bf16.gmra.mxu0 %vm871_vm8, %v10500_v41  ;;  %9262 = vmatmul.msk.bf16.gmra.mxu1 %vm871_vm8, %v10500_v41 }
 0x14f   : > { %v11710_v61 = vpop.permute.xlu2 %1280 }
 0x156   : > { %v11734_v31 = vpop.permute.xlu0 %1265 }
 0x157   : > { %v903_v42 = vpop.f32.mrf.mxu0  ;;  %v932_v43 = vpop.f32.mrf.mxu1 }
 0x158   : > { %v11716_v4 = vpop.permute.xlu2 %1255 }
 0x15f   : > { %v905_v44 = vpop.f32.mrf.mxu0  ;;  %v934_v47 = vpop.f32.mrf.mxu1 }
 0x160   : > { %v1246_v51 = vpop.permute.xlu2 %1245 }
 0x167   : > { %v11694_v48 = vpop.f32.mrf.mxu0  ;;  %v11696_v49 = vpop.f32.mrf.mxu1 }
 0x16c   : > { %v999_v62 = vpop.f32.mrf.mxu2  ;;  %v1028_v1 = vpop.f32.mrf.mxu3 }
 0x16d   : > { %v1000_v7 = vadd.f32 %v999_v62, %v903_v42  ;;  %v1029_v8 = vadd.f32 %v1028_v1, %v932_v43  ;;  %v1251_v42 = vpop.permute.xlu0 %1250 }
 0x16f   : > { %v11698_v50 = vpop.f32.mrf.mxu0  ;;  %v11700_v52 = vpop.f32.mrf.mxu1 }
 0x174   : > { %v1001_v5 = vpop.f32.mrf.mxu2  ;;  %v1030_v6 = vpop.f32.mrf.mxu3 }
 0x175   : > { %v1002_v36 = vadd.f32 %v1001_v5, %v905_v44 }
 0x177   : > { %v11702_v53 = vpop.f32.mrf.mxu0  ;;  %v11704_v54 = vpop.f32.mrf.mxu1 }
 0x17c   : > { %v1004_v13 = vpop.f32.mrf.mxu2  ;;  %v11722_v14 = vpop.f32.mrf.mxu3 }
 0x17f   : > { %v11706_v55 = vpop.f32.mrf.mxu0  ;;  %v11708_v60 = vpop.f32.mrf.mxu1 }
 0x184   : > { %v1006_v27 = vpop.f32.mrf.mxu2  ;;  %v1035_v30 = vpop.f32.mrf.mxu3 }
 0x185   : > { %v1007_v21 = vadd.f32 %v1006_v27, %v11698_v50  ;;  %v1036_v57 = vadd.f32 %v1035_v30, %v11700_v52 }
 0x187   : > { %v11712_v2 = vpop.f32.mrf.mxu0  ;;  %v11714_v3 = vpop.f32.mrf.mxu1 }
 0x18c   : > { %v1009_v37 = vpop.f32.mrf.mxu2  ;;  %v1038_v40 = vpop.f32.mrf.mxu3 }
 0x18f   : > { %v11718_v25 = vpop.f32.mrf.mxu0  ;;  %v11720_v26 = vpop.f32.mrf.mxu1 }
 0x194   : > { %v1011_v44 = vpop.f32.mrf.mxu2  ;;  %v1040_v5 = vpop.f32.mrf.mxu3 }
 0x197   : > { %v1170_v11 = vpop.f32.mrf.mxu0  ;;  %v1199_v12 = vpop.f32.mrf.mxu1 }
 0x198   : > { %v1219_v15 = vadd.f32 %v1170_v11, %v1000_v7  ;;  %v1220_v16 = vadd.f32 %v1199_v12, %v1029_v8  ;;  %v1031_v7 = vadd.f32 %v1030_v6, %v934_v47 }
 0x19a   : > { %v1283_v17 = vadd.f32 %v1246_v51, %v1219_v15  ;;  %v1284_v18 = vadd.f32 %v1246_v51, %v1220_v16  ;;  %v1276_v51 = vpop.permute.xlu1 %1275 }
 0x19c   : > { %v11724_v19 = vmax.f32 %v1283_v17, 0.0  ;;  %v11726_v20 = vmax.f32 %v1284_v18, 0.0  ;;  %v1014_v18 = vpop.f32.mrf.mxu2 }
 0x19e   : > { %1675 = vrot.lane.b32.xlu0 %v11726_v20, %s11265_s1  ;;  %1739 = vrot.lane.b32.xlu2 %v11724_v19, %s16903_s2 }
 0x19f   : > { %1659 = vrot.lane.b32.xlu1 %v11724_v19, %s11265_s1  ;;  %v1172_v23 = vpop.f32.mrf.mxu0  ;;  %v1201_v24 = vpop.f32.mrf.mxu1 }
 0x1a0   : > { %v1221_v41 = vadd.f32 %v1172_v23, %v1002_v36  ;;  %v1222_v8 = vadd.f32 %v1201_v24, %v1031_v7  ;;  %v1043_v23 = vpop.f32.mrf.mxu3  ;;  %v1005_v24 = vadd.f32 %v1004_v13, %v11694_v48  ;;  %v1012_v7 = vadd.f32 %v1011_v44, %v11706_v55 }
 0x1a1   : > { %v1041_v48 = vadd.f32 %v1040_v5, %v11708_v60 }
 0x1a2   : > { %v1285_v1 = vadd.f32 %v1251_v42, %v1221_v41  ;;  %v1286_v16 = vadd.f32 %v1251_v42, %v1222_v8  ;;  %v1271_v41 = vpop.permute.xlu1 %1270  ;;  %v1015_v42 = vadd.f32 %v1014_v18, %v11712_v2  ;;  %v1039_v18 = vadd.f32 %v1038_v40, %v11704_v54 }
 0x1a4   : > { %v11748_v11 = vmax.f32 %v1285_v1, 0.0  ;;  %v11756_v17 = vmax.f32 %v1286_v16, 0.0  ;;  %v1044_v1 = vadd.f32 %v1043_v23, %v11714_v3  ;;  %v1010_v3 = vadd.f32 %v1009_v37, %v11702_v53 }
 0x1a5   : > { %v1034_v23 = vadd.f32 %v11722_v14, %v11696_v49 }
 0x1a6   : > { %1387 = vrot.lane.b32.xlu0 %v11724_v19, %s11264_s23  ;;  %1403 = vrot.lane.b32.xlu2 %v11726_v20, %s11264_s23 }
 0x1a7   : > { %1755 = vrot.lane.b32.xlu1 %v11726_v20, %s16903_s2  ;;  %v1175_v34 = vpop.f32.mrf.mxu0  ;;  %v1204_v35 = vpop.f32.mrf.mxu1 }
 0x1a8   : > { %v1223_v36 = vadd.f32 %v1175_v34, %v1005_v24  ;;  %v1016_v24 = vpop.f32.mrf.mxu2  ;;  %v1045_v56 = vpop.f32.mrf.mxu3  ;;  %v1224_v54 = vadd.f32 %v1204_v35, %v1034_v23 }
 0x1a9   : > { %v1017_v53 = vadd.f32 %v1016_v24, %v11718_v25  ;;  %v1046_v49 = vadd.f32 %v1045_v56, %v11720_v26 }
 0x1aa   : > { %v1287_v13 = vadd.f32 %v11716_v4, %v1223_v36  ;;  %v1261_v14 = vpop.permute.xlu1 %1260  ;;  %v1288_v30 = vadd.f32 %v11716_v4, %v1224_v54 }
 0x1ac   : > { %v11782_v36 = vmax.f32 %v1287_v13, 0.0 }
 0x1ae   : > { %1331 = vrot.lane.b32.xlu0 %v11726_v20, %s11266_s24  ;;  %1459 = vrot.lane.b32.xlu2 %v11724_v19, %s16999_s17 }
 0x1af   : > { %1315 = vrot.lane.b32.xlu1 %v11724_v19, %s11266_s24  ;;  %v1177_v43 = vpop.f32.mrf.mxu0  ;;  %v1206_v62 = vpop.f32.mrf.mxu1 }
 0x1b0   : > { %v1225_v37 = vadd.f32 %v1177_v43, %v1007_v21  ;;  %v1226_v40 = vadd.f32 %v1206_v62, %v1036_v57 }
 0x1b2   : > { %v1289_v35 = vadd.f32 %v1261_v14, %v1225_v37  ;;  %v1290_v43 = vadd.f32 %v1261_v14, %v1226_v40  ;;  %v1732_v37 = vpack.c.bf16 %v11756_v17, %v11748_v11 }
 0x1b4   : > { %v11819_v13 = vmax.f32 %v1290_v43, 0.0 }
 0x1b6   : > { %1741 = vrot.lane.b32.xlu0 %v11748_v11, %s16903_s2  ;;  %1661 = vrot.lane.b32.xlu2 %v11748_v11, %s11265_s1 }
 0x1b7   : > { %1475 = vrot.lane.b32.xlu1 %v11726_v20, %s16999_s17  ;;  %v1180_v12 = vpop.f32.mrf.mxu0  ;;  %v1209_v15 = vpop.f32.mrf.mxu1 }
 0x1b8   : > { %v1227_v60 = vadd.f32 %v1180_v12, %v1010_v3  ;;  %v1228_v5 = vadd.f32 %v1209_v15, %v1039_v18 }
 0x1ba   : > { %v1291_v50 = vadd.f32 %v11734_v31, %v1227_v60  ;;  %v1292_v52 = vadd.f32 %v11734_v31, %v1228_v5 }
 0x1be   : > { %1405 = vrot.lane.b32.xlu0 %v11756_v17, %s11264_s23  ;;  %1757 = vrot.lane.b32.xlu2 %v11756_v17, %s16903_s2 }
 0x1bf   : > { %1677 = vrot.lane.b32.xlu1 %v11756_v17, %s11265_s1  ;;  %v1182_v47 = vpop.f32.mrf.mxu0  ;;  %v1211_v6 = vpop.f32.mrf.mxu1 }
 0x1c0   : > { %v1229_v55 = vadd.f32 %v1182_v47, %v1012_v7  ;;  %v1230_v44 = vadd.f32 %v1211_v6, %v1041_v48  ;;  %v11817_v48 = vmax.f32 %v1289_v35, 0.0 }
 0x1c2   : > { %v1293_v47 = vadd.f32 %v1271_v41, %v1229_v55  ;;  %v1294_v6 = vadd.f32 %v1271_v41, %v1230_v44  ;;  %v11807_v41 = vmax.f32 %v1292_v52, 0.0  ;;  %v1734_v55 = vpack.c.bf16 %v11819_v13, %v11817_v48 }
 0x1c3   : > { %v1731_v52 = vpack.c.bf16 %v11726_v20, %v11724_v19 }
 0x1c4   : > { %v11799_v62 = vmax.f32 %v1293_v47, 0.0  ;;  %v11801_v12 = vmax.f32 %v1294_v6, 0.0  ;;  %v1865_v14 = vunpack.c.l.b16 %v1734_v55  ;;  %v1866_v47 = vunpack.c.h.b16 %v1734_v55 }
 0x1c5   : > { %v1860_v35 = vunpack.c.h.b16 %v1731_v52 }
 0x1c6   : > { %1461 = vrot.lane.b32.xlu0 %v11748_v11, %s16999_s17  ;;  %1317 = vrot.lane.b32.xlu2 %v11748_v11, %s11266_s24 }
 0x1c7   : > { %1389 = vrot.lane.b32.xlu1 %v11748_v11, %s11264_s23  ;;  %v1185_v8 = vpop.f32.mrf.mxu0  ;;  %v1214_v16 = vpop.f32.mrf.mxu1 }
 0x1c8   : > { %v1231_v2 = vadd.f32 %v1185_v8, %v1015_v42  ;;  %v1232_v34 = vadd.f32 %v1214_v16, %v1044_v1  ;;  %v11815_v16 = vmax.f32 %v1288_v30, 0.0  ;;  %v1859_v30 = vunpack.c.l.b16 %v1731_v52 }
 0x1ca   : > { %v1295_v42 = vadd.f32 %v1276_v51, %v1231_v2  ;;  %v1296_v1 = vadd.f32 %v1276_v51, %v1232_v34  ;;  %v11805_v51 = vmax.f32 %v1291_v50, 0.0  ;;  %v1736_v2 = vpack.c.bf16 %v11801_v12, %v11799_v62 }
 0x1cb   : > { %v1733_v54 = vpack.c.bf16 %v11815_v16, %v11782_v36 }
 0x1cc   : > { %v11794_v25 = vmax.f32 %v1295_v42, 0.0  ;;  %v11796_v56 = vmax.f32 %v1296_v1, 0.0  ;;  %v1735_v34 = vpack.c.bf16 %v11807_v41, %v11805_v51  ;;  %v1869_v5 = vunpack.c.l.b16 %v1736_v2 }
 0x1cd   : > { %v1870_v42 = vunpack.c.h.b16 %v1736_v2  ;;  %v1863_v6 = vunpack.c.l.b16 %v1733_v54  ;;  %v1864_v50 = vunpack.c.h.b16 %v1733_v54 }
 0x1ce   : > { %1743 = vrot.lane.b32.xlu0 %v11782_v36, %s16903_s2  ;;  %1477 = vrot.lane.b32.xlu2 %v11756_v17, %s16999_s17  ;;  %v1737_v4 = vpack.c.bf16 %v11796_v56, %v11794_v25  ;;  %v1867_v1 = vunpack.c.l.b16 %v1735_v34 }
 0x1cf   : > { %1333 = vrot.lane.b32.xlu1 %v11756_v17, %s11266_s24  ;;  %v1187_v21 = vpop.f32.mrf.mxu0  ;;  %v1216_v57 = vpop.f32.mrf.mxu1 }
 0x1d0   : > { %v1233_v26 = vadd.f32 %v1187_v21, %v1017_v53  ;;  %v1234_v27 = vadd.f32 %v1216_v57, %v1046_v49  ;;  %v1871_v3 = vunpack.c.l.b16 %v1737_v4  ;;  %v1872_v18 = vunpack.c.h.b16 %v1737_v4 }
 0x1d1   : > { %v1868_v53 = vunpack.c.h.b16 %v1735_v34  ;;  %v1879_v40 = vpack.c.b16 %v1869_v5, %v1867_v1  ;;  %v1877_v21 = vpack.c.b16 %v1865_v14, %v1863_v6  ;;  %v1878_v57 = vpack.c.b16 %v1866_v47, %v1864_v50 }
 0x1d2   : > { %v1297_v31 = vadd.f32 %v11710_v61, %v1233_v26  ;;  %v1298_v15 = vadd.f32 %v11710_v61, %v1234_v27  ;;  %v1861_v26 = vunpack.c.l.b16 %v1732_v37  ;;  %v1862_v27 = vunpack.c.h.b16 %v1732_v37 }
 0x1d3   : > { %v1880_v49 = vpack.c.b16 %v1870_v42, %v1868_v53 }
 0x1d4   : > { %v11809_v7 = vmax.f32 %v1297_v31, 0.0  ;;  %v11811_v8 = vmax.f32 %v1298_v15, 0.0  ;;  %v1875_v43 = vpack.c.b16 %v1861_v26, %v1859_v30  ;;  %v1876_v31 = vpack.c.b16 %v1862_v27, %v1860_v35 }
 0x1d6   : > { %1463 = vrot.lane.b32.xlu0 %v11782_v36, %s16999_s17  ;;  %1663 = vrot.lane.b32.xlu2 %v11782_v36, %s11265_s1  ;;  %v1738_v61 = vpack.c.bf16 %v11811_v8, %v11809_v7 }
 0x1d7   : > { %1679 = vrot.lane.b32.xlu1 %v11815_v16, %s11265_s1 }
 0x1d8   : > { %v1873_v23 = vunpack.c.l.b16 %v1738_v61  ;;  %v1874_v24 = vunpack.c.h.b16 %v1738_v61 }
 0x1da   : > { %v1881_v44 = vpack.c.b16 %v1873_v23, %v1871_v3  ;;  %v1882_v60 = vpack.c.b16 %v1874_v24, %v1872_v18 }
 0x1dc   : > { %1989 = vmatpush.bf16.msrb.mxu2 %v1881_v44  ;;  %2047 = vmatpush.bf16.msra.mxu0 %v1882_v60 }
 0x1de   : > { %1665 = vrot.lane.b32.xlu0 %v11817_v48, %s11265_s1  ;;  %1759 = vrot.lane.b32.xlu2 %v11815_v16, %s16903_s2 }
 0x1df   : > { %1407 = vrot.lane.b32.xlu1 %v11815_v16, %s11264_s23 }
 0x1e0   : > { %1990 = vmatpush.bf16.msrb.mxu2 %v1879_v40  ;;  %2048 = vmatpush.bf16.msra.mxu0 %v1880_v49 }
 0x1e4   : > { %1991 = vmatpush.bf16.msrb.mxu2 %v1877_v21  ;;  %2049 = vmatpush.bf16.msra.mxu0 %v1878_v57 }
 0x1e6   : > { %1761 = vrot.lane.b32.xlu0 %v11819_v13, %s16903_s2  ;;  %1391 = vrot.lane.b32.xlu2 %v11782_v36, %s11264_s23 }
 0x1e7   : > { %1335 = vrot.lane.b32.xlu1 %v11815_v16, %s11266_s24 }
 0x1e8   : > { %1992 = vmatpush.bf16.msrb.mxu2 %v1875_v43  ;;  %2050 = vmatpush.bf16.msra.mxu0 %v1876_v31 }
 0x1ee   : > { %1393 = vrot.lane.b32.xlu0 %v11817_v48, %s11264_s23  ;;  %1319 = vrot.lane.b32.xlu2 %v11782_v36, %s11266_s24 }
 0x1ef   : > { %1745 = vrot.lane.b32.xlu1 %v11817_v48, %s16903_s2 }
 0x1f6   : > { %1321 = vrot.lane.b32.xlu0 %v11817_v48, %s11266_s24  ;;  %1479 = vrot.lane.b32.xlu2 %v11815_v16, %s16999_s17 }
 0x1f7   : > { %1465 = vrot.lane.b32.xlu1 %v11817_v48, %s16999_s17 }
 0x1f8   : > { %v11865_v15 = vpop.permute.xlu2 %1739 }
 0x1fe   : > { %1481 = vrot.lane.b32.xlu0 %v11819_v13, %s16999_s17  ;;  %1681 = vrot.lane.b32.xlu2 %v11819_v13, %s11265_s1 }
 0x1ff   : > { %1747 = vrot.lane.b32.xlu1 %v11805_v51, %s16903_s2 }
 0x200   : > { %v11873_v4 = vpop.permute.xlu2 %1403 }
 0x206   : > { %1667 = vrot.lane.b32.xlu0 %v11805_v51, %s11265_s1  ;;  %1409 = vrot.lane.b32.xlu2 %v11819_v13, %s11264_s23 }
 0x207   : > { %1395 = vrot.lane.b32.xlu1 %v11805_v51, %s11264_s23 }
 0x208   : > { %v11881_v61 = vpop.permute.xlu2 %1459 }
 0x209   : > { %17000 = vst [vmem:[#allocation20_spill] sm:$0xff] %v11881_v61 }
 0x20e   : > { %1763 = vrot.lane.b32.xlu0 %v11807_v41, %s16903_s2  ;;  %1337 = vrot.lane.b32.xlu2 %v11819_v13, %s11266_s24 }
 0x20f   : > { %1467 = vrot.lane.b32.xlu1 %v11805_v51, %s16999_s17 }
 0x210   : > { %v11889_v2 = vpop.permute.xlu0 %1675  ;;  %v11891_v34 = vpop.permute.xlu2 %1661 }
 0x211   : > { %v11893_v3 = vpop.permute.xlu1 %1659 }
 0x216   : > { %1411 = vrot.lane.b32.xlu0 %v11807_v41, %s11264_s23  ;;  %1683 = vrot.lane.b32.xlu2 %v11807_v41, %s11265_s1 }
 0x217   : > { %1669 = vrot.lane.b32.xlu1 %v11799_v62, %s11265_s1 }
 0x218   : > { %v11901_v18 = vpop.permute.xlu0 %1387  ;;  %v11903_v23 = vpop.permute.xlu2 %1757 }
 0x219   : > { %v11905_v24 = vpop.permute.xlu1 %1755 }
 0x21e   : > { %1323 = vrot.lane.b32.xlu0 %v11805_v51, %s11266_s24  ;;  %1339 = vrot.lane.b32.xlu2 %v11807_v41, %s11266_s24 }
 0x21f   : > { %1765 = vrot.lane.b32.xlu1 %v11801_v12, %s16903_s2 }
 0x220   : > { %v11913_v55 = vpop.permute.xlu0 %1331  ;;  %v11915_v44 = vpop.permute.xlu2 %1317 }
 0x221   : > { %17001 = vst [vmem:[#allocation21_spill] sm:$0xff] %v11913_v55  ;;  %v11917_v60 = vpop.permute.xlu1 %1315 }
 0x222   : > { %17002 = vst [vmem:[#allocation22_spill] sm:$0xff] %v11915_v44 }
 0x223   : > { %17003 = vst [vmem:[#allocation23_spill] sm:$0xff] %v11917_v60 }
 0x226   : > { %1483 = vrot.lane.b32.xlu0 %v11807_v41, %s16999_s17  ;;  %1749 = vrot.lane.b32.xlu2 %v11799_v62, %s16903_s2 }
 0x227   : > { %1413 = vrot.lane.b32.xlu1 %v11801_v12, %s11264_s23 }
 0x228   : > { %v11925_v5 = vpop.permute.xlu0 %1741  ;;  %v11927_v42 = vpop.permute.xlu2 %1477 }
 0x229   : > { %v11929_v1 = vpop.permute.xlu1 %1475 }
 0x22a   : > { %17004 = vst [vmem:[#allocation24_spill] sm:$0xff] %v11929_v1 }
 0x22e   : > { %1685 = vrot.lane.b32.xlu0 %v11801_v12, %s11265_s1  ;;  %1397 = vrot.lane.b32.xlu2 %v11799_v62, %s11264_s23 }
 0x22f   : > { %1325 = vrot.lane.b32.xlu1 %v11799_v62, %s11266_s24 }
 0x230   : > { %v11937_v53 = vpop.permute.xlu0 %1405  ;;  %v11939_v54 = vpop.permute.xlu2 %1663 }
 0x231   : > { %v11941_v37 = vpop.permute.xlu1 %1677 }
 0x236   : > { %1341 = vrot.lane.b32.xlu0 %v11801_v12, %s11266_s24  ;;  %1469 = vrot.lane.b32.xlu2 %v11799_v62, %s16999_s17 }
 0x237   : > { %1485 = vrot.lane.b32.xlu1 %v11801_v12, %s16999_s17 }
 0x238   : > { %v11949_v40 = vpop.permute.xlu0 %1461  ;;  %v11951_v49 = vpop.permute.xlu2 %1759 }
 0x239   : > { %v11953_v14 = vpop.permute.xlu1 %1389 }
 0x23e   : > { %1687 = vrot.lane.b32.xlu0 %v11796_v56, %s11265_s1  ;;  %1751 = vrot.lane.b32.xlu2 %v11794_v25, %s16903_s2 }
 0x23f   : > { %1671 = vrot.lane.b32.xlu1 %v11794_v25, %s11265_s1 }
 0x240   : > { %v11961_v47 = vpop.permute.xlu0 %1743  ;;  %v11963_v6 = vpop.permute.xlu2 %1391 }
 0x241   : > { %17005 = vst [vmem:[#allocation25_spill] sm:$0xff] %v11963_v6  ;;  %v11965_v50 = vpop.permute.xlu1 %1333 }
 0x242   : > { %17006 = vst [vmem:[#allocation26_spill] sm:$0xff] %v11965_v50 }
 0x246   : > { %1399 = vrot.lane.b32.xlu0 %v11794_v25, %s11264_s23  ;;  %1415 = vrot.lane.b32.xlu2 %v11796_v56, %s11264_s23 }
 0x247   : > { %1767 = vrot.lane.b32.xlu1 %v11796_v56, %s16903_s2 }
 0x248   : > { %v11973_v52 = vpop.permute.xlu0 %1463  ;;  %v11975_v21 = vpop.permute.xlu2 %1319 }
 0x249   : > { %17007 = vst [vmem:[#allocation27_spill] sm:$0xff] %v11973_v52  ;;  %v11977_v57 = vpop.permute.xlu1 %1679 }
 0x24a   : > { %17008 = vst [vmem:[#allocation28_spill] sm:$0xff] %v11975_v21 }
 0x24e   : > { %1343 = vrot.lane.b32.xlu0 %v11796_v56, %s11266_s24  ;;  %1471 = vrot.lane.b32.xlu2 %v11794_v25, %s16999_s17 }
 0x24f   : > { %1327 = vrot.lane.b32.xlu1 %v11794_v25, %s11266_s24 }
 0x250   : > { %v11985_v26 = vpop.permute.xlu0 %1665  ;;  %v11987_v27 = vpop.permute.xlu2 %1479 }
 0x251   : > { %17009 = vst [vmem:[#allocation29_spill] sm:$0xff] %v11987_v27  ;;  %v11989_v30 = vpop.permute.xlu1 %1407 }
 0x252   : > { %17010 = vst [vmem:[#allocation30_spill] sm:$0xff] %v11989_v30 }
 0x256   : > { %1753 = vrot.lane.b32.xlu0 %v11809_v7, %s16903_s2  ;;  %1673 = vrot.lane.b32.xlu2 %v11809_v7, %s11265_s1 }
 0x257   : > { %1487 = vrot.lane.b32.xlu1 %v11796_v56, %s16999_s17 }
 0x258   : > { %v11997_v35 = vpop.permute.xlu0 %1761  ;;  %v11999_v43 = vpop.permute.xlu2 %1681 }
 0x259   : > { %v12001_v31 = vpop.permute.xlu1 %1335 }
 0x25a   : > { %17011 = vst [vmem:[#allocation31_spill] sm:$0xff] %v12001_v31 }
 0x25e   : > { %2353 = vrot.lane.b32.xlu0 %v11794_v25, %s17012_s26  ;;  %1769 = vrot.lane.b32.xlu2 %v11811_v8, %s16903_s2 }
 0x25f   : > { %1689 = vrot.lane.b32.xlu1 %v11811_v8, %s11265_s1 }
 0x260   : > { %v12009_v46 = vpop.permute.xlu0 %1393  ;;  %v12011_v45 = vpop.permute.xlu2 %1409 }
 0x261   : > { %17013 = vst [vmem:[#allocation32_spill] sm:$0xff] %v12009_v46  ;;  %v12013_v39 = vpop.permute.xlu1 %1745 }
 0x266   : > { %2365 = vrot.lane.b32.xlu0 %v11807_v41, %s17012_s26  ;;  %2369 = vrot.lane.b32.xlu2 %v11796_v56, %s17012_s26 }
 0x267   : > { %2349 = vrot.lane.b32.xlu1 %v11805_v51, %s17012_s26 }
 0x268   : > { %v12021_v38 = vpop.permute.xlu0 %1321  ;;  %v12023_v10 = vpop.permute.xlu2 %1337 }
 0x269   : > { %17014 = vst [vmem:[#allocation33_spill] sm:$0xff] %v12021_v38  ;;  %v12025_v9 = vpop.permute.xlu1 %1465 }
 0x26a   : > { %17015 = vst [vmem:[#allocation34_spill] sm:$0xff] %v12023_v10 }
 0x26b   : > { %17016 = vst [vmem:[#allocation35_spill] sm:$0xff] %v12025_v9 }
 0x26e   : > { %2347 = vrot.lane.b32.xlu0 %v11817_v48, %s17012_s26  ;;  %2351 = vrot.lane.b32.xlu2 %v11799_v62, %s17012_s26 }
 0x26f   : > { %2367 = vrot.lane.b32.xlu1 %v11801_v12, %s17012_s26 }
 0x270   : > { %v12033_v21 = vpop.permute.xlu0 %1481  ;;  %v12035_v31 = vpop.permute.xlu2 %1683 }
 0x271   : > { %17017 = vst [vmem:[#allocation36_spill] sm:$0xff] %v12033_v21  ;;  %v12037_v44 = vpop.permute.xlu1 %1747 }
 0x276   : > { %2341 = vrot.lane.b32.xlu0 %v11724_v19, %s17012_s26  ;;  %2345 = vrot.lane.b32.xlu2 %v11782_v36, %s17012_s26 }
 0x277   : > { %2361 = vrot.lane.b32.xlu1 %v11815_v16, %s17012_s26 }
 0x278   : > { %v12045_v9 = vpop.permute.xlu0 %1667  ;;  %v12047_v38 = vpop.permute.xlu2 %1339 }
 0x279   : > { %17018 = vst [vmem:[#allocation37_spill] sm:$0xff] %v12047_v38  ;;  %v12049_v10 = vpop.permute.xlu1 %1395 }
 0x27a   : > { %17019 = vst [vmem:[#allocation38_spill] sm:$0xff] %v12049_v10 }
 0x27e   : > { %2359 = vrot.lane.b32.xlu0 %v11756_v17, %s17012_s26  ;;  %2363 = vrot.lane.b32.xlu2 %v11819_v13, %s17012_s26 }
 0x27f   : > { %2343 = vrot.lane.b32.xlu1 %v11748_v11, %s17012_s26 }
 0x280   : > { %v12057_v21 = vpop.permute.xlu0 %1763  ;;  %v12059_v50 = vpop.permute.xlu2 %1749 }
 0x281   : > { %v12061_v60 = vpop.permute.xlu1 %1467 }
 0x282   : > { %17020 = vst [vmem:[#allocation39_spill] sm:$0xff] %v12061_v60 }
 0x286   : > { %1417 = vrot.lane.b32.xlu0 %v11811_v8, %s11264_s23  ;;  %2357 = vrot.lane.b32.xlu2 %v11726_v20, %s17012_s26 }
 0x287   : > { %2281 = vrot.lane.b32.xlu1 %v11794_v25, %s17021_s28 }
 0x288   : > { %v12069_v38 = vpop.permute.xlu0 %1411  ;;  %v12071_v10 = vpop.permute.xlu2 %1397 }
 0x289   : > { %17022 = vst [vmem:[#allocation40_spill] sm:$0xff] %v12069_v38  ;;  %v12073_v55 = vpop.permute.xlu1 %1669 }
 0x28a   : > { %17023 = vst [vmem:[#allocation41_spill] sm:$0xff] %v12071_v10 }
 0x28e   : > { %2297 = vrot.lane.b32.xlu0 %v11796_v56, %s17021_s28  ;;  %2425 = vrot.lane.b32.xlu2 %v11794_v25, %s17024_s4 }
 0x28f   : > { %1401 = vrot.lane.b32.xlu1 %v11809_v7, %s11264_s23  ;;  %s11278_s23 = smov 8  }
 0x290   : > { %v12081_v60 = vpop.permute.xlu0 %1323  ;;  %v12083_v52 = vpop.permute.xlu2 %1469 }
 0x291   : > { %17025 = vst [vmem:[#allocation42_spill] sm:$0xff] %v12081_v60  ;;  %v1766_v27 = vpop.permute.xlu1 %1765 }
 0x292   : > { %17026 = vst [vmem:[#allocation43_spill] sm:$0xff] %v12083_v52 }
 0x296   : > { %1473 = vrot.lane.b32.xlu0 %v11809_v7, %s16999_s17  ;;  %1329 = vrot.lane.b32.xlu2 %v11809_v7, %s11266_s24 }
 0x297   : > { %2441 = vrot.lane.b32.xlu1 %v11796_v56, %s17024_s4 }
 0x298   : > { %v12091_v10 = vpop.permute.xlu0 %1483  ;;  %v1752_v25 = vpop.permute.xlu2 %1751 }
 0x299   : > { %17027 = vst [vmem:[#allocation44_spill] sm:$0xff] %v12091_v10  ;;  %v12093_v38 = vpop.permute.xlu1 %1413 }
 0x29a   : > { %17028 = vst [vmem:[#allocation45_spill] sm:$0xff] %v12093_v38 }
 0x29e   : > { %2277 = vrot.lane.b32.xlu0 %v11805_v51, %s17021_s28  ;;  %1489 = vrot.lane.b32.xlu2 %v11811_v8, %s16999_s17  ;;  %s16907_s17 = smov 73  }
 0x29f   : > { %1345 = vrot.lane.b32.xlu1 %v11811_v8, %s11266_s24  ;;  %s11279_s24 = smov 56  }
 0x2a0   : > { %v12101_v60 = vpop.permute.xlu0 %1685  ;;  %v12103_v52 = vpop.permute.xlu2 %1415 }
 0x2a1   : > { %17029 = vst [vmem:[#allocation46_spill] sm:$0xff] %v12103_v52  ;;  %v12105_v61 = vpop.permute.xlu1 %1325 }
 0x2a2   : > { %17030 = vst [vmem:[#allocation47_spill] sm:$0xff] %v12105_v61 }
 0x2a6   : > { %2295 = vrot.lane.b32.xlu0 %v11801_v12, %s17021_s28  ;;  %2293 = vrot.lane.b32.xlu2 %v11807_v41, %s17021_s28 }
 0x2a7   : > { %2279 = vrot.lane.b32.xlu1 %v11799_v62, %s17021_s28 }
 0x2a8   : > { %v12113_v56 = vpop.permute.xlu0 %1341  ;;  %v12115_v10 = vpop.permute.xlu2 %1471 }
 0x2a9   : > { %17031 = vst [vmem:[#allocation48_spill] sm:$0xff] %v12113_v56  ;;  %v12117_v38 = vpop.permute.xlu1 %1485 }
 0x2aa   : > { %17032 = vst [vmem:[#allocation49_spill] sm:$0xff] %v12115_v10  ;;  %v1771_v10 = vsel %vm816_vm1, %v11865_v15, %v11905_v24 }
 0x2ab   : > { %17033 = vst [vmem:[#allocation50_spill] sm:$0xff] %v12117_v38  ;;  %v1781_v38 = vsel %vm816_vm1, %v11951_v49, %v11961_v47  ;;  %v1787_v30 = vmul.f32 %v1771_v10, %v11499_v32  ;;  %v12191_v10 = vsel %vm800_vm0, %v11893_v3, %v11889_v2 }
 0x2ae   : > { %2437 = vrot.lane.b32.xlu0 %v11807_v41, %s17024_s4  ;;  %2423 = vrot.lane.b32.xlu2 %v11799_v62, %s17024_s4 }
 0x2af   : > { %2421 = vrot.lane.b32.xlu1 %v11805_v51, %s17024_s4  ;;  %v1773_v51 = vsel %vm816_vm1, %v11961_v47, %v11951_v49  ;;  %v1780_v49 = vsel %vm816_vm1, %v11903_v23, %v11925_v5 }
 0x2b0   : > { %v12125_v61 = vpop.permute.xlu0 %1687  ;;  %v12127_v52 = vpop.permute.xlu2 %1673  ;;  %v1791_v47 = vmul.f32 %v1773_v51, %v11499_v32 }
 0x2b1   : > { %v12129_v1 = vpop.permute.xlu1 %1671 }
 0x2b6   : > { %2275 = vrot.lane.b32.xlu0 %v11817_v48, %s17021_s28  ;;  %2273 = vrot.lane.b32.xlu2 %v11782_v36, %s17021_s28 }
 0x2b7   : > { %2439 = vrot.lane.b32.xlu1 %v11801_v12, %s17024_s4  ;;  %v1779_v12 = vsel %vm816_vm1, %v11905_v24, %v11865_v15  ;;  %v1792_v15 = vmul.f32 %v1781_v38, %v11502_v33 }
 0x2b8   : > { %v12137_v41 = vpop.permute.xlu0 %1399  ;;  %v1770_v62 = vpop.permute.xlu2 %1769 }
 0x2b9   : > { %17034 = vst [vmem:[#allocation51_spill] sm:$0xff] %v12137_v41  ;;  %v1768_v56 = vpop.permute.xlu1 %1767  ;;  %v1772_v41 = vsel %vm816_vm1, %v11925_v5, %v11903_v23  ;;  %v1788_v23 = vmul.f32 %v1779_v12, %v11502_v33  ;;  %v1790_v5 = vmul.f32 %v1780_v49, %v11502_v33  ;;  %v12185_v46 = vpack.c.bf16 %v1792_v15, %v1791_v47 }
 0x2ba   : > { %v1777_v38 = vsel %vm816_vm1, %v1752_v25, %v1768_v56  ;;  %v1785_v51 = vsel %vm816_vm1, %v1768_v56, %v1752_v25  ;;  %v1776_v12 = vsel %vm816_vm1, %v12059_v50, %v1766_v27  ;;  %v1784_v56 = vsel %vm816_vm1, %v1766_v27, %v12059_v50 }
 0x2bb   : > { %v12202_v49 = vpack.c.bf16 %v1788_v23, %v1787_v30  ;;  %v1799_v47 = vmul.f32 %v1777_v38, %v11499_v32  ;;  %v1800_v15 = vmul.f32 %v1785_v51, %v11502_v33  ;;  %v12231_v50 = vsel %vm800_vm0, %v11939_v54, %v11977_v57 }
 0x2bc   : > { %v1774_v27 = vsel %vm816_vm1, %v12013_v39, %v11997_v35 }
 0x2be   : > { %2417 = vrot.lane.b32.xlu0 %v11782_v36, %s17024_s4  ;;  %2291 = vrot.lane.b32.xlu2 %v11819_v13, %s17021_s28  ;;  %v1789_v36 = vmul.f32 %v1772_v41, %v11499_v32  ;;  %v12197_v41 = vsel %vm800_vm0, %v11889_v2, %v11893_v3  ;;  %v12219_v2 = vsel %vm800_vm0, %v11891_v34, %v11941_v37 }
 0x2bf   : > { %2289 = vrot.lane.b32.xlu1 %v11815_v16, %s17021_s28  ;;  %v12225_v3 = vsel %vm800_vm0, %v11941_v37, %v11891_v34  ;;  %v1782_v34 = vsel %vm816_vm1, %v11997_v35, %v12013_v39  ;;  %v1775_v37 = vsel %vm816_vm1, %v12037_v44, %v12057_v21 }
 0x2c0   : > { %v12171_v24 = vpop.permute.xlu0 %1343  ;;  %v12173_v6 = vpop.permute.xlu2 %2369  ;;  %v12204_v25 = vpack.c.bf16 %v1790_v5, %v1789_v36  ;;  %v1797_v36 = vmul.f32 %v1776_v12, %v11499_v32  ;;  %v1798_v5 = vmul.f32 %v1784_v56, %v11502_v33  ;;  %v1809_v12 = vpack.c.bf16 %v1800_v15, %v1799_v47 }
 0x2c1   : > { %17035 = vst [vmem:[#allocation52_spill] sm:$0xff] %v12173_v6  ;;  %v12179_v0 = vpop.permute.xlu1 %1327  ;;  %v1694_v56 = vsel %vm800_vm0, %v11985_v26, %v11999_v43  ;;  %v1794_v6 = vmul.f32 %v1782_v34, %v11502_v33  ;;  %v1704_v15 = vsel %vm800_vm0, %v12101_v60, %v12073_v55 }
 0x2c6   : > { %2371 = vrot.lane.b32.xlu0 %v11811_v8, %s17012_s26  ;;  %2433 = vrot.lane.b32.xlu2 %v11815_v16, %s17024_s4  ;;  %v1793_v16 = vmul.f32 %v1774_v27, %v11499_v32  ;;  %v1808_v27 = vpack.c.bf16 %v1798_v5, %v1797_v36 }
 0x2c7   : > { %2419 = vrot.lane.b32.xlu1 %v11817_v48, %s17024_s4  ;;  %v1783_v48 = vsel %vm816_vm1, %v12057_v21, %v12037_v44  ;;  %v1701_v44 = vsel %vm800_vm0, %v11977_v57, %v11939_v54  ;;  %v1697_v54 = vsel %vm800_vm0, %v12129_v1, %v12125_v61  ;;  %v1705_v57 = vsel %vm800_vm0, %v12125_v61, %v12129_v1 }
 0x2c8   : > { %v1754_v30 = vpop.permute.xlu0 %1753  ;;  %v12252_v23 = vpop.permute.xlu2 %2351  ;;  %v1911_v61 = vunpack.c.l.b16 %v1809_v12  ;;  %v1912_v1 = vunpack.c.h.b16 %v1809_v12 }
 0x2c9   : > { %v1778_v39 = vsel %vm816_vm1, %v1754_v30, %v1770_v62  ;;  %v1786_v35 = vsel %vm816_vm1, %v1770_v62, %v1754_v30  ;;  %v12260_v38 = vpop.permute.xlu1 %1487  ;;  %v1795_v62 = vmul.f32 %v1775_v37, %v11499_v32  ;;  %v1796_v30 = vmul.f32 %v1783_v48, %v11502_v33 }
 0x2ca   : > { %v1801_v21 = vmul.f32 %v1778_v39, %v11499_v32  ;;  %v1802_v51 = vmul.f32 %v1786_v35, %v11502_v33  ;;  %v1703_v32 = vsel %vm800_vm0, %v12035_v31, %v12045_v9  ;;  %v1696_v33 = vsel %vm800_vm0, %v12073_v55, %v12101_v60 }
 0x2cb   : > { %v1695_v48 = vsel %vm800_vm0, %v12045_v9, %v12035_v31  ;;  %v1719_v39 = vmul.f32 %v1705_v57, %v11488_v28  ;;  %v1720_v55 = vmul.f32 %v1697_v54, %v11491_v29  ;;  %v1702_v60 = vsel %vm800_vm0, %v11999_v43, %v11985_v26 }
 0x2cc   : > { %v1810_v47 = vpack.c.bf16 %v1802_v51, %v1801_v21  ;;  %v1806_v9 = vpack.c.bf16 %v1794_v6, %v1793_v16  ;;  %v1715_v31 = vmul.f32 %v1703_v32, %v11488_v28  ;;  %v1717_v51 = vmul.f32 %v1704_v15, %v11488_v28 }
 0x2cd   : > { %v1718_v12 = vmul.f32 %v1696_v33, %v11491_v29  ;;  %v1910_v6 = vunpack.c.h.b16 %v1808_v27  ;;  %v1729_v32 = vpack.c.bf16 %v1720_v55, %v1719_v39  ;;  %v1711_v33 = vmul.f32 %v1701_v44, %v11488_v28 }
 0x2ce   : > { %2435 = vrot.lane.b32.xlu0 %v11819_v13, %s17024_s4  ;;  %2271 = vrot.lane.b32.xlu2 %v11748_v11, %s17021_s28  ;;  %v1913_v34 = vunpack.c.l.b16 %v1810_v47  ;;  %v1914_v37 = vunpack.c.h.b16 %v1810_v47  ;;  %v1807_v13 = vpack.c.bf16 %v1796_v30, %v1795_v62  ;;  %v1909_v62 = vunpack.c.l.b16 %v1808_v27 }
 0x2cf   : > { %2355 = vrot.lane.b32.xlu1 %v11809_v7, %s17012_s26  ;;  %v1716_v30 = vmul.f32 %v1695_v48, %v11491_v29  ;;  %v1713_v15 = vmul.f32 %v1702_v60, %v11488_v28  ;;  %v1905_v48 = vunpack.c.l.b16 %v1806_v9  ;;  %v1712_v27 = vmul.f32 %v12231_v50, %v11491_v29 }
 0x2d0   : > { %v12312_v36 = vpop.permute.xlu0 %2353  ;;  %v12314_v5 = vpop.permute.xlu2 %2345  ;;  %v1921_v35 = vpack.c.b16 %v1913_v34, %v1911_v61  ;;  %v1922_v21 = vpack.c.b16 %v1914_v37, %v1912_v1  ;;  %v1907_v47 = vunpack.c.l.b16 %v1807_v13  ;;  %v1714_v61 = vmul.f32 %v1694_v56, %v11491_v29 }
 0x2d1   : > { %v1690_v54 = vpop.permute.xlu1 %1689  ;;  %v1908_v1 = vunpack.c.h.b16 %v1807_v13  ;;  %v1906_v44 = vunpack.c.h.b16 %v1806_v9  ;;  %v1727_v55 = vpack.c.bf16 %v1716_v30, %v1715_v31  ;;  %v1831_v56 = vunpack.c.l.b16 %v1729_v32 }
 0x2d2   : > { %v1698_v26 = vsel %vm800_vm0, %v12127_v52, %v1690_v54  ;;  %v1706_v43 = vsel %vm800_vm0, %v1690_v54, %v12127_v52  ;;  %2022 = vmatpush.bf16.msrb.mxu3 %v1921_v35  ;;  %2080 = vmatpush.bf16.msra.mxu1 %v1922_v21  ;;  %v1919_v34 = vpack.c.b16 %v1909_v62, %v1907_v47  ;;  %v1832_v60 = vunpack.c.h.b16 %v1729_v32 }
 0x2d3   : > { %v1721_v16 = vmul.f32 %v1706_v43, %v11488_v28  ;;  %v1722_v57 = vmul.f32 %v1698_v26, %v11491_v29  ;;  %v1728_v52 = vpack.c.bf16 %v1718_v12, %v1717_v51  ;;  %v1920_v39 = vpack.c.b16 %v1910_v6, %v1908_v1  ;;  %v10509_v1 = vld [vmem:[#allocation3 + $0x44] sm:$0xf] }
 0x2d4   : > { %v1709_v50 = vmul.f32 %v12225_v3, %v11488_v28  ;;  %v1710_v21 = vmul.f32 %v12219_v2, %v11491_v29  ;;  %v1904_v9 = vunpack.c.h.b16 %v12185_v46  ;;  %v1726_v31 = vpack.c.bf16 %v1714_v61, %v1713_v15 }
 0x2d5   : > { %v1730_v37 = vpack.c.bf16 %v1722_v57, %v1721_v16  ;;  %v17036_v62 = vunpack.c.l.b16 %v12185_v46  ;;  %v1829_v43 = vunpack.c.l.b16 %v1728_v52  ;;  %v1707_v3 = vmul.f32 %v12197_v41, %v11488_v28  ;;  %v9267_v28 = vld [vmem:[#allocation3 + $0x48] sm:$0xf0] }
 0x2d6   : > { %2427 = vrot.lane.b32.xlu0 %v11809_v7, %s17024_s4  ;;  %2283 = vrot.lane.b32.xlu2 %v11809_v7, %s17021_s28  ;;  %v1918_v2 = vpack.c.b16 %v1906_v44, %v1904_v9  ;;  %v1901_v6 = vunpack.c.l.b16 %v12204_v25  ;;  %v1830_v16 = vunpack.c.h.b16 %v1728_v52  ;;  %v1708_v57 = vmul.f32 %v12191_v10, %v11491_v29  ;;  %v10510_v9 = vld [vmem:[#allocation3 + $0x44] sm:$0xf0] }
 0x2d7   : > { %2269 = vrot.lane.b32.xlu1 %v11724_v19, %s17021_s28  ;;  %2023 = vmatpush.bf16.msrb.mxu3 %v1919_v34  ;;  %v1833_v13 = vunpack.c.l.b16 %v1730_v37  ;;  %v1834_v35 = vunpack.c.h.b16 %v1730_v37  ;;  %v1917_v30 = vpack.c.b16 %v1905_v48, %v17036_v62  ;;  %v1827_v47 = vunpack.c.l.b16 %v1727_v55 }
 0x2d8   : > { %2081 = vmatpush.bf16.msra.mxu1 %v1920_v39  ;;  %v12343_v51 = vpop.permute.xlu0 %2365  ;;  %v12345_v7 = vpop.permute.xlu2 %2363  ;;  %v1902_v32 = vunpack.c.h.b16 %v12204_v25  ;;  %v1725_v15 = vpack.c.bf16 %v1712_v27, %v1711_v33  ;;  %v1899_v46 = vunpack.c.l.b16 %v12202_v49  ;;  %v1828_v61 = vunpack.c.h.b16 %v1727_v55 }
 0x2d9   : > { %v12348_v12 = vpop.permute.xlu1 %2349  ;;  %v1841_v54 = vpack.c.b16 %v1833_v13, %v1831_v56  ;;  %v1842_v26 = vpack.c.b16 %v1834_v35, %v1832_v60  ;;  %v1839_v41 = vpack.c.b16 %v1829_v43, %v1827_v47  ;;  %v1900_v34 = vunpack.c.h.b16 %v12202_v49 }
 0x2da   : > { %v1825_v37 = vunpack.c.l.b16 %v1726_v31  ;;  %v1724_v48 = vpack.c.bf16 %v1710_v21, %v1709_v50  ;;  %v1915_v29 = vpack.c.b16 %v1901_v6, %v1899_v46  ;;  %v1840_v10 = vpack.c.b16 %v1830_v16, %v1828_v61  ;;  %v9265_v21 = vld [vmem:[#allocation3 + $0x40] sm:$0xf]  ;;  %v10511_v16 = vld [vmem:[#allocation3 + $0x54] sm:$0xf] }
 0x2db   : > { %1993 = vmatpush.bf16.msrb.mxu2 %v1841_v54  ;;  %2024 = vmatpush.bf16.msrb.mxu3 %v1917_v30  ;;  %v1826_v25 = vunpack.c.h.b16 %v1726_v31  ;;  %v1916_v33 = vpack.c.b16 %v1902_v32, %v1900_v34  ;;  %v1823_v52 = vunpack.c.l.b16 %v1725_v15  ;;  %v9270_v27 = vor.u32 %v10509_v1, %v9267_v28  ;;  %v17041_v1 = vld [vmem:[#allocation32_spill] sm:$0xff] }
 0x2dc   : > { %2051 = vmatpush.bf16.msra.mxu0 %v1842_v26  ;;  %2082 = vmatpush.bf16.msra.mxu1 %v1918_v2  ;;  %v1723_v39 = vpack.c.bf16 %v1708_v57, %v1707_v3  ;;  %v1824_v55 = vunpack.c.h.b16 %v1725_v15  ;;  %v1821_v60 = vunpack.c.l.b16 %v1724_v48  ;;  %v9266_v30 = vor.u32 %v10510_v9, %v9265_v21  ;;  %v2794_v2 = vld [vmem:[%s17040_s3] sm:$0xff]  ;;  %v2796_v21 = vld [vmem:[%s17040_s3 + $0x10] sm:$0xff]  ;;  %v9273_v9 = vld [vmem:[#allocation3 + $0x50] sm:$0xf] }
 0x2dd   : > { %v1837_v13 = vpack.c.b16 %v1825_v37, %v1823_v52  ;;  %v1427_v6 = vsel %vm740_vm6, %v11873_v4, %v11901_v18  ;;  %v9275_v57 = vld [vmem:[#allocation3 + $0x58] sm:$0xf0]  ;;  %v1419_v47 = vsel %vm740_vm6, %v11901_v18, %v11873_v4  ;;  %v1492_v15 = vsel %vm756_vm7, %v11949_v40, %v11927_v42 }
 0x2de   : > { %2285 = vrot.lane.b32.xlu0 %v11726_v20, %s17021_s28  ;;  %2443 = vrot.lane.b32.xlu2 %v11811_v8, %s17024_s4  ;;  %v1838_v35 = vpack.c.b16 %v1826_v25, %v1824_v55  ;;  %v1819_v50 = vunpack.c.l.b16 %v1723_v39  ;;  %v1820_v31 = vunpack.c.h.b16 %v1723_v39  ;;  %v1435_v4 = vmul.f32 %v1427_v6, %v11525_v58  ;;  %v17043_v37 = vld [vmem:[#allocation30_spill] sm:$0xff]  ;;  %v2797_v39 = vld [vmem:[%s17040_s3 + $0x18] sm:$0xff] }
 0x2df   : > { %2299 = vrot.lane.b32.xlu1 %v11811_v8, %s17021_s28  ;;  %1994 = vmatpush.bf16.msrb.mxu2 %v1839_v41  ;;  %v1822_v8 = vunpack.c.h.b16 %v1724_v48  ;;  %v9278_v18 = vor.u32 %v10511_v16, %v9275_v57  ;;  %v1436_v46 = vmul.f32 %v1419_v47, %v11528_v59  ;;  %v1422_v28 = vsel %vm740_vm6, %v17041_v1, %v12011_v45  ;;  %v17044_v48 = vld [vmem:[#allocation25_spill] sm:$0xff] }
 0x2e0   : > { %2025 = vmatpush.bf16.msrb.mxu3 %v1915_v29  ;;  %2052 = vmatpush.bf16.msra.mxu0 %v1840_v10  ;;  %v12366_v49 = vpop.permute.xlu0 %2347  ;;  %v12368_v44 = vpop.permute.xlu2 %2357  ;;  %v1835_v54 = vpack.c.b16 %v1821_v60, %v1819_v50  ;;  %v1421_v29 = vsel %vm740_vm6, %v17044_v48, %v17043_v37  ;;  %v1429_v10 = vsel %vm740_vm6, %v17043_v37, %v17044_v48  ;;  %v17047_v55 = vld [vmem:[#allocation29_spill] sm:$0xff]  ;;  %vm9069_vm0 = vcmask 1040384  }
 0x2e1   : > { %17037 = vst [vmem:[#allocation53_spill] sm:$0xff] %v12368_v44  ;;  %2083 = vmatpush.bf16.msra.mxu1 %v1916_v33  ;;  %v12370_v56 = vpop.permute.xlu1 %2367  ;;  %v1836_v62 = vpack.c.b16 %v1822_v8, %v1820_v31  ;;  %v17046_v33 = vld [vmem:[#allocation20_spill] sm:$0xff]  ;;  %v1442_v50 = vmul.f32 %v1422_v28, %v11528_v59  ;;  %v10512_v31 = vld [vmem:[#allocation3 + $0x54] sm:$0xf0]  ;;  %v17049_v28 = vld [vmem:[#allocation21_spill] sm:$0xff] }
 0x2e3   : > { %1995 = vmatpush.bf16.msrb.mxu2 %v1837_v13  ;;  %9295 = vmatmul.msk.bf16.vlgmr.msrb.gmra.mxu3 %vm1976_vm13, %v9270_v27  ;;  %v17048_v13 = vld [vmem:[#allocation27_spill] sm:$0xff] }
 0x2e4   : > { %2053 = vmatpush.bf16.msra.mxu0 %v1838_v35  ;;  %9299 = vmatmul.msk.bf16.vlgmr.msra.gmra.mxu1 %vm1976_vm13, %v9270_v27  ;;  %v1493_v60 = vsel %vm756_vm7, %v17048_v13, %v17047_v55  ;;  %v1501_v35 = vsel %vm756_vm7, %v17047_v55, %v17048_v13  ;;  %v2799_v55 = vld [vmem:[%s17040_s3 + $0x28] sm:$0xff] }
 0x2e5   : > { %v1511_v57 = vmul.f32 %v1501_v35, %v11533_v63  ;;  %v17054_v35 = vld [vmem:[#allocation26_spill] sm:$0xff] }
 0x2e6   : > { %2415 = vrot.lane.b32.xlu0 %v11748_v11, %s17024_s4  ;;  %2413 = vrot.lane.b32.xlu2 %v11724_v19, %s17024_s4  ;;  %v1420_v11 = vsel %vm740_vm6, %v11953_v14, %v11937_v53  ;;  %v1428_v19 = vsel %vm740_vm6, %v11937_v53, %v11953_v14  ;;  %v1500_v53 = vsel %vm756_vm7, %v11927_v42, %v11949_v40 }
 0x2e7   : > { %2287 = vrot.lane.b32.xlu1 %v11756_v17, %s17021_s28  ;;  %1996 = vmatpush.bf16.msrb.mxu2 %v1835_v54  ;;  %v1437_v14 = vmul.f32 %v1428_v19, %v11525_v58  ;;  %v1438_v32 = vmul.f32 %v1420_v11, %v11528_v59  ;;  %v1509_v61 = vmul.f32 %v1500_v53, %v11533_v63  ;;  %v2795_v11 = vld [vmem:[%s17040_s3 + $0x8] sm:$0xff]  ;;  %s16901_s28 = smov 62  }
 0x2e8   : > { %2054 = vmatpush.bf16.msra.mxu0 %v1836_v62  ;;  %v12380_v26 = vpop.permute.xlu0 %2341  ;;  %v12382_v43 = vpop.permute.xlu2 %2425  ;;  %v1451_v54 = vpack.c.bf16 %v1436_v46, %v1435_v4  ;;  %v1439_v62 = vmul.f32 %v1429_v10, %v11525_v58  ;;  %v9274_v53 = vor.u32 %v10512_v31, %v9273_v9  ;;  %v2798_v9 = vld [vmem:[%s17040_s3 + $0x20] sm:$0xff]  ;;  %v10513_v31 = vld [vmem:[#allocation3 + $0x64] sm:$0xf] }
 0x2e9   : > { %17038 = vst [vmem:[#allocation54_spill] sm:$0xff] %v12380_v26  ;;  %v12384_v3 = vpop.permute.xlu1 %2361  ;;  %v1452_v34 = vpack.c.bf16 %v1438_v32, %v1437_v14 }
 0x2ea   : > { %17039 = vst [vmem:[#allocation55_spill] sm:$0xff] %v12382_v43  ;;  %1997 = vmatmul.bf16.vlgmr.msrb.gmra.mxu2 %v9266_v30  ;;  %v1579_v46 = vunpack.c.l.b16 %v1451_v54 }
 0x2eb   : > { %2055 = vmatmul.bf16.vlgmr.msra.gmra.mxu0 %v9266_v30  ;;  %v1440_v30 = vmul.f32 %v1421_v29, %v11528_v59  ;;  %v1581_v16 = vunpack.c.l.b16 %v1452_v34  ;;  %v1582_v14 = vunpack.c.h.b16 %v1452_v34 }
 0x2ed   : > { %v12502_v29 = vpack.c.b16 %v1581_v16, %v1579_v46 }
 0x2ee   : > { %2804 = vperm.xlu0 %10822, %v2794_v2   ;;  %2431 = vrot.lane.b32.xlu2 %v11756_v17, %s17024_s4  ;;  %v1430_v17 = vsel %vm740_vm6, %v12011_v45, %v17041_v1  ;;  %v17045_v45 = vld [vmem:[#allocation24_spill] sm:$0xff]  ;;  %v1580_v1 = vunpack.c.h.b16 %v1451_v54 }
 0x2ef   : > { %2429 = vrot.lane.b32.xlu1 %v11726_v20, %s17024_s4  ;;  %v17042_v20 = vld [vmem:[#allocation11_spill] sm:$0xff]  ;;  %v1491_v52 = vsel %vm756_vm7, %v17046_v33, %v17045_v45  ;;  %v1499_v27 = vsel %vm756_vm7, %v17045_v45, %v17046_v33  ;;  %v1441_v8 = vmul.f32 %v1430_v17, %v11525_v58  ;;  %v17052_v33 = vld [vmem:[#allocation46_spill] sm:$0xff]  ;;  %v9283_v54 = vld [vmem:[#allocation3 + $0x68] sm:$0xf0]  ;;  %s16905_s4 = smov 65  }
 0x2f0   : > { %v12430_v42 = vpop.permute.xlu0 %2359  ;;  %v12432_v40 = vpop.permute.xlu2 %1329  ;;  %v1510_v41 = vmul.f32 %v1492_v15, %v17042_v20  ;;  %v1507_v19 = vmul.f32 %v1499_v27, %v11533_v63  ;;  %v1508_v2 = vmul.f32 %v1491_v52, %v17042_v20  ;;  %v1512_v47 = vmul.f32 %v1493_v60, %v17042_v20  ;;  %v17053_v52 = vld [vmem:[#allocation51_spill] sm:$0xff] }
 0x2f1   : > { %v12443_v25 = vpop.permute.xlu1 %2343  ;;  %v1454_v32 = vpack.c.bf16 %v1442_v50, %v1441_v8  ;;  %v1453_v15 = vpack.c.bf16 %v1440_v30, %v1439_v62  ;;  %v12504_v10 = vpack.c.b16 %v1582_v14, %v1580_v1  ;;  %v1425_v27 = vsel %vm740_vm6, %v17053_v52, %v17052_v33  ;;  %v17055_v8 = vld [vmem:[#allocation22_spill] sm:$0xff] }
 0x2f2   : > { %v12478_v6 = vpack.c.bf16 %v1510_v41, %v1509_v61  ;;  %v17050_v61 = vld [vmem:[#allocation23_spill] sm:$0xff]  ;;  %v12496_v34 = vpack.c.bf16 %v1508_v2, %v1507_v19  ;;  %v12500_v48 = vpack.c.bf16 %v1512_v47, %v1511_v57  ;;  %v12522_v50 = vsel %vm724_vm9, %v17055_v8, %v17054_v35  ;;  %v17057_v19 = vld [vmem:[#allocation38_spill] sm:$0xff]  ;;  %v17058_v57 = vld [vmem:[#allocation45_spill] sm:$0xff] }
 0x2f3   : > { %9296 = vmatmul.msk.bf16.gmra.mxu3 %vm1976_vm13, %v9278_v18  ;;  %v12488_v17 = vsel %vm724_vm9, %v17050_v61, %v17049_v28  ;;  %v12494_v41 = vsel %vm724_vm9, %v17049_v28, %v17050_v61  ;;  %v1585_v13 = vunpack.c.l.b16 %v1454_v32  ;;  %v1586_v60 = vunpack.c.h.b16 %v1454_v32  ;;  %v17059_v47 = vld [vmem:[#allocation41_spill] sm:$0xff]  ;;  %v17060_v32 = vld [vmem:[#allocation31_spill] sm:$0xff] }
 0x2f4   : > { %9300 = vmatmul.msk.bf16.gmra.mxu1 %vm1976_vm13, %v9278_v18  ;;  %v1583_v62 = vunpack.c.l.b16 %v1453_v15  ;;  %v1584_v30 = vunpack.c.h.b16 %v1453_v15  ;;  %v1432_v14 = vsel %vm740_vm6, %v17058_v57, %v17059_v47  ;;  %v17061_v15 = vld [vmem:[#allocation28_spill] sm:$0xff]  ;;  %v1448_v28 = vmul.f32 %v1425_v27, %v11528_v59 }
 0x2f5   : > { %v12553_v46 = vsel %vm724_vm9, %v17061_v15, %v17060_v32  ;;  %v1445_v27 = vmul.f32 %v1432_v14, %v11525_v58 }
 0x2f6   : > { %2819 = vperm.xlu0 %10822, %v2797_v39   ;;  %2814 = vperm.xlu2 %10821, %v2796_v21   ;;  %v1433_v39 = vsel %vm740_vm6, %v17052_v33, %v17053_v52  ;;  %v12528_v21 = vsel %vm724_vm9, %v17054_v35, %v17055_v8  ;;  %v12562_v33 = vsel %vm724_vm9, %v17060_v32, %v17061_v15 }
 0x2f7   : > { %2809 = vperm.xlu1 %10820, %v2795_v11   ;;  %v17056_v11 = vld [vmem:[#allocation40_spill] sm:$0xff]  ;;  %v1447_v1 = vmul.f32 %v1433_v39, %v11525_v58  ;;  %v9286_v52 = vor.u32 %v10513_v31, %v9283_v54  ;;  %v12564_v35 = vpack.c.b16 %v1585_v13, %v1583_v62  ;;  %v12566_v8 = vpack.c.b16 %v1586_v60, %v1584_v30  ;;  %v17065_v60 = vld [vmem:[#allocation35_spill] sm:$0xff] }
 0x2f8   : > { %v1418_v4 = vpop.permute.xlu0 %1417  ;;  %v12482_v18 = vpop.permute.xlu2 %1489  ;;  %v1423_v2 = vsel %vm740_vm6, %v17057_v19, %v17056_v11  ;;  %v1431_v16 = vsel %vm740_vm6, %v17056_v11, %v17057_v19  ;;  %v17066_v31 = vld [vmem:[#allocation36_spill] sm:$0xff]  ;;  %v17068_v30 = vld [vmem:[#allocation39_spill] sm:$0xff] }
 0x2f9   : > { %v12498_v37 = vpop.permute.xlu1 %2281  ;;  %v1443_v11 = vmul.f32 %v1431_v16, %v11525_v58  ;;  %v1444_v39 = vmul.f32 %v1423_v2, %v11528_v59  ;;  %v1502_v54 = vsel %vm756_vm7, %v17066_v31, %v17065_v60  ;;  %v17067_v62 = vld [vmem:[#allocation44_spill] sm:$0xff]  ;;  %v1457_v32 = vpack.c.bf16 %v1448_v28, %v1447_v1  ;;  %v9281_v28 = vld [vmem:[#allocation3 + $0x60] sm:$0xf] }
 0x2fa   : > { %17051 = vst [vmem:[#allocation32_spill] sm:$0xff] %v12498_v37  ;;  %2002 = vmatmul.bf16.gmra.mxu2 %v9274_v53  ;;  %v1495_v2 = vsel %vm756_vm7, %v17068_v30, %v17067_v62  ;;  %v1503_v14 = vsel %vm756_vm7, %v17067_v62, %v17068_v30  ;;  %v10514_v62 = vld [vmem:[#allocation3 + $0x64] sm:$0xf0]  ;;  %v1494_v30 = vsel %vm756_vm7, %v17065_v60, %v17066_v31 }
 0x2fb   : > { %2060 = vmatmul.bf16.gmra.mxu0 %v9274_v53  ;;  %v1424_v53 = vsel %vm740_vm6, %v17059_v47, %v17058_v57  ;;  %v17063_v57 = vld [vmem:[#allocation34_spill] sm:$0xff]  ;;  %v17064_v47 = vld [vmem:[#allocation33_spill] sm:$0xff]  ;;  %v1516_v60 = vmul.f32 %v1495_v2, %v17042_v20 }
 0x2fc   : > { %v12584_v13 = vsel %vm724_vm9, %v17063_v57, %v17064_v47 }
 0x2fe   : > { %2829 = vperm.xlu2 %10821, %v2799_v55   ;;  %v1446_v55 = vmul.f32 %v1424_v53, %v11528_v59 }
 0x2ff   : > { %2824 = vperm.xlu1 %10820, %v2798_v9   ;;  %v12578_v9 = vsel %vm724_vm9, %v17064_v47, %v17063_v57  ;;  %v17070_v47 = vld [vmem:[#allocation49_spill] sm:$0xff] }
 0x300   : > { %v12572_v19 = vpop.permute.xlu0 %2297  ;;  %v12594_v16 = vpop.permute.xlu2 %2293  ;;  %v1497_v45 = vsel %vm756_vm7, %v17070_v47, %v12260_v38  ;;  %v1505_v61 = vsel %vm756_vm7, %v12260_v38, %v17070_v47  ;;  %v1455_v38 = vpack.c.bf16 %v1444_v39, %v1443_v11  ;;  %v1456_v47 = vpack.c.bf16 %v1446_v55, %v1445_v27 }
 0x301   : > { %17062 = vst [vmem:[#allocation11_spill] sm:$0xff] %v12572_v19  ;;  %v1402_v53 = vpop.permute.xlu1 %1401  ;;  %v1519_v11 = vmul.f32 %v1505_v61, %v11533_v63  ;;  %v1520_v39 = vmul.f32 %v1497_v45, %v17042_v20  ;;  %v1591_v27 = vunpack.c.l.b16 %v1457_v32  ;;  %v1592_v55 = vunpack.c.h.b16 %v1457_v32 }
 0x302   : > { %17069 = vst [vmem:[#allocation30_spill] sm:$0xff] %v12594_v16  ;;  %v1426_v15 = vsel %vm740_vm6, %v1402_v53, %v1418_v4  ;;  %v1434_v57 = vsel %vm740_vm6, %v1418_v4, %v1402_v53  ;;  %v2800_v4 = vld [vmem:[%s17040_s3 + $0x30] sm:$0xff]  ;;  %v1513_v53 = vmul.f32 %v1502_v54, %v11533_v63  ;;  %v1589_v44 = vunpack.c.l.b16 %v1456_v47 }
 0x303   : > { %v1449_v16 = vmul.f32 %v1434_v57, %v11525_v58  ;;  %v1450_v1 = vmul.f32 %v1426_v15, %v11528_v59  ;;  %9297 = vmatmul.msk.bf16.gmra.mxu3 %vm1976_vm13, %v9286_v52  ;;  %v1515_v58 = vmul.f32 %v1503_v14, %v11533_v63  ;;  %v17071_v59 = vld [vmem:[#allocation50_spill] sm:$0xff]  ;;  %v17072_v15 = vld [vmem:[#allocation43_spill] sm:$0xff] }
 0x304   : > { %9301 = vmatmul.msk.bf16.gmra.mxu1 %vm1976_vm13, %v9286_v52  ;;  %v1496_v57 = vsel %vm756_vm7, %v17072_v15, %v17071_v59  ;;  %v1504_v37 = vsel %vm756_vm7, %v17071_v59, %v17072_v15  ;;  %v9282_v52 = vor.u32 %v10514_v62, %v9281_v28  ;;  %v1590_v59 = vunpack.c.h.b16 %v1456_v47  ;;  %v17073_v28 = vld [vmem:[#allocation42_spill] sm:$0xff]  ;;  %v17074_v62 = vld [vmem:[#allocation37_spill] sm:$0xff] }
 0x305   : > { %v1458_v19 = vpack.c.bf16 %v1450_v1, %v1449_v16  ;;  %v1517_v14 = vmul.f32 %v1504_v37, %v11533_v63  ;;  %v1518_v43 = vmul.f32 %v1496_v57, %v17042_v20  ;;  %v1529_v37 = vpack.c.bf16 %v1520_v39, %v1519_v11 }
 0x306   : > { %2834 = vperm.xlu2 %10821, %v2800_v4   ;;  %v1359_v47 = vsel %vm724_vm9, %v17074_v62, %v17073_v28  ;;  %v1527_v15 = vpack.c.bf16 %v1516_v60, %v1515_v58  ;;  %v17075_v58 = vld [vmem:[#allocation48_spill] sm:$0xff]  ;;  %v17076_v60 = vld [vmem:[#allocation47_spill] sm:$0xff] }
 0x307   : > { %v1593_v31 = vunpack.c.l.b16 %v1458_v19  ;;  %v1594_v54 = vunpack.c.h.b16 %v1458_v19  ;;  %v1514_v19 = vmul.f32 %v1494_v30, %v17042_v20  ;;  %v1352_v11 = vsel %vm724_vm9, %v17076_v60, %v17075_v58 }
 0x308   : > { %v1474_v26 = vpop.permute.xlu0 %1473  ;;  %v12653_v57 = vpop.permute.xlu2 %2423 }
 0x309   : > { %v1498_v2 = vsel %vm756_vm7, %v1474_v26, %v12482_v18  ;;  %v1506_v45 = vsel %vm756_vm7, %v12482_v18, %v1474_v26  ;;  %v12644_v61 = vpop.permute.xlu1 %2441  ;;  %v1601_v16 = vpack.c.b16 %v1593_v31, %v1591_v27  ;;  %v1602_v32 = vpack.c.b16 %v1594_v54, %v1592_v55  ;;  %v9291_v55 = vld [vmem:[#allocation3 + $0x78] sm:$0xf0] }
 0x30a   : > { %v1521_v1 = vmul.f32 %v1506_v45, %v11533_v63  ;;  %v1522_v4 = vmul.f32 %v1498_v2, %v17042_v20  ;;  %2007 = vmatmul.bf16.gmra.mxu2 %v9282_v52  ;;  %v1587_v26 = vunpack.c.l.b16 %v1455_v38  ;;  %v1588_v18 = vunpack.c.h.b16 %v1455_v38  ;;  %v17077_v45 = vld [vmem:[#allocation12_spill] sm:$0xff] }
 0x30b   : > { %2065 = vmatmul.bf16.gmra.mxu0 %v9282_v52  ;;  %2153 = vmatpush.bf16.msra.mxu2 %v1601_v16  ;;  %v1528_v27 = vpack.c.bf16 %v1518_v43, %v1517_v14  ;;  %v1353_v63 = vsel %vm724_vm9, %v12179_v0, %v12171_v24  ;;  %v1361_v20 = vsel %vm724_vm9, %v12171_v24, %v12179_v0  ;;  %v10515_v52 = vld [vmem:[#allocation3 + $0x74] sm:$0xf]  ;;  %v1631_v31 = vunpack.c.l.b16 %v1529_v37 }
 0x30c   : > { %v1530_v30 = vpack.c.bf16 %v1522_v4, %v1521_v1  ;;  %2211 = vmatpush.bf16.msrb.mxu0 %v1602_v32  ;;  %v1360_v43 = vsel %vm724_vm9, %v17075_v58, %v17076_v60  ;;  %v1599_v38 = vpack.c.b16 %v1589_v44, %v1587_v26  ;;  %v1600_v39 = vpack.c.b16 %v1590_v59, %v1588_v18  ;;  %v17078_v32 = vld [vmem:[#allocation13_spill] sm:$0xff] }
 0x30d   : > { %v1632_v54 = vunpack.c.h.b16 %v1529_v37  ;;  %v12671_v24 = vpack.c.bf16 %v1514_v19, %v1513_v53  ;;  %v1351_v2 = vsel %vm724_vm9, %v17073_v28, %v17074_v62  ;;  %v1375_v16 = vmul.f32 %v1361_v20, %v17077_v45 }
 0x30e   : > { %v1633_v14 = vunpack.c.l.b16 %v1530_v30  ;;  %v1634_v0 = vunpack.c.h.b16 %v1530_v30  ;;  %v1376_v1 = vmul.f32 %v1353_v63, %v17078_v32  ;;  %v9294_v37 = vor.u32 %v10515_v52, %v9291_v55 }
 0x30f   : > { %2154 = vmatpush.bf16.msra.mxu2 %v1599_v38  ;;  %v1629_v26 = vunpack.c.l.b16 %v1528_v27  ;;  %v1371_v53 = vmul.f32 %v1359_v47, %v17077_v45  ;;  %v1373_v19 = vmul.f32 %v1360_v43, %v17077_v45  ;;  %v1374_v18 = vmul.f32 %v1352_v11, %v17078_v32  ;;  %v9289_v11 = vld [vmem:[#allocation3 + $0x70] sm:$0xf]  ;;  %v10516_v38 = vld [vmem:[#allocation3 + $0x74] sm:$0xf0] }
 0x310   : > { %2212 = vmatpush.bf16.msrb.mxu0 %v1600_v39  ;;  %v12679_v44 = vpop.permute.xlu0 %2277  ;;  %v1641_v59 = vpack.c.b16 %v1633_v14, %v1631_v31  ;;  %v1642_v4 = vpack.c.b16 %v1634_v0, %v1632_v54  ;;  %v1630_v28 = vunpack.c.h.b16 %v1528_v27  ;;  %v1372_v62 = vmul.f32 %v1351_v2, %v17078_v32 }
 0x311   : > { %v1346_v30 = vpop.permute.xlu1 %1345  ;;  %v1627_v58 = vunpack.c.l.b16 %v1527_v15  ;;  %v1385_v60 = vpack.c.bf16 %v1376_v1, %v1375_v16  ;;  %v1628_v27 = vunpack.c.h.b16 %v1527_v15  ;;  %v1367_v39 = vmul.f32 %v12562_v33, %v17077_v45  ;;  %v12703_v15 = vpop.permute.xlu2 %2273 }
 0x312   : > { %v1354_v63 = vsel %vm724_vm9, %v12432_v40, %v1346_v30  ;;  %v1362_v20 = vsel %vm724_vm9, %v1346_v30, %v12432_v40  ;;  %2186 = vmatpush.bf16.msra.mxu3 %v1641_v59  ;;  %2244 = vmatpush.bf16.msrb.mxu1 %v1642_v4  ;;  %v1369_v52 = vmul.f32 %v12584_v13, %v17077_v45  ;;  %v1625_v55 = vunpack.c.l.b16 %v12671_v24 }
 0x313   : > { %v1377_v47 = vmul.f32 %v1362_v20, %v17077_v45  ;;  %v1378_v43 = vmul.f32 %v1354_v63, %v17078_v32  ;;  %2155 = vmatpush.bf16.msra.mxu2 %v12564_v35  ;;  %9298 = vmatmul.msk.bf16.gmra.mxu3 %vm1976_vm13, %v9294_v37  ;;  %v1639_v40 = vpack.c.b16 %v1629_v26, %v1627_v58  ;;  %v1626_v0 = vunpack.c.h.b16 %v12671_v24 }
 0x314   : > { %2213 = vmatpush.bf16.msrb.mxu0 %v12566_v8  ;;  %v1370_v35 = vmul.f32 %v12578_v9, %v17078_v32  ;;  %v1384_v31 = vpack.c.bf16 %v1374_v18, %v1373_v19  ;;  %v1640_v14 = vpack.c.b16 %v1630_v28, %v1628_v27  ;;  %9302 = vmatmul.msk.bf16.gmra.mxu1 %vm1976_vm13, %v9294_v37  ;;  %v1551_v2 = vunpack.c.l.b16 %v1385_v60 }
 0x315   : > { %v1386_v54 = vpack.c.bf16 %v1378_v43, %v1377_v47  ;;  %v1368_v33 = vmul.f32 %v12553_v46, %v17078_v32  ;;  %v1383_v13 = vpack.c.bf16 %v1372_v62, %v1371_v53  ;;  %v9290_v8 = vor.u32 %v10516_v38, %v9289_v11 }
 0x316   : > { %2187 = vmatpush.bf16.msra.mxu3 %v1639_v40  ;;  %2245 = vmatpush.bf16.msrb.mxu1 %v1640_v14  ;;  %v1552_v16 = vunpack.c.h.b16 %v1385_v60  ;;  %v1365_v59 = vmul.f32 %v12528_v21, %v17077_v45  ;;  %v1366_v4 = vmul.f32 %v12522_v50, %v17078_v32  ;;  %v17079_v37 = vunpack.c.l.b16 %v12500_v48 }
 0x317   : > { %2156 = vmatpush.bf16.msra.mxu2 %v12502_v29  ;;  %v1553_v9 = vunpack.c.l.b16 %v1386_v54  ;;  %v1554_v1 = vunpack.c.h.b16 %v1386_v54  ;;  %v1624_v29 = vunpack.c.h.b16 %v12500_v48  ;;  %v1382_v26 = vpack.c.bf16 %v1370_v35, %v1369_v52  ;;  %v10501_v52 = vld [vmem:[#allocation3 + $0x4] sm:$0xf] }
 0x318   : > { %2214 = vmatpush.bf16.msrb.mxu0 %v12504_v10  ;;  %v12715_v46 = vpop.permute.xlu0 %2295  ;;  %v1637_v24 = vpack.c.b16 %v1625_v55, %v17079_v37  ;;  %v1549_v30 = vunpack.c.l.b16 %v1384_v31  ;;  %v1619_v50 = vunpack.c.l.b16 %v12496_v34  ;;  %v1550_v28 = vunpack.c.h.b16 %v1384_v31 }
 0x319   : > { %v12720_v53 = vpop.permute.xlu1 %2279  ;;  %v1561_v19 = vpack.c.b16 %v1553_v9, %v1551_v2  ;;  %v1562_v18 = vpack.c.b16 %v1554_v1, %v1552_v16  ;;  %v1638_v21 = vpack.c.b16 %v1626_v0, %v1624_v29  ;;  %v1622_v10 = vunpack.c.h.b16 %v12478_v6  ;;  %v12731_v40 = vpop.permute.xlu2 %2291  ;;  %v9305_v0 = vld [vmem:[#allocation3] sm:$0xf]  ;;  %v10502_v2 = vld [vmem:[#allocation3 + $0x4] sm:$0xf0]  ;;  %v10503_v29 = vld [vmem:[#allocation3 + $0x14] sm:$0xf] }
 0x31a   : > { %2012 = vmatmul.bf16.gmra.mxu2 %v9290_v8  ;;  %2188 = vmatpush.bf16.msra.mxu3 %v1637_v24  ;;  %v1363_v62 = vmul.f32 %v12494_v41, %v17077_v45  ;;  %v1364_v48 = vmul.f32 %v12488_v17, %v17078_v32  ;;  %v1381_v63 = vpack.c.bf16 %v1368_v33, %v1367_v39  ;;  %v1547_v20 = vunpack.c.l.b16 %v1383_v13  ;;  %v9307_v41 = vld [vmem:[#allocation3 + $0x8] sm:$0xf0] }
 0x31b   : > { %2070 = vmatmul.bf16.gmra.mxu0 %v9290_v8  ;;  %2157 = vmatpush.bf16.msra.mxu2 %v1561_v19  ;;  %v17080_v58 = vunpack.c.l.b16 %v12478_v6  ;;  %v1548_v47 = vunpack.c.h.b16 %v1383_v13  ;;  %v1620_v43 = vunpack.c.h.b16 %v12496_v34  ;;  %v1380_v27 = vpack.c.bf16 %v1366_v4, %v1365_v59 }
 0x31c   : > { %2215 = vmatpush.bf16.msrb.mxu0 %v1562_v18  ;;  %2246 = vmatpush.bf16.msrb.mxu1 %v1638_v21  ;;  %v1559_v11 = vpack.c.b16 %v1549_v30, %v1547_v20  ;;  %v1545_v38 = vunpack.c.l.b16 %v1382_v26  ;;  %v1546_v32 = vunpack.c.h.b16 %v1382_v26  ;;  %v1379_v39 = vpack.c.bf16 %v1364_v48, %v1363_v62  ;;  %v9315_v26 = vld [vmem:[#allocation3 + $0x18] sm:$0xf0]  ;;  %v17083_v20 = vld [vmem:[#allocation15_spill] sm:$0xff] }
 0x31d   : > { %v1635_v60 = vpack.c.b16 %v17080_v58, %v1619_v50  ;;  %v1560_v45 = vpack.c.b16 %v1550_v28, %v1548_v47  ;;  %v1636_v17 = vpack.c.b16 %v1622_v10, %v1620_v43  ;;  %v1543_v55 = vunpack.c.l.b16 %v1381_v63  ;;  %v17081_v10 = vld [vmem:[#allocation52_spill] sm:$0xff]  ;;  %v17082_v48 = vld [vmem:[#allocation14_spill] sm:$0xff] }
 0x31e   : > { %v1544_v35 = vunpack.c.h.b16 %v1381_v63  ;;  %v9310_v34 = vor.u32 %v10501_v52, %v9307_v41  ;;  %v1541_v14 = vunpack.c.l.b16 %v1380_v27  ;;  %v1542_v13 = vunpack.c.h.b16 %v1380_v27  ;;  %v17084_v52 = vld [vmem:[#allocation53_spill] sm:$0xff] }
 0x31f   : > { %2189 = vmatpush.bf16.msra.mxu3 %v1635_v60  ;;  %2158 = vmatpush.bf16.msra.mxu2 %v1559_v11  ;;  %v1557_v54 = vpack.c.b16 %v1545_v38, %v1543_v55  ;;  %v1539_v8 = vunpack.c.l.b16 %v1379_v39  ;;  %v1540_v9 = vunpack.c.h.b16 %v1379_v39  ;;  %v9306_v59 = vor.u32 %v10502_v2, %v9305_v0  ;;  %v9313_v11 = vld [vmem:[#allocation3 + $0x10] sm:$0xf]  ;;  %v10504_v38 = vld [vmem:[#allocation3 + $0x14] sm:$0xf0] }
 0x320   : > { %2216 = vmatpush.bf16.msrb.mxu0 %v1560_v45  ;;  %2247 = vmatpush.bf16.msrb.mxu1 %v1636_v17  ;;  %v12733_v6 = vpop.permute.xlu0 %2437  ;;  %v1558_v33 = vpack.c.b16 %v1546_v32, %v1544_v35  ;;  %v2378_v19 = vsel %vm1073_vm10, %v12252_v23, %v12370_v56  ;;  %v2386_v18 = vsel %vm1073_vm10, %v12370_v56, %v12252_v23 }
 0x321   : > { %v12735_v31 = vpop.permute.xlu1 %2421  ;;  %v1555_v16 = vpack.c.b16 %v1541_v14, %v1539_v8  ;;  %v1556_v1 = vpack.c.b16 %v1542_v13, %v1540_v9  ;;  %v12741_v37 = vpop.permute.xlu2 %2433  ;;  %v2377_v30 = vsel %vm1073_vm10, %v12348_v12, %v12343_v51  ;;  %v2385_v21 = vsel %vm1073_vm10, %v12343_v51, %v12348_v12 }
 0x322   : > { %v9318_v28 = vor.u32 %v10503_v29, %v9315_v26  ;;  %v2379_v62 = vsel %vm1073_vm10, %v12312_v36, %v17081_v10  ;;  %v2387_v23 = vsel %vm1073_vm10, %v17081_v10, %v12312_v36  ;;  %v2375_v56 = vsel %vm1073_vm10, %v12314_v5, %v12384_v3  ;;  %v9323_v10 = vld [vmem:[#allocation3 + $0x28] sm:$0xf0] }
 0x323   : > { %2159 = vmatpush.bf16.msra.mxu2 %v1557_v54  ;;  %9335 = vmatmul.msk.bf16.vlgmr.msra.gmra.mxu3 %vm1976_vm13, %v9310_v34  ;;  %v2383_v51 = vsel %vm1073_vm10, %v12384_v3, %v12314_v5  ;;  %v2399_v63 = vmul.f32 %v2378_v19, %v17082_v48  ;;  %v2400_v58 = vmul.f32 %v2386_v18, %v17083_v20 }
 0x324   : > { %2217 = vmatpush.bf16.msrb.mxu0 %v1558_v33  ;;  %9339 = vmatmul.msk.bf16.vlgmr.msrb.gmra.mxu1 %vm1976_vm13, %v9310_v34  ;;  %v2374_v36 = vsel %vm1073_vm10, %v12443_v25, %v12430_v42  ;;  %v2382_v60 = vsel %vm1073_vm10, %v12430_v42, %v12443_v25  ;;  %v2397_v47 = vmul.f32 %v2377_v30, %v17082_v48  ;;  %v17085_v42 = vld [vmem:[#allocation54_spill] sm:$0xff] }
 0x325   : > { %v2398_v5 = vmul.f32 %v2385_v21, %v17083_v20  ;;  %v2376_v3 = vsel %vm1073_vm10, %v12366_v49, %v12345_v7  ;;  %v2384_v43 = vsel %vm1073_vm10, %v12345_v7, %v12366_v49  ;;  %v2373_v25 = vsel %vm1073_vm10, %v17085_v42, %v17084_v52 }
 0x326   : > { %v2381_v41 = vsel %vm1073_vm10, %v17084_v52, %v17085_v42  ;;  %v2393_v45 = vmul.f32 %v2375_v56, %v17082_v48  ;;  %v2394_v17 = vmul.f32 %v2383_v51, %v17083_v20  ;;  %v2401_v7 = vmul.f32 %v2379_v62, %v17082_v48 }
 0x327   : > { %2160 = vmatpush.bf16.msra.mxu2 %v1555_v16  ;;  %v2402_v49 = vmul.f32 %v2387_v23, %v17083_v20  ;;  %v2391_v32 = vmul.f32 %v2374_v36, %v17082_v48  ;;  %v2392_v39 = vmul.f32 %v2382_v60, %v17083_v20  ;;  %v2395_v55 = vmul.f32 %v2376_v3, %v17082_v48  ;;  %v17086_v60 = vld [vmem:[#allocation55_spill] sm:$0xff] }
 0x328   : > { %2218 = vmatpush.bf16.msrb.mxu0 %v1556_v1  ;;  %v12739_v4 = vpop.permute.xlu0 %2275  ;;  %v2396_v35 = vmul.f32 %v2384_v43, %v17083_v20  ;;  %v2410_v34 = vpack.c.bf16 %v2400_v58, %v2399_v63  ;;  %v9314_v54 = vor.u32 %v10504_v38, %v9313_v11  ;;  %v2389_v14 = vmul.f32 %v2373_v25, %v17082_v48 }
 0x329   : > { %v12743_v24 = vpop.permute.xlu1 %2439  ;;  %v12801_v27 = vpop.permute.xlu2 %2271  ;;  %v2390_v33 = vmul.f32 %v2381_v41, %v17083_v20  ;;  %v2409_v13 = vpack.c.bf16 %v2398_v5, %v2397_v47  ;;  %v2407_v8 = vpack.c.bf16 %v2394_v17, %v2393_v45  ;;  %v12823_v2 = vpack.c.bf16 %v2402_v49, %v2401_v7  ;;  %v17087_v41 = vld [vmem:[#allocation11_spill] sm:$0xff]  ;;  %v17088_v45 = vld [vmem:[#allocation32_spill] sm:$0xff] }
 0x32a   : > { %2161 = vmatmul.bf16.vlgmr.msra.gmra.mxu2 %v9306_v59  ;;  %v2406_v9 = vpack.c.bf16 %v2392_v39, %v2391_v32  ;;  %v2408_v1 = vpack.c.bf16 %v2396_v35, %v2395_v55  ;;  %v2544_v26 = vunpack.c.h.b16 %v2410_v34  ;;  %v2451_v47 = vsel %vm1089_vm11, %v17086_v60, %v12644_v61  ;;  %v17089_v39 = vld [vmem:[#allocation16_spill] sm:$0xff]  ;;  %v17090_v35 = vld [vmem:[#allocation17_spill] sm:$0xff] }
 0x32b   : > { %2219 = vmatmul.bf16.vlgmr.msrb.gmra.mxu0 %v9306_v59  ;;  %v2543_v59 = vunpack.c.l.b16 %v2410_v34  ;;  %v2405_v29 = vpack.c.bf16 %v2390_v33, %v2389_v14  ;;  %v2541_v19 = vunpack.c.l.b16 %v2409_v13  ;;  %v2537_v18 = vunpack.c.l.b16 %v2407_v8 }
 0x32c   : > { %v2545_v30 = vunpack.c.l.b16 %v12823_v2  ;;  %v2542_v62 = vunpack.c.h.b16 %v2409_v13  ;;  %v2538_v23 = vunpack.c.h.b16 %v2407_v8  ;;  %v2535_v56 = vunpack.c.l.b16 %v2406_v9 }
 0x32d   : > { %v2546_v51 = vunpack.c.h.b16 %v12823_v2  ;;  %v12831_v63 = vpack.c.b16 %v2543_v59, %v2541_v19  ;;  %v2539_v58 = vunpack.c.l.b16 %v2408_v1  ;;  %v2540_v36 = vunpack.c.h.b16 %v2408_v1  ;;  %v10506_v1 = vld [vmem:[#allocation3 + $0x24] sm:$0xf0]  ;;  %v17091_v59 = vld [vmem:[#allocation18_spill] sm:$0xff] }
 0x32e   : > { %v2459_v5 = vsel %vm1089_vm11, %v12644_v61, %v17086_v60  ;;  %v12841_v3 = vpack.c.b16 %v2544_v26, %v2542_v62  ;;  %v2533_v43 = vunpack.c.l.b16 %v2405_v29  ;;  %v2534_v42 = vunpack.c.h.b16 %v2405_v29  ;;  %v17093_v60 = vld [vmem:[#allocation30_spill] sm:$0xff] }
 0x32f   : > { %v12843_v52 = vpack.c.b16 %v2539_v58, %v2537_v18  ;;  %v2536_v25 = vunpack.c.h.b16 %v2406_v9  ;;  %v2307_v17 = vsel %vm1057_vm12, %v17088_v45, %v17087_v41  ;;  %v2315_v7 = vsel %vm1057_vm12, %v17087_v41, %v17088_v45  ;;  %v9321_v9 = vld [vmem:[#allocation3 + $0x20] sm:$0xf] }
 0x330   : > { %v12761_v50 = vpop.permute.xlu0 %2417  ;;  %v12853_v49 = vpack.c.b16 %v2540_v36, %v2538_v23  ;;  %v12855_v32 = vpack.c.b16 %v2535_v56, %v2533_v43  ;;  %v2473_v55 = vmul.f32 %v2451_v47, %v17089_v39  ;;  %v2474_v34 = vmul.f32 %v2459_v5, %v17090_v35 }
 0x331   : > { %v12779_v12 = vpop.permute.xlu1 %2289  ;;  %v12828_v21 = vpop.permute.xlu2 %2283  ;;  %v2449_v33 = vsel %vm1089_vm11, %v12735_v31, %v12733_v6  ;;  %v2457_v13 = vsel %vm1089_vm11, %v12733_v6, %v12735_v31  ;;  %v2329_v29 = vmul.f32 %v2307_v17, %v17091_v59  ;;  %v2458_v26 = vsel %vm1089_vm11, %v12743_v24, %v12653_v57  ;;  %v17092_v31 = vld [vmem:[#allocation19_spill] sm:$0xff] }
 0x332   : > { %v12883_v6 = vpack.c.b16 %v2536_v25, %v2534_v42  ;;  %v2314_v19 = vsel %vm1057_vm12, %v12715_v46, %v12720_v53  ;;  %v2472_v23 = vmul.f32 %v2458_v26, %v17090_v35 }
 0x333   : > { %9336 = vmatmul.msk.bf16.gmra.mxu3 %vm1976_vm13, %v9318_v28  ;;  %v2328_v5 = vmul.f32 %v2314_v19, %v17092_v31 }
 0x334   : > { %9340 = vmatmul.msk.bf16.gmra.mxu1 %vm1976_vm13, %v9318_v28  ;;  %v10505_v28 = vld [vmem:[#allocation3 + $0x24] sm:$0xf] }
 0x335   : > { %v9326_v38 = vor.u32 %v10505_v28, %v9323_v10  ;;  %v2470_v28 = vmul.f32 %v2457_v13, %v17090_v35  ;;  %v9322_v10 = vor.u32 %v10506_v1, %v9321_v9  ;;  %v10507_v9 = vld [vmem:[#allocation3 + $0x34] sm:$0xf]  ;;  %v9331_v1 = vld [vmem:[#allocation3 + $0x38] sm:$0xf0] }
 0x338   : > { %v2372_v0 = vpop.permute.xlu0 %2371 }
 0x339   : > { %v12825_v16 = vpop.permute.xlu1 %2419  ;;  %v2444_v56 = vpop.permute.xlu2 %2443 }
 0x33a   : > { %2166 = vmatmul.bf16.gmra.mxu2 %v9314_v54 }
 0x33b   : > { %2224 = vmatmul.bf16.gmra.mxu0 %v9314_v54 }
 0x340   : > { %v2436_v11 = vpop.permute.xlu0 %2435 }
 0x341   : > { %v2356_v61 = vpop.permute.xlu1 %2355  ;;  %v2448_v17 = vsel %vm1089_vm11, %v12825_v16, %v2436_v11 }
 0x342   : > { %v2380_v54 = vsel %vm1073_vm10, %v2356_v61, %v2372_v0  ;;  %v2388_v14 = vsel %vm1073_vm10, %v2372_v0, %v2356_v61  ;;  %v2450_v0 = vsel %vm1089_vm11, %v12653_v57, %v12743_v24  ;;  %v2483_v57 = vpack.c.bf16 %v2474_v34, %v2473_v55 }
 0x343   : > { %v2403_v8 = vmul.f32 %v2380_v54, %v17082_v48  ;;  %v2404_v2 = vmul.f32 %v2388_v14, %v17083_v20  ;;  %9337 = vmatmul.msk.bf16.gmra.mxu3 %vm1976_vm13, %v9326_v38  ;;  %v2330_v48 = vmul.f32 %v2315_v7, %v17092_v31  ;;  %v2306_v20 = vsel %vm1057_vm12, %v12720_v53, %v12715_v46 }
 0x344   : > { %9341 = vmatmul.msk.bf16.gmra.mxu1 %vm1976_vm13, %v9326_v38  ;;  %v2469_v24 = vmul.f32 %v2449_v33, %v17089_v39  ;;  %v2471_v62 = vmul.f32 %v2450_v0, %v17089_v39  ;;  %v2305_v46 = vsel %vm1057_vm12, %v12679_v44, %v17093_v60  ;;  %v2313_v53 = vsel %vm1057_vm12, %v17093_v60, %v12679_v44 }
 0x345   : > { %v2412_v18 = vpack.c.bf16 %v2404_v2, %v2403_v8  ;;  %v2327_v47 = vmul.f32 %v2306_v20, %v17091_v59  ;;  %v2456_v44 = vsel %vm1089_vm11, %v2436_v11, %v12825_v16  ;;  %v12923_v55 = vpack.c.bf16 %v2330_v48, %v2329_v29 }
 0x346   : > { %v2585_v34 = vunpack.c.l.b16 %v2483_v57  ;;  %v2481_v54 = vpack.c.bf16 %v2470_v28, %v2469_v24  ;;  %v2482_v14 = vpack.c.bf16 %v2472_v23, %v2471_v62  ;;  %v2455_v16 = vsel %vm1089_vm11, %v12741_v37, %v12761_v50 }
 0x347   : > { %v2547_v58 = vunpack.c.l.b16 %v2412_v18  ;;  %v2548_v36 = vunpack.c.h.b16 %v2412_v18  ;;  %v2325_v33 = vmul.f32 %v2305_v46, %v17091_v59  ;;  %v2326_v13 = vmul.f32 %v2313_v53, %v17092_v31 }
 0x348   : > { %v2428_v43 = vpop.permute.xlu0 %2427  ;;  %v2467_v8 = vmul.f32 %v2448_v17, %v17089_v39  ;;  %v2468_v2 = vmul.f32 %v2456_v44, %v17090_v35  ;;  %v12937_v29 = vpack.c.bf16 %v2328_v5, %v2327_v47  ;;  %v2304_v0 = vsel %vm1057_vm12, %v12739_v4, %v12731_v40  ;;  %v9329_v5 = vld [vmem:[#allocation3 + $0x30] sm:$0xf] }
 0x349   : > { %v2452_v38 = vsel %vm1089_vm11, %v2428_v43, %v2444_v56  ;;  %v2460_v42 = vsel %vm1089_vm11, %v2444_v56, %v2428_v43  ;;  %v12913_v25 = vpop.permute.xlu1 %2269  ;;  %v2555_v41 = vpack.c.b16 %v2547_v58, %v2545_v30  ;;  %v2556_v45 = vpack.c.b16 %v2548_v36, %v2546_v51  ;;  %v12952_v58 = vpop.permute.xlu2 %2413  ;;  %v10508_v43 = vld [vmem:[#allocation3 + $0x34] sm:$0xf0] }
 0x34a   : > { %v2475_v7 = vmul.f32 %v2452_v38, %v17089_v39  ;;  %v2476_v61 = vmul.f32 %v2460_v42, %v17090_v35  ;;  %2171 = vmatmul.bf16.gmra.mxu2 %v9322_v10  ;;  %v2586_v30 = vunpack.c.h.b16 %v2483_v57  ;;  %v2447_v51 = vsel %vm1089_vm11, %v12761_v50, %v12741_v37 }
 0x34b   : > { %2229 = vmatmul.bf16.gmra.mxu0 %v9322_v10  ;;  %2662 = vmatpush.bf16.msrb.mxu2 %v2555_v41  ;;  %v2465_v26 = vmul.f32 %v2447_v51, %v17089_v39  ;;  %v2466_v48 = vmul.f32 %v2455_v16, %v17090_v35  ;;  %v2581_v20 = vunpack.c.l.b16 %v2481_v54  ;;  %v2583_v19 = vunpack.c.l.b16 %v2482_v14 }
 0x34c   : > { %v2484_v11 = vpack.c.bf16 %v2476_v61, %v2475_v7  ;;  %2720 = vmatpush.bf16.msra.mxu0 %v2556_v45  ;;  %v9334_v28 = vor.u32 %v10507_v9, %v9331_v1  ;;  %v2584_v10 = vunpack.c.h.b16 %v2482_v14  ;;  %v2312_v62 = vsel %vm1057_vm12, %v12731_v40, %v12739_v4 }
 0x34d   : > { %v2323_v23 = vmul.f32 %v2304_v0, %v17091_v59  ;;  %v2480_v56 = vpack.c.bf16 %v2468_v2, %v2467_v8  ;;  %v2582_v36 = vunpack.c.h.b16 %v2481_v54  ;;  %v2311_v60 = vsel %vm1057_vm12, %v12779_v12, %v12703_v15 }
 0x34e   : > { %v2587_v37 = vunpack.c.l.b16 %v2484_v11  ;;  %v2588_v50 = vunpack.c.h.b16 %v2484_v11  ;;  %v2479_v46 = vpack.c.bf16 %v2466_v48, %v2465_v26  ;;  %v2506_v42 = vunpack.c.h.b16 %v12923_v55 }
 0x34f   : > { %2663 = vmatpush.bf16.msrb.mxu2 %v12831_v63  ;;  %v2594_v38 = vpack.c.b16 %v2584_v10, %v2582_v36  ;;  %v2322_v45 = vmul.f32 %v2311_v60, %v17092_v31  ;;  %v2579_v17 = vunpack.c.l.b16 %v2480_v56  ;;  %v2337_v44 = vpack.c.bf16 %v2326_v13, %v2325_v33 }
 0x350   : > { %2721 = vmatpush.bf16.msra.mxu0 %v12841_v3  ;;  %v2286_v18 = vpop.permute.xlu0 %2285  ;;  %v2595_v57 = vpack.c.b16 %v2587_v37, %v2585_v34  ;;  %v2596_v24 = vpack.c.b16 %v2588_v50, %v2586_v30  ;;  %v2303_v3 = vsel %vm1057_vm12, %v12703_v15, %v12779_v12  ;;  %v2505_v15 = vunpack.c.l.b16 %v12923_v55 }
 0x351   : > { %v2300_v63 = vpop.permute.xlu1 %2299  ;;  %v2324_v12 = vmul.f32 %v2312_v62, %v17092_v31  ;;  %v2321_v41 = vmul.f32 %v2303_v3, %v17091_v59  ;;  %v9330_v7 = vor.u32 %v10508_v43, %v9329_v5  ;;  %v2580_v61 = vunpack.c.h.b16 %v2480_v56  ;;  %v2432_v37 = vpop.permute.xlu2 %2431 }
 0x352   : > { %v2308_v40 = vsel %vm1057_vm12, %v12828_v21, %v2300_v63  ;;  %v2316_v4 = vsel %vm1057_vm12, %v2300_v63, %v12828_v21  ;;  %2695 = vmatpush.bf16.msrb.mxu3 %v2595_v57  ;;  %2753 = vmatpush.bf16.msra.mxu1 %v2596_v24  ;;  %v2593_v21 = vpack.c.b16 %v2583_v19, %v2581_v20  ;;  %v2577_v54 = vunpack.c.l.b16 %v2479_v46 }
 0x353   : > { %v2331_v53 = vmul.f32 %v2308_v40, %v17091_v59  ;;  %v2332_v47 = vmul.f32 %v2316_v4, %v17092_v31  ;;  %2664 = vmatpush.bf16.msrb.mxu2 %v12843_v52  ;;  %9338 = vmatmul.msk.bf16.gmra.mxu3 %vm1976_vm13, %v9334_v28  ;;  %v2301_v34 = vsel %vm1057_vm12, %v12913_v25, %v2286_v18  ;;  %v2578_v16 = vunpack.c.h.b16 %v2479_v46 }
 0x354   : > { %2722 = vmatpush.bf16.msra.mxu0 %v12853_v49  ;;  %9342 = vmatmul.msk.bf16.gmra.mxu1 %vm1976_vm13, %v9334_v28  ;;  %v2503_v49 = vunpack.c.l.b16 %v12937_v29  ;;  %v2336_v30 = vpack.c.bf16 %v2324_v12, %v2323_v23  ;;  %v2309_v51 = vsel %vm1057_vm12, %v2286_v18, %v12913_v25  ;;  %v2504_v11 = vunpack.c.h.b16 %v12937_v29  ;;  %v9345_v12 = vld [vmem:[#allocation3 + $0x80] sm:$0xf] }
 0x355   : > { %v2340_v52 = vpack.c.bf16 %v2332_v47, %v2331_v53  ;;  %v2335_v33 = vpack.c.bf16 %v2322_v45, %v2321_v41  ;;  %v2591_v9 = vpack.c.b16 %v2579_v17, %v2577_v54  ;;  %v2317_v1 = vmul.f32 %v2301_v34, %v17091_v59 }
 0x356   : > { %2696 = vmatpush.bf16.msrb.mxu3 %v2593_v21  ;;  %2754 = vmatpush.bf16.msra.mxu1 %v2594_v38  ;;  %v2318_v29 = vmul.f32 %v2309_v51, %v17092_v31  ;;  %v2501_v48 = vunpack.c.l.b16 %v2337_v44  ;;  %v2499_v23 = vunpack.c.l.b16 %v2336_v30  ;;  %v2500_v56 = vunpack.c.h.b16 %v2336_v30  ;;  %v10518_v21 = vld [vmem:[#allocation3 + $0x84] sm:$0xf0] }
 0x357   : > { %2665 = vmatpush.bf16.msrb.mxu2 %v12855_v32  ;;  %v2507_v55 = vunpack.c.l.b16 %v2340_v52  ;;  %v2508_v14 = vunpack.c.h.b16 %v2340_v52  ;;  %v2497_v24 = vunpack.c.l.b16 %v2335_v33  ;;  %v9346_v17 = vor.u32 %v10518_v21, %v9345_v12  ;;  %v9371_v12 = vld [vmem:[#allocation3 + $0xb8] sm:$0xf0] }
 0x358   : > { %2723 = vmatpush.bf16.msra.mxu0 %v12883_v6  ;;  %v2416_v13 = vpop.permute.xlu0 %2415  ;;  %v2592_v6 = vpack.c.b16 %v2580_v61, %v2578_v16  ;;  %v2513_v57 = vpack.c.b16 %v2503_v49, %v2501_v48  ;;  %v2333_v10 = vpack.c.bf16 %v2318_v29, %v2317_v1  ;;  %v10517_v49 = vld [vmem:[#allocation3 + $0x84] sm:$0xf] }
 0x359   : > { %v2288_v8 = vpop.permute.xlu1 %2287  ;;  %v2515_v2 = vpack.c.b16 %v2507_v55, %v2505_v15  ;;  %v2516_v32 = vpack.c.b16 %v2508_v14, %v2506_v42  ;;  %v2446_v20 = vsel %vm1089_vm11, %v2416_v13, %v2432_v37  ;;  %v2454_v19 = vsel %vm1089_vm11, %v2432_v37, %v2416_v13 }
 0x35a   : > { %v2302_v0 = vsel %vm1057_vm12, %v12801_v27, %v2288_v8  ;;  %v2310_v25 = vsel %vm1057_vm12, %v2288_v8, %v12801_v27  ;;  %2176 = vmatmul.bf16.gmra.mxu2 %v9330_v7  ;;  %2697 = vmatpush.bf16.msrb.mxu3 %v2591_v9  ;;  %v2502_v27 = vunpack.c.h.b16 %v2337_v44  ;;  %v2464_v62 = vmul.f32 %v2454_v19, %v17090_v35  ;;  %v9353_v8 = vld [vmem:[#allocation3 + $0x90] sm:$0xf] }
 0x35b   : > { %v2319_v50 = vmul.f32 %v2302_v0, %v17091_v59  ;;  %v2320_v26 = vmul.f32 %v2310_v25, %v17092_v31  ;;  %2234 = vmatmul.bf16.gmra.mxu0 %v9330_v7  ;;  %2666 = vmatpush.bf16.msrb.mxu2 %v2515_v2  ;;  %v2498_v59 = vunpack.c.h.b16 %v2335_v33  ;;  %v2463_v31 = vmul.f32 %v2446_v20, %v17089_v39  ;;  %v10520_v2 = vld [vmem:[#allocation3 + $0x94] sm:$0xf0]  ;;  %v10519_v0 = vld [vmem:[#allocation3 + $0x94] sm:$0xf]  ;;  %v9355_v25 = vld [vmem:[#allocation3 + $0x98] sm:$0xf0] }
 0x35c   : > { %2724 = vmatpush.bf16.msra.mxu0 %v2516_v32  ;;  %2755 = vmatpush.bf16.msra.mxu1 %v2592_v6  ;;  %v2514_v28 = vpack.c.b16 %v2504_v11, %v2502_v27  ;;  %v2511_v36 = vpack.c.b16 %v2499_v23, %v2497_v24  ;;  %v2493_v15 = vunpack.c.l.b16 %v2333_v10  ;;  %v2494_v38 = vunpack.c.h.b16 %v2333_v10  ;;  %v10521_v10 = vld [vmem:[#allocation3 + $0xa4] sm:$0xf] }
 0x35d   : > { %v2334_v18 = vpack.c.bf16 %v2320_v26, %v2319_v50  ;;  %v2512_v46 = vpack.c.b16 %v2500_v56, %v2498_v59  ;;  %v2478_v47 = vpack.c.bf16 %v2464_v62, %v2463_v31  ;;  %v9354_v1 = vor.u32 %v10520_v2, %v9353_v8  ;;  %v9363_v31 = vld [vmem:[#allocation3 + $0xa8] sm:$0xf0] }
 0x35e   : > { %v9358_v50 = vor.u32 %v10519_v0, %v9355_v25 }
 0x35f   : > { %2667 = vmatpush.bf16.msrb.mxu2 %v2513_v57  ;;  %v2495_v3 = vunpack.c.l.b16 %v2334_v18  ;;  %v2496_v53 = vunpack.c.h.b16 %v2334_v18  ;;  %v2575_v44 = vunpack.c.l.b16 %v2478_v47  ;;  %v2576_v61 = vunpack.c.h.b16 %v2478_v47  ;;  %v9361_v18 = vld [vmem:[#allocation3 + $0xa0] sm:$0xf]  ;;  %v10522_v57 = vld [vmem:[#allocation3 + $0xa4] sm:$0xf0] }
 0x360   : > { %2725 = vmatpush.bf16.msra.mxu0 %v2514_v28  ;;  %v9362_v59 = vor.u32 %v10522_v57, %v9361_v18 }
 0x361   : > { %v2430_v63 = vpop.permute.xlu1 %2429  ;;  %v2085_v60 = vpop.f32.mrf.mxu1  ;;  %v2509_v41 = vpack.c.b16 %v2495_v3, %v2493_v15  ;;  %v2510_v45 = vpack.c.b16 %v2496_v53, %v2494_v38  ;;  %v10524_v53 = vld [vmem:[#allocation3 + $0xb4] sm:$0xf0]  ;;  %v10523_v15 = vld [vmem:[#allocation3 + $0xb4] sm:$0xf] }
 0x362   : > { %v2445_v40 = vsel %vm1089_vm11, %v12952_v58, %v2430_v63  ;;  %v2453_v4 = vsel %vm1089_vm11, %v2430_v63, %v12952_v58  ;;  %v9366_v63 = vor.u32 %v10521_v10, %v9363_v31 }
 0x363   : > { %v2461_v5 = vmul.f32 %v2445_v40, %v17089_v39  ;;  %v2462_v43 = vmul.f32 %v2453_v4, %v17090_v35  ;;  %2668 = vmatpush.bf16.msrb.mxu2 %v2511_v36  ;;  %v9347_v39 = vld [vmem:[#allocation3 + $0x88] sm:$0xf0] }
 0x364   : > { %2726 = vmatpush.bf16.msra.mxu0 %v2512_v46  ;;  %v9350_v30 = vor.u32 %v10517_v49, %v9347_v39  ;;  %v9369_v46 = vld [vmem:[#allocation3 + $0xb0] sm:$0xf] }
 0x365   : > { %v2477_v42 = vpack.c.bf16 %v2462_v43, %v2461_v5  ;;  %v9370_v5 = vor.u32 %v10524_v53, %v9369_v46 }
 0x366   : > { %v2027_v52 = vpop.f32.mrf.mxu3 }
 0x367   : > { %2669 = vmatpush.bf16.msrb.mxu2 %v2509_v41  ;;  %v2573_v58 = vunpack.c.l.b16 %v2477_v42  ;;  %v2574_v7 = vunpack.c.h.b16 %v2477_v42  ;;  %v9374_v42 = vor.u32 %v10523_v15, %v9371_v12 }
 0x368   : > { %v2056_v34 = vpop.f32.mrf.mxu0  ;;  %2727 = vmatpush.bf16.msra.mxu0 %v2510_v45 }
 0x369   : > { %v13013_v35 = vadd.f32 %v2085_v60, %v2056_v34  ;;  %v2589_v55 = vpack.c.b16 %v2575_v44, %v2573_v58  ;;  %v2590_v54 = vpack.c.b16 %v2576_v61, %v2574_v7  ;;  %v13015_v14 = vpop.f32.mrf.mxu1 }
 0x36a   : > { %2670 = vmatmul.bf16.vlgmr.msrb.gmra.mxu2 %v9346_v17 }
 0x36b   : > { %2698 = vmatpush.bf16.msrb.mxu3 %v2589_v55  ;;  %2756 = vmatpush.bf16.msra.mxu1 %v2590_v54 }
 0x36c   : > { %2728 = vmatmul.bf16.vlgmr.msra.gmra.mxu0 %v9346_v17 }
 0x36d   : > { %v1998_v51 = vpop.f32.mrf.mxu2 }
 0x36e   : > { %v13017_v16 = vadd.f32 %v2027_v52, %v1998_v51  ;;  %9375 = vmatmul.msk.bf16.vlgmr.msrb.gmra.mxu3 %vm1976_vm13, %v9350_v30  ;;  %9379 = vmatmul.msk.bf16.vlgmr.msra.gmra.mxu1 %vm1976_vm13, %v9350_v30  ;;  %v13021_v11 = vpop.f32.mrf.mxu3 }
 0x370   : > { %v13023_v33 = vpop.f32.mrf.mxu0 }
 0x371   : > { %v2090_v13 = vpop.f32.mrf.mxu1 }
 0x375   : > { %v13025_v9 = vpop.f32.mrf.mxu2 }
 0x376   : > { %v2032_v32 = vpop.f32.mrf.mxu3 }
 0x378   : > { %v2061_v6 = vpop.f32.mrf.mxu0 }
 0x379   : > { %v13027_v37 = vadd.f32 %v2090_v13, %v2061_v6  ;;  %v13029_v29 = vpop.f32.mrf.mxu1 }
 0x37a   : > { %2675 = vmatmul.bf16.gmra.mxu2 %v9354_v1 }
 0x37c   : > { %2733 = vmatmul.bf16.gmra.mxu0 %v9354_v1 }
 0x37d   : > { %v2003_v26 = vpop.f32.mrf.mxu2 }
 0x37e   : > { %v13031_v48 = vadd.f32 %v2032_v32, %v2003_v26  ;;  %9376 = vmatmul.msk.bf16.gmra.mxu3 %vm1976_vm13, %v9358_v50  ;;  %9380 = vmatmul.msk.bf16.gmra.mxu1 %vm1976_vm13, %v9358_v50  ;;  %v13035_v20 = vpop.f32.mrf.mxu3 }
 0x380   : > { %v13037_v19 = vpop.f32.mrf.mxu0 }
 0x381   : > { %v2095_v27 = vpop.f32.mrf.mxu1 }
 0x385   : > { %v13039_v24 = vpop.f32.mrf.mxu2 }
 0x386   : > { %v2037_v28 = vpop.f32.mrf.mxu3 }
 0x388   : > { %v2066_v62 = vpop.f32.mrf.mxu0 }
 0x389   : > { %v2096_v23 = vadd.f32 %v2095_v27, %v2066_v62  ;;  %v13041_v56 = vpop.f32.mrf.mxu1 }
 0x38a   : > { %2680 = vmatmul.bf16.gmra.mxu2 %v9362_v59 }
 0x38c   : > { %2738 = vmatmul.bf16.gmra.mxu0 %v9362_v59 }
 0x38d   : > { %v2008_v36 = vpop.f32.mrf.mxu2 }
 0x38e   : > { %v2038_v3 = vadd.f32 %v2037_v28, %v2008_v36  ;;  %9377 = vmatmul.msk.bf16.gmra.mxu3 %vm1976_vm13, %v9366_v63  ;;  %9381 = vmatmul.msk.bf16.gmra.mxu1 %vm1976_vm13, %v9366_v63  ;;  %v13045_v60 = vpop.f32.mrf.mxu3 }
 0x390   : > { %v13047_v40 = vpop.f32.mrf.mxu0 }
 0x391   : > { %v2100_v4 = vpop.f32.mrf.mxu1 }
 0x395   : > { %v13049_v47 = vpop.f32.mrf.mxu2 }
 0x396   : > { %v2042_v43 = vpop.f32.mrf.mxu3 }
 0x398   : > { %v2071_v21 = vpop.f32.mrf.mxu0 }
 0x399   : > { %v2101_v38 = vadd.f32 %v2100_v4, %v2071_v21  ;;  %v13051_v41 = vpop.f32.mrf.mxu1 }
 0x39a   : > { %2685 = vmatmul.bf16.gmra.mxu2 %v9370_v5 }
 0x39c   : > { %2743 = vmatmul.bf16.gmra.mxu0 %v9370_v5 }
 0x39d   : > { %v2013_v45 = vpop.f32.mrf.mxu2 }
 0x39e   : > { %v2043_v52 = vadd.f32 %v2042_v43, %v2013_v45  ;;  %9378 = vmatmul.msk.bf16.gmra.mxu3 %vm1976_vm13, %v9374_v42  ;;  %9382 = vmatmul.msk.bf16.gmra.mxu1 %vm1976_vm13, %v9374_v42  ;;  %v13055_v17 = vpop.f32.mrf.mxu3 }
 0x3a0   : > { %v13057_v58 = vpop.f32.mrf.mxu0 }
 0x3a1   : > { %v2249_v44 = vpop.f32.mrf.mxu1 }
 0x3a5   : > { %v13059_v7 = vpop.f32.mrf.mxu2 }
 0x3a6   : > { %v2191_v61 = vpop.f32.mrf.mxu3 }
 0x3a8   : > { %v2220_v49 = vpop.f32.mrf.mxu0 }
 0x3a9   : > { %v2221_v39 = vadd.f32 %v2220_v49, %v13013_v35  ;;  %v2251_v34 = vpop.f32.mrf.mxu1 }
 0x3ab   : > { %v2250_v55 = vadd.f32 %v2249_v44, %v2221_v39 }
 0x3ad   : > { %v2162_v54 = vpop.f32.mrf.mxu2 }
 0x3ae   : > { %v2163_v30 = vadd.f32 %v2162_v54, %v13017_v16  ;;  %v13063_v51 = vpop.f32.mrf.mxu3 }
 0x3b0   : > { %v2192_v13 = vadd.f32 %v2191_v61, %v2163_v30  ;;  %v2222_v8 = vpop.f32.mrf.mxu0 }
 0x3b1   : > { %v2254_v2 = vpop.f32.mrf.mxu1 }
 0x3b5   : > { %v2164_v32 = vpop.f32.mrf.mxu2 }
 0x3b6   : > { %v2196_v1 = vpop.f32.mrf.mxu3 }
 0x3b8   : > { %v2225_v0 = vpop.f32.mrf.mxu0 }
 0x3b9   : > { %v2226_v25 = vadd.f32 %v2225_v0, %v13027_v37  ;;  %v13066_v6 = vpop.f32.mrf.mxu1 }
 0x3bb   : > { %v13068_v50 = vadd.f32 %v2254_v2, %v2226_v25 }
 0x3bd   : > { %v2167_v35 = vpop.f32.mrf.mxu2 }
 0x3be   : > { %v2168_v26 = vadd.f32 %v2167_v35, %v13031_v48  ;;  %v13075_v18 = vpop.f32.mrf.mxu3 }
 0x3c0   : > { %v13071_v27 = vadd.f32 %v2196_v1, %v2168_v26  ;;  %v13073_v16 = vpop.f32.mrf.mxu0  ;;  %v2030_v26 = vadd.f32 %v13021_v11, %v13025_v9 }
 0x3c1   : > { %v2259_v57 = vpop.f32.mrf.mxu1 }
 0x3c5   : > { %v13077_v28 = vpop.f32.mrf.mxu2 }
 0x3c6   : > { %v2201_v31 = vpop.f32.mrf.mxu3 }
 0x3c8   : > { %v2230_v59 = vpop.f32.mrf.mxu0 }
 0x3c9   : > { %v2231_v10 = vadd.f32 %v2230_v59, %v2096_v23  ;;  %v13081_v36 = vpop.f32.mrf.mxu1 }
 0x3cb   : > { %v13079_v37 = vadd.f32 %v2259_v57, %v2231_v10 }
 0x3cd   : > { %v2172_v62 = vpop.f32.mrf.mxu2 }
 0x3ce   : > { %v2173_v63 = vadd.f32 %v2172_v62, %v2038_v3  ;;  %v13087_v46 = vpop.f32.mrf.mxu3 }
 0x3d0   : > { %v13083_v4 = vadd.f32 %v2201_v31, %v2173_v63  ;;  %v13085_v48 = vpop.f32.mrf.mxu0  ;;  %v2805_v31 = vpop.permute.xlu0 %2804  ;;  %v2165_v63 = vadd.f32 %v2164_v32, %v2030_v26 }
 0x3d1   : > { %v2264_v43 = vpop.f32.mrf.mxu1 }
 0x3d5   : > { %v13089_v53 = vpop.f32.mrf.mxu2 }
 0x3d6   : > { %v2206_v42 = vpop.f32.mrf.mxu3 }
 0x3d8   : > { %v2235_v5 = vpop.f32.mrf.mxu0 }
 0x3d9   : > { %v2236_v15 = vadd.f32 %v2235_v5, %v2101_v38  ;;  %v13097_v44 = vpop.f32.mrf.mxu1  ;;  %v2088_v38 = vadd.f32 %v13015_v14, %v13023_v33 }
 0x3db   : > { %v13091_v12 = vadd.f32 %v2264_v43, %v2236_v15  ;;  %v2223_v1 = vadd.f32 %v2222_v8, %v2088_v38  ;;  %v2810_v15 = vpop.permute.xlu1 %2809 }
 0x3dd   : > { %v2177_v23 = vpop.f32.mrf.mxu2  ;;  %v2252_v57 = vadd.f32 %v2251_v34, %v2223_v1 }
 0x3de   : > { %v2178_v21 = vadd.f32 %v2177_v23, %v2043_v52  ;;  %v13101_v49 = vpop.f32.mrf.mxu3 }
 0x3e0   : > { %v13093_v45 = vadd.f32 %v2206_v42, %v2178_v21  ;;  %v13095_v3 = vpop.f32.mrf.mxu0 }
 0x3e5   : > { %v13099_v61 = vpop.f32.mrf.mxu2 }
 0x3e9   : > { %v2729_v39 = vpop.f32.mrf.mxu0 }
 0x3eb   : > { %v2758_v54 = vpop.f32.mrf.mxu1 }
 0x3ec   : > { %v2759_v2 = vadd.f32 %v2758_v54, %v2729_v39  ;;  %v2093_v54 = vadd.f32 %v13029_v29, %v13037_v19 }
 0x3ed   : > { %v2671_v30 = vpop.f32.mrf.mxu2 }
 0x3ee   : > { %v2779_v25 = vadd.f32 %v2759_v2, %v2250_v55  ;;  %v2194_v55 = vadd.f32 %v13063_v51, %v2165_v63  ;;  %v2228_v38 = vadd.f32 %v13073_v16, %v2093_v54  ;;  %v2820_v63 = vpop.permute.xlu0 %2819 }
 0x3f0   : > { %v13107_v5 = vadd.f32 %v2805_v31, %v2779_v25  ;;  %v2257_v26 = vadd.f32 %v13066_v6, %v2228_v38 }
 0x3f1   : > { %v2700_v52 = vpop.f32.mrf.mxu3  ;;  %v2731_v0 = vpop.f32.mrf.mxu0 }
 0x3f2   : > { %v2701_v59 = vadd.f32 %v2700_v52, %v2671_v30  ;;  %v2859_v21 = vmax.f32 %v13107_v5, 0.0 }
 0x3f3   : > { %v2760_v35 = vpop.f32.mrf.mxu1 }
 0x3f4   : > { %v2761_v10 = vadd.f32 %v2760_v35, %v2731_v0  ;;  %v2778_v14 = vadd.f32 %v2701_v59, %v2192_v13  ;;  %v2035_v35 = vadd.f32 %v13035_v20, %v13039_v24  ;;  %v2815_v59 = vpop.permute.xlu2 %2814  ;;  %v2801_v24 = vld [vmem:[%s17040_s3 + $0x38] sm:$0xff]  ;;  %s17152_s3 = smov 121  }
 0x3f5   : > { %v2673_v62 = vpop.f32.mrf.mxu2 }
 0x3f6   : > { %v2781_v43 = vadd.f32 %v2761_v10, %v2252_v57  ;;  %v13114_v42 = vadd.f32 %v2805_v31, %v2778_v14  ;;  %v2170_v31 = vadd.f32 %v13077_v28, %v2035_v35 }
 0x3f8   : > { %v13109_v33 = vadd.f32 %v2810_v15, %v2781_v43  ;;  %v2858_v2 = vmax.f32 %v13114_v42, 0.0  ;;  %v2199_v6 = vadd.f32 %v13075_v18, %v2170_v31 }
 0x3f9   : > { %v2702_v8 = vpop.f32.mrf.mxu3  ;;  %v2734_v23 = vpop.f32.mrf.mxu0 }
 0x3fa   : > { %v2861_v11 = vmax.f32 %v13109_v33, 0.0  ;;  %v2703_v9 = vadd.f32 %v2702_v8, %v2673_v62 }
 0x3fb   : > { %v2763_v34 = vpop.f32.mrf.mxu1 }
 0x3fc   : > { %v2780_v32 = vadd.f32 %v2703_v9, %v2194_v55  ;;  %v10823_v13 = vpack.i.bf16 %v2861_v11, %v2859_v21  ;;  %v2764_v51 = vadd.f32 %v2763_v34, %v2734_v23 }
 0x3fd   : > { %v2676_v39 = vpop.f32.mrf.mxu2 }
 0x3fe   : > { %v13122_v30 = vadd.f32 %v2810_v15, %v2780_v32  ;;  %10824 = vrot.lane.b32.xlu1 %v10823_v13, %s16903_s2  ;;  %v2783_v25 = vadd.f32 %v2764_v51, %v13068_v50  ;;  %v2098_v13 = vadd.f32 %v13041_v56, %v13047_v40 }
 0x400   : > { %v2860_v1 = vmax.f32 %v13122_v30, 0.0  ;;  %v13138_v50 = vadd.f32 %v2815_v59, %v2783_v25  ;;  %v2233_v54 = vadd.f32 %v13085_v48, %v2098_v13  ;;  %v2103_v13 = vadd.f32 %v13051_v41, %v13057_v58 }
 0x401   : > { %v2705_v52 = vpop.f32.mrf.mxu3  ;;  %v2736_v0 = vpop.f32.mrf.mxu0 }
 0x402   : > { %v10828_v29 = vpack.i.bf16 %v2860_v1, %v2858_v2  ;;  %v2706_v16 = vadd.f32 %v2705_v52, %v2676_v39  ;;  %v2863_v8 = vmax.f32 %v13138_v50, 0.0 }
 0x403   : > { %v2765_v19 = vpop.f32.mrf.mxu1 }
 0x404   : > { %v2766_v57 = vadd.f32 %v2765_v19, %v2736_v0  ;;  %10829 = vrot.lane.b32.xlu0 %v10828_v29, %s16903_s2  ;;  %v2782_v43 = vadd.f32 %v2706_v16, %v13071_v27  ;;  %v2040_v29 = vadd.f32 %v13045_v60, %v13049_v47  ;;  %v2262_v19 = vadd.f32 %v13081_v36, %v2233_v54 }
 0x405   : > { %v2678_v10 = vpop.f32.mrf.mxu2 }
 0x406   : > { %v2785_v62 = vadd.f32 %v2766_v57, %v2257_v26  ;;  %v13149_v9 = vadd.f32 %v2815_v59, %v2782_v43  ;;  %v2825_v26 = vpop.permute.xlu1 %2824  ;;  %v2175_v16 = vadd.f32 %v13089_v53, %v2040_v29  ;;  %v2830_v59 = vpop.permute.xlu2 %2829  ;;  %v2238_v29 = vadd.f32 %v13095_v3, %v2103_v13 }
 0x408   : > { %v13141_v15 = vadd.f32 %v2820_v63, %v2785_v62  ;;  %v2862_v51 = vmax.f32 %v13149_v9, 0.0  ;;  %v2204_v60 = vadd.f32 %v13087_v46, %v2175_v16 }
 0x409   : > { %v2707_v14 = vpop.f32.mrf.mxu3  ;;  %v2739_v20 = vpop.f32.mrf.mxu0 }
 0x40a   : > { %v2865_v28 = vmax.f32 %v13141_v15, 0.0  ;;  %v2708_v23 = vadd.f32 %v2707_v14, %v2678_v10 }
 0x40b   : > { %v2768_v55 = vpop.f32.mrf.mxu1 }
 0x40c   : > { %v2784_v34 = vadd.f32 %v2708_v23, %v2199_v6  ;;  %2839 = vperm.xlu0 %10822, %v2801_v24   ;;  %v10838_v27 = vpack.i.bf16 %v2865_v28, %v2863_v8  ;;  %v2769_v39 = vadd.f32 %v2768_v55, %v2739_v20 }
 0x40d   : > { %v2681_v32 = vpop.f32.mrf.mxu2 }
 0x40e   : > { %v13157_v18 = vadd.f32 %v2820_v63, %v2784_v34  ;;  %10839 = vrot.lane.b32.xlu2 %v10838_v27, %s16903_s2  ;;  %v2787_v25 = vadd.f32 %v2769_v39, %v13079_v37  ;;  %v2045_v39 = vadd.f32 %v13055_v17, %v13059_v7 }
 0x410   : > { %v2864_v38 = vmax.f32 %v13157_v18, 0.0  ;;  %v13173_v57 = vadd.f32 %v2825_v26, %v2787_v25 }
 0x411   : > { %v2710_v52 = vpop.f32.mrf.mxu3  ;;  %v2741_v0 = vpop.f32.mrf.mxu0 }
 0x412   : > { %v10833_v56 = vpack.i.bf16 %v2864_v38, %v2862_v51  ;;  %v2711_v48 = vadd.f32 %v2710_v52, %v2681_v32  ;;  %v2867_v47 = vmax.f32 %v13173_v57, 0.0  ;;  %v10530_v57 = vld [vmem:[#allocation5 + $0x28] sm:$0xff] }
 0x413   : > { %v2770_v40 = vpop.f32.mrf.mxu1 }
 0x414   : > { %v2771_v35 = vadd.f32 %v2770_v40, %v2741_v0  ;;  %10834 = vrot.lane.b32.xlu1 %v10833_v56, %s16903_s2  ;;  %v2786_v31 = vadd.f32 %v2711_v48, %v13083_v4 }
 0x415   : > { %v2683_v10 = vpop.f32.mrf.mxu2 }
 0x416   : > { %v2789_v37 = vadd.f32 %v2771_v35, %v2262_v19  ;;  %v13181_v14 = vadd.f32 %v2825_v26, %v2786_v31  ;;  %v2180_v19 = vadd.f32 %v13099_v61, %v2045_v39 }
 0x418   : > { %v13176_v62 = vadd.f32 %v2830_v59, %v2789_v37  ;;  %v2866_v4 = vmax.f32 %v13181_v14, 0.0  ;;  %v10531_v14 = vld [vmem:[#allocation5 + $0x30] sm:$0xff] }
 0x419   : > { %v2712_v63 = vpop.f32.mrf.mxu3  ;;  %v2744_v23 = vpop.f32.mrf.mxu0 }
 0x41a   : > { %v2869_v36 = vmax.f32 %v13176_v62, 0.0  ;;  %v2713_v43 = vadd.f32 %v2712_v63, %v2683_v10  ;;  %v10532_v62 = vld [vmem:[#allocation5 + $0x38] sm:$0xff] }
 0x41b   : > { %v2773_v55 = vpop.f32.mrf.mxu1  ;;  %3138 = vmatpush.bf16.msra.mxu2 %v10532_v62 }
 0x41c   : > { %v2788_v53 = vadd.f32 %v2713_v43, %v2204_v60  ;;  %v10848_v20 = vpack.i.bf16 %v2869_v36, %v2867_v47  ;;  %v2774_v54 = vadd.f32 %v2773_v55, %v2744_v23  ;;  %v2267_v60 = vadd.f32 %v13097_v44, %v2238_v29 }
 0x41d   : > { %v2686_v34 = vpop.f32.mrf.mxu2  ;;  %v2209_v43 = vadd.f32 %v13101_v49, %v2180_v19 }
 0x41e   : > { %v13187_v24 = vadd.f32 %v2830_v59, %v2788_v53  ;;  %10849 = vrot.lane.b32.xlu1 %v10848_v20, %s16903_s2  ;;  %v2791_v41 = vadd.f32 %v2774_v54, %v13091_v12  ;;  %v2835_v53 = vpop.permute.xlu2 %2834 }
 0x41f   : > { %3139 = vmatpush.bf16.msra.mxu2 %v10531_v14 }
 0x420   : > { %v2868_v46 = vmax.f32 %v13187_v24, 0.0 }
 0x421   : > { %v2715_v27 = vpop.f32.mrf.mxu3  ;;  %v2746_v32 = vpop.f32.mrf.mxu0 }
 0x422   : > { %v10843_v6 = vpack.i.bf16 %v2868_v46, %v2866_v4  ;;  %v2716_v52 = vadd.f32 %v2715_v27, %v2686_v34 }
 0x423   : > { %v2775_v0 = vpop.f32.mrf.mxu1  ;;  %3140 = vmatpush.bf16.msra.mxu2 %v10530_v57 }
 0x424   : > { %10844 = vrot.lane.b32.xlu0 %v10843_v6, %s16903_s2  ;;  %v2790_v58 = vadd.f32 %v2716_v52, %v13093_v45  ;;  %v2776_v17 = vadd.f32 %v2775_v0, %v2746_v32 }
 0x425   : > { %v2688_v56 = vpop.f32.mrf.mxu2 }
 0x426   : > { %v13237_v42 = vadd.f32 %v2835_v53, %v2790_v58 }
 0x428   : > { %v2870_v20 = vmax.f32 %v13237_v42, 0.0 }
 0x429   : > { %v2717_v40 = vpop.f32.mrf.mxu3 }
 0x42a   : > { %v2718_v7 = vadd.f32 %v2717_v40, %v2688_v56 }
 0x468   : > { %v10840_v27 = vpop.permute.xlu2 %10839 }
 0x469   : > { %v10842_v13 = vunpack.i.h.bf16 %v10840_v27  ;;  %v10841_v39 = vunpack.i.l.bf16 %v10840_v27 }
 0x470   : > { %v10825_v25 = vpop.permute.xlu1 %10824 }
 0x471   : > { %v10827_v35 = vunpack.i.h.bf16 %v10825_v25  ;;  %v10826_v26 = vunpack.i.l.bf16 %v10825_v25 }
 0x476   : > { %v10830_v48 = vpop.permute.xlu0 %10829 }
 0x477   : > { %v10832_v16 = vunpack.i.h.bf16 %v10830_v48  ;;  %v10831_v37 = vunpack.i.l.bf16 %v10830_v48 }
 0x479   : > { %v2907_v59 = vsel %vm816_vm1, %v10832_v16, %v10827_v35  ;;  %v2915_v10 = vsel %vm816_vm1, %v10827_v35, %v10832_v16  ;;  %v2906_v3 = vsel %vm816_vm1, %v10831_v37, %v10826_v26  ;;  %v2914_v61 = vsel %vm816_vm1, %v10826_v26, %v10831_v37 }
 0x47a   : > { %v13215_v31 = vmax.f32 %v2860_v1, %v2907_v59  ;;  %v13219_v12 = vmax.f32 %v2861_v11, %v2915_v10  ;;  %v13223_v45 = vmax.f32 %v2858_v2, %v2906_v3  ;;  %v13227_v63 = vmax.f32 %v2859_v21, %v2914_v61  ;;  %v10537_v3 = vld [vmem:[#allocation5 + $0x60] sm:$0xff]  ;;  %v10528_v61 = vld [vmem:[#allocation5 + $0x18] sm:$0xff] }
 0x47b   : > { %v13235_v11 = vadd.f32 %v2835_v53, %v2791_v41  ;;  %v2793_v2 = vadd.f32 %v2776_v17, %v2267_v60  ;;  %v2792_v1 = vadd.f32 %v2718_v7, %v2209_v43  ;;  %v10536_v60 = vld [vmem:[#allocation5 + $0x58] sm:$0xff]  ;;  %v10527_v43 = vld [vmem:[#allocation5 + $0x10] sm:$0xff] }
 0x47c   : > { %v10858_v30 = vpack.i.bf16 %v13219_v12, %v13227_v63  ;;  %v10853_v33 = vpack.i.bf16 %v13215_v31, %v13223_v45  ;;  %v10535_v53 = vld [vmem:[#allocation5 + $0x50] sm:$0xff] }
 0x47d   : > { %v2871_v21 = vmax.f32 %v13235_v11, 0.0 }
 0x47e   : > { %v2840_v5 = vpop.permute.xlu0 %2839  ;;  %10859 = vrot.lane.b32.xlu0 %v10858_v30, %s17012_s26  ;;  %10854 = vrot.lane.b32.xlu2 %v10853_v33, %s17012_s26  ;;  %v10526_v30 = vld [vmem:[#allocation5 + $0x8] sm:$0xff] }
 0x47f   : > { %v13241_v44 = vadd.f32 %v2840_v5, %v2793_v2  ;;  %v13243_v49 = vadd.f32 %v2840_v5, %v2792_v1  ;;  %v10534_v33 = vld [vmem:[#allocation5 + $0x48] sm:$0xff]  ;;  %v10525_v2 = vld [vmem:[#allocation5] sm:$0xff] }
 0x480   : > { %v10533_v1 = vld [vmem:[#allocation5 + $0x40] sm:$0xff] }
 0x481   : > { %v2873_v6 = vmax.f32 %v13241_v44, 0.0  ;;  %v2872_v23 = vmax.f32 %v13243_v49, 0.0 }
 0x483   : > { %v10868_v55 = vpack.i.bf16 %v2873_v6, %v2871_v21  ;;  %v10863_v34 = vpack.i.bf16 %v2872_v23, %v2870_v20 }
 0x485   : > { %10864 = vrot.lane.b32.xlu1 %v10863_v34, %s16903_s2 }
 0x486   : > { %v10835_v32 = vpop.permute.xlu1 %10834  ;;  %10869 = vrot.lane.b32.xlu2 %v10868_v55, %s16903_s2 }
 0x487   : > { %v10837_v54 = vunpack.i.h.bf16 %v10835_v32  ;;  %v10836_v52 = vunpack.i.l.bf16 %v10835_v32 }
 0x489   : > { %v2909_v0 = vsel %vm816_vm1, %v10837_v54, %v10842_v13  ;;  %v2917_v25 = vsel %vm816_vm1, %v10842_v13, %v10837_v54  ;;  %v2908_v56 = vsel %vm816_vm1, %v10836_v52, %v10841_v39  ;;  %v2916_v40 = vsel %vm816_vm1, %v10841_v39, %v10836_v52 }
 0x48a   : > { %v13269_v29 = vmax.f32 %v2864_v38, %v2909_v0  ;;  %v13273_v19 = vmax.f32 %v2865_v28, %v2917_v25  ;;  %v13277_v48 = vmax.f32 %v2862_v51, %v2908_v56  ;;  %v13281_v35 = vmax.f32 %v2863_v8, %v2916_v40 }
 0x48c   : > { %v10873_v26 = vpack.i.bf16 %v13269_v29, %v13277_v48  ;;  %v10878_v18 = vpack.i.bf16 %v13273_v19, %v13281_v35 }
 0x48e   : > { %10874 = vrot.lane.b32.xlu0 %v10873_v26, %s17012_s26  ;;  %10879 = vrot.lane.b32.xlu1 %v10878_v18, %s17012_s26 }
 0x490   : > { %v10850_v15 = vpop.permute.xlu1 %10849 }
 0x491   : > { %v10852_v38 = vunpack.i.h.bf16 %v10850_v15  ;;  %v10851_v9 = vunpack.i.l.bf16 %v10850_v15 }
 0x496   : > { %v10845_v28 = vpop.permute.xlu0 %10844 }
 0x497   : > { %v10847_v51 = vunpack.i.h.bf16 %v10845_v28  ;;  %v10846_v16 = vunpack.i.l.bf16 %v10845_v28 }
 0x499   : > { %v2911_v50 = vsel %vm816_vm1, %v10847_v51, %v10852_v38  ;;  %v2919_v8 = vsel %vm816_vm1, %v10852_v38, %v10847_v51  ;;  %v2910_v37 = vsel %vm816_vm1, %v10846_v16, %v10851_v9  ;;  %v2918_v41 = vsel %vm816_vm1, %v10851_v9, %v10846_v16 }
 0x49a   : > { %v13299_v58 = vmax.f32 %v2868_v46, %v2911_v50  ;;  %v13303_v17 = vmax.f32 %v2869_v36, %v2919_v8  ;;  %v13307_v7 = vmax.f32 %v2866_v4, %v2910_v37  ;;  %v13311_v59 = vmax.f32 %v2867_v47, %v2918_v41  ;;  %v10540_v36 = vld [vmem:[#allocation5 + $0x78] sm:$0xff]  ;;  %v10539_v4 = vld [vmem:[#allocation5 + $0x70] sm:$0xff]  ;;  %v10538_v47 = vld [vmem:[#allocation5 + $0x68] sm:$0xff] }
 0x49b   : > { %3167 = vmatpush.bf16.msra.mxu3 %v10540_v36  ;;  %v10529_v46 = vld [vmem:[#allocation5 + $0x20] sm:$0xff] }
 0x49c   : > { %v10888_v10 = vpack.i.bf16 %v13303_v17, %v13311_v59  ;;  %v10883_v24 = vpack.i.bf16 %v13299_v58, %v13307_v7  ;;  %3141 = vmatpush.bf16.msra.mxu2 %v10529_v46 }
 0x49e   : > { %10889 = vrot.lane.b32.xlu0 %v10888_v10, %s17012_s26  ;;  %10884 = vrot.lane.b32.xlu2 %v10883_v24, %s17012_s26 }
 0x49f   : > { %3168 = vmatpush.bf16.msra.mxu3 %v10539_v4 }
 0x4a0   : > { %3142 = vmatpush.bf16.msra.mxu2 %v10528_v61 }
 0x4a3   : > { %3169 = vmatpush.bf16.msra.mxu3 %v10538_v47 }
 0x4a4   : > { %3143 = vmatpush.bf16.msra.mxu2 %v10527_v43 }
 0x4a7   : > { %3170 = vmatpush.bf16.msra.mxu3 %v10537_v3 }
 0x4a8   : > { %3144 = vmatpush.bf16.msra.mxu2 %v10526_v30 }
 0x4ab   : > { %3171 = vmatpush.bf16.msra.mxu3 %v10536_v60 }
 0x4ac   : > { %3145 = vmatpush.bf16.msra.mxu2 %v10525_v2 }
 0x4af   : > { %3172 = vmatpush.bf16.msra.mxu3 %v10535_v53 }
 0x4b3   : > { %3173 = vmatpush.bf16.msra.mxu3 %v10534_v33 }
 0x4b7   : > { %3174 = vmatpush.bf16.msra.mxu3 %v10533_v1 }
 0x4d8   : > { %v10855_v5 = vpop.permute.xlu2 %10854 }
 0x4d9   : > { %v10857_v34 = vunpack.i.h.bf16 %v10855_v5  ;;  %v10856_v27 = vunpack.i.l.bf16 %v10855_v5 }
 0x4e0   : > { %v10870_v18 = vpop.permute.xlu2 %10869 }
 0x4e1   : > { %v10872_v9 = vunpack.i.h.bf16 %v10870_v18  ;;  %v10871_v51 = vunpack.i.l.bf16 %v10870_v18 }
 0x4f0   : > { %v10860_v55 = vpop.permute.xlu0 %10859 }
 0x4f1   : > { %v10862_v32 = vunpack.i.h.bf16 %v10860_v55  ;;  %v10861_v13 = vunpack.i.l.bf16 %v10860_v55 }
 0x4f3   : > { %v2970_v39 = vsel %vm1073_vm10, %v10856_v27, %v10861_v13  ;;  %v2971_v54 = vsel %vm1073_vm10, %v10857_v34, %v10862_v32  ;;  %v2978_v52 = vsel %vm1073_vm10, %v10861_v13, %v10856_v27  ;;  %v2979_v0 = vsel %vm1073_vm10, %v10862_v32, %v10857_v34 }
 0x4f4   : > { %v2986_v25 = vmax.f32 %v13223_v45, %v2970_v39  ;;  %v2987_v56 = vmax.f32 %v13227_v63, %v2978_v52  ;;  %v2988_v40 = vmax.f32 %v13215_v31, %v2971_v54  ;;  %v2989_v26 = vmax.f32 %v13219_v12, %v2979_v0 }
 0x4f6   : > { %v3002_v15 = vpack.c.bf16 %v2988_v40, %v2986_v25  ;;  %v3003_v28 = vpack.c.bf16 %v2989_v26, %v2987_v56 }
 0x4f7   : > { %v10865_v38 = vpop.permute.xlu1 %10864 }
 0x4f8   : > { %v10867_v16 = vunpack.i.h.bf16 %v10865_v38  ;;  %v10866_v50 = vunpack.i.l.bf16 %v10865_v38  ;;  %3146 = vmatmul.bf16.vlgmr.msra.gmra.mxu2 %v3002_v15  ;;  %3175 = vmatmul.bf16.vlgmr.msra.gmra.mxu3 %v3003_v28  ;;  %v10885_v60 = vpop.permute.xlu2 %10884 }
 0x4f9   : > { %v10887_v53 = vunpack.i.h.bf16 %v10885_v60  ;;  %v10886_v30 = vunpack.i.l.bf16 %v10885_v60 }
 0x4fa   : > { %v2913_v8 = vsel %vm816_vm1, %v10867_v16, %v10872_v9  ;;  %v2921_v45 = vsel %vm816_vm1, %v10872_v9, %v10867_v16  ;;  %v2912_v31 = vsel %vm816_vm1, %v10866_v50, %v10871_v51  ;;  %v2920_v12 = vsel %vm816_vm1, %v10871_v51, %v10866_v50 }
 0x4fb   : > { %v2936_v63 = vmax.f32 %v2872_v23, %v2913_v8  ;;  %v2937_v37 = vmax.f32 %v2873_v6, %v2921_v45  ;;  %v2934_v41 = vmax.f32 %v2870_v20, %v2912_v31  ;;  %v2935_v10 = vmax.f32 %v2871_v21, %v2920_v12 }
 0x4fd   : > { %v10898_v24 = vpack.i.bf16 %v2937_v37, %v2935_v10  ;;  %v10893_v62 = vpack.i.bf16 %v2936_v63, %v2934_v41 }
 0x4ff   : > { %10899 = vrot.lane.b32.xlu2 %v10898_v24, %s17012_s26  ;;  %10894 = vrot.lane.b32.xlu1 %v10893_v62, %s17012_s26  ;;  %s16953_s26 = smov 64  }
 0x500   : > { %v10875_v36 = vpop.permute.xlu0 %10874  ;;  %v10880_v14 = vpop.permute.xlu1 %10879 }
 0x501   : > { %v10877_v4 = vunpack.i.h.bf16 %v10875_v36  ;;  %v10876_v49 = vunpack.i.l.bf16 %v10875_v36  ;;  %v10882_v23 = vunpack.i.h.bf16 %v10880_v14  ;;  %v10881_v57 = vunpack.i.l.bf16 %v10880_v14 }
 0x503   : > { %v2972_v44 = vsel %vm1073_vm10, %v10876_v49, %v10881_v57  ;;  %v2973_v42 = vsel %vm1073_vm10, %v10877_v4, %v10882_v23  ;;  %v2980_v11 = vsel %vm1073_vm10, %v10881_v57, %v10876_v49  ;;  %v2981_v21 = vsel %vm1073_vm10, %v10882_v23, %v10877_v4 }
 0x504   : > { %v2990_v20 = vmax.f32 %v13277_v48, %v2972_v44  ;;  %v2992_v6 = vmax.f32 %v13269_v29, %v2973_v42  ;;  %v2991_v47 = vmax.f32 %v13281_v35, %v2980_v11  ;;  %v2993_v46 = vmax.f32 %v13273_v19, %v2981_v21 }
 0x506   : > { %v3004_v3 = vpack.c.bf16 %v2992_v6, %v2990_v20  ;;  %v3005_v61 = vpack.c.bf16 %v2993_v46, %v2991_v47  ;;  %v13419_v20 = vld [vmem:[%s17094_s16] sm:$0xff] }
 0x507   : > { %v3429_v6 = vperm.slane %v13419_v20, 4 }
 0x508   : > { %3151 = vmatmul.bf16.gmra.mxu2 %v3004_v3  ;;  %3180 = vmatmul.bf16.gmra.mxu3 %v3005_v61 }
 0x510   : > { %v10890_v43 = vpop.permute.xlu0 %10889 }
 0x511   : > { %v10892_v33 = vunpack.i.h.bf16 %v10890_v43  ;;  %v10891_v2 = vunpack.i.l.bf16 %v10890_v43 }
 0x513   : > { %v2974_v1 = vsel %vm1073_vm10, %v10886_v30, %v10891_v2  ;;  %v2975_v29 = vsel %vm1073_vm10, %v10887_v53, %v10892_v33  ;;  %v2982_v48 = vsel %vm1073_vm10, %v10891_v2, %v10886_v30  ;;  %v2983_v19 = vsel %vm1073_vm10, %v10892_v33, %v10887_v53 }
 0x514   : > { %v2994_v35 = vmax.f32 %v13307_v7, %v2974_v1  ;;  %v2996_v5 = vmax.f32 %v13299_v58, %v2975_v29  ;;  %v2995_v55 = vmax.f32 %v13311_v59, %v2982_v48  ;;  %v2997_v34 = vmax.f32 %v13303_v17, %v2983_v19 }
 0x516   : > { %v3006_v27 = vpack.c.bf16 %v2996_v5, %v2994_v35  ;;  %v3007_v32 = vpack.c.bf16 %v2997_v34, %v2995_v55 }
 0x518   : > { %3156 = vmatmul.bf16.gmra.mxu2 %v3006_v27  ;;  %3185 = vmatmul.bf16.gmra.mxu3 %v3007_v32 }
 0x559   : > { %v10900_v13 = vpop.permute.xlu2 %10899 }
 0x55a   : > { %v10902_v54 = vunpack.i.h.bf16 %v10900_v13  ;;  %v10901_v52 = vunpack.i.l.bf16 %v10900_v13 }
 0x571   : > { %v10895_v39 = vpop.permute.xlu1 %10894 }
 0x572   : > { %v10897_v0 = vunpack.i.h.bf16 %v10895_v39  ;;  %v10896_v25 = vunpack.i.l.bf16 %v10895_v39 }
 0x574   : > { %v2976_v56 = vsel %vm1073_vm10, %v10896_v25, %v10901_v52  ;;  %v2977_v58 = vsel %vm1073_vm10, %v10897_v0, %v10902_v54  ;;  %v2984_v7 = vsel %vm1073_vm10, %v10901_v52, %v10896_v25  ;;  %v2985_v17 = vsel %vm1073_vm10, %v10902_v54, %v10897_v0 }
 0x575   : > { %v2998_v59 = vmax.f32 %v2934_v41, %v2976_v56  ;;  %v3000_v40 = vmax.f32 %v2936_v63, %v2977_v58  ;;  %v2999_v26 = vmax.f32 %v2935_v10, %v2984_v7  ;;  %v3001_v18 = vmax.f32 %v2937_v37, %v2985_v17 }
 0x576   : > { %v3400_v7 = vperm.slane %v13419_v20, 3 }
 0x577   : > { %v3008_v15 = vpack.c.bf16 %v3000_v40, %v2998_v59  ;;  %v3009_v28 = vpack.c.bf16 %v3001_v18, %v2999_v26 }
 0x579   : > { %3161 = vmatmul.bf16.gmra.mxu2 %v3008_v15  ;;  %3190 = vmatmul.bf16.gmra.mxu3 %v3009_v28 }
 0x57b   : > { %v3147_v38 = vpop.f32.mrf.mxu2  ;;  %v3176_v9 = vpop.f32.mrf.mxu3 }
 0x57c   : > { %v13381_v51 = vadd.f32 %v3176_v9, %v3147_v38 }
 0x57e   : > { %v3421_v40 = vpack.c.bf16 %v13381_v51, %v13381_v51 }
 0x580   : > { %v3478_v18 = vunpack.c.l.b16 %v3421_v40 }
 0x583   : > { %v3149_v16 = vpop.f32.mrf.mxu2  ;;  %v3178_v50 = vpop.f32.mrf.mxu3 }
 0x584   : > { %v13412_v21 = vadd.f32 %v3178_v50, %v3149_v16 }
 0x586   : > { %v3422_v17 = vpack.c.bf16 %v13412_v21, %v13412_v21 }
 0x588   : > { %v3479_v26 = vunpack.c.l.b16 %v3422_v17 }
 0x58a   : > { %v3486_v15 = vpack.c.b16 %v3479_v26, %v3478_v18 }
 0x58b   : > { %v3152_v8 = vpop.f32.mrf.mxu2  ;;  %v3181_v45 = vpop.f32.mrf.mxu3 }
 0x58c   : > { %v13383_v31 = vadd.f32 %v3181_v45, %v3152_v8 }
 0x58e   : > { %v3423_v55 = vpack.c.bf16 %v13383_v31, %v13383_v31 }
 0x590   : > { %v3480_v32 = vunpack.c.l.b16 %v3423_v55 }
 0x593   : > { %v3154_v22 = vpop.f32.mrf.mxu2  ;;  %v3183_v12 = vpop.f32.mrf.mxu3 }
 0x594   : > { %v13389_v37 = vadd.f32 %v3183_v12, %v3154_v22 }
 0x596   : > { %v3424_v48 = vpack.c.bf16 %v13389_v37, %v13389_v37 }
 0x598   : > { %v3481_v34 = vunpack.c.l.b16 %v3424_v48 }
 0x59a   : > { %v3487_v0 = vpack.c.b16 %v3481_v34, %v3480_v32 }
 0x59b   : > { %v3157_v41 = vpop.f32.mrf.mxu2  ;;  %v3186_v63 = vpop.f32.mrf.mxu3 }
 0x59c   : > { %v13385_v10 = vadd.f32 %v3186_v63, %v3157_v41 }
 0x59e   : > { %3209 = vrot.lane.b32.xlu2 %v13385_v10, %s16953_s26  ;;  %v3425_v25 = vpack.c.bf16 %v13385_v10, %v13385_v10 }
 0x5a0   : > { %v3482_v58 = vunpack.c.l.b16 %v3425_v25 }
 0x5a3   : > { %v3159_v24 = vpop.f32.mrf.mxu2  ;;  %v3188_v62 = vpop.f32.mrf.mxu3 }
 0x5a4   : > { %v13400_v42 = vadd.f32 %v3188_v62, %v3159_v24 }
 0x5a6   : > { %3206 = vrot.lane.b32.xlu2 %v13389_v37, %s16953_s26  ;;  %v3426_v13 = vpack.c.bf16 %v13400_v42, %v13400_v42 }
 0x5a8   : > { %v3483_v56 = vunpack.c.l.b16 %v3426_v13 }
 0x5aa   : > { %v3488_v59 = vpack.c.b16 %v3483_v56, %v3482_v58 }
 0x5f8   : > { %v3210_v36 = vpop.permute.xlu2 %3209 }
 0x5f9   : > { %v3211_v14 = vsel %vm3196_vm14, %v3210_v36, %v13385_v10 }
 0x5fa   : > { %3229 = vrot.lane.b32.xlu2 %v3211_v14, %s16953_s26 }
 0x5fc   : > { %v3162_v4 = vpop.f32.mrf.mxu2  ;;  %v3191_v49 = vpop.f32.mrf.mxu3 }
 0x5fd   : > { %v13396_v23 = vadd.f32 %v3191_v49, %v3162_v4 }
 0x5ff   : > { %3215 = vrot.lane.b32.xlu0 %v13396_v23, %s16953_s26  ;;  %v3427_v30 = vpack.c.bf16 %v13396_v23, %v13396_v23 }
 0x600   : > { %v3207_v3 = vpop.permute.xlu2 %3206 }
 0x601   : > { %v3208_v60 = vsel %vm3196_vm14, %v3207_v3, %v13389_v37  ;;  %v3484_v1 = vunpack.c.l.b16 %v3427_v30 }
 0x604   : > { %v3164_v57 = vpop.f32.mrf.mxu2  ;;  %v3193_v44 = vpop.f32.mrf.mxu3 }
 0x605   : > { %v13402_v11 = vadd.f32 %v3193_v44, %v3164_v57 }
 0x607   : > { %3212 = vrot.lane.b32.xlu0 %v13400_v42, %s16953_s26  ;;  %3218 = vrot.lane.b32.xlu1 %v13402_v11, %s16953_s26  ;;  %v3428_v43 = vpack.c.bf16 %v13402_v11, %v13402_v11 }
 0x609   : > { %v3485_v2 = vunpack.c.l.b16 %v3428_v43 }
 0x60b   : > { %v3489_v5 = vpack.c.b16 %v3485_v2, %v3484_v1 }
 0x60f   : > { %3197 = vrot.lane.b32.xlu0 %v13381_v51, %s16953_s26  ;;  %3203 = vrot.lane.b32.xlu1 %v13383_v31, %s16953_s26 }
 0x617   : > { %3200 = vrot.lane.b32.xlu1 %v13412_v21, %s16953_s26 }
 0x61f   : > { %3431 = vrot.lane.b32.xlu1 %v3429_v6, %s11265_s1  ;;  %s16951_s1 = smov 63  }
 0x654   : > { %v3230_v28 = vpop.permute.xlu2 %3229 }
 0x655   : > { %v13486_v62 = vsel %vm3196_vm14, %v3230_v28, %v13385_v10 }
 0x671   : > { %v3216_v47 = vpop.permute.xlu0 %3215 }
 0x672   : > { %v3217_v46 = vsel %vm3196_vm14, %v3216_v47, %v13396_v23 }
 0x673   : > { %3233 = vrot.lane.b32.xlu2 %v3217_v46, %s16953_s26 }
 0x679   : > { %v3219_v61 = vpop.permute.xlu1 %3218  ;;  %v3213_v33 = vpop.permute.xlu0 %3212 }
 0x67a   : > { %v3220_v53 = vsel %vm3196_vm14, %v3219_v61, %v13402_v11  ;;  %v3214_v19 = vsel %vm3196_vm14, %v3213_v33, %v13400_v42 }
 0x67b   : > { %3227 = vrot.lane.b32.xlu2 %v3208_v60, %s16953_s26  ;;  %3235 = vrot.lane.b32.xlu0 %v3220_v53, %s16953_s26 }
 0x681   : > { %v3204_v29 = vpop.permute.xlu1 %3203  ;;  %v3198_v27 = vpop.permute.xlu0 %3197 }
 0x682   : > { %v3205_v35 = vsel %vm3196_vm14, %v3204_v29, %v13383_v31  ;;  %v3199_v54 = vsel %vm3196_vm14, %v3198_v27, %v13381_v51 }
 0x683   : > { %3231 = vrot.lane.b32.xlu0 %v3214_v19, %s16953_s26  ;;  %3225 = vrot.lane.b32.xlu1 %v3205_v35, %s16953_s26 }
 0x684   : > { %3496 = vrot.lane.b32.xlu2 %v3489_v5, %s16951_s1 }
 0x689   : > { %v3201_v39 = vpop.permute.xlu1 %3200 }
 0x68a   : > { %v3202_v52 = vsel %vm3196_vm14, %v3201_v39, %v13412_v21 }
 0x68b   : > { %3221 = vrot.lane.b32.xlu0 %v3199_v54, %s16953_s26  ;;  %3223 = vrot.lane.b32.xlu1 %v3202_v52, %s16953_s26 }
 0x68c   : > { %3492 = vrot.lane.b32.xlu2 %v3487_v0, %s16951_s1 }
 0x691   : > { %v13470_v16 = vpop.permute.xlu1 %3431 }
 0x692   : > { %17095 = vst [vmem:[#allocation25_spill] sm:$0xff] %v13470_v16  ;;  %v3438_v49 = vmul.f32 %v13470_v16, %v13486_v62 }
 0x693   : > { %3494 = vrot.lane.b32.xlu0 %v3488_v59, %s16951_s1  ;;  %3402 = vrot.lane.b32.xlu1 %v3400_v7, %s16951_s1 }
 0x694   : > { %v3446_v46 = vpack.c.bf16 %v3438_v49, %v3438_v49 }
 0x696   : > { %v3510_v43 = vunpack.c.l.b16 %v3446_v46 }
 0x69b   : > { %3490 = vrot.lane.b32.xlu0 %v3486_v15, %s16951_s1 }
 0x6cd   : > { %v3234_v38 = vpop.permute.xlu2 %3233 }
 0x6ce   : > { %v13468_v9 = vsel %vm3196_vm14, %v3234_v38, %v13396_v23 }
 0x6cf   : > { %v3440_v50 = vmul.f32 %v13470_v16, %v13468_v9 }
 0x6d1   : > { %v3448_v41 = vpack.c.bf16 %v3440_v50, %v3440_v50 }
 0x6d3   : > { %v3512_v36 = vunpack.c.l.b16 %v3448_v41 }
 0x6d5   : > { %v3228_v8 = vpop.permute.xlu2 %3227 }
 0x6d6   : > { %v13482_v63 = vsel %vm3196_vm14, %v3228_v8, %v13389_v37 }
 0x6d7   : > { %v3437_v4 = vmul.f32 %v13470_v16, %v13482_v63 }
 0x6d9   : > { %v3445_v6 = vpack.c.bf16 %v3437_v4, %v3437_v4 }
 0x6ed   : > { %v3236_v45 = vpop.permute.xlu0 %3235 }
 0x6ee   : > { %v13476_v22 = vsel %vm3196_vm14, %v3236_v45, %v13402_v11 }
 0x6ef   : > { %v3441_v12 = vmul.f32 %v13470_v16, %v13476_v22 }
 0x6f1   : > { %v3449_v24 = vpack.c.bf16 %v3441_v12, %v3441_v12 }
 0x6f3   : > { %v3513_v14 = vunpack.c.l.b16 %v3449_v24 }
 0x6f5   : > { %v3232_v23 = vpop.permute.xlu0 %3231  ;;  %v3226_v57 = vpop.permute.xlu1 %3225  ;;  %v3517_v44 = vpack.c.b16 %v3513_v14, %v3512_v36 }
 0x6f6   : > { %v13494_v37 = vsel %vm3196_vm14, %v3232_v23, %v13400_v42  ;;  %v13498_v11 = vsel %vm3196_vm14, %v3226_v57, %v13383_v31  ;;  %v3509_v42 = vunpack.c.l.b16 %v3445_v6  ;;  %v4024_v23 = vperm.slane %v13419_v20, 6 }
 0x6f7   : > { %3524 = vrot.lane.b32.xlu1 %v3517_v44, %s16901_s28  ;;  %v3436_v10 = vmul.f32 %v13470_v16, %v13498_v11  ;;  %v3439_v47 = vmul.f32 %v13470_v16, %v13494_v37 }
 0x6f9   : > { %v3444_v3 = vpack.c.bf16 %v3436_v10, %v3436_v10  ;;  %v3447_v61 = vpack.c.bf16 %v3439_v47, %v3439_v47 }
 0x6fb   : > { %v3508_v60 = vunpack.c.l.b16 %v3444_v3  ;;  %v3511_v53 = vunpack.c.l.b16 %v3447_v61  ;;  %v3266_v61 = vperm.slane %v13419_v20, 1 }
 0x6fd   : > { %v3222_v30 = vpop.permute.xlu0 %3221  ;;  %v3224_v31 = vpop.permute.xlu1 %3223  ;;  %v3515_v33 = vpack.c.b16 %v3509_v42, %v3508_v60  ;;  %v3516_v2 = vpack.c.b16 %v3511_v53, %v3510_v43  ;;  %v4045_v43 = vperm.slane %v13419_v20, 7  ;;  %v3287_v53 = vperm.slane %v13419_v20, 2 }
 0x6fe   : > { %v13507_v1 = vsel %vm3196_vm14, %v3222_v30, %v13381_v51  ;;  %v13511_v29 = vsel %vm3196_vm14, %v3224_v31, %v13412_v21  ;;  %v3497_v51 = vpop.permute.xlu2 %3496 }
 0x6ff   : > { %3520 = vrot.lane.b32.xlu0 %v3515_v33, %s16901_s28  ;;  %3522 = vrot.lane.b32.xlu2 %v3516_v2, %s16901_s28  ;;  %v3434_v48 = vmul.f32 %v13470_v16, %v13507_v1  ;;  %v3435_v19 = vmul.f32 %v13470_v16, %v13511_v29  ;;  %v3245_v33 = vperm.slane %v13419_v20, 0 }
 0x701   : > { %v3442_v35 = vpack.c.bf16 %v3434_v48, %v3434_v48  ;;  %v3443_v5 = vpack.c.bf16 %v3435_v19, %v3435_v19 }
 0x703   : > { %v3506_v55 = vunpack.c.l.b16 %v3442_v35  ;;  %v3507_v34 = vunpack.c.l.b16 %v3443_v5 }
 0x705   : > { %v3495_v27 = vpop.permute.xlu0 %3494  ;;  %v13519_v32 = vpop.permute.xlu1 %3402  ;;  %v3514_v21 = vpack.c.b16 %v3507_v34, %v3506_v55 }
 0x706   : > { %17096 = vst [vmem:[#allocation24_spill] sm:$0xff] %v13519_v32  ;;  %v3411_v13 = vmul.f32 %v13519_v32, %v13468_v9  ;;  %v3412_v39 = vmul.f32 %v13519_v32, %v13476_v22  ;;  %v3409_v56 = vmul.f32 %v13519_v32, %v13486_v62  ;;  %v3410_v58 = vmul.f32 %v13519_v32, %v13494_v37  ;;  %v3493_v59 = vpop.permute.xlu2 %3492 }
 0x707   : > { %3627 = vrot.lane.b32.xlu0 %v3495_v27, %s16905_s4  ;;  %3518 = vrot.lane.b32.xlu1 %v3514_v21, %s16901_s28  ;;  %v3405_v38 = vmul.f32 %v13519_v32, %v13507_v1  ;;  %v3406_v50 = vmul.f32 %v13519_v32, %v13511_v29  ;;  %v3407_v4 = vmul.f32 %v13519_v32, %v13498_v11 }
 0x708   : > { %3629 = vrot.lane.b32.xlu2 %v3497_v51, %s16905_s4  ;;  %v3419_v54 = vpack.c.bf16 %v3411_v13, %v3411_v13  ;;  %v3420_v52 = vpack.c.bf16 %v3412_v39, %v3412_v39  ;;  %v3417_v40 = vpack.c.bf16 %v3409_v56, %v3409_v56  ;;  %v3418_v26 = vpack.c.bf16 %v3410_v58, %v3410_v58 }
 0x709   : > { %v3413_v8 = vpack.c.bf16 %v3405_v38, %v3405_v38  ;;  %v3414_v45 = vpack.c.bf16 %v3406_v50, %v3406_v50  ;;  %v3408_v49 = vmul.f32 %v13519_v32, %v13482_v63  ;;  %v3415_v57 = vpack.c.bf16 %v3407_v4, %v3407_v4 }
 0x70a   : > { %v3464_v0 = vunpack.c.l.b16 %v3419_v54  ;;  %v3465_v25 = vunpack.c.l.b16 %v3420_v52  ;;  %v3462_v18 = vunpack.c.l.b16 %v3417_v40  ;;  %v3463_v15 = vunpack.c.l.b16 %v3418_v26 }
 0x70b   : > { %v3458_v41 = vunpack.c.l.b16 %v3413_v8  ;;  %v3459_v24 = vunpack.c.l.b16 %v3414_v45  ;;  %v3416_v44 = vpack.c.bf16 %v3408_v49, %v3408_v49  ;;  %v3460_v6 = vunpack.c.l.b16 %v3415_v57 }
 0x70c   : > { %v3469_v7 = vpack.c.b16 %v3465_v25, %v3464_v0  ;;  %v3468_v28 = vpack.c.b16 %v3463_v15, %v3462_v18 }
 0x70d   : > { %v3491_v17 = vpop.permute.xlu0 %3490  ;;  %v3466_v36 = vpack.c.b16 %v3459_v24, %v3458_v41  ;;  %v3461_v47 = vunpack.c.l.b16 %v3416_v44 }
 0x70f   : > { %3621 = vrot.lane.b32.xlu0 %v3469_v7, %s16905_s4  ;;  %3625 = vrot.lane.b32.xlu1 %v3493_v59, %s16905_s4  ;;  %v3467_v46 = vpack.c.b16 %v3461_v47, %v3460_v6 }
 0x710   : > { %3623 = vrot.lane.b32.xlu2 %v3491_v17, %s16905_s4 }
 0x718   : > { %3619 = vrot.lane.b32.xlu2 %v3468_v28, %s16905_s4 }
 0x759   : > { %v3523_v12 = vpop.permute.xlu2 %3522 }
 0x75a   : > { %3635 = vrot.lane.b32.xlu0 %v3523_v12, %s16905_s4 }
 0x762   : > { %v13541_v14 = vpop.permute.xlu2 %3629  ;;  %3615 = vrot.lane.b32.xlu0 %v3466_v36, %s16905_s4 }
 0x763   : > { %17097 = vst [vmem:[#allocation20_spill] sm:$0xff] %v13541_v14  ;;  %3675 = vmatpush.bf16.msrb.mxu0 %v13541_v14 }
 0x769   : > { %v3525_v10 = vpop.permute.xlu1 %3524 }
 0x76a   : > { %3637 = vrot.lane.b32.xlu1 %v3525_v10, %s16905_s4  ;;  %4026 = vrot.lane.b32.xlu0 %v4024_v23, %s11278_s23  ;;  %v13563_v31 = vpop.permute.xlu2 %3623  ;;  %s16909_s23 = smov 121  }
 0x76b   : > { %17100 = vst [vmem:[#allocation21_spill] sm:$0xff] %v13563_v31 }
 0x771   : > { %v3521_v3 = vpop.permute.xlu0 %3520 }
 0x772   : > { %3633 = vrot.lane.b32.xlu2 %v3521_v3, %s16905_s4  ;;  %3617 = vrot.lane.b32.xlu1 %v3467_v46, %s16905_s4  ;;  %v13570_v48 = vpop.permute.xlu2 %3619 }
 0x773   : > { %17102 = vst [vmem:[#allocation46_spill] sm:$0xff] %v13570_v48 }
 0x779   : > { %v13554_v60 = vpop.permute.xlu0 %3627  ;;  %v3519_v42 = vpop.permute.xlu1 %3518 }
 0x77a   : > { %17098 = vst [vmem:[#allocation29_spill] sm:$0xff] %v13554_v60  ;;  %3268 = vrot.lane.b32.xlu2 %v3266_v61, %s11279_s24  ;;  %3631 = vrot.lane.b32.xlu1 %v3519_v42, %s16905_s4  ;;  %s17146_s24 = smov 62  }
 0x77b   : > { %3676 = vmatpush.bf16.msrb.mxu0 %v13554_v60 }
 0x781   : > { %v13560_v30 = vpop.permute.xlu1 %3625  ;;  %v13567_v2 = vpop.permute.xlu0 %3621 }
 0x782   : > { %17099 = vst [vmem:[#allocation27_spill] sm:$0xff] %v13560_v30  ;;  %4047 = vrot.lane.b32.xlu2 %v4045_v43, %s11280_s25  ;;  %3289 = vrot.lane.b32.xlu1 %v3287_v53, %s11281_s27  ;;  %s17114_s25 = sld [smem:[#allocation61_spill]]  ;;  %s17147_s27 = smov 73  }
 0x783   : > { %3677 = vmatpush.bf16.msrb.mxu0 %v13560_v30  ;;  %17101 = vst [vmem:[#allocation23_spill] sm:$0xff] %v13567_v2 }
 0x787   : > { %3678 = vmatpush.bf16.msrb.mxu0 %v13563_v31 }
 0x78a   : > { %3247 = vrot.lane.b32.xlu2 %v3245_v33, %s11282_s0 }
 0x78b   : > { %3679 = vmatpush.bf16.msrb.mxu0 %v13567_v2 }
 0x78f   : > { %3680 = vmatpush.bf16.msrb.mxu0 %v13570_v48 }
 0x7cc   : > { %v13573_v19 = vpop.permute.xlu0 %3635  ;;  %v13575_v35 = vpop.permute.xlu2 %3633 }
 0x7cd   : > { %17103 = vst [vmem:[#allocation51_spill] sm:$0xff] %v13573_v19 }
 0x7ce   : > { %17104 = vst [vmem:[#allocation26_spill] sm:$0xff] %v13575_v35 }
 0x7d4   : > { %v13577_v5 = vpop.permute.xlu0 %3615  ;;  %v13579_v55 = vpop.permute.xlu2 %3268 }
 0x7d5   : > { %17105 = vst [vmem:[#allocation22_spill] sm:$0xff] %v13577_v5  ;;  %v3277_v34 = vmul.f32 %v13579_v55, %v13468_v9  ;;  %v3278_v51 = vmul.f32 %v13579_v55, %v13476_v22  ;;  %v3275_v27 = vmul.f32 %v13579_v55, %v13486_v62  ;;  %v3276_v21 = vmul.f32 %v13579_v55, %v13494_v37 }
 0x7d6   : > { %17106 = vst [vmem:[#allocation40_spill] sm:$0xff] %v13579_v55  ;;  %v3271_v13 = vmul.f32 %v13579_v55, %v13507_v1  ;;  %v3272_v39 = vmul.f32 %v13579_v55, %v13511_v29  ;;  %v3273_v54 = vmul.f32 %v13579_v55, %v13498_v11  ;;  %v3274_v17 = vmul.f32 %v13579_v55, %v13482_v63 }
 0x7d7   : > { %v3285_v52 = vpack.c.bf16 %v3277_v34, %v3277_v34  ;;  %v3286_v0 = vpack.c.bf16 %v3278_v51, %v3278_v51  ;;  %v3283_v25 = vpack.c.bf16 %v3275_v27, %v3275_v27  ;;  %v3284_v56 = vpack.c.bf16 %v3276_v21, %v3276_v21 }
 0x7d8   : > { %v3279_v58 = vpack.c.bf16 %v3271_v13, %v3271_v13  ;;  %v3280_v7 = vpack.c.bf16 %v3272_v39, %v3272_v39  ;;  %v3281_v8 = vpack.c.bf16 %v3273_v54, %v3273_v54  ;;  %v3282_v24 = vpack.c.bf16 %v3274_v17, %v3274_v17 }
 0x7d9   : > { %v3342_v59 = vunpack.c.l.b16 %v3285_v52  ;;  %v3343_v40 = vunpack.c.l.b16 %v3286_v0  ;;  %v3340_v26 = vunpack.c.l.b16 %v3283_v25  ;;  %v3341_v18 = vunpack.c.l.b16 %v3284_v56 }
 0x7da   : > { %v3336_v15 = vunpack.c.l.b16 %v3279_v58  ;;  %v3337_v28 = vunpack.c.l.b16 %v3280_v7  ;;  %v3338_v10 = vunpack.c.l.b16 %v3281_v8  ;;  %v3339_v47 = vunpack.c.l.b16 %v3282_v24 }
 0x7db   : > { %v3347_v38 = vpack.c.b16 %v3343_v40, %v3342_v59  ;;  %v3346_v50 = vpack.c.b16 %v3341_v18, %v3340_v26  ;;  %v4003_v56 = vperm.slane %v13419_v20, 5 }
 0x7dc   : > { %v13597_v45 = vpop.permute.xlu1 %3637  ;;  %v13599_v12 = vpop.permute.xlu0 %4026  ;;  %v3344_v41 = vpack.c.b16 %v3337_v28, %v3336_v15  ;;  %v3345_v27 = vpack.c.b16 %v3339_v47, %v3338_v10 }
 0x7dd   : > { %17107 = vst [vmem:[#allocation38_spill] sm:$0xff] %v13597_v45  ;;  %3728 = vmatpush.bf16.msrb.mxu1 %v13597_v45  ;;  %3354 = vrot.lane.b32.xlu0 %v3347_v38, %s16903_s2  ;;  %v4035_v36 = vmul.f32 %v13599_v12, %v13468_v9  ;;  %v4036_v4 = vmul.f32 %v13599_v12, %v13476_v22  ;;  %v13635_v18 = vpop.permute.xlu2 %4047 }
 0x7de   : > { %17108 = vst [vmem:[#allocation45_spill] sm:$0xff] %v13599_v12  ;;  %v4031_v49 = vmul.f32 %v13599_v12, %v13498_v11  ;;  %3352 = vrot.lane.b32.xlu1 %v3346_v50, %s16903_s2  ;;  %3348 = vrot.lane.b32.xlu2 %v3344_v41, %s16903_s2  ;;  %v4032_v23 = vmul.f32 %v13599_v12, %v13482_v63 }
 0x7df   : > { %v4043_v57 = vpack.c.bf16 %v4035_v36, %v4035_v36  ;;  %v4044_v44 = vpack.c.bf16 %v4036_v4, %v4036_v4  ;;  %v4033_v3 = vmul.f32 %v13599_v12, %v13486_v62  ;;  %v4034_v61 = vmul.f32 %v13599_v12, %v13494_v37  ;;  %17111 = vst [vmem:[#allocation28_spill] sm:$0xff] %v13635_v18 }
 0x7e0   : > { %v4039_v6 = vpack.c.bf16 %v4031_v49, %v4031_v49  ;;  %v4040_v46 = vpack.c.bf16 %v4032_v23, %v4032_v23  ;;  %v4029_v0 = vmul.f32 %v13599_v12, %v13507_v1  ;;  %v4030_v25 = vmul.f32 %v13599_v12, %v13511_v29 }
 0x7e1   : > { %3729 = vmatpush.bf16.msrb.mxu1 %v13573_v19  ;;  %v4100_v42 = vunpack.c.l.b16 %v4043_v57  ;;  %v4101_v43 = vunpack.c.l.b16 %v4044_v44  ;;  %v4041_v13 = vpack.c.bf16 %v4033_v3, %v4033_v3  ;;  %v4042_v39 = vpack.c.bf16 %v4034_v61, %v4034_v61 }
 0x7e2   : > { %v4096_v53 = vunpack.c.l.b16 %v4039_v6  ;;  %v4097_v33 = vunpack.c.l.b16 %v4040_v46  ;;  %v4037_v17 = vpack.c.bf16 %v4029_v0, %v4029_v0  ;;  %v4038_v59 = vpack.c.bf16 %v4030_v25, %v4030_v25 }
 0x7e3   : > { %v4105_v34 = vpack.c.b16 %v4101_v43, %v4100_v42  ;;  %v4098_v54 = vunpack.c.l.b16 %v4041_v13  ;;  %v4099_v52 = vunpack.c.l.b16 %v4042_v39  ;;  %v4056_v20 = vmul.f32 %v13635_v18, %v13468_v9 }
 0x7e4   : > { %v13618_v51 = vpop.permute.xlu1 %3617  ;;  %v4103_v21 = vpack.c.b16 %v4097_v33, %v4096_v53  ;;  %v4094_v40 = vunpack.c.l.b16 %v4037_v17  ;;  %v4095_v26 = vunpack.c.l.b16 %v4038_v59  ;;  %v4057_v38 = vmul.f32 %v13635_v18, %v13476_v22 }
 0x7e5   : > { %17109 = vst [vmem:[#allocation41_spill] sm:$0xff] %v13618_v51  ;;  %3681 = vmatpush.bf16.msrb.mxu0 %v13618_v51  ;;  %3730 = vmatpush.bf16.msrb.mxu1 %v13575_v35  ;;  %v4104_v7 = vpack.c.b16 %v4099_v52, %v4098_v54  ;;  %v4054_v49 = vmul.f32 %v13635_v18, %v13486_v62 }
 0x7e6   : > { %4112 = vrot.lane.b32.xlu1 %v4105_v34, %s16903_s2  ;;  %3350 = vrot.lane.b32.xlu0 %v3345_v27, %s16903_s2  ;;  %v4102_v28 = vpack.c.b16 %v4095_v26, %v4094_v40  ;;  %v4055_v23 = vmul.f32 %v13635_v18, %v13494_v37  ;;  %v4052_v3 = vmul.f32 %v13635_v18, %v13498_v11 }
 0x7e7   : > { %4108 = vrot.lane.b32.xlu2 %v4103_v21, %s16903_s2  ;;  %v4053_v61 = vmul.f32 %v13635_v18, %v13482_v63  ;;  %v4064_v21 = vpack.c.bf16 %v4056_v20, %v4056_v20  ;;  %v4065_v13 = vpack.c.bf16 %v4057_v38, %v4057_v38  ;;  %v4062_v52 = vpack.c.bf16 %v4054_v49, %v4054_v49  ;;  %v13675_v49 = vpop.permute.xlu2 %3247 }
 0x7e8   : > { %v4063_v25 = vpack.c.bf16 %v4055_v23, %v4055_v23  ;;  %v4050_v20 = vmul.f32 %v13635_v18, %v13507_v1  ;;  %17113 = vst [vmem:[#allocation33_spill] sm:$0xff] %v13675_v49 }
 0x7e9   : > { %3682 = vmatpush.bf16.msrb.mxu0 %v13577_v5  ;;  %v4128_v17 = vunpack.c.l.b16 %v4064_v21  ;;  %v4129_v59 = vunpack.c.l.b16 %v4065_v13  ;;  %v4126_v40 = vunpack.c.l.b16 %v4062_v52  ;;  %v3254_v13 = vmul.f32 %v13675_v49, %v13486_v62 }
 0x7ea   : > { %v4127_v38 = vunpack.c.l.b16 %v4063_v25 }
 0x7eb   : > { %v3262_v52 = vpack.c.bf16 %v3254_v13, %v3254_v13 }
 0x7ec   : > { %v13631_v58 = vpop.permute.xlu1 %3631  ;;  %v4132_v23 = vpack.c.b16 %v4127_v38, %v4126_v40 }
 0x7ed   : > { %17110 = vst [vmem:[#allocation31_spill] sm:$0xff] %v13631_v58  ;;  %3731 = vmatpush.bf16.msrb.mxu1 %v13631_v58  ;;  %v3320_v25 = vunpack.c.l.b16 %v3262_v52 }
 0x7ee   : > { %4005 = vrot.lane.b32.xlu1 %v4003_v56, %s11283_s30  ;;  %4110 = vrot.lane.b32.xlu0 %v4104_v7, %s16903_s2  ;;  %v4060_v56 = vpack.c.bf16 %v4052_v3, %v4052_v3  ;;  %v4061_v7 = vpack.c.bf16 %v4053_v61, %v4053_v61  ;;  %v3257_v3 = vmul.f32 %v13675_v49, %v13476_v22 }
 0x7f4   : > { %v13637_v15 = vpop.permute.xlu1 %3289 }
 0x7f5   : > { %17112 = vst [vmem:[#allocation34_spill] sm:$0xff] %v13637_v15  ;;  %v3294_v50 = vmul.f32 %v13637_v15, %v13498_v11  ;;  %v3295_v8 = vmul.f32 %v13637_v15, %v13482_v63  ;;  %v3298_v41 = vmul.f32 %v13637_v15, %v13468_v9  ;;  %v3299_v24 = vmul.f32 %v13637_v15, %v13476_v22 }
 0x7f6   : > { %4106 = vrot.lane.b32.xlu1 %v4102_v28, %s16903_s2  ;;  %v3296_v36 = vmul.f32 %v13637_v15, %v13486_v62  ;;  %v3297_v4 = vmul.f32 %v13637_v15, %v13494_v37  ;;  %v3292_v26 = vmul.f32 %v13637_v15, %v13507_v1  ;;  %v3293_v28 = vmul.f32 %v13637_v15, %v13511_v29 }
 0x7f7   : > { %v3302_v57 = vpack.c.bf16 %v3294_v50, %v3294_v50  ;;  %v3303_v44 = vpack.c.bf16 %v3295_v8, %v3295_v8  ;;  %v3306_v10 = vpack.c.bf16 %v3298_v41, %v3298_v41  ;;  %v3307_v6 = vpack.c.bf16 %v3299_v24, %v3299_v24 }
 0x7f8   : > { %v3304_v47 = vpack.c.bf16 %v3296_v36, %v3296_v36  ;;  %v3305_v46 = vpack.c.bf16 %v3297_v4, %v3297_v4  ;;  %v4124_v50 = vunpack.c.l.b16 %v4060_v56  ;;  %v4125_v8 = vunpack.c.l.b16 %v4061_v7 }
 0x7f9   : > { %v3366_v42 = vunpack.c.l.b16 %v3302_v57  ;;  %v3367_v43 = vunpack.c.l.b16 %v3303_v44  ;;  %v3370_v53 = vunpack.c.l.b16 %v3306_v10  ;;  %v3371_v33 = vunpack.c.l.b16 %v3307_v6 }
 0x7fa   : > { %v3368_v34 = vunpack.c.l.b16 %v3304_v47  ;;  %v3369_v27 = vunpack.c.l.b16 %v3305_v46  ;;  %v4051_v41 = vmul.f32 %v13635_v18, %v13511_v29  ;;  %v4133_v24 = vpack.c.b16 %v4129_v59, %v4128_v17 }
 0x7fb   : > { %v3373_v39 = vpack.c.b16 %v3367_v43, %v3366_v42  ;;  %v3375_v54 = vpack.c.b16 %v3371_v33, %v3370_v53  ;;  %v3300_v36 = vpack.c.bf16 %v3292_v26, %v3292_v26  ;;  %v3301_v4 = vpack.c.bf16 %v3293_v28, %v3293_v28 }
 0x7fc   : > { %v3374_v0 = vpack.c.b16 %v3369_v27, %v3368_v34  ;;  %v4131_v57 = vpack.c.b16 %v4125_v8, %v4124_v50  ;;  %v4058_v44 = vpack.c.bf16 %v4050_v20, %v4050_v20  ;;  %v4059_v10 = vpack.c.bf16 %v4051_v41, %v4051_v41  ;;  %v9465_v41 = vld [vmem:[%s17114_s25 + $0x80] sm:$0xf] }
 0x7fd   : > { %3382 = vrot.lane.b32.xlu0 %v3375_v54, %s16899_s5  ;;  %v3364_v6 = vunpack.c.l.b16 %v3300_v36  ;;  %v3365_v47 = vunpack.c.l.b16 %v3301_v4  ;;  %v3256_v46 = vmul.f32 %v13675_v49, %v13468_v9  ;;  %v3265_v33 = vpack.c.bf16 %v3257_v3, %v3257_v3  ;;  %v10557_v36 = vld [vmem:[%s17114_s25 + $0x84] sm:$0xf] }
 0x7fe   : > { %3378 = vrot.lane.b32.xlu1 %v3373_v39, %s16899_s5  ;;  %3380 = vrot.lane.b32.xlu2 %v3374_v0, %s16899_s5  ;;  %v4122_v61 = vunpack.c.l.b16 %v4058_v44  ;;  %v4123_v42 = vunpack.c.l.b16 %v4059_v10  ;;  %v3255_v39 = vmul.f32 %v13675_v49, %v13494_v37  ;;  %v3252_v7 = vmul.f32 %v13675_v49, %v13498_v11 }
 0x7ff   : > { %v3372_v43 = vpack.c.b16 %v3365_v47, %v3364_v6  ;;  %v3264_v53 = vpack.c.bf16 %v3256_v46, %v3256_v46  ;;  %v3323_v21 = vunpack.c.l.b16 %v3265_v33  ;;  %v3253_v17 = vmul.f32 %v13675_v49, %v13482_v63 }
 0x800   : > { %v4130_v34 = vpack.c.b16 %v4123_v42, %v4122_v61  ;;  %v3263_v0 = vpack.c.bf16 %v3255_v39, %v3255_v39  ;;  %v3260_v40 = vpack.c.bf16 %v3252_v7, %v3252_v7  ;;  %v9473_v61 = vld [vmem:[%s17114_s25 + $0x90] sm:$0xf]  ;;  %v10560_v42 = vld [vmem:[%s17114_s25 + $0x94] sm:$0xf0] }
 0x801   : > { %v3322_v27 = vunpack.c.l.b16 %v3264_v53  ;;  %v3261_v26 = vpack.c.bf16 %v3253_v17, %v3253_v17  ;;  %v9474_v13 = vor.u32 %v10560_v42, %v9473_v61 }
 0x802   : > { %v3321_v56 = vunpack.c.l.b16 %v3263_v0  ;;  %v3318_v28 = vunpack.c.l.b16 %v3260_v40 }
 0x803   : > { %v3327_v54 = vpack.c.b16 %v3323_v21, %v3322_v27  ;;  %v3319_v20 = vunpack.c.l.b16 %v3261_v26 }
 0x804   : > { %v3326_v59 = vpack.c.b16 %v3321_v56, %v3320_v25 }
 0x805   : > { %4140 = vrot.lane.b32.xlu0 %v4133_v24, %s16899_s5  ;;  %v3325_v38 = vpack.c.b16 %v3319_v20, %v3318_v28  ;;  %v10558_v24 = vld [vmem:[%s17114_s25 + $0x84] sm:$0xf0] }
 0x806   : > { %4138 = vrot.lane.b32.xlu2 %v4132_v23, %s16899_s5  ;;  %4136 = vrot.lane.b32.xlu1 %v4131_v57, %s16899_s5  ;;  %v9466_v4 = vor.u32 %v10558_v24, %v9465_v41  ;;  %v9467_v23 = vld [vmem:[%s17114_s25 + $0x88] sm:$0xf0]  ;;  %v10562_v41 = vld [vmem:[%s17114_s25 + $0xa4] sm:$0xf0] }
 0x807   : > { %v9470_v57 = vor.u32 %v10557_v36, %v9467_v23  ;;  %v10561_v36 = vld [vmem:[%s17114_s25 + $0xa4] sm:$0xf] }
 0x808   : > { %3683 = vmatmul.bf16.vlgmr.msrb.gmra.mxu0 %v9466_v4  ;;  %v9483_v4 = vld [vmem:[%s17114_s25 + $0xa8] sm:$0xf0] }
 0x809   : > { %9527 = vmatmul.msk.bf16.vlgmr.msrb.gmra.mxu1 %vm1976_vm13, %v9470_v57 }
 0x80d   : > { %3376 = vrot.lane.b32.xlu0 %v3372_v43, %s16899_s5  ;;  %v10559_v43 = vld [vmem:[%s17114_s25 + $0x94] sm:$0xf] }
 0x80e   : > { %4134 = vrot.lane.b32.xlu2 %v4130_v34, %s16899_s5  ;;  %v9475_v34 = vld [vmem:[%s17114_s25 + $0x98] sm:$0xf0]  ;;  %s17144_s5 = smov 127  }
 0x80f   : > { %v9478_v39 = vor.u32 %v10559_v43, %v9475_v34 }
 0x815   : > { %3851 = vrot.lane.b32.xlu0 %v3327_v54, %s16907_s17 }
 0x818   : > { %3688 = vmatmul.bf16.gmra.mxu0 %v9474_v13 }
 0x819   : > { %9528 = vmatmul.msk.bf16.gmra.mxu1 %vm1976_vm13, %v9478_v39  ;;  %v10563_v39 = vld [vmem:[%s17114_s25 + $0xb4] sm:$0xf] }
 0x81d   : > { %3849 = vrot.lane.b32.xlu0 %v3326_v59, %s16907_s17  ;;  %v3251_v59 = vmul.f32 %v13675_v49, %v13511_v29 }
 0x825   : > { %3847 = vrot.lane.b32.xlu0 %v3325_v38, %s16907_s17 }
 0x838   : > { %v3349_v44 = vpop.permute.xlu2 %3348 }
 0x841   : > { %v4109_v47 = vpop.permute.xlu2 %4108 }
 0x84f   : > { %v3355_v50 = vpop.permute.xlu0 %3354 }
 0x850   : > { %v3353_v8 = vpop.permute.xlu1 %3352  ;;  %3859 = vrot.lane.b32.xlu0 %v3355_v50, %s16907_s17  ;;  %v3259_v50 = vpack.c.bf16 %v3251_v59, %v3251_v59  ;;  %v9497_v59 = vld [vmem:[%s17114_s25 + $0xc0] sm:$0xf] }
 0x851   : > { %3857 = vrot.lane.b32.xlu1 %v3353_v8, %s16907_s17  ;;  %v9481_v8 = vld [vmem:[%s17114_s25 + $0xa0] sm:$0xf] }
 0x852   : > { %v9482_v24 = vor.u32 %v10562_v41, %v9481_v8  ;;  %v3317_v57 = vunpack.c.l.b16 %v3259_v50  ;;  %v4413_v50 = vld [vmem:[%s17116_s6 + $0x40] sm:$0xff]  ;;  %v4415_v41 = vld [vmem:[%s17116_s6 + $0x50] sm:$0xff] }
 0x853   : > { %v4417_v8 = vld [vmem:[%s17116_s6 + $0x60] sm:$0xff] }
 0x854   : > { %3693 = vmatmul.bf16.gmra.mxu0 %v9482_v24  ;;  %v4412_v24 = vld [vmem:[%s17116_s6 + $0x38] sm:$0xff] }
 0x858   : > { %v4113_v10 = vpop.permute.xlu1 %4112  ;;  %v3351_v6 = vpop.permute.xlu0 %3350 }
 0x859   : > { %3855 = vrot.lane.b32.xlu2 %v3351_v6, %s16907_s17  ;;  %4245 = vrot.lane.b32.xlu0 %v4113_v10, %s16909_s23  ;;  %v3381_v52 = vpop.permute.xlu2 %3380 }
 0x85a   : > { %3853 = vrot.lane.b32.xlu1 %v3349_v44, %s16907_s17  ;;  %v9486_v44 = vor.u32 %v10561_v36, %v9483_v4  ;;  %v4416_v36 = vld [vmem:[%s17116_s6 + $0x58] sm:$0xff]  ;;  %v4414_v4 = vld [vmem:[%s17116_s6 + $0x48] sm:$0xff] }
 0x85c   : > { %9529 = vmatmul.msk.bf16.gmra.mxu1 %vm1976_vm13, %v9486_v44  ;;  %v10567_v44 = vld [vmem:[%s17114_s25 + $0xd4] sm:$0xf] }
 0x860   : > { %v13715_v46 = vpop.permute.xlu1 %4005  ;;  %v4111_v3 = vpop.permute.xlu0 %4110 }
 0x861   : > { %17115 = vst [vmem:[#allocation35_spill] sm:$0xff] %v13715_v46  ;;  %4243 = vrot.lane.b32.xlu2 %v4111_v3, %s16909_s23  ;;  %v4012_v53 = vmul.f32 %v13715_v46, %v13486_v62  ;;  %v4013_v33 = vmul.f32 %v13715_v46, %v13494_v37  ;;  %v4014_v27 = vmul.f32 %v13715_v46, %v13468_v9  ;;  %v4139_v6 = vpop.permute.xlu2 %4138 }
 0x862   : > { %4241 = vrot.lane.b32.xlu1 %v4109_v47, %s16909_s23  ;;  %v4015_v21 = vmul.f32 %v13715_v46, %v13476_v22  ;;  %v3250_v22 = vmul.f32 %v13675_v49, %v13507_v1  ;;  %v4010_v3 = vmul.f32 %v13715_v46, %v13498_v11  ;;  %v4011_v61 = vmul.f32 %v13715_v46, %v13482_v63  ;;  %v9489_v63 = vld [vmem:[%s17114_s25 + $0xb0] sm:$0xf] }
 0x863   : > { %v4020_v54 = vpack.c.bf16 %v4012_v53, %v4012_v53  ;;  %v4021_v62 = vpack.c.bf16 %v4013_v33, %v4013_v33  ;;  %v4022_v37 = vpack.c.bf16 %v4014_v27, %v4014_v27  ;;  %v4008_v42 = vmul.f32 %v13715_v46, %v13507_v1 }
 0x864   : > { %v4023_v25 = vpack.c.bf16 %v4015_v21, %v4015_v21  ;;  %v3258_v38 = vpack.c.bf16 %v3250_v22, %v3250_v22  ;;  %v4009_v43 = vmul.f32 %v13715_v46, %v13511_v29  ;;  %v4018_v33 = vpack.c.bf16 %v4010_v3, %v4010_v3  ;;  %v10564_v29 = vld [vmem:[%s17114_s25 + $0xb4] sm:$0xf0] }
 0x865   : > { %v4078_v56 = vunpack.c.l.b16 %v4020_v54  ;;  %v4079_v9 = vunpack.c.l.b16 %v4021_v62  ;;  %v4080_v7 = vunpack.c.l.b16 %v4022_v37  ;;  %v4019_v34 = vpack.c.bf16 %v4011_v61, %v4011_v61  ;;  %v9491_v54 = vld [vmem:[%s17114_s25 + $0xb8] sm:$0xf0]  ;;  %v4407_v61 = vld [vmem:[%s17116_s6 + $0x10] sm:$0xff] }
 0x866   : > { %v4081_v17 = vunpack.c.l.b16 %v4023_v25  ;;  %v3316_v23 = vunpack.c.l.b16 %v3258_v38  ;;  %v4016_v21 = vpack.c.bf16 %v4008_v42, %v4008_v42  ;;  %v4017_v13 = vpack.c.bf16 %v4009_v43, %v4009_v43  ;;  %v4419_v25 = vld [vmem:[%s17116_s6 + $0x70] sm:$0xff]  ;;  %v4409_v43 = vld [vmem:[%s17116_s6 + $0x20] sm:$0xff] }
 0x867   : > { %v4084_v26 = vpack.c.b16 %v4079_v9, %v4078_v56  ;;  %v4076_v11 = vunpack.c.l.b16 %v4018_v33  ;;  %v4077_v1 = vunpack.c.l.b16 %v4019_v34  ;;  %v9494_v37 = vor.u32 %v10563_v39, %v9491_v54  ;;  %v4411_v42 = vld [vmem:[%s17116_s6 + $0x30] sm:$0xff]  ;;  %v4410_v33 = vld [vmem:[%s17116_s6 + $0x28] sm:$0xff]  ;;  %v4408_v34 = vld [vmem:[%s17116_s6 + $0x18] sm:$0xff] }
 0x868   : > { %v4107_v0 = vpop.permute.xlu1 %4106  ;;  %v4085_v20 = vpack.c.b16 %v4081_v17, %v4080_v7  ;;  %v3324_v47 = vpack.c.b16 %v3317_v57, %v3316_v23  ;;  %v4074_v62 = vunpack.c.l.b16 %v4016_v21  ;;  %v4418_v7 = vld [vmem:[%s17116_s6 + $0x68] sm:$0xff]  ;;  %v4420_v17 = vld [vmem:[%s17116_s6 + $0x78] sm:$0xff]  ;;  %v9505_v23 = vld [vmem:[%s17114_s25 + $0xd0] sm:$0xf] }
 0x869   : > { %3865 = vrot.lane.b32.xlu2 %v3381_v52, %s16907_s17  ;;  %v4075_v52 = vunpack.c.l.b16 %v4017_v13  ;;  %v4083_v56 = vpack.c.b16 %v4077_v1, %v4076_v11  ;;  %v4135_v22 = vpop.permute.xlu2 %4134  ;;  %v10568_v57 = vld [vmem:[%s17114_s25 + $0xd4] sm:$0xf0]  ;;  %v9513_v13 = vld [vmem:[%s17114_s25 + $0xe0] sm:$0xf]  ;;  %v10569_v11 = vld [vmem:[%s17114_s25 + $0xe4] sm:$0xf] }
 0x86a   : > { %4239 = vrot.lane.b32.xlu1 %v4107_v0, %s16909_s23  ;;  %v9490_v0 = vor.u32 %v10564_v29, %v9489_v63  ;;  %v10570_v63 = vld [vmem:[%s17114_s25 + $0xe4] sm:$0xf0]  ;;  %v4405_v1 = vld [vmem:[%s17116_s6] sm:$0xff]  ;;  %v9515_v39 = vld [vmem:[%s17114_s25 + $0xe8] sm:$0xf0] }
 0x86b   : > { %v4082_v9 = vpack.c.b16 %v4075_v52, %v4074_v62  ;;  %v9514_v29 = vor.u32 %v10570_v63, %v9513_v13  ;;  %v9518_v54 = vor.u32 %v10569_v11, %v9515_v39  ;;  %v10541_v11 = vld [vmem:[%s17114_s25 + $0x4] sm:$0xf] }
 0x86c   : > { %3698 = vmatmul.bf16.gmra.mxu0 %v9490_v0  ;;  %9530 = vmatmul.msk.bf16.gmra.mxu1 %vm1976_vm13, %v9494_v37 }
 0x86f   : > { %v3383_v40 = vpop.permute.xlu0 %3382 }
 0x870   : > { %v3379_v28 = vpop.permute.xlu1 %3378 }
 0x871   : > { %3863 = vrot.lane.b32.xlu0 %v3379_v28, %s16907_s17  ;;  %4235 = vrot.lane.b32.xlu2 %v4084_v26, %s16909_s23  ;;  %v10565_v26 = vld [vmem:[%s17114_s25 + $0xc4] sm:$0xf] }
 0x872   : > { %4237 = vrot.lane.b32.xlu1 %v4085_v20, %s16909_s23  ;;  %v9499_v20 = vld [vmem:[%s17114_s25 + $0xc8] sm:$0xf0] }
 0x873   : > { %v9502_v38 = vor.u32 %v10565_v26, %v9499_v20 }
 0x877   : > { %v4141_v10 = vpop.permute.xlu0 %4140 }
 0x878   : > { %v4137_v27 = vpop.permute.xlu1 %4136 }
 0x879   : > { %3867 = vrot.lane.b32.xlu2 %v3383_v40, %s16907_s17  ;;  %4251 = vrot.lane.b32.xlu0 %v4139_v6, %s16909_s23  ;;  %v10566_v40 = vld [vmem:[%s17114_s25 + $0xc4] sm:$0xf0]  ;;  %v9507_v6 = vld [vmem:[%s17114_s25 + $0xd8] sm:$0xf0] }
 0x87a   : > { %3845 = vrot.lane.b32.xlu1 %v3324_v47, %s16907_s17  ;;  %v9498_v28 = vor.u32 %v10566_v40, %v9497_v59  ;;  %v9510_v47 = vor.u32 %v10567_v44, %v9507_v6 }
 0x87c   : > { %3703 = vmatmul.bf16.gmra.mxu0 %v9498_v28  ;;  %9531 = vmatmul.msk.bf16.gmra.mxu1 %vm1976_vm13, %v9502_v38 }
 0x87f   : > { %v3377_v53 = vpop.permute.xlu0 %3376 }
 0x881   : > { %4253 = vrot.lane.b32.xlu2 %v4141_v10, %s16909_s23  ;;  %4249 = vrot.lane.b32.xlu0 %v4137_v27, %s16909_s23  ;;  %v9506_v10 = vor.u32 %v10568_v57, %v9505_v23 }
 0x882   : > { %3861 = vrot.lane.b32.xlu1 %v3377_v53, %s16907_s17  ;;  %v4406_v53 = vld [vmem:[%s17116_s6 + $0x8] sm:$0xff]  ;;  %s17149_s17 = smov 126   ;;  %s17161_s6 = smov 64  }
 0x887   : > { %v13844_v3 = vpop.permute.xlu0 %3851 }
 0x888   : > { %17117 = vst [vmem:[#allocation36_spill] sm:$0xff] %v13844_v3 }
 0x889   : > { %4233 = vrot.lane.b32.xlu2 %v4083_v56, %s16909_s23  ;;  %4493 = vperm.xlu0 %10822, %v4419_v25   ;;  %v9521_v56 = vld [vmem:[%s17114_s25 + $0xf0] sm:$0xf] }
 0x88a   : > { %4231 = vrot.lane.b32.xlu1 %v4082_v9, %s16909_s23  ;;  %v10572_v9 = vld [vmem:[%s17114_s25 + $0xf4] sm:$0xf0] }
 0x88c   : > { %3708 = vmatmul.bf16.gmra.mxu0 %v9506_v10  ;;  %9532 = vmatmul.msk.bf16.gmra.mxu1 %vm1976_vm13, %v9510_v47 }
 0x88f   : > { %v13865_v27 = vpop.permute.xlu0 %3849 }
 0x890   : > { %17118 = vst [vmem:[#allocation44_spill] sm:$0xff] %v13865_v27 }
 0x891   : > { %4488 = vperm.xlu0 %10822, %v4418_v7   ;;  %4247 = vrot.lane.b32.xlu2 %v4135_v22, %s16909_s23  ;;  %v10571_v7 = vld [vmem:[%s17114_s25 + $0xf4] sm:$0xf]  ;;  %v9523_v22 = vld [vmem:[%s17114_s25 + $0xf8] sm:$0xf0]  ;;  %s17141_s23 = smov 65  }
 0x892   : > { %4498 = vperm.xlu1 %10820, %v4420_v17   ;;  %v9522_v17 = vor.u32 %v10572_v9, %v9521_v56  ;;  %v9526_v59 = vor.u32 %v10571_v7, %v9523_v22  ;;  %v10573_v56 = vld [vmem:[%s17114_s25 + $0x104] sm:$0xf]  ;;  %v9627_v9 = vld [vmem:[%s17114_s25 + $0x108] sm:$0xf0] }
 0x897   : > { %v13885_v62 = vpop.permute.xlu0 %3847 }
 0x898   : > { %17120 = vst [vmem:[#allocation49_spill] sm:$0xff] %v13885_v62 }
 0x899   : > { %4463 = vperm.xlu0 %10822, %v4413_v50   ;;  %4483 = vperm.xlu2 %10821, %v4417_v8   ;;  %v3684_v50 = vpop.f32.mrf.mxu0  ;;  %v3733_v8 = vpop.f32.mrf.mxu1 }
 0x89a   : > { %4473 = vperm.xlu1 %10820, %v4415_v41   ;;  %v13927_v41 = vadd.f32 %v3733_v8, %v3684_v50  ;;  %v9630_v50 = vor.u32 %v10573_v56, %v9627_v9  ;;  %v9545_v8 = vld [vmem:[%s17114_s25 + $0x10] sm:$0xf]  ;;  %v10543_v56 = vld [vmem:[%s17114_s25 + $0x14] sm:$0xf]  ;;  %v9547_v9 = vld [vmem:[%s17114_s25 + $0x18] sm:$0xf0] }
 0x89c   : > { %3713 = vmatmul.bf16.gmra.mxu0 %v9514_v29  ;;  %9533 = vmatmul.msk.bf16.gmra.mxu1 %vm1976_vm13, %v9518_v54 }
 0x8a1   : > { %4458 = vperm.xlu0 %10822, %v4412_v24   ;;  %4478 = vperm.xlu2 %10821, %v4416_v36   ;;  %v13940_v23 = vpop.f32.mrf.mxu1 }
 0x8a2   : > { %4468 = vperm.xlu1 %10820, %v4414_v4   ;;  %v13937_v4 = vpop.f32.mrf.mxu0 }
 0x8a9   : > { %4433 = vperm.xlu0 %10822, %v4407_v61   ;;  %4453 = vperm.xlu2 %10821, %v4411_v42   ;;  %v3738_v6 = vpop.f32.mrf.mxu1  ;;  %v9537_v61 = vld [vmem:[%s17114_s25] sm:$0xf]  ;;  %v10542_v42 = vld [vmem:[%s17114_s25 + $0x4] sm:$0xf0] }
 0x8aa   : > { %4443 = vperm.xlu1 %10820, %v4409_v43   ;;  %v3689_v10 = vpop.f32.mrf.mxu0 }
 0x8ab   : > { %v13948_v47 = vadd.f32 %v3738_v6, %v3689_v10  ;;  %v10544_v10 = vld [vmem:[%s17114_s25 + $0x14] sm:$0xf0]  ;;  %v9625_v6 = vld [vmem:[%s17114_s25 + $0x100] sm:$0xf] }
 0x8ac   : > { %3718 = vmatmul.bf16.gmra.mxu0 %v9522_v17  ;;  %9534 = vmatmul.msk.bf16.gmra.mxu1 %vm1976_vm13, %v9526_v59 }
 0x8b1   : > { %4428 = vperm.xlu0 %10822, %v4406_v53   ;;  %4448 = vperm.xlu2 %10821, %v4410_v33   ;;  %v13968_v63 = vpop.f32.mrf.mxu1 }
 0x8b2   : > { %4438 = vperm.xlu1 %10820, %v4408_v34   ;;  %v9538_v34 = vor.u32 %v10542_v42, %v9537_v61  ;;  %v13964_v13 = vpop.f32.mrf.mxu0  ;;  %v10574_v61 = vld [vmem:[%s17114_s25 + $0x104] sm:$0xf0] }
 0x8b3   : > { %v13867_v21 = vpop.permute.xlu2 %3855 }
 0x8b4   : > { %17119 = vst [vmem:[#allocation39_spill] sm:$0xff] %v13867_v21 }
 0x8b9   : > { %4423 = vperm.xlu2 %10821, %v4405_v1   ;;  %v9539_v1 = vld [vmem:[%s17114_s25 + $0x8] sm:$0xf0] }
 0x8ba   : > { %v9542_v54 = vor.u32 %v10541_v11, %v9539_v1  ;;  %v9626_v11 = vor.u32 %v10574_v61, %v9625_v6 }
 0x8bb   : > { %v13887_v52 = vpop.permute.xlu2 %4243 }
 0x8bc   : > { %17121 = vst [vmem:[#allocation50_spill] sm:$0xff] %v13887_v52 }
 0x8c2   : > { %v13889_v0 = vpop.permute.xlu0 %3859 }
 0x8c3   : > { %17122 = vst [vmem:[#allocation43_spill] sm:$0xff] %v13889_v0  ;;  %v13891_v37 = vpop.permute.xlu1 %3857  ;;  %v13893_v25 = vpop.permute.xlu2 %3865  ;;  %3905 = vmatpush.bf16.msrb.mxu2 %v13889_v0 }
 0x8c4   : > { %17123 = vst [vmem:[#allocation42_spill] sm:$0xff] %v13891_v37 }
 0x8c5   : > { %17124 = vst [vmem:[#allocation37_spill] sm:$0xff] %v13893_v25 }
 0x8c7   : > { %3906 = vmatpush.bf16.msrb.mxu2 %v13891_v37 }
 0x8cb   : > { %v13910_v40 = vpop.permute.xlu0 %4245  ;;  %v13912_v26 = vpop.permute.xlu2 %4235  ;;  %3907 = vmatpush.bf16.msrb.mxu2 %v13867_v21 }
 0x8cc   : > { %17125 = vst [vmem:[#allocation48_spill] sm:$0xff] %v13910_v40  ;;  %v13915_v28 = vpop.permute.xlu1 %3853  ;;  %4291 = vmatpush.bf16.msra.mxu0 %v13910_v40 }
 0x8cd   : > { %17126 = vst [vmem:[#allocation47_spill] sm:$0xff] %v13912_v26 }
 0x8ce   : > { %17127 = vst [vmem:[#allocation12_spill] sm:$0xff] %v13915_v28 }
 0x8cf   : > { %3908 = vmatpush.bf16.msrb.mxu2 %v13915_v28  ;;  %v10585_v28 = vld [vmem:[%s17114_s25 + $0x164] sm:$0xf] }
 0x8d0   : > { %4292 = vmatpush.bf16.msra.mxu0 %v13887_v52  ;;  %v9571_v52 = vld [vmem:[%s17114_s25 + $0x48] sm:$0xf0] }
 0x8d1   : > { %v3694_v7 = vpop.f32.mrf.mxu0 }
 0x8d3   : > { %v13920_v20 = vpop.permute.xlu2 %3867  ;;  %3909 = vmatpush.bf16.msrb.mxu2 %v13844_v3 }
 0x8d4   : > { %17128 = vst [vmem:[#allocation13_spill] sm:$0xff] %v13920_v20  ;;  %v13923_v38 = vpop.permute.xlu1 %4241  ;;  %3958 = vmatpush.bf16.msrb.mxu3 %v13920_v20  ;;  %v10549_v20 = vld [vmem:[%s17114_s25 + $0x44] sm:$0xf] }
 0x8d5   : > { %17129 = vst [vmem:[#allocation52_spill] sm:$0xff] %v13923_v38  ;;  %4293 = vmatpush.bf16.msra.mxu0 %v13923_v38  ;;  %v9574_v40 = vor.u32 %v10549_v20, %v9571_v52  ;;  %v10552_v52 = vld [vmem:[%s17114_s25 + $0x54] sm:$0xf0]  ;;  %v9657_v20 = vld [vmem:[%s17114_s25 + $0x140] sm:$0xf] }
 0x8d7   : > { %3910 = vmatpush.bf16.msrb.mxu2 %v13865_v27 }
 0x8d8   : > { %3959 = vmatpush.bf16.msrb.mxu3 %v13893_v25  ;;  %v9563_v25 = vld [vmem:[%s17114_s25 + $0x38] sm:$0xf0] }
 0x8d9   : > { %v3743_v17 = vpop.f32.mrf.mxu1  ;;  %v14009_v1 = vpop.f32.mrf.mxu0 }
 0x8da   : > { %v13988_v22 = vadd.f32 %v3743_v17, %v3694_v7  ;;  %v9550_v7 = vor.u32 %v10543_v56, %v9547_v9  ;;  %v10575_v17 = vld [vmem:[%s17114_s25 + $0x114] sm:$0xf]  ;;  %v9633_v56 = vld [vmem:[%s17114_s25 + $0x110] sm:$0xf]  ;;  %v10576_v9 = vld [vmem:[%s17114_s25 + $0x114] sm:$0xf0] }
 0x8db   : > { %v13931_v24 = vpop.permute.xlu2 %4253  ;;  %3911 = vmatpush.bf16.msrb.mxu2 %v13885_v62 }
 0x8dc   : > { %17130 = vst [vmem:[#allocation14_spill] sm:$0xff] %v13931_v24  ;;  %v13934_v36 = vpop.permute.xlu1 %4239  ;;  %4344 = vmatpush.bf16.msra.mxu1 %v13931_v24 }
 0x8dd   : > { %17131 = vst [vmem:[#allocation15_spill] sm:$0xff] %v13934_v36  ;;  %4294 = vmatpush.bf16.msra.mxu0 %v13934_v36  ;;  %v10547_v36 = vld [vmem:[%s17114_s25 + $0x34] sm:$0xf] }
 0x8de   : > { %v9566_v38 = vor.u32 %v10547_v36, %v9563_v25  ;;  %v10550_v25 = vld [vmem:[%s17114_s25 + $0x44] sm:$0xf0]  ;;  %v9649_v36 = vld [vmem:[%s17114_s25 + $0x130] sm:$0xf] }
 0x8e3   : > { %v13942_v57 = vpop.permute.xlu0 %3863  ;;  %v13957_v43 = vpop.permute.xlu2 %4233 }
 0x8e4   : > { %17132 = vst [vmem:[#allocation53_spill] sm:$0xff] %v13942_v57  ;;  %v13944_v44 = vpop.permute.xlu1 %4237  ;;  %3960 = vmatpush.bf16.msrb.mxu3 %v13942_v57 }
 0x8e5   : > { %17133 = vst [vmem:[#allocation54_spill] sm:$0xff] %v13944_v44  ;;  %4295 = vmatpush.bf16.msra.mxu0 %v13944_v44 }
 0x8e6   : > { %17134 = vst [vmem:[#allocation55_spill] sm:$0xff] %v13957_v43 }
 0x8e9   : > { %4296 = vmatpush.bf16.msra.mxu0 %v13912_v26 }
 0x8eb   : > { %v13959_v53 = vpop.permute.xlu0 %4251  ;;  %v13990_v59 = vpop.permute.xlu2 %4247 }
 0x8ec   : > { %17135 = vst [vmem:[#allocation11_spill] sm:$0xff] %v13959_v53  ;;  %v13961_v33 = vpop.permute.xlu1 %3845  ;;  %4345 = vmatpush.bf16.msra.mxu1 %v13959_v53 }
 0x8ed   : > { %17136 = vst [vmem:[#allocation32_spill] sm:$0xff] %v13961_v33  ;;  %3912 = vmatpush.bf16.msrb.mxu2 %v13961_v33  ;;  %4297 = vmatpush.bf16.msra.mxu0 %v13957_v43  ;;  %v9579_v43 = vld [vmem:[%s17114_s25 + $0x58] sm:$0xf0] }
 0x8ee   : > { %17139 = vst [vmem:[#allocation18_spill] sm:$0xff] %v13990_v59 }
 0x8f0   : > { %3913 = vmatmul.bf16.vlgmr.msrb.gmra.mxu2 %v9538_v34  ;;  %v9546_v34 = vor.u32 %v10544_v10, %v9545_v8  ;;  %v3699_v8 = vpop.f32.mrf.mxu0 }
 0x8f3   : > { %v13976_v29 = vpop.permute.xlu0 %4249  ;;  %v14234_v27 = vpop.permute.xlu2 %4483 }
 0x8f4   : > { %17137 = vst [vmem:[#allocation16_spill] sm:$0xff] %v13976_v29  ;;  %v13978_v39 = vpop.permute.xlu1 %3861  ;;  %4346 = vmatpush.bf16.msra.mxu1 %v13976_v29 }
 0x8f5   : > { %17138 = vst [vmem:[#allocation17_spill] sm:$0xff] %v13978_v39  ;;  %3961 = vmatpush.bf16.msrb.mxu3 %v13978_v39  ;;  %v9555_v39 = vld [vmem:[%s17114_s25 + $0x28] sm:$0xf0] }
 0x8f8   : > { %9599 = vmatmul.msk.bf16.vlgmr.msrb.gmra.mxu3 %vm1976_vm13, %v9542_v54  ;;  %4347 = vmatpush.bf16.msra.mxu1 %v13990_v59  ;;  %v14012_v54 = vpop.f32.mrf.mxu1 }
 0x8f9   : > { %v3746_v60 = vadd.f32 %v14012_v54, %v14009_v1 }
 0x8fb   : > { %9687 = vmatmul.msk.bf16.vlgmr.msra.gmra.mxu1 %vm1976_vm13, %v9630_v50  ;;  %v9635_v50 = vld [vmem:[%s17114_s25 + $0x118] sm:$0xf0]  ;;  %v14252_v29 = vpop.permute.xlu0 %4493 }
 0x8fc   : > { %v14007_v42 = vpop.permute.xlu1 %4231  ;;  %v9638_v61 = vor.u32 %v10575_v17, %v9635_v50  ;;  %v14042_v50 = vpop.f32.mrf.mxu0 }
 0x8fd   : > { %17140 = vst [vmem:[#allocation19_spill] sm:$0xff] %v14007_v42  ;;  %4298 = vmatpush.bf16.msra.mxu0 %v14007_v42  ;;  %v10551_v42 = vld [vmem:[%s17114_s25 + $0x54] sm:$0xf] }
 0x8fe   : > { %v9582_v26 = vor.u32 %v10551_v42, %v9579_v43  ;;  %v10554_v43 = vld [vmem:[%s17114_s25 + $0x64] sm:$0xf0]  ;;  %v9665_v42 = vld [vmem:[%s17114_s25 + $0x150] sm:$0xf] }
 0x900   : > { %3918 = vmatmul.bf16.gmra.mxu2 %v9546_v34  ;;  %4299 = vmatmul.bf16.vlgmr.msra.gmra.mxu0 %v9626_v11  ;;  %v3748_v10 = vpop.f32.mrf.mxu1  ;;  %v9553_v34 = vld [vmem:[%s17114_s25 + $0x20] sm:$0xf]  ;;  %v10546_v11 = vld [vmem:[%s17114_s25 + $0x24] sm:$0xf0] }
 0x901   : > { %v14026_v6 = vadd.f32 %v3748_v10, %v3699_v8  ;;  %v9554_v17 = vor.u32 %v10546_v11, %v9553_v34  ;;  %v10545_v10 = vld [vmem:[%s17114_s25 + $0x24] sm:$0xf]  ;;  %v9643_v34 = vld [vmem:[%s17114_s25 + $0x128] sm:$0xf0] }
 0x902   : > { %v9558_v57 = vor.u32 %v10545_v10, %v9555_v39  ;;  %v10548_v39 = vld [vmem:[%s17114_s25 + $0x34] sm:$0xf0]  ;;  %v9641_v10 = vld [vmem:[%s17114_s25 + $0x120] sm:$0xf] }
 0x903   : > { %v14259_v46 = vpop.permute.xlu0 %4488 }
 0x904   : > { %v3704_v11 = vpop.f32.mrf.mxu0 }
 0x908   : > { %9600 = vmatmul.msk.bf16.gmra.mxu3 %vm1976_vm13, %v9550_v7  ;;  %v9634_v7 = vor.u32 %v10576_v9, %v9633_v56  ;;  %v14044_v8 = vpop.f32.mrf.mxu1 }
 0x90b   : > { %9688 = vmatmul.msk.bf16.gmra.mxu1 %vm1976_vm13, %v9638_v61  ;;  %v10577_v61 = vld [vmem:[%s17114_s25 + $0x124] sm:$0xf] }
 0x910   : > { %3923 = vmatmul.bf16.gmra.mxu2 %v9554_v17  ;;  %4304 = vmatmul.bf16.gmra.mxu0 %v9634_v7  ;;  %v3753_v56 = vpop.f32.mrf.mxu1  ;;  %v9646_v17 = vor.u32 %v10577_v61, %v9643_v34  ;;  %v9561_v7 = vld [vmem:[%s17114_s25 + $0x30] sm:$0xf]  ;;  %v14074_v34 = vpop.f32.mrf.mxu0 }
 0x911   : > { %v14058_v9 = vadd.f32 %v3753_v56, %v3704_v11  ;;  %v10578_v11 = vld [vmem:[%s17114_s25 + $0x124] sm:$0xf0]  ;;  %v9562_v61 = vor.u32 %v10548_v39, %v9561_v7  ;;  %v9651_v7 = vld [vmem:[%s17114_s25 + $0x138] sm:$0xf0] }
 0x918   : > { %9601 = vmatmul.msk.bf16.gmra.mxu3 %vm1976_vm13, %v9558_v57  ;;  %v9642_v57 = vor.u32 %v10578_v11, %v9641_v10  ;;  %v14076_v56 = vpop.f32.mrf.mxu1  ;;  %v3709_v39 = vpop.f32.mrf.mxu0 }
 0x91b   : > { %9689 = vmatmul.msk.bf16.gmra.mxu1 %vm1976_vm13, %v9646_v17  ;;  %v10579_v17 = vld [vmem:[%s17114_s25 + $0x134] sm:$0xf] }
 0x920   : > { %3928 = vmatmul.bf16.gmra.mxu2 %v9562_v61  ;;  %4309 = vmatmul.bf16.gmra.mxu0 %v9642_v57  ;;  %v3758_v10 = vpop.f32.mrf.mxu1  ;;  %v9654_v61 = vor.u32 %v10579_v17, %v9651_v7  ;;  %v9569_v57 = vld [vmem:[%s17114_s25 + $0x40] sm:$0xf]  ;;  %v14106_v7 = vpop.f32.mrf.mxu0 }
 0x921   : > { %v14090_v11 = vadd.f32 %v3758_v10, %v3709_v39  ;;  %v10580_v39 = vld [vmem:[%s17114_s25 + $0x134] sm:$0xf0]  ;;  %v9570_v17 = vor.u32 %v10550_v25, %v9569_v57  ;;  %v9659_v57 = vld [vmem:[%s17114_s25 + $0x148] sm:$0xf0] }
 0x928   : > { %9602 = vmatmul.msk.bf16.gmra.mxu3 %vm1976_vm13, %v9566_v38  ;;  %v9650_v38 = vor.u32 %v10580_v39, %v9649_v36  ;;  %v14108_v10 = vpop.f32.mrf.mxu1  ;;  %v3714_v25 = vpop.f32.mrf.mxu0 }
 0x92b   : > { %9690 = vmatmul.msk.bf16.gmra.mxu1 %vm1976_vm13, %v9654_v61  ;;  %v10581_v61 = vld [vmem:[%s17114_s25 + $0x144] sm:$0xf] }
 0x92c   : > { %v9662_v39 = vor.u32 %v10581_v61, %v9659_v57  ;;  %v10582_v61 = vld [vmem:[%s17114_s25 + $0x144] sm:$0xf0] }
 0x930   : > { %3933 = vmatmul.bf16.gmra.mxu2 %v9570_v17  ;;  %4314 = vmatmul.bf16.gmra.mxu0 %v9650_v38  ;;  %v3763_v36 = vpop.f32.mrf.mxu1  ;;  %v9577_v38 = vld [vmem:[%s17114_s25 + $0x50] sm:$0xf] }
 0x931   : > { %v14122_v17 = vadd.f32 %v3763_v36, %v3714_v25  ;;  %v9578_v57 = vor.u32 %v10552_v52, %v9577_v38  ;;  %v14138_v25 = vpop.f32.mrf.mxu0  ;;  %v9667_v38 = vld [vmem:[%s17114_s25 + $0x158] sm:$0xf0] }
 0x938   : > { %9603 = vmatmul.msk.bf16.gmra.mxu3 %vm1976_vm13, %v9574_v40  ;;  %v9658_v40 = vor.u32 %v10582_v61, %v9657_v20  ;;  %v14140_v36 = vpop.f32.mrf.mxu1 }
 0x939   : > { %v3719_v52 = vpop.f32.mrf.mxu0 }
 0x93b   : > { %9691 = vmatmul.msk.bf16.gmra.mxu1 %vm1976_vm13, %v9662_v39  ;;  %v10583_v39 = vld [vmem:[%s17114_s25 + $0x154] sm:$0xf] }
 0x93c   : > { %v9670_v61 = vor.u32 %v10583_v39, %v9667_v38  ;;  %v10584_v39 = vld [vmem:[%s17114_s25 + $0x154] sm:$0xf0] }
 0x940   : > { %3938 = vmatmul.bf16.gmra.mxu2 %v9578_v57  ;;  %4319 = vmatmul.bf16.gmra.mxu0 %v9658_v40  ;;  %v3768_v20 = vpop.f32.mrf.mxu1  ;;  %v9585_v40 = vld [vmem:[%s17114_s25 + $0x60] sm:$0xf] }
 0x941   : > { %v14154_v57 = vadd.f32 %v3768_v20, %v3719_v52  ;;  %v9586_v38 = vor.u32 %v10554_v43, %v9585_v40  ;;  %v10553_v52 = vld [vmem:[%s17114_s25 + $0x64] sm:$0xf]  ;;  %v9587_v20 = vld [vmem:[%s17114_s25 + $0x68] sm:$0xf0]  ;;  %v9593_v43 = vld [vmem:[%s17114_s25 + $0x70] sm:$0xf] }
 0x942   : > { %v9590_v44 = vor.u32 %v10553_v52, %v9587_v20  ;;  %v9595_v52 = vld [vmem:[%s17114_s25 + $0x78] sm:$0xf0] }
 0x948   : > { %9604 = vmatmul.msk.bf16.gmra.mxu3 %vm1976_vm13, %v9582_v26  ;;  %v9666_v26 = vor.u32 %v10584_v39, %v9665_v42  ;;  %v10556_v42 = vld [vmem:[%s17114_s25 + $0x74] sm:$0xf0]  ;;  %v9673_v39 = vld [vmem:[%s17114_s25 + $0x160] sm:$0xf] }
 0x94b   : > { %9692 = vmatmul.msk.bf16.gmra.mxu1 %vm1976_vm13, %v9670_v61  ;;  %v9675_v61 = vld [vmem:[%s17114_s25 + $0x168] sm:$0xf0] }
 0x94c   : > { %v9678_v40 = vor.u32 %v10585_v28, %v9675_v61  ;;  %v9594_v28 = vor.u32 %v10556_v42, %v9593_v43  ;;  %v10587_v61 = vld [vmem:[%s17114_s25 + $0x174] sm:$0xf]  ;;  %v9681_v42 = vld [vmem:[%s17114_s25 + $0x170] sm:$0xf] }
 0x950   : > { %3943 = vmatmul.bf16.gmra.mxu2 %v9586_v38  ;;  %4324 = vmatmul.bf16.gmra.mxu0 %v9666_v26  ;;  %v10586_v38 = vld [vmem:[%s17114_s25 + $0x164] sm:$0xf0]  ;;  %v10555_v26 = vld [vmem:[%s17114_s25 + $0x74] sm:$0xf] }
 0x951   : > { %v9598_v20 = vor.u32 %v10555_v26, %v9595_v52  ;;  %v14219_v52 = vpop.f32.mrf.mxu0 }
 0x958   : > { %9605 = vmatmul.msk.bf16.gmra.mxu3 %vm1976_vm13, %v9590_v44  ;;  %v9674_v44 = vor.u32 %v10586_v38, %v9673_v39  ;;  %v10588_v39 = vld [vmem:[%s17114_s25 + $0x174] sm:$0xf0] }
 0x959   : > { %v9682_v38 = vor.u32 %v10588_v39, %v9681_v42 }
 0x95b   : > { %9693 = vmatmul.msk.bf16.gmra.mxu1 %vm1976_vm13, %v9678_v40  ;;  %v9683_v40 = vld [vmem:[%s17114_s25 + $0x178] sm:$0xf0] }
 0x95c   : > { %v9686_v43 = vor.u32 %v10587_v61, %v9683_v40 }
 0x960   : > { %3948 = vmatmul.bf16.gmra.mxu2 %v9594_v28  ;;  %4329 = vmatmul.bf16.gmra.mxu0 %v9674_v44  ;;  %v14216_v28 = vpop.f32.mrf.mxu1 }
 0x968   : > { %9606 = vmatmul.msk.bf16.gmra.mxu3 %vm1976_vm13, %v9598_v20 }
 0x96b   : > { %9694 = vmatmul.msk.bf16.gmra.mxu1 %vm1976_vm13, %v9686_v43  ;;  %v14227_v43 = vpop.permute.xlu1 %4498 }
 0x970   : > { %4334 = vmatmul.bf16.gmra.mxu0 %v9682_v38 }
 0x973   : > { %v3914_v44 = vpop.f32.mrf.mxu2 }
 0x974   : > { %v3915_v26 = vadd.f32 %v3914_v44, %v13927_v41 }
 0x978   : > { %v4349_v20 = vpop.f32.mrf.mxu1 }
 0x97b   : > { %v14221_v61 = vpop.f32.mrf.mxu2  ;;  %v3963_v40 = vpop.f32.mrf.mxu3 }
 0x97c   : > { %v3964_v21 = vadd.f32 %v3963_v40, %v3915_v26 }
 0x97d   : > { %v4300_v33 = vpop.f32.mrf.mxu0 }
 0x97e   : > { %v4350_v37 = vadd.f32 %v4349_v20, %v4300_v33 }
 0x980   : > { %v14223_v62 = vadd.f32 %v4350_v37, %v3964_v21  ;;  %v14225_v0 = vpop.f32.mrf.mxu1  ;;  %v14238_v21 = vpop.permute.xlu1 %4473 }
 0x983   : > { %v3919_v42 = vpop.f32.mrf.mxu2  ;;  %v14229_v39 = vpop.f32.mrf.mxu3 }
 0x984   : > { %v3920_v41 = vadd.f32 %v3919_v42, %v13948_v47  ;;  %v14246_v47 = vpop.permute.xlu2 %4478 }
 0x985   : > { %v14232_v38 = vpop.f32.mrf.mxu0 }
 0x988   : > { %v4354_v44 = vpop.f32.mrf.mxu1  ;;  %v14250_v45 = vpop.permute.xlu1 %4468 }
 0x98b   : > { %v14236_v3 = vpop.f32.mrf.mxu2  ;;  %v3968_v26 = vpop.f32.mrf.mxu3 }
 0x98c   : > { %v3969_v33 = vadd.f32 %v3968_v26, %v3920_v41  ;;  %v4454_v53 = vpop.permute.xlu2 %4453 }
 0x98d   : > { %v4305_v37 = vpop.f32.mrf.mxu0 }
 0x98e   : > { %v4355_v20 = vadd.f32 %v4354_v44, %v4305_v37 }
 0x990   : > { %v14240_v40 = vadd.f32 %v4355_v20, %v3969_v33  ;;  %v14242_v58 = vpop.f32.mrf.mxu1  ;;  %v4444_v30 = vpop.permute.xlu1 %4443 }
 0x993   : > { %v3924_v35 = vpop.f32.mrf.mxu2  ;;  %v14244_v19 = vpop.f32.mrf.mxu3 }
 0x994   : > { %v3925_v44 = vadd.f32 %v3924_v35, %v13988_v22 }
 0x995   : > { %v14248_v42 = vpop.f32.mrf.mxu0 }
 0x998   : > { %v4359_v59 = vpop.f32.mrf.mxu1 }
 0x99b   : > { %v3926_v41 = vpop.f32.mrf.mxu2  ;;  %v3973_v26 = vpop.f32.mrf.mxu3 }
 0x99c   : > { %v3974_v37 = vadd.f32 %v3973_v26, %v3925_v44  ;;  %v3927_v48 = vadd.f32 %v3926_v41, %v3746_v60  ;;  %v4449_v44 = vpop.permute.xlu2 %4448 }
 0x99d   : > { %v4310_v33 = vpop.f32.mrf.mxu0 }
 0x99e   : > { %v4360_v20 = vadd.f32 %v4359_v59, %v4310_v33 }
 0x9a0   : > { %v4393_v24 = vadd.f32 %v4360_v20, %v3974_v37  ;;  %v4361_v31 = vpop.f32.mrf.mxu1 }
 0x9a2   : > { %v4505_v14 = vadd.f32 %v4444_v30, %v4393_v24 }
 0x9a3   : > { %v3929_v5 = vpop.f32.mrf.mxu2  ;;  %v3975_v51 = vpop.f32.mrf.mxu3 }
 0x9a4   : > { %v14257_v2 = vmax.f32 %v4505_v14, 0.0  ;;  %v3976_v35 = vadd.f32 %v3975_v51, %v3927_v48  ;;  %v3930_v30 = vadd.f32 %v3929_v5, %v14026_v6 }
 0x9a5   : > { %v4312_v18 = vpop.f32.mrf.mxu0 }
 0x9a6   : > { %v4362_v22 = vadd.f32 %v4361_v31, %v4312_v18  ;;  %4545 = vrot.lane.b32.xlu2 %v14257_v2, %s16953_s26  ;;  %v4464_v31 = vpop.permute.xlu0 %4463  ;;  %v3751_v18 = vadd.f32 %v14044_v8, %v14042_v50 }
 0x9a8   : > { %v4394_v59 = vadd.f32 %v4362_v22, %v3976_v35  ;;  %v4364_v26 = vpop.f32.mrf.mxu1 }
 0x9aa   : > { %v4506_v33 = vadd.f32 %v4449_v44, %v4394_v59 }
 0x9ab   : > { %v3931_v37 = vpop.f32.mrf.mxu2  ;;  %v3978_v1 = vpop.f32.mrf.mxu3 }
 0x9ac   : > { %v14264_v24 = vmax.f32 %v4506_v33, 0.0  ;;  %v3979_v60 = vadd.f32 %v3978_v1, %v3930_v30  ;;  %v3932_v22 = vadd.f32 %v3931_v37, %v3751_v18  ;;  %v3756_v18 = vadd.f32 %v14076_v56, %v14074_v34 }
 0x9ad   : > { %v4315_v14 = vpop.f32.mrf.mxu0 }
 0x9ae   : > { %v4365_v54 = vadd.f32 %v4364_v26, %v4315_v14  ;;  %4548 = vrot.lane.b32.xlu0 %v14264_v24, %s16953_s26  ;;  %v4459_v1 = vpop.permute.xlu0 %4458 }
 0x9b0   : > { %v4395_v48 = vadd.f32 %v4365_v54, %v3979_v60  ;;  %v4366_v51 = vpop.f32.mrf.mxu1 }
 0x9b2   : > { %v4507_v41 = vadd.f32 %v4454_v53, %v4395_v48 }
 0x9b3   : > { %v3934_v20 = vpop.f32.mrf.mxu2  ;;  %v3980_v35 = vpop.f32.mrf.mxu3 }
 0x9b4   : > { %v14270_v59 = vmax.f32 %v4507_v41, 0.0  ;;  %v3981_v6 = vadd.f32 %v3980_v35, %v3932_v22  ;;  %v3935_v50 = vadd.f32 %v3934_v20, %v14058_v9 }
 0x9b5   : > { %v4317_v5 = vpop.f32.mrf.mxu0 }
 0x9b6   : > { %v4367_v44 = vadd.f32 %v4366_v51, %v4317_v5  ;;  %4551 = vrot.lane.b32.xlu0 %v14270_v59, %s16953_s26 }
 0x9b8   : > { %v4396_v26 = vadd.f32 %v4367_v44, %v3981_v6  ;;  %v4369_v33 = vpop.f32.mrf.mxu1 }
 0x9ba   : > { %v4508_v30 = vadd.f32 %v4459_v1, %v4396_v26 }
 0x9bb   : > { %v3936_v14 = vpop.f32.mrf.mxu2  ;;  %v3983_v60 = vpop.f32.mrf.mxu3 }
 0x9bc   : > { %v14275_v53 = vmax.f32 %v4508_v30, 0.0  ;;  %v3984_v37 = vadd.f32 %v3983_v60, %v3935_v50  ;;  %v3937_v5 = vadd.f32 %v3936_v14, %v3756_v18 }
 0x9bd   : > { %v4320_v8 = vpop.f32.mrf.mxu0 }
 0x9be   : > { %v4370_v54 = vadd.f32 %v4369_v33, %v4320_v8  ;;  %4554 = vrot.lane.b32.xlu1 %v14275_v53, %s16953_s26 }
 0x9c0   : > { %v4397_v48 = vadd.f32 %v4370_v54, %v3984_v37  ;;  %v4371_v51 = vpop.f32.mrf.mxu1  ;;  %v3761_v54 = vadd.f32 %v14108_v10, %v14106_v7 }
 0x9c2   : > { %v4509_v41 = vadd.f32 %v4464_v31, %v4397_v48 }
 0x9c3   : > { %v3939_v35 = vpop.f32.mrf.mxu2  ;;  %v3985_v22 = vpop.f32.mrf.mxu3 }
 0x9c4   : > { %v14281_v6 = vmax.f32 %v4509_v41, 0.0  ;;  %v3986_v20 = vadd.f32 %v3985_v22, %v3937_v5  ;;  %v3940_v34 = vadd.f32 %v3939_v35, %v14090_v11 }
 0x9c5   : > { %v4322_v9 = vpop.f32.mrf.mxu0 }
 0x9c6   : > { %v4372_v44 = vadd.f32 %v4371_v51, %v4322_v9  ;;  %4557 = vrot.lane.b32.xlu1 %v14281_v6, %s16953_s26 }
 0x9c8   : > { %v4398_v26 = vadd.f32 %v4372_v44, %v3986_v20  ;;  %v4374_v33 = vpop.f32.mrf.mxu1 }
 0x9ca   : > { %v4510_v1 = vadd.f32 %v14250_v45, %v4398_v26 }
 0x9cb   : > { %v3941_v30 = vpop.f32.mrf.mxu2  ;;  %v3988_v60 = vpop.f32.mrf.mxu3 }
 0x9cc   : > { %v14287_v56 = vmax.f32 %v4510_v1, 0.0  ;;  %v3989_v14 = vadd.f32 %v3988_v60, %v3940_v34  ;;  %v3942_v18 = vadd.f32 %v3941_v30, %v3761_v54  ;;  %v3766_v34 = vadd.f32 %v14140_v36, %v14138_v25  ;;  %v4424_v54 = vpop.permute.xlu2 %4423 }
 0x9cd   : > { %v4325_v31 = vpop.f32.mrf.mxu0 }
 0x9ce   : > { %v4375_v50 = vadd.f32 %v4374_v33, %v4325_v31  ;;  %4560 = vrot.lane.b32.xlu2 %v14287_v56, %s16953_s26 }
 0x9d0   : > { %v4399_v8 = vadd.f32 %v4375_v50, %v3989_v14  ;;  %v4376_v37 = vpop.f32.mrf.mxu1 }
 0x9d2   : > { %v4511_v48 = vadd.f32 %v14238_v21, %v4399_v8 }
 0x9d3   : > { %v3944_v45 = vpop.f32.mrf.mxu2  ;;  %v3990_v51 = vpop.f32.mrf.mxu3 }
 0x9d4   : > { %v14294_v41 = vmax.f32 %v4511_v48, 0.0  ;;  %v3991_v35 = vadd.f32 %v3990_v51, %v3942_v18  ;;  %v3945_v7 = vadd.f32 %v3944_v45, %v14122_v17  ;;  %v4501_v45 = vadd.f32 %v4424_v54, %v14223_v62 }
 0x9d5   : > { %v4327_v11 = vpop.f32.mrf.mxu0 }
 0x9d6   : > { %v4377_v22 = vadd.f32 %v4376_v37, %v4327_v11  ;;  %4563 = vrot.lane.b32.xlu2 %v14294_v41, %s16953_s26 }
 0x9d8   : > { %v4400_v5 = vadd.f32 %v4377_v22, %v3991_v35  ;;  %v4379_v9 = vpop.f32.mrf.mxu1 }
 0x9da   : > { %v4512_v20 = vadd.f32 %v14246_v47, %v4400_v5 }
 0x9db   : > { %v3993_v44 = vpop.f32.mrf.mxu3  ;;  %v3946_v21 = vpop.f32.mrf.mxu2 }
 0x9dc   : > { %v14300_v10 = vmax.f32 %v4512_v20, 0.0  ;;  %v3994_v33 = vadd.f32 %v3993_v44, %v3945_v7  ;;  %v3947_v14 = vadd.f32 %v3946_v21, %v3766_v34 }
 0x9dd   : > { %v4330_v26 = vpop.f32.mrf.mxu0 }
 0x9de   : > { %v4380_v1 = vadd.f32 %v4379_v9, %v4330_v26  ;;  %4566 = vrot.lane.b32.xlu0 %v14300_v10, %s16953_s26 }
 0x9e0   : > { %v4401_v30 = vadd.f32 %v4380_v1, %v3994_v33  ;;  %v4381_v60 = vpop.f32.mrf.mxu1  ;;  %v3736_v33 = vadd.f32 %v13940_v23, %v13937_v4  ;;  %v4357_v4 = vadd.f32 %v14242_v58, %v14248_v42  ;;  %v4439_v58 = vpop.permute.xlu1 %4438 }
 0x9e2   : > { %v4513_v31 = vadd.f32 %v14234_v27, %v4401_v30  ;;  %v14313_v27 = vmax.f32 %v4501_v45, 0.0 }
 0x9e3   : > { %v3995_v47 = vpop.f32.mrf.mxu3  ;;  %v3949_v48 = vpop.f32.mrf.mxu2 }
 0x9e4   : > { %v14307_v50 = vmax.f32 %v4513_v31, 0.0  ;;  %v3996_v8 = vadd.f32 %v3995_v47, %v3947_v14  ;;  %v3950_v11 = vadd.f32 %v3949_v48, %v14154_v57  ;;  %v4434_v57 = vpop.permute.xlu0 %4433 }
 0x9e5   : > { %v4332_v17 = vpop.f32.mrf.mxu0  ;;  %v4503_v47 = vadd.f32 %v4434_v57, %v14240_v40 }
 0x9e6   : > { %v4382_v37 = vadd.f32 %v4381_v60, %v4332_v17  ;;  %4569 = vrot.lane.b32.xlu0 %v14307_v50, %s16953_s26  ;;  %v3741_v60 = vadd.f32 %v13968_v63, %v13964_v13 }
 0x9e8   : > { %v4402_v51 = vadd.f32 %v4382_v37, %v3996_v8  ;;  %v4384_v25 = vpop.f32.mrf.mxu1  ;;  %v14343_v8 = vmax.f32 %v4503_v47, 0.0 }
 0x9ea   : > { %v4514_v18 = vadd.f32 %v14259_v46, %v4402_v51  ;;  %v3771_v46 = vadd.f32 %v14216_v28, %v14219_v52  ;;  %v4352_v28 = vadd.f32 %v14225_v0, %v14232_v38  ;;  %v3922_v52 = vadd.f32 %v14236_v3, %v3741_v60 }
 0x9eb   : > { %v3998_v36 = vpop.f32.mrf.mxu3  ;;  %v3951_v20 = vpop.f32.mrf.mxu2 }
 0x9ec   : > { %v14316_v35 = vmax.f32 %v4514_v18, 0.0  ;;  %v3999_v5 = vadd.f32 %v3998_v36, %v3950_v11  ;;  %v3952_v21 = vadd.f32 %v3951_v20, %v3771_v46  ;;  %v3971_v63 = vadd.f32 %v14244_v19, %v3922_v52  ;;  %v4429_v3 = vpop.permute.xlu0 %4428 }
 0x9ed   : > { %v4335_v22 = vpop.f32.mrf.mxu0 }
 0x9ee   : > { %v4385_v9 = vadd.f32 %v4384_v25, %v4335_v22  ;;  %4572 = vrot.lane.b32.xlu1 %v14316_v35, %s16953_s26  ;;  %4533 = vrot.lane.b32.xlu0 %v14313_v27, %s16953_s26 }
 0x9f0   : > { %v4403_v62 = vadd.f32 %v4385_v9, %v3999_v5  ;;  %v4386_v1 = vpop.f32.mrf.mxu1 }
 0x9f2   : > { %v4515_v44 = vadd.f32 %v14252_v29, %v4403_v62  ;;  %v3917_v29 = vadd.f32 %v14221_v61, %v3736_v33  ;;  %v4392_v61 = vadd.f32 %v4357_v4, %v3971_v63 }
 0x9f3   : > { %v4000_v7 = vpop.f32.mrf.mxu3 }
 0x9f4   : > { %v14325_v26 = vmax.f32 %v4515_v44, 0.0  ;;  %v4001_v34 = vadd.f32 %v4000_v7, %v3952_v21  ;;  %v3966_v13 = vadd.f32 %v14229_v39, %v3917_v29  ;;  %v4504_v39 = vadd.f32 %v4439_v58, %v4392_v61 }
 0x9f5   : > { %v4337_v30 = vpop.f32.mrf.mxu0  ;;  %v4953_v58 = vpack.c.bf16 %v14307_v50, %v14307_v50 }
 0x9f6   : > { %v4387_v31 = vadd.f32 %v4386_v1, %v4337_v30  ;;  %4575 = vrot.lane.b32.xlu1 %v14325_v26, %s16953_s26  ;;  %v4390_v17 = vadd.f32 %v4352_v28, %v3966_v13  ;;  %v14353_v19 = vmax.f32 %v4504_v39, 0.0  ;;  %v4955_v52 = vpack.c.bf16 %v14325_v26, %v14325_v26 }
 0x9f8   : > { %v4404_v23 = vadd.f32 %v4387_v31, %v4001_v34  ;;  %v4502_v0 = vadd.f32 %v4429_v3, %v4390_v17  ;;  %v5059_v4 = vunpack.c.l.b16 %v4955_v52  ;;  %v4954_v17 = vpack.c.bf16 %v14316_v35, %v14316_v35 }
 0x9fa   : > { %v4516_v14 = vadd.f32 %v14227_v43, %v4404_v23  ;;  %v14351_v38 = vmax.f32 %v4502_v0, 0.0  ;;  %v5058_v3 = vunpack.c.l.b16 %v4954_v17  ;;  %v5057_v0 = vunpack.c.l.b16 %v4953_v58 }
 0x9fc   : > { %v14345_v37 = vmax.f32 %v4516_v14, 0.0  ;;  %v5067_v39 = vpack.c.b16 %v5058_v3, %v5057_v0 }
 0x9fe   : > { %4578 = vrot.lane.b32.xlu2 %v14345_v37, %s16953_s26  ;;  %4539 = vrot.lane.b32.xlu1 %v14343_v8, %s16953_s26  ;;  %v4956_v29 = vpack.c.bf16 %v14345_v37, %v14345_v37 }
 0xa00   : > { %v4546_v43 = vpop.permute.xlu2 %4545  ;;  %v5060_v47 = vunpack.c.l.b16 %v4956_v29 }
 0xa01   : > { %v4547_v33 = vsel %vm3196_vm14, %v4546_v43, %v14257_v2  ;;  %v4952_v43 = vpack.c.bf16 %v14300_v10, %v14300_v10 }
 0xa02   : > { %v5068_v63 = vpack.c.b16 %v5060_v47, %v5059_v4 }
 0xa06   : > { %4542 = vrot.lane.b32.xlu2 %v14353_v19, %s16953_s26  ;;  %4536 = vrot.lane.b32.xlu1 %v14351_v38, %s16953_s26 }
 0xa20   : > { %v4549_v40 = vpop.permute.xlu0 %4548 }
 0xa21   : > { %v4550_v57 = vsel %vm3196_vm14, %v4549_v40, %v14264_v24  ;;  %v4951_v40 = vpack.c.bf16 %v14294_v41, %v14294_v41 }
 0xa28   : > { %v4552_v42 = vpop.permute.xlu0 %4551  ;;  %v4561_v54 = vpop.permute.xlu2 %4560 }
 0xa29   : > { %v4553_v48 = vsel %vm3196_vm14, %v4552_v42, %v14270_v59  ;;  %v4562_v45 = vsel %vm3196_vm14, %v4561_v54, %v14287_v56  ;;  %v5056_v42 = vunpack.c.l.b16 %v4952_v43  ;;  %v5055_v54 = vunpack.c.l.b16 %v4951_v40 }
 0xa2a   : > { %4593 = vrot.lane.b32.xlu1 %v4553_v48, %s16953_s26  ;;  %4599 = vrot.lane.b32.xlu0 %v4562_v45, %s16953_s26 }
 0xa2b   : > { %v5066_v48 = vpack.c.b16 %v5056_v42, %v5055_v54 }
 0xa30   : > { %v4555_v51 = vpop.permute.xlu1 %4554  ;;  %v4564_v18 = vpop.permute.xlu2 %4563 }
 0xa31   : > { %v4556_v25 = vsel %vm3196_vm14, %v4555_v51, %v14275_v53  ;;  %v4565_v36 = vsel %vm3196_vm14, %v4564_v18, %v14294_v41 }
 0xa32   : > { %4595 = vrot.lane.b32.xlu2 %v4556_v25, %s16953_s26  ;;  %4601 = vrot.lane.b32.xlu0 %v4565_v36, %s16953_s26 }
 0xa38   : > { %v4558_v11 = vpop.permute.xlu1 %4557 }
 0xa39   : > { %v4559_v22 = vsel %vm3196_vm14, %v4558_v11, %v14281_v6 }
 0xa3a   : > { %4597 = vrot.lane.b32.xlu2 %v4559_v22, %s16953_s26 }
 0xa50   : > { %v4567_v5 = vpop.permute.xlu0 %4566 }
 0xa51   : > { %v4568_v9 = vsel %vm3196_vm14, %v4567_v5, %v14300_v10 }
 0xa52   : > { %4603 = vrot.lane.b32.xlu1 %v4568_v9, %s16953_s26 }
 0xa58   : > { %v4570_v62 = vpop.permute.xlu0 %4569  ;;  %v4579_v20 = vpop.permute.xlu2 %4578 }
 0xa59   : > { %v4571_v46 = vsel %vm3196_vm14, %v4570_v62, %v14307_v50  ;;  %v4580_v44 = vsel %vm3196_vm14, %v4579_v20, %v14345_v37 }
 0xa5a   : > { %4605 = vrot.lane.b32.xlu1 %v4571_v46, %s16953_s26  ;;  %4611 = vrot.lane.b32.xlu0 %v4580_v44, %s16953_s26 }
 0xa60   : > { %v4573_v7 = vpop.permute.xlu1 %4572  ;;  %v4534_v1 = vpop.permute.xlu0 %4533 }
 0xa61   : > { %v4574_v21 = vsel %vm3196_vm14, %v4573_v7, %v14316_v35  ;;  %v4543_v30 = vpop.permute.xlu2 %4542  ;;  %v4535_v34 = vsel %vm3196_vm14, %v4534_v1, %v14313_v27  ;;  %v4950_v7 = vpack.c.bf16 %v14287_v56, %v14287_v56 }
 0xa62   : > { %4607 = vrot.lane.b32.xlu2 %v4574_v21, %s16953_s26  ;;  %4591 = vrot.lane.b32.xlu1 %v4550_v57, %s16953_s26  ;;  %v4544_v28 = vsel %vm3196_vm14, %v4543_v30, %v14353_v19 }
 0xa63   : > { %4589 = vrot.lane.b32.xlu0 %v4547_v33, %s16953_s26  ;;  %v4949_v33 = vpack.c.bf16 %v14281_v6, %v14281_v6 }
 0xa65   : > { %v14488_v3 = vunpack.c.l.b16 %v4949_v33 }
 0xa68   : > { %v4576_v60 = vpop.permute.xlu1 %4575 }
 0xa69   : > { %v4577_v31 = vsel %vm3196_vm14, %v4576_v60, %v14325_v26 }
 0xa6a   : > { %4609 = vrot.lane.b32.xlu2 %v4577_v31, %s16953_s26  ;;  %4581 = vrot.lane.b32.xlu1 %v4535_v34, %s16953_s26 }
 0xa6b   : > { %4587 = vrot.lane.b32.xlu0 %v4544_v28, %s16953_s26 }
 0xa70   : > { %v4540_v23 = vpop.permute.xlu1 %4539 }
 0xa71   : > { %v4541_v13 = vsel %vm3196_vm14, %v4540_v23, %v14343_v8 }
 0xa72   : > { %4585 = vrot.lane.b32.xlu2 %v4541_v13, %s16953_s26 }
 0xa73   : > { %5083 = vrot.lane.b32.xlu0 %v5068_v63, %s16951_s1 }
 0xa78   : > { %v4537_v14 = vpop.permute.xlu1 %4536 }
 0xa79   : > { %v4538_v61 = vsel %vm3196_vm14, %v4537_v14, %v14351_v38 }
 0xa7a   : > { %4583 = vrot.lane.b32.xlu2 %v4538_v61, %s16953_s26 }
 0xa82   : > { %5081 = vrot.lane.b32.xlu2 %v5067_v39, %s16951_s1 }
 0xa8a   : > { %5079 = vrot.lane.b32.xlu2 %v5066_v48, %s16951_s1 }
 0xa8c   : > { %v4596_v45 = vpop.permute.xlu2 %4595 }
 0xa8d   : > { %v14428_v46 = vsel %vm3196_vm14, %v4596_v45, %v14275_v53 }
 0xa8e   : > { %v4916_v57 = vmul.f32 %v14428_v46, %v13519_v32 }
 0xa90   : > { %v4932_v23 = vpack.c.bf16 %v4916_v57, %v4916_v57 }
 0xa94   : > { %v4598_v51 = vpop.permute.xlu2 %4597 }
 0xa95   : > { %v14432_v44 = vsel %vm3196_vm14, %v4598_v51, %v14281_v6 }
 0xa96   : > { %v4917_v29 = vmul.f32 %v14432_v44, %v13519_v32 }
 0xa98   : > { %v4933_v43 = vpack.c.bf16 %v4917_v29, %v4917_v29 }
 0xa9c   : > { %v4600_v18 = vpop.permute.xlu0 %4599  ;;  %v4594_v25 = vpop.permute.xlu1 %4593 }
 0xa9d   : > { %v14442_v1 = vsel %vm3196_vm14, %v4594_v25, %v14270_v59  ;;  %v14446_v30 = vsel %vm3196_vm14, %v4600_v18, %v14287_v56 }
 0xa9e   : > { %v4918_v63 = vmul.f32 %v14446_v30, %v13519_v32  ;;  %v4915_v14 = vmul.f32 %v14442_v1, %v13519_v32 }
 0xaa0   : > { %v4934_v18 = vpack.c.bf16 %v4918_v63, %v4918_v63  ;;  %v4931_v25 = vpack.c.bf16 %v4915_v14, %v4915_v14 }
 0xaa2   : > { %v5011_v63 = vunpack.c.l.b16 %v4931_v25 }
 0xaa4   : > { %v4602_v11 = vpop.permute.xlu0 %4601 }
 0xaa5   : > { %v14456_v6 = vsel %vm3196_vm14, %v4602_v11, %v14294_v41  ;;  %v14474_v41 = vunpack.c.l.b16 %v4950_v7  ;;  %v14502_v11 = vunpack.c.l.b16 %v4932_v23 }
 0xaa6   : > { %v4919_v61 = vmul.f32 %v14456_v6, %v13519_v32 }
 0xaa7   : > { %v5065_v54 = vpack.c.b16 %v14474_v41, %v14488_v3  ;;  %v4946_v3 = vpack.c.bf16 %v14264_v24, %v14264_v24 }
 0xaa8   : > { %v4935_v57 = vpack.c.bf16 %v4919_v61, %v4919_v61 }
 0xabc   : > { %v14422_v36 = vpop.permute.xlu2 %4607 }
 0xac4   : > { %v4604_v22 = vpop.permute.xlu1 %4603  ;;  %v4610_v5 = vpop.permute.xlu2 %4609 }
 0xac5   : > { %v14460_v28 = vsel %vm3196_vm14, %v4604_v22, %v14300_v10  ;;  %v14500_v45 = vsel %vm3196_vm14, %v4610_v5, %v14325_v26 }
 0xac6   : > { %v4920_v58 = vmul.f32 %v14460_v28, %v13519_v32  ;;  %v4971_v14 = vmul.f32 %v14500_v45, %v13470_v16 }
 0xacc   : > { %v14424_v9 = vpop.permute.xlu1 %4605  ;;  %v4612_v62 = vpop.permute.xlu0 %4611 }
 0xacd   : > { %v4586_v20 = vpop.permute.xlu2 %4585 }
 0xace   : > { %v14478_v10 = vsel %vm3196_vm14, %v4586_v20, %v14343_v8 }
 0xacf   : > { %v4911_v42 = vmul.f32 %v14478_v10, %v13519_v32 }
 0xad4   : > { %v4592_v21 = vpop.permute.xlu1 %4591 }
 0xad5   : > { %v14450_v60 = vsel %vm3196_vm14, %v4592_v21, %v14264_v24  ;;  %v4590_v34 = vpop.permute.xlu0 %4589  ;;  %v4584_v31 = vpop.permute.xlu2 %4583  ;;  %v4936_v21 = vpack.c.bf16 %v4920_v58, %v4920_v58 }
 0xad6   : > { %v14464_v56 = vsel %vm3196_vm14, %v4590_v34, %v14257_v2  ;;  %v4914_v52 = vmul.f32 %v14450_v60, %v13519_v32  ;;  %v14470_v47 = vsel %vm3196_vm14, %v4584_v31, %v14351_v38  ;;  %v14514_v34 = vunpack.c.l.b16 %v4933_v43 }
 0xad7   : > { %v4913_v4 = vmul.f32 %v14464_v56, %v13519_v32  ;;  %v4910_v39 = vmul.f32 %v14470_v47, %v13519_v32  ;;  %v14518_v31 = vsel %vm3196_vm14, %v4612_v62, %v14345_v37  ;;  %v5016_v61 = vunpack.c.l.b16 %v4936_v21 }
 0xad8   : > { %v4930_v13 = vpack.c.bf16 %v4914_v52, %v4914_v52  ;;  %v4927_v52 = vpack.c.bf16 %v4911_v42, %v4911_v42  ;;  %v4643_v37 = vmul.f32 %v14500_v45, %v13675_v49  ;;  %v4972_v43 = vmul.f32 %v14518_v31, %v13470_v16 }
 0xad9   : > { %v4929_v17 = vpack.c.bf16 %v4913_v4, %v4913_v4  ;;  %v4926_v5 = vpack.c.bf16 %v4910_v39, %v4910_v39  ;;  %v4675_v4 = vmul.f32 %v14500_v45, %v13579_v55  ;;  %v4676_v39 = vmul.f32 %v14518_v31, %v13579_v55 }
 0xada   : > { %v5010_v0 = vunpack.c.l.b16 %v4930_v13  ;;  %v5014_v13 = vunpack.c.l.b16 %v4934_v18  ;;  %v4707_v18 = vmul.f32 %v14500_v45, %v13637_v15 }
 0xadb   : > { %v5009_v40 = vunpack.c.l.b16 %v4929_v17  ;;  %v5015_v17 = vunpack.c.l.b16 %v4935_v57  ;;  %v4987_v57 = vpack.c.bf16 %v4971_v14, %v4971_v14 }
 0xadc   : > { %v4582_v51 = vpop.permute.xlu1 %4581 }
 0xadd   : > { %v14506_v22 = vsel %vm3196_vm14, %v4582_v51, %v14313_v27  ;;  %v4588_v20 = vpop.permute.xlu0 %4587  ;;  %v5023_v7 = vpack.c.b16 %v5010_v0, %v5009_v40  ;;  %v5006_v0 = vunpack.c.l.b16 %v4926_v5  ;;  %v5007_v40 = vunpack.c.l.b16 %v4927_v52 }
 0xade   : > { %v14510_v33 = vsel %vm3196_vm14, %v4588_v20, %v14353_v19  ;;  %v4909_v26 = vmul.f32 %v14506_v22, %v13519_v32  ;;  %v4691_v51 = vpack.c.bf16 %v4675_v4, %v4675_v4  ;;  %v4923_v20 = vmul.f32 %v14500_v45, %v13519_v32 }
 0xadf   : > { %5306 = vrot.lane.b32.xlu2 %v5023_v7, %s17141_s23  ;;  %v4912_v29 = vmul.f32 %v14510_v33, %v13519_v32  ;;  %v4671_v7 = vmul.f32 %v14456_v6, %v13579_v55  ;;  %v5026_v21 = vpack.c.b16 %v5016_v61, %v5015_v17  ;;  %v4672_v5 = vmul.f32 %v14460_v28, %v13579_v55 }
 0xae0   : > { %v4925_v23 = vpack.c.bf16 %v4909_v26, %v4909_v26  ;;  %v4692_v52 = vpack.c.bf16 %v4676_v39, %v4676_v39  ;;  %v4988_v4 = vpack.c.bf16 %v4972_v43, %v4972_v43  ;;  %v14548_v14 = vunpack.c.l.b16 %v4691_v51 }
 0xae1   : > { %v4928_v58 = vpack.c.bf16 %v4912_v29, %v4912_v29  ;;  %v5914_v29 = vmul.f32 %v14500_v45, %v13599_v12  ;;  %v4708_v17 = vmul.f32 %v14518_v31, %v13637_v15  ;;  %v4723_v61 = vpack.c.bf16 %v4707_v18, %v4707_v18 }
 0xae2   : > { %v5005_v62 = vunpack.c.l.b16 %v4925_v23  ;;  %v4644_v23 = vmul.f32 %v14518_v31, %v13675_v49  ;;  %v14556_v39 = vunpack.c.l.b16 %v4987_v57  ;;  %v14558_v43 = vunpack.c.l.b16 %v4988_v4 }
 0xae3   : > { %v5008_v42 = vunpack.c.l.b16 %v4928_v58  ;;  %v4659_v58 = vpack.c.bf16 %v4643_v37, %v4643_v37  ;;  %v5930_v51 = vpack.c.bf16 %v5914_v29, %v5914_v29  ;;  %v14570_v57 = vunpack.c.l.b16 %v4723_v61 }
 0xae4   : > { %v5021_v25 = vpack.c.b16 %v5006_v0, %v5005_v62  ;;  %v5915_v62 = vmul.f32 %v14518_v31, %v13599_v12  ;;  %v14554_v0 = vunpack.c.l.b16 %v4692_v52  ;;  %v4660_v37 = vpack.c.bf16 %v4644_v23, %v4644_v23 }
 0xae5   : > { %v5022_v26 = vpack.c.b16 %v5008_v42, %v5007_v40  ;;  %v4924_v40 = vmul.f32 %v14518_v31, %v13519_v32  ;;  %v4724_v42 = vpack.c.bf16 %v4708_v17, %v4708_v17  ;;  %v14574_v23 = vunpack.c.l.b16 %v5930_v51  ;;  %v17143_v51 = vld [vmem:[#allocation28_spill] sm:$0xff] }
 0xae6   : > { %5302 = vrot.lane.b32.xlu1 %v5021_v25, %s17141_s23  ;;  %v5931_v25 = vpack.c.bf16 %v5915_v62, %v5915_v62  ;;  %v14568_v52 = vunpack.c.l.b16 %v4660_v37  ;;  %v5025_v29 = vpack.c.b16 %v5014_v13, %v14514_v34  ;;  %v5024_v17 = vpack.c.b16 %v14502_v11, %v5011_v63 }
 0xae7   : > { %5312 = vrot.lane.b32.xlu2 %v5026_v21, %s17141_s23  ;;  %5304 = vrot.lane.b32.xlu0 %v5022_v26, %s17141_s23  ;;  %v4804_v21 = vpack.c.b16 %v14554_v0, %v14548_v14  ;;  %v14566_v26 = vunpack.c.l.b16 %v4659_v58  ;;  %v14572_v4 = vunpack.c.l.b16 %v4724_v42  ;;  %v4688_v62 = vpack.c.bf16 %v4672_v5, %v4672_v5 }
 0xae8   : > { %v14576_v48 = vunpack.c.l.b16 %v5931_v25  ;;  %v14585_v58 = vsel %vm3196_vm14, %v14424_v9, %v14307_v50  ;;  %v4940_v61 = vpack.c.bf16 %v4924_v40, %v4924_v40  ;;  %v4687_v34 = vpack.c.bf16 %v4671_v7, %v4671_v7 }
 0xae9   : > { %v4764_v18 = vpack.c.b16 %v14568_v52, %v14566_v26  ;;  %v14595_v11 = vsel %vm3196_vm14, %v14422_v36, %v14316_v35  ;;  %v4947_v50 = vpack.c.bf16 %v14270_v59, %v14270_v59  ;;  %v4939_v9 = vpack.c.bf16 %v4923_v20, %v4923_v20 }
 0xaea   : > { %v4792_v13 = vunpack.c.l.b16 %v4688_v62  ;;  %v4921_v63 = vmul.f32 %v14585_v58, %v13519_v32  ;;  %v17142_v7 = vpack.c.bf16 %v14275_v53, %v14275_v53  ;;  %v5020_v36 = vunpack.c.l.b16 %v4940_v61 }
 0xaeb   : > { %v4969_v5 = vmul.f32 %v14585_v58, %v13470_v16  ;;  %v4791_v41 = vunpack.c.l.b16 %v4687_v34  ;;  %v4922_v59 = vmul.f32 %v14595_v11, %v13519_v32  ;;  %v5019_v20 = vunpack.c.l.b16 %v4939_v9 }
 0xaec   : > { %v5052_v35 = vunpack.c.l.b16 %v17142_v7  ;;  %v4970_v40 = vmul.f32 %v14595_v11, %v13470_v16  ;;  %v5946_v53 = vmul.f32 %v14500_v45, %v17143_v51 }
 0xaed   : > { %v4802_v25 = vpack.c.b16 %v4792_v13, %v4791_v41  ;;  %v5028_v61 = vpack.c.b16 %v5020_v36, %v5019_v20  ;;  %v4985_v34 = vpack.c.bf16 %v4969_v5, %v4969_v5  ;;  %v4938_v9 = vpack.c.bf16 %v4922_v59, %v4922_v59  ;;  %v17145_v59 = vld [vmem:[#allocation35_spill] sm:$0xff] }
 0xaee   : > { %5308 = vrot.lane.b32.xlu1 %v5024_v17, %s17141_s23  ;;  %v5947_v17 = vmul.f32 %v14518_v31, %v17143_v51  ;;  %v5962_v24 = vpack.c.bf16 %v5946_v53, %v5946_v53  ;;  %v5050_v13 = vunpack.c.l.b16 %v4946_v3  ;;  %v5882_v20 = vmul.f32 %v14500_v45, %v17145_v59 }
 0xaef   : > { %5077 = vrot.lane.b32.xlu2 %v5065_v54, %s16951_s1  ;;  %5310 = vrot.lane.b32.xlu0 %v5025_v29, %s17141_s23  ;;  %v5051_v54 = vunpack.c.l.b16 %v4947_v50  ;;  %v4937_v29 = vpack.c.bf16 %v4921_v63, %v4921_v63  ;;  %v4945_v50 = vpack.c.bf16 %v14257_v2, %v14257_v2  ;;  %v4986_v63 = vpack.c.bf16 %v4970_v40, %v4970_v40 }
 0xaf0   : > { %v5963_v7 = vpack.c.bf16 %v5947_v17, %v5947_v17  ;;  %v14628_v36 = vunpack.c.l.b16 %v5962_v24  ;;  %v4968_v2 = vmul.f32 %v14460_v28, %v13470_v16  ;;  %v5883_v53 = vmul.f32 %v14518_v31, %v17145_v59 }
 0xaf1   : > { %v5064_v62 = vpack.c.b16 %v5052_v35, %v5051_v54  ;;  %v5017_v41 = vunpack.c.l.b16 %v4937_v29  ;;  %v4673_v35 = vmul.f32 %v14585_v58, %v13579_v55  ;;  %v5113_v54 = vunpack.c.l.b16 %v4985_v34 }
 0xaf2   : > { %v14630_v5 = vunpack.c.l.b16 %v5963_v7  ;;  %v5049_v3 = vunpack.c.l.b16 %v4945_v50  ;;  %v5018_v40 = vunpack.c.l.b16 %v4938_v9  ;;  %v5114_v17 = vunpack.c.l.b16 %v4986_v63 }
 0xaf3   : > { %v5899_v34 = vpack.c.bf16 %v5883_v53, %v5883_v53  ;;  %v4944_v45 = vpack.c.bf16 %v14353_v19, %v14353_v19  ;;  %v4689_v31 = vpack.c.bf16 %v4673_v35, %v4673_v35  ;;  %v4984_v9 = vpack.c.bf16 %v4968_v2, %v4968_v2 }
 0xaf4   : > { %v6099_v29 = vpack.c.b16 %v14630_v5, %v14628_v36  ;;  %v5063_v24 = vpack.c.b16 %v5050_v13, %v5049_v3  ;;  %v5027_v7 = vpack.c.b16 %v5018_v40, %v5017_v41  ;;  %v5123_v50 = vpack.c.b16 %v5114_v17, %v5113_v54 }
 0xaf5   : > { %v14648_v37 = vunpack.c.l.b16 %v5899_v34  ;;  %v4943_v13 = vpack.c.bf16 %v14343_v8, %v14343_v8  ;;  %v4793_v35 = vunpack.c.l.b16 %v4689_v31  ;;  %v4670_v54 = vmul.f32 %v14446_v30, %v13579_v55 }
 0xaf6   : > { %4815 = vrot.lane.b32.xlu1 %v4802_v25, %s17144_s5  ;;  %v4674_v25 = vmul.f32 %v14595_v11, %v13579_v55  ;;  %v5048_v2 = vunpack.c.l.b16 %v4944_v45  ;;  %v4966_v53 = vmul.f32 %v14446_v30, %v13470_v16  ;;  %v4669_v40 = vmul.f32 %v14432_v44, %v13579_v55 }
 0xaf7   : > { %5075 = vrot.lane.b32.xlu2 %v5064_v62, %s16951_s1  ;;  %5316 = vrot.lane.b32.xlu0 %v5028_v61, %s17141_s23  ;;  %v4967_v62 = vmul.f32 %v14456_v6, %v13470_v16  ;;  %v5898_v61 = vpack.c.bf16 %v5882_v20, %v5882_v20  ;;  %v5112_v20 = vunpack.c.l.b16 %v4984_v9  ;;  %v4965_v8 = vmul.f32 %v14432_v44, %v13470_v16 }
 0xaf8   : > { %v4690_v63 = vpack.c.bf16 %v4674_v25, %v4674_v25  ;;  %v5047_v25 = vunpack.c.l.b16 %v4943_v13  ;;  %v4982_v45 = vpack.c.bf16 %v4966_v53, %v4966_v53  ;;  %v4685_v31 = vpack.c.bf16 %v4669_v40, %v4669_v40 }
 0xaf9   : > { %v14646_v42 = vunpack.c.l.b16 %v5898_v61  ;;  %v4983_v41 = vpack.c.bf16 %v4967_v62, %v4967_v62  ;;  %v4686_v61 = vpack.c.bf16 %v4670_v54, %v4670_v54  ;;  %v4981_v9 = vpack.c.bf16 %v4965_v8, %v4965_v8 }
 0xafa   : > { %v4794_v3 = vunpack.c.l.b16 %v4690_v63  ;;  %v5062_v34 = vpack.c.b16 %v5048_v2, %v5047_v25  ;;  %v4667_v13 = vmul.f32 %v14442_v1, %v13579_v55  ;;  %v4789_v54 = vunpack.c.l.b16 %v4685_v31 }
 0xafb   : > { %v6003_v19 = vpack.c.b16 %v14648_v37, %v14646_v42  ;;  %v5111_v17 = vunpack.c.l.b16 %v4983_v41  ;;  %v4790_v63 = vunpack.c.l.b16 %v4686_v61  ;;  %v4668_v2 = vmul.f32 %v14428_v46, %v13579_v55 }
 0xafc   : > { %v4803_v62 = vpack.c.b16 %v4794_v3, %v4793_v35  ;;  %v5110_v35 = vunpack.c.l.b16 %v4982_v45  ;;  %v5109_v53 = vunpack.c.l.b16 %v4981_v9  ;;  %v4964_v3 = vmul.f32 %v14428_v46, %v13470_v16 }
 0xafd   : > { %v4683_v40 = vpack.c.bf16 %v4667_v13, %v4667_v13  ;;  %v4961_v31 = vmul.f32 %v14464_v56, %v13470_v16  ;;  %v14691_v13 = vpop.permute.xlu2 %5081  ;;  %v4698_v36 = vmul.f32 %v14450_v60, %v13637_v15 }
 0xafe   : > { %5314 = vrot.lane.b32.xlu1 %v5027_v7, %s17141_s23  ;;  %v4942_v7 = vpack.c.bf16 %v14351_v38, %v14351_v38  ;;  %v4963_v38 = vmul.f32 %v14442_v1, %v13470_v16  ;;  %v4980_v61 = vpack.c.bf16 %v4964_v3, %v4964_v3 }
 0xaff   : > { %5073 = vrot.lane.b32.xlu2 %v5063_v24, %s16951_s1  ;;  %5137 = vrot.lane.b32.xlu0 %v5123_v50, %s17146_s24  ;;  %v5122_v24 = vpack.c.b16 %v5112_v20, %v5111_v17  ;;  %v4941_v50 = vpack.c.bf16 %v14313_v27, %v14313_v27  ;;  %v4801_v27 = vpack.c.b16 %v4790_v63, %v4789_v54 }
 0xb00   : > { %v5046_v41 = vunpack.c.l.b16 %v4942_v7  ;;  %v5121_v17 = vpack.c.b16 %v5110_v35, %v5109_v53  ;;  %v4979_v8 = vpack.c.bf16 %v4963_v38, %v4963_v38  ;;  %v4666_v7 = vmul.f32 %v14450_v60, %v13579_v55  ;;  %v5084_v53 = vpop.permute.xlu0 %5083 }
 0xb01   : > { %v5045_v20 = vunpack.c.l.b16 %v4941_v50  ;;  %v4962_v50 = vmul.f32 %v14450_v60, %v13470_v16  ;;  %v5108_v63 = vunpack.c.l.b16 %v4980_v61  ;;  %v4663_v61 = vmul.f32 %v14478_v10, %v13579_v55 }
 0xb02   : > { %v5107_v45 = vunpack.c.l.b16 %v4979_v8  ;;  %v4682_v38 = vpack.c.bf16 %v4666_v7, %v4666_v7  ;;  %v4960_v8 = vmul.f32 %v14510_v33, %v13470_v16 }
 0xb03   : > { %v5061_v25 = vpack.c.b16 %v5046_v41, %v5045_v20  ;;  %v4978_v20 = vpack.c.bf16 %v4962_v50, %v4962_v50 }
 0xb04   : > { %v5120_v54 = vpack.c.b16 %v5108_v63, %v5107_v45  ;;  %v4976_v50 = vpack.c.bf16 %v4960_v8, %v4960_v8 }
 0xb05   : > { %v5080_v63 = vpop.permute.xlu2 %5079 }
 0xb06   : > { %4817 = vrot.lane.b32.xlu1 %v4803_v62, %s17144_s5  ;;  %v4684_v62 = vpack.c.bf16 %v4668_v2, %v4668_v2  ;;  %v4977_v2 = vpack.c.bf16 %v4961_v31, %v4961_v31 }
 0xb07   : > { %5071 = vrot.lane.b32.xlu2 %v5062_v34, %s16951_s1  ;;  %5135 = vrot.lane.b32.xlu0 %v5122_v24, %s17146_s24  ;;  %v4787_v34 = vunpack.c.l.b16 %v4683_v40  ;;  %v4665_v24 = vmul.f32 %v14464_v56, %v13579_v55  ;;  %v4664_v40 = vmul.f32 %v14510_v33, %v13579_v55 }
 0xb08   : > { %v4788_v9 = vunpack.c.l.b16 %v4684_v62  ;;  %v4640_v62 = vmul.f32 %v14460_v28, %v13675_v49 }
 0xb09   : > { %v4681_v35 = vpack.c.bf16 %v4665_v24, %v4665_v24  ;;  %v4639_v24 = vmul.f32 %v14456_v6, %v13675_v49  ;;  %v4680_v45 = vpack.c.bf16 %v4664_v40, %v4664_v40 }
 0xb0a   : > { %v4800_v41 = vpack.c.b16 %v4788_v9, %v4787_v34  ;;  %v4959_v34 = vmul.f32 %v14478_v10, %v13470_v16  ;;  %v4656_v9 = vpack.c.bf16 %v4640_v62, %v4640_v62 }
 0xb0b   : > { %v4785_v3 = vunpack.c.l.b16 %v4681_v35 }
 0xb0c   : > { %v4975_v35 = vpack.c.bf16 %v4959_v34, %v4959_v34 }
 0xb0e   : > { %4813 = vrot.lane.b32.xlu1 %v4801_v27, %s17144_s5  ;;  %v4786_v27 = vunpack.c.l.b16 %v4682_v38  ;;  %v4655_v38 = vpack.c.bf16 %v4639_v24, %v4639_v24  ;;  %v5103_v40 = vunpack.c.l.b16 %v4975_v35 }
 0xb0f   : > { %5069 = vrot.lane.b32.xlu2 %v5061_v25, %s16951_s1  ;;  %5133 = vrot.lane.b32.xlu0 %v5121_v17, %s17146_s24  ;;  %v5105_v25 = vunpack.c.l.b16 %v4977_v2  ;;  %v5106_v17 = vunpack.c.l.b16 %v4978_v20  ;;  %v4661_v2 = vmul.f32 %v14506_v22, %v13579_v55  ;;  %v5104_v20 = vunpack.c.l.b16 %v4976_v50  ;;  %s17178_s1 = smov 63  }
 0xb10   : > { %v4799_v7 = vpack.c.b16 %v4786_v27, %v4785_v3  ;;  %v4662_v27 = vmul.f32 %v14470_v47, %v13579_v55 }
 0xb11   : > { %v5119_v31 = vpack.c.b16 %v5106_v17, %v5105_v25  ;;  %v4751_v25 = vunpack.c.l.b16 %v4655_v38  ;;  %v4677_v8 = vpack.c.bf16 %v4661_v2, %v4661_v2  ;;  %v5118_v62 = vpack.c.b16 %v5104_v20, %v5103_v40 }
 0xb12   : > { %v4678_v34 = vpack.c.bf16 %v4662_v27, %v4662_v27  ;;  %v4642_v20 = vmul.f32 %v14595_v11, %v13675_v49 }
 0xb13   : > { %v4781_v24 = vunpack.c.l.b16 %v4677_v8  ;;  %v4638_v8 = vmul.f32 %v14446_v30, %v13675_v49 }
 0xb16   : > { %4811 = vrot.lane.b32.xlu1 %v4800_v41, %s17144_s5  ;;  %v4679_v41 = vpack.c.bf16 %v4663_v61, %v4663_v61 }
 0xb17   : > { %5332 = vrot.lane.b32.xlu2 %v5084_v53, %s17141_s23  ;;  %5131 = vrot.lane.b32.xlu0 %v5120_v54, %s17146_s24  ;;  %v4784_v54 = vunpack.c.l.b16 %v4680_v45  ;;  %v4752_v53 = vunpack.c.l.b16 %v4656_v9  ;;  %v4782_v45 = vunpack.c.l.b16 %v4678_v34 }
 0xb18   : > { %v4783_v3 = vunpack.c.l.b16 %v4679_v41 }
 0xb19   : > { %v4762_v61 = vpack.c.b16 %v4752_v53, %v4751_v25  ;;  %v4797_v50 = vpack.c.b16 %v4782_v45, %v4781_v24 }
 0xb1a   : > { %v4798_v17 = vpack.c.b16 %v4784_v54, %v4783_v3  ;;  %v4641_v54 = vmul.f32 %v14585_v58, %v13675_v49  ;;  %v4658_v3 = vpack.c.bf16 %v4642_v20, %v4642_v20 }
 0xb1c   : > { %v4657_v53 = vpack.c.bf16 %v4641_v54, %v4641_v54  ;;  %v4754_v25 = vunpack.c.l.b16 %v4658_v3  ;;  %v4634_v54 = vmul.f32 %v14450_v60, %v13675_v49 }
 0xb1e   : > { %4809 = vrot.lane.b32.xlu1 %v4799_v7, %s17144_s5  ;;  %v4957_v7 = vmul.f32 %v14506_v22, %v13470_v16  ;;  %v4753_v27 = vunpack.c.l.b16 %v4657_v53 }
 0xb1f   : > { %5129 = vrot.lane.b32.xlu0 %v5119_v31, %s17146_s24  ;;  %5328 = vrot.lane.b32.xlu2 %v5080_v63, %s17141_s23  ;;  %v4958_v31 = vmul.f32 %v14470_v47, %v13470_v16 }
 0xb20   : > { %v4973_v9 = vpack.c.bf16 %v4957_v7, %v4957_v7 }
 0xb21   : > { %v4974_v63 = vpack.c.bf16 %v4958_v31, %v4958_v31  ;;  %v4636_v31 = vmul.f32 %v14428_v46, %v13675_v49 }
 0xb22   : > { %v5101_v41 = vunpack.c.l.b16 %v4973_v9 }
 0xb23   : > { %v5102_v35 = vunpack.c.l.b16 %v4974_v63 }
 0xb25   : > { %v5117_v38 = vpack.c.b16 %v5102_v35, %v5101_v41  ;;  %v4652_v41 = vpack.c.bf16 %v4636_v31, %v4636_v31 }
 0xb26   : > { %4807 = vrot.lane.b32.xlu1 %v4798_v17, %s17144_s5  ;;  %v4763_v17 = vpack.c.b16 %v4754_v25, %v4753_v27  ;;  %v4650_v25 = vpack.c.bf16 %v4634_v54, %v4634_v54 }
 0xb27   : > { %5127 = vrot.lane.b32.xlu0 %v5118_v62, %s17146_s24  ;;  %5659 = vrot.lane.b32.xlu2 %v4762_v61, %s17147_s27  ;;  %v4637_v62 = vmul.f32 %v14432_v44, %v13675_v49  ;;  %v4654_v61 = vpack.c.bf16 %v4638_v8, %v4638_v8  ;;  %v4748_v20 = vunpack.c.l.b16 %v4652_v41 }
 0xb29   : > { %v4653_v24 = vpack.c.bf16 %v4637_v62, %v4637_v62  ;;  %v4750_v7 = vunpack.c.l.b16 %v4654_v61  ;;  %v4746_v61 = vunpack.c.l.b16 %v4650_v25  ;;  %v9729_v25 = vld [vmem:[%s16813_s7 + $0xc0] sm:$0xf] }
 0xb2b   : > { %v4749_v45 = vunpack.c.l.b16 %v4653_v24 }
 0xb2e   : > { %4805 = vrot.lane.b32.xlu1 %v4797_v50, %s17144_s5  ;;  %v4761_v50 = vpack.c.b16 %v4750_v7, %v4749_v45 }
 0xb36   : > { %5125 = vrot.lane.b32.xlu1 %v5117_v38, %s17146_s24  ;;  %v4633_v38 = vmul.f32 %v14464_v56, %v13675_v49 }
 0xb38   : > { %v4649_v27 = vpack.c.bf16 %v4633_v38, %v4633_v38 }
 0xb39   : > { %v14726_v2 = vpop.permute.xlu2 %5306 }
 0xb3a   : > { %v4745_v62 = vunpack.c.l.b16 %v4649_v27 }
 0xb3c   : > { %v4759_v24 = vpack.c.b16 %v4746_v61, %v4745_v62  ;;  %v17150_v62 = vpack.c.b16 %v14572_v4, %v14570_v57  ;;  %v17151_v57 = vpack.c.b16 %v14576_v48, %v14574_v23  ;;  %v5910_v48 = vmul.f32 %v14456_v6, %v13599_v12 }
 0xb3d   : > { %v4629_v23 = vmul.f32 %v14506_v22, %v13675_v49 }
 0xb3e   : > { %5330 = vrot.lane.b32.xlu1 %v14691_v13, %s17141_s23  ;;  %v4635_v13 = vmul.f32 %v14442_v1, %v13675_v49 }
 0xb40   : > { %v4651_v9 = vpack.c.bf16 %v4635_v13, %v4635_v13 }
 0xb41   : > { %v5313_v40 = vpop.permute.xlu2 %5312 }
 0xb42   : > { %v4747_v35 = vunpack.c.l.b16 %v4651_v9  ;;  %v17148_v9 = vpack.c.b16 %v14558_v43, %v14556_v39 }
 0xb44   : > { %v4760_v3 = vpack.c.b16 %v4748_v20, %v4747_v35 }
 0xb46   : > { %5661 = vrot.lane.b32.xlu1 %v4763_v17, %s17147_s27 }
 0xb49   : > { %v5078_v34 = vpop.permute.xlu2 %5077 }
 0xb4a   : > { %5326 = vrot.lane.b32.xlu0 %v5078_v34, %s17141_s23 }
 0xb51   : > { %v5076_v63 = vpop.permute.xlu2 %5075 }
 0xb52   : > { %5657 = vrot.lane.b32.xlu0 %v4761_v50, %s17147_s27  ;;  %5324 = vrot.lane.b32.xlu1 %v5076_v63, %s17141_s23 }
 0xb58   : > { %v5303_v53 = vpop.permute.xlu1 %5302 }
 0xb59   : > { %v5305_v17 = vpop.permute.xlu0 %5304  ;;  %v5074_v8 = vpop.permute.xlu2 %5073 }
 0xb5a   : > { %5655 = vrot.lane.b32.xlu1 %v4760_v3, %s17147_s27  ;;  %5322 = vrot.lane.b32.xlu2 %v5074_v8, %s17141_s23 }
 0xb60   : > { %v5309_v34 = vpop.permute.xlu1 %5308 }
 0xb61   : > { %v5311_v7 = vpop.permute.xlu0 %5310  ;;  %v5072_v13 = vpop.permute.xlu2 %5071 }
 0xb62   : > { %5653 = vrot.lane.b32.xlu2 %v4759_v24, %s17147_s27  ;;  %5320 = vrot.lane.b32.xlu0 %v5072_v13, %s17141_s23  ;;  %v5913_v13 = vmul.f32 %v14595_v11, %v13599_v12 }
 0xb64   : > { %v5929_v4 = vpack.c.bf16 %v5913_v13, %v5913_v13 }
 0xb68   : > { %v4816_v45 = vpop.permute.xlu1 %4815 }
 0xb69   : > { %v5317_v31 = vpop.permute.xlu0 %5316  ;;  %v5070_v50 = vpop.permute.xlu2 %5069 }
 0xb6a   : > { %5374 = vmatpush.bf16.msra.mxu2 %v5317_v31  ;;  %4819 = vrot.lane.b32.xlu2 %v4804_v21, %s17144_s5  ;;  %v4632_v31 = vmul.f32 %v14510_v33, %v13675_v49 }
 0xb6b   : > { %5139 = vrot.lane.b32.xlu0 %v17148_v9, %s17146_s24  ;;  %5318 = vrot.lane.b32.xlu1 %v5070_v50, %s17141_s23  ;;  %v4631_v50 = vmul.f32 %v14478_v10, %v13675_v49 }
 0xb70   : > { %v5315_v63 = vpop.permute.xlu1 %5314 }
 0xb71   : > { %v5138_v41 = vpop.permute.xlu0 %5137  ;;  %v5333_v35 = vpop.permute.xlu2 %5332  ;;  %5375 = vmatpush.bf16.msra.mxu2 %v5315_v63 }
 0xb72   : > { %5423 = vmatpush.bf16.msra.mxu3 %v5333_v35  ;;  %v5911_v35 = vmul.f32 %v14460_v28, %v13599_v12 }
 0xb73   : > { %5663 = vrot.lane.b32.xlu0 %v4764_v18, %s17147_s27 }
 0xb75   : > { %5376 = vmatpush.bf16.msra.mxu2 %v5313_v40 }
 0xb78   : > { %v4818_v14 = vpop.permute.xlu1 %4817 }
 0xb79   : > { %v5136_v0 = vpop.permute.xlu0 %5135  ;;  %5377 = vmatpush.bf16.msra.mxu2 %v5311_v7  ;;  %v5329_v52 = vpop.permute.xlu2 %5328  ;;  %v5912_v7 = vmul.f32 %v14585_v58, %v13599_v12 }
 0xb7d   : > { %5378 = vmatpush.bf16.msra.mxu2 %v5309_v34 }
 0xb80   : > { %v4814_v21 = vpop.permute.xlu1 %4813 }
 0xb81   : > { %v5134_v39 = vpop.permute.xlu0 %5133  ;;  %5379 = vmatpush.bf16.msra.mxu2 %v14726_v2  ;;  %v14778_v40 = vpop.permute.xlu2 %5659 }
 0xb85   : > { %5380 = vmatpush.bf16.msra.mxu2 %v5305_v17  ;;  %v10614_v17 = vld [vmem:[%s16813_s7 + $0xc8] sm:$0xf0] }
 0xb86   : > { %v9730_v8 = vor.u32 %v10614_v17, %v9729_v25 }
 0xb88   : > { %v4812_v43 = vpop.permute.xlu1 %4811 }
 0xb89   : > { %v5132_v38 = vpop.permute.xlu0 %5131  ;;  %5381 = vmatpush.bf16.msra.mxu2 %v5303_v53 }
 0xb8c   : > { %5382 = vmatmul.bf16.vlgmr.msra.gmra.mxu2 %v9730_v8  ;;  %v4645_v8 = vpack.c.bf16 %v4629_v23, %v4629_v23  ;;  %v5907_v23 = vmul.f32 %v14428_v46, %v13599_v12 }
 0xb90   : > { %v4810_v54 = vpop.permute.xlu1 %4809 }
 0xb91   : > { %v5130_v20 = vpop.permute.xlu0 %5129 }
 0xb92   : > { %5338 = vrot.lane.b32.xlu1 %v5130_v20, %s17141_s23  ;;  %v5927_v20 = vpack.c.bf16 %v5911_v35, %v5911_v35 }
 0xb94   : > { %v6031_v17 = vunpack.c.l.b16 %v5927_v20 }
 0xb98   : > { %v4808_v3 = vpop.permute.xlu1 %4807 }
 0xb99   : > { %v5128_v26 = vpop.permute.xlu0 %5127  ;;  %5667 = vrot.lane.b32.xlu0 %v4808_v3, %s17147_s27 }
 0xb9a   : > { %5336 = vrot.lane.b32.xlu2 %v5128_v26, %s17141_s23  ;;  %5671 = vrot.lane.b32.xlu1 %v4812_v43, %s17147_s27  ;;  %v10617_v43 = vld [vmem:[%s16813_s7 + $0xe0] sm:$0xf0] }
 0xba0   : > { %v4806_v18 = vpop.permute.xlu1 %4805 }
 0xba1   : > { %5340 = vrot.lane.b32.xlu0 %v5132_v38, %s17141_s23 }
 0xba2   : > { %5669 = vrot.lane.b32.xlu2 %v4810_v54, %s17147_s27  ;;  %5344 = vrot.lane.b32.xlu1 %v5136_v0, %s17141_s23  ;;  %v6033_v0 = vunpack.c.l.b16 %v5929_v4 }
 0xba8   : > { %v14773_v2 = vpop.permute.xlu1 %5125 }
 0xba9   : > { %5673 = vrot.lane.b32.xlu0 %v4814_v21, %s17147_s27  ;;  %v4647_v21 = vpack.c.bf16 %v4631_v50, %v4631_v50 }
 0xbaa   : > { %5342 = vrot.lane.b32.xlu2 %v5134_v39, %s17141_s23  ;;  %5677 = vrot.lane.b32.xlu1 %v4818_v14, %s17147_s27  ;;  %v9741_v39 = vld [vmem:[%s16813_s7 + $0xd8] sm:$0xf] }
 0xbab   : > { %v9742_v3 = vor.u32 %v10617_v43, %v9741_v39  ;;  %v4743_v26 = vunpack.c.l.b16 %v4647_v21  ;;  %v9753_v43 = vld [vmem:[%s16813_s7 + $0xf0] sm:$0xf] }
 0xbad   : > { %5387 = vmatmul.bf16.gmra.mxu2 %v9742_v3 }
 0xbb0   : > { %v5331_v53 = vpop.permute.xlu1 %5330 }
 0xbb1   : > { %5346 = vrot.lane.b32.xlu0 %v5138_v41, %s17141_s23  ;;  %5424 = vmatpush.bf16.msra.mxu3 %v5331_v53  ;;  %v4648_v41 = vpack.c.bf16 %v4632_v31, %v4632_v31 }
 0xbb2   : > { %5675 = vrot.lane.b32.xlu2 %v4816_v45, %s17147_s27  ;;  %5665 = vrot.lane.b32.xlu1 %v4806_v18, %s17147_s27  ;;  %v5928_v45 = vpack.c.bf16 %v5912_v7, %v5912_v7  ;;  %v5926_v18 = vpack.c.bf16 %v5910_v48, %v5910_v48  ;;  %v5908_v7 = vmul.f32 %v14432_v44, %v13599_v12 }
 0xbb3   : > { %v4744_v54 = vunpack.c.l.b16 %v4648_v41 }
 0xbb4   : > { %v5323_v27 = vpop.permute.xlu2 %5322  ;;  %v6032_v63 = vunpack.c.l.b16 %v5928_v45  ;;  %v4741_v45 = vunpack.c.l.b16 %v4645_v8  ;;  %v5924_v50 = vpack.c.bf16 %v5908_v7, %v5908_v7 }
 0xbb5   : > { %5425 = vmatpush.bf16.msra.mxu3 %v5329_v52  ;;  %v4630_v52 = vmul.f32 %v14470_v47, %v13675_v49  ;;  %v4758_v25 = vpack.c.b16 %v4744_v54, %v4743_v26 }
 0xbb6   : > { %v6042_v38 = vpack.c.b16 %v6033_v0, %v6032_v63  ;;  %v6028_v48 = vunpack.c.l.b16 %v5924_v50 }
 0xbb8   : > { %v14793_v61 = vpop.permute.xlu1 %5661 }
 0xbba   : > { %4875 = vrot.lane.b32.xlu1 %v17150_v62, %s17149_s17  ;;  %v5909_v62 = vmul.f32 %v14446_v30, %v13599_v12 }
 0xbbc   : > { %v5327_v34 = vpop.permute.xlu0 %5326  ;;  %v14795_v24 = vpop.permute.xlu2 %5653  ;;  %v5925_v31 = vpack.c.bf16 %v5909_v62, %v5909_v62  ;;  %v5904_v62 = vmul.f32 %v14464_v56, %v13599_v12 }
 0xbbd   : > { %5426 = vmatpush.bf16.msra.mxu3 %v5327_v34  ;;  %v6030_v34 = vunpack.c.l.b16 %v5926_v18  ;;  %v4704_v18 = vmul.f32 %v14460_v28, %v13637_v15 }
 0xbbe   : > { %v6029_v35 = vunpack.c.l.b16 %v5925_v31  ;;  %v5920_v50 = vpack.c.bf16 %v5904_v62, %v5904_v62 }
 0xbbf   : > { %v6041_v13 = vpack.c.b16 %v6031_v17, %v6030_v34  ;;  %v4703_v17 = vmul.f32 %v14456_v6, %v13637_v15  ;;  %v5905_v34 = vmul.f32 %v14450_v60, %v13599_v12 }
 0xbc0   : > { %v6040_v54 = vpack.c.b16 %v6029_v35, %v6028_v48 }
 0xbc2   : > { %6058 = vrot.lane.b32.xlu1 %v17151_v57, %s17144_s5  ;;  %v4705_v57 = vmul.f32 %v14585_v58, %v13637_v15 }
 0xbc4   : > { %v5325_v9 = vpop.permute.xlu1 %5324  ;;  %v4820_v14 = vpop.permute.xlu2 %4819  ;;  %v4721_v21 = vpack.c.bf16 %v4705_v57, %v4705_v57  ;;  %v4719_v57 = vpack.c.bf16 %v4703_v17, %v4703_v17 }
 0xbc5   : > { %5427 = vmatpush.bf16.msra.mxu3 %v5325_v9  ;;  %5679 = vrot.lane.b32.xlu0 %v4820_v14, %s17147_s27  ;;  %v14825_v53 = vpop.permute.xlu0 %5657  ;;  %v4706_v9 = vmul.f32 %v14595_v11, %v13637_v15  ;;  %v5906_v14 = vmul.f32 %v14442_v1, %v13599_v12 }
 0xbc6   : > { %v4849_v26 = vunpack.c.l.b16 %v4721_v21  ;;  %v4847_v35 = vunpack.c.l.b16 %v4719_v57  ;;  %v6024_v21 = vunpack.c.l.b16 %v5920_v50 }
 0xbc7   : > { %v4722_v39 = vpack.c.bf16 %v4706_v9, %v4706_v9  ;;  %v5922_v20 = vpack.c.bf16 %v5906_v14, %v5906_v14  ;;  %v5921_v9 = vpack.c.bf16 %v5905_v34, %v5905_v34  ;;  %v4701_v14 = vmul.f32 %v14432_v44, %v13637_v15 }
 0xbc8   : > { %v4699_v34 = vmul.f32 %v14442_v1, %v13637_v15 }
 0xbc9   : > { %5428 = vmatpush.bf16.msra.mxu3 %v5323_v27  ;;  %v4646_v27 = vpack.c.bf16 %v4630_v52, %v4630_v52  ;;  %v5923_v52 = vpack.c.bf16 %v5907_v23, %v5907_v23  ;;  %v6026_v8 = vunpack.c.l.b16 %v5922_v20  ;;  %v6025_v48 = vunpack.c.l.b16 %v5921_v9 }
 0xbca   : > { %6056 = vrot.lane.b32.xlu1 %v6042_v38, %s17144_s5  ;;  %v10620_v38 = vld [vmem:[%s16813_s7 + $0xf8] sm:$0xf0]  ;;  %v5903_v23 = vmul.f32 %v14510_v33, %v13599_v12  ;;  %v4717_v20 = vpack.c.bf16 %v4701_v14, %v4701_v14  ;;  %v4715_v9 = vpack.c.bf16 %v4699_v34, %v4699_v34 }
 0xbcb   : > { %v4742_v4 = vunpack.c.l.b16 %v4646_v27  ;;  %v9754_v3 = vor.u32 %v10620_v38, %v9753_v43  ;;  %v6027_v31 = vunpack.c.l.b16 %v5923_v52 }
 0xbcc   : > { %v14839_v0 = vpop.permute.xlu1 %5655  ;;  %v5919_v52 = vpack.c.bf16 %v5903_v23, %v5903_v23  ;;  %v4697_v23 = vmul.f32 %v14464_v56, %v13637_v15 }
 0xbcd   : > { %5651 = vrot.lane.b32.xlu0 %v4758_v25, %s17147_s27  ;;  %v4757_v41 = vpack.c.b16 %v4742_v4, %v4741_v45  ;;  %5392 = vmatmul.bf16.gmra.mxu2 %v9754_v3  ;;  %v4850_v25 = vunpack.c.l.b16 %v4722_v39  ;;  %v4720_v45 = vpack.c.bf16 %v4704_v18, %v4704_v18  ;;  %v6039_v4 = vpack.c.b16 %v6027_v31, %v6026_v8  ;;  %v9765_v3 = vld [vmem:[%s16813_s7 + $0x108] sm:$0xf]  ;;  %v10613_v18 = vld [vmem:[%s16813_s7 + $0xc4] sm:$0xf]  ;;  %v9731_v8 = vld [vmem:[%s16813_s7 + $0xcc] sm:$0xf0] }
 0xbce   : > { %v4700_v31 = vmul.f32 %v14428_v46, %v13637_v15  ;;  %v6023_v57 = vunpack.c.l.b16 %v5919_v52  ;;  %v5941_v52 = vmul.f32 %v14446_v30, %v17143_v51 }
 0xbd2   : > { %6054 = vrot.lane.b32.xlu1 %v6041_v13, %s17144_s5  ;;  %v4859_v13 = vpack.c.b16 %v4850_v25, %v4849_v26  ;;  %v10623_v26 = vld [vmem:[%s16813_s7 + $0x110] sm:$0xf0]  ;;  %v5944_v25 = vmul.f32 %v14585_v58, %v17143_v51 }
 0xbd3   : > { %v9766_v17 = vor.u32 %v10623_v26, %v9765_v3  ;;  %v10626_v26 = vld [vmem:[%s16813_s7 + $0x128] sm:$0xf0] }
 0xbd4   : > { %v5321_v63 = vpop.permute.xlu0 %5320 }
 0xbd5   : > { %5429 = vmatpush.bf16.msra.mxu3 %v5321_v63  ;;  %5649 = vrot.lane.b32.xlu0 %v4757_v41, %s17147_s27  ;;  %v4848_v63 = vunpack.c.l.b16 %v4720_v45  ;;  %v4702_v41 = vmul.f32 %v14446_v30, %v13637_v15  ;;  %v4845_v45 = vunpack.c.l.b16 %v4717_v20  ;;  %v4714_v20 = vpack.c.bf16 %v4698_v36, %v4698_v36 }
 0xbd7   : > { %v4858_v43 = vpack.c.b16 %v4848_v63, %v4847_v35  ;;  %v4718_v38 = vpack.c.bf16 %v4702_v41, %v4702_v41  ;;  %v4716_v41 = vpack.c.bf16 %v4700_v31, %v4700_v31  ;;  %v5957_v31 = vpack.c.bf16 %v5941_v52, %v5941_v52 }
 0xbd9   : > { %v4846_v62 = vunpack.c.l.b16 %v4718_v38  ;;  %v6085_v42 = vunpack.c.l.b16 %v5957_v31 }
 0xbda   : > { %6052 = vrot.lane.b32.xlu1 %v6040_v54, %s17144_s5  ;;  %v5902_v54 = vmul.f32 %v14478_v10, %v13599_v12 }
 0xbdb   : > { %v4857_v50 = vpack.c.b16 %v4846_v62, %v4845_v45  ;;  %v4696_v62 = vmul.f32 %v14510_v33, %v13637_v15 }
 0xbdd   : > { %v5140_v27 = vpop.permute.xlu0 %5139  ;;  %v5319_v7 = vpop.permute.xlu1 %5318  ;;  %4873 = vrot.lane.b32.xlu0 %v4859_v13, %s17149_s17  ;;  %v5945_v13 = vmul.f32 %v14595_v11, %v17143_v51  ;;  %5397 = vmatmul.bf16.gmra.mxu2 %v9766_v17 }
 0xbde   : > { %5348 = vrot.lane.b32.xlu2 %v5140_v27, %s17141_s23  ;;  %5430 = vmatpush.bf16.msra.mxu3 %v5319_v7  ;;  %v9734_v27 = vor.u32 %v10613_v18, %v9731_v8  ;;  %v5918_v7 = vpack.c.bf16 %v5902_v54, %v5902_v54  ;;  %v4713_v54 = vpack.c.bf16 %v4697_v23, %v4697_v23  ;;  %v10616_v18 = vld [vmem:[%s16813_s7 + $0xdc] sm:$0xf]  ;;  %v4842_v8 = vunpack.c.l.b16 %v4714_v20 }
 0xbdf   : > { %v5961_v63 = vpack.c.bf16 %v5945_v13, %v5945_v13  ;;  %v4695_v13 = vmul.f32 %v14478_v10, %v13637_v15 }
 0xbe0   : > { %v4841_v17 = vunpack.c.l.b16 %v4713_v54  ;;  %v9755_v54 = vld [vmem:[%s16813_s7 + $0xfc] sm:$0xf0] }
 0xbe1   : > { %5431 = vmatmul.bf16.vlgmr.msra.gmra.mxu3 %v9734_v27  ;;  %v6089_v5 = vunpack.c.l.b16 %v5961_v63  ;;  %v4711_v37 = vpack.c.bf16 %v4695_v13, %v4695_v13  ;;  %v5939_v63 = vmul.f32 %v14428_v46, %v17143_v51 }
 0xbe2   : > { %6050 = vrot.lane.b32.xlu1 %v6039_v4, %s17144_s5  ;;  %v5960_v4 = vpack.c.bf16 %v5944_v25, %v5944_v25  ;;  %v9743_v25 = vld [vmem:[%s16813_s7 + $0xe4] sm:$0xf0] }
 0xbe3   : > { %v9746_v34 = vor.u32 %v10616_v18, %v9743_v25  ;;  %v5901_v25 = vmul.f32 %v14470_v47, %v13599_v12 }
 0xbe4   : > { %v6088_v14 = vunpack.c.l.b16 %v5960_v4  ;;  %v4712_v4 = vpack.c.bf16 %v4696_v62, %v4696_v62 }
 0xbe5   : > { %v5664_v39 = vpop.permute.xlu0 %5663  ;;  %4871 = vrot.lane.b32.xlu0 %v4858_v43, %s17149_s17  ;;  %v5917_v13 = vpack.c.bf16 %v5901_v25, %v5901_v25 }
 0xbe6   : > { %5334 = vrot.lane.b32.xlu2 %v14773_v2, %s17141_s23  ;;  %5721 = vmatpush.bf16.msrb.mxu1 %v5664_v39  ;;  %v6038_v2 = vpack.c.b16 %v6025_v48, %v6024_v21  ;;  %v5943_v21 = vmul.f32 %v14460_v28, %v17143_v51  ;;  %v4843_v48 = vunpack.c.l.b16 %v4715_v9  ;;  %v6098_v39 = vpack.c.b16 %v6089_v5, %v6088_v14 }
 0xbe7   : > { %v4693_v9 = vmul.f32 %v14506_v22, %v13637_v15  ;;  %v5955_v5 = vpack.c.bf16 %v5939_v63, %v5939_v63  ;;  %v9801_v63 = vld [vmem:[%s16813_s7 + $0x150] sm:$0xf] }
 0xbe8   : > { %v5959_v43 = vpack.c.bf16 %v5943_v21, %v5943_v21 }
 0xbe9   : > { %v4709_v36 = vpack.c.bf16 %v4693_v9, %v4693_v9  ;;  %v6083_v52 = vunpack.c.l.b16 %v5955_v5  ;;  %v10622_v5 = vld [vmem:[%s16813_s7 + $0x10c] sm:$0xf] }
 0xbea   : > { %5722 = vmatpush.bf16.msrb.mxu1 %v14793_v61  ;;  %6048 = vrot.lane.b32.xlu1 %v6038_v2, %s17144_s5  ;;  %v6022_v61 = vunpack.c.l.b16 %v5918_v7  ;;  %v6087_v2 = vunpack.c.l.b16 %v5959_v43  ;;  %v5940_v7 = vmul.f32 %v14432_v44, %v17143_v51 }
 0xbeb   : > { %v4837_v18 = vunpack.c.l.b16 %v4709_v36  ;;  %v5932_v36 = vmul.f32 %v14506_v22, %v17143_v51 }
 0xbec   : > { %v6037_v35 = vpack.c.b16 %v6023_v57, %v6022_v61  ;;  %v4855_v57 = vpack.c.b16 %v4842_v8, %v4841_v17 }
 0xbed   : > { %4869 = vrot.lane.b32.xlu0 %v4857_v50, %s17149_s17  ;;  %v4840_v50 = vunpack.c.l.b16 %v4712_v4 }
 0xbee   : > { %6114 = vrot.lane.b32.xlu2 %v6099_v29, %s17149_s17  ;;  %5723 = vmatpush.bf16.msrb.mxu1 %v14778_v40  ;;  %v5942_v29 = vmul.f32 %v14456_v6, %v17143_v51  ;;  %v4844_v40 = vunpack.c.l.b16 %v4716_v41  ;;  %v4839_v41 = vunpack.c.l.b16 %v4711_v37 }
 0xbf0   : > { %v4856_v38 = vpack.c.b16 %v4844_v40, %v4843_v48  ;;  %v5958_v3 = vpack.c.bf16 %v5942_v29, %v5942_v29  ;;  %v4854_v23 = vpack.c.b16 %v4840_v50, %v4839_v41  ;;  %v9789_v29 = vld [vmem:[%s16813_s7 + $0x138] sm:$0xf]  ;;  %v10629_v40 = vld [vmem:[%s16813_s7 + $0x140] sm:$0xf0]  ;;  %v10632_v41 = vld [vmem:[%s16813_s7 + $0x158] sm:$0xf0] }
 0xbf1   : > { %5436 = vmatmul.bf16.gmra.mxu3 %v9746_v34 }
 0xbf2   : > { %5724 = vmatpush.bf16.msrb.mxu1 %v14825_v53  ;;  %6046 = vrot.lane.b32.xlu1 %v6037_v35, %s17144_s5  ;;  %v9777_v53 = vld [vmem:[%s16813_s7 + $0x120] sm:$0xf]  ;;  %v6086_v27 = vunpack.c.l.b16 %v5958_v3  ;;  %v4694_v35 = vmul.f32 %v14470_v47, %v13637_v15  ;;  %v5936_v3 = vmul.f32 %v14464_v56, %v17143_v51 }
 0xbf4   : > { %v6097_v45 = vpack.c.b16 %v6087_v2, %v6086_v27  ;;  %v4710_v43 = vpack.c.bf16 %v4694_v35, %v4694_v35  ;;  %v5900_v2 = vmul.f32 %v14506_v22, %v13599_v12  ;;  %v5952_v62 = vpack.c.bf16 %v5936_v3, %v5936_v3  ;;  %v14979_v4 = vpop.permute.xlu2 %5336 }
 0xbf5   : > { %4867 = vrot.lane.b32.xlu0 %v4856_v38, %s17149_s17  ;;  %v9790_v38 = vor.u32 %v10629_v40, %v9789_v29  ;;  %v9767_v29 = vld [vmem:[%s16813_s7 + $0x114] sm:$0xf0] }
 0xbf6   : > { %6112 = vrot.lane.b32.xlu2 %v6098_v39, %s17149_s17  ;;  %5725 = vmatpush.bf16.msrb.mxu1 %v14839_v0  ;;  %v9778_v0 = vor.u32 %v10626_v26, %v9777_v53  ;;  %v10619_v39 = vld [vmem:[%s16813_s7 + $0xf4] sm:$0xf]  ;;  %v5937_v53 = vmul.f32 %v14450_v60, %v17143_v51 }
 0xbf7   : > { %v9758_v26 = vor.u32 %v10619_v39, %v9755_v54  ;;  %v5933_v39 = vmul.f32 %v14470_v47, %v17143_v51 }
 0xbf8   : > { %5402 = vmatmul.bf16.gmra.mxu2 %v9778_v0  ;;  %v4838_v0 = vunpack.c.l.b16 %v4710_v43  ;;  %v5953_v34 = vpack.c.bf16 %v5937_v53, %v5937_v53  ;;  %v9770_v43 = vor.u32 %v10622_v5, %v9767_v29  ;;  %v5948_v53 = vpack.c.bf16 %v5932_v36, %v5932_v36 }
 0xbfa   : > { %5726 = vmatpush.bf16.msrb.mxu1 %v14795_v24  ;;  %6291 = vrot.lane.b32.xlu1 %v6003_v19, %s17152_s3  ;;  %v5956_v24 = vpack.c.bf16 %v5940_v7, %v5940_v7  ;;  %v5938_v19 = vmul.f32 %v14442_v1, %v17143_v51  ;;  %v4853_v27 = vpack.c.b16 %v4838_v0, %v4837_v18  ;;  %v6081_v31 = vunpack.c.l.b16 %v5953_v34 }
 0xbfb   : > { %v5916_v7 = vpack.c.bf16 %v5900_v2, %v5900_v2  ;;  %v6076_v18 = vunpack.c.l.b16 %v5948_v53  ;;  %v5880_v2 = vmul.f32 %v14585_v58, %v17145_v59  ;;  %v5881_v0 = vmul.f32 %v14595_v11, %v17145_v59  ;;  %v10635_v58 = vld [vmem:[%s16813_s7 + $0x170] sm:$0xf0]  ;;  %v10590_v53 = vld [vmem:[%s16813_s7 + $0x8] sm:$0xf0] }
 0xbfc   : > { %v6084_v61 = vunpack.c.l.b16 %v5956_v24  ;;  %v5954_v48 = vpack.c.bf16 %v5938_v19, %v5938_v19  ;;  %v6021_v19 = vunpack.c.l.b16 %v5917_v13  ;;  %v9813_v13 = vld [vmem:[%s16813_s7 + $0x168] sm:$0xf] }
 0xbfd   : > { %4865 = vrot.lane.b32.xlu0 %v4855_v57, %s17149_s17  ;;  %v5935_v57 = vmul.f32 %v14510_v33, %v17143_v51  ;;  %v6020_v24 = vunpack.c.l.b16 %v5916_v7  ;;  %v5897_v7 = vpack.c.bf16 %v5881_v0, %v5881_v0  ;;  %v9803_v0 = vld [vmem:[%s16813_s7 + $0x15c] sm:$0xf0] }
 0xbfe   : > { %6110 = vrot.lane.b32.xlu2 %v6097_v45, %s17149_s17  ;;  %v6096_v21 = vpack.c.b16 %v6085_v42, %v6084_v61  ;;  %v6082_v20 = vunpack.c.l.b16 %v5954_v48  ;;  %v6080_v45 = vunpack.c.l.b16 %v5952_v62  ;;  %v5934_v42 = vmul.f32 %v14478_v10, %v17143_v51 }
 0xbff   : > { %v5951_v61 = vpack.c.bf16 %v5935_v57, %v5935_v57  ;;  %v6036_v35 = vpack.c.b16 %v6021_v19, %v6020_v24  ;;  %v9802_v48 = vor.u32 %v10632_v41, %v9801_v63  ;;  %v5896_v62 = vpack.c.bf16 %v5880_v2, %v5880_v2  ;;  %v10625_v57 = vld [vmem:[%s16813_s7 + $0x124] sm:$0xf]  ;;  %v9779_v24 = vld [vmem:[%s16813_s7 + $0x12c] sm:$0xf0]  ;;  %v10631_v2 = vld [vmem:[%s16813_s7 + $0x154] sm:$0xf] }
 0xc00   : > { %v6095_v8 = vpack.c.b16 %v6083_v52, %v6082_v20  ;;  %v6094_v9 = vpack.c.b16 %v6081_v31, %v6080_v45  ;;  %v9814_v45 = vor.u32 %v10635_v58, %v9813_v13  ;;  %v5993_v11 = vunpack.c.l.b16 %v5897_v7  ;;  %v9837_v58 = vld [vmem:[%s16813_s7 + $0x18] sm:$0xf] }
 0xc01   : > { %5441 = vmatmul.bf16.gmra.mxu3 %v9758_v26  ;;  %v5949_v26 = vpack.c.bf16 %v5933_v39, %v5933_v39  ;;  %v5992_v31 = vunpack.c.l.b16 %v5896_v62 }
 0xc03   : > { %v6077_v52 = vunpack.c.l.b16 %v5949_v26 }
 0xc04   : > { %v14949_v14 = vpop.permute.xlu1 %5338 }
 0xc05   : > { %4863 = vrot.lane.b32.xlu0 %v4854_v23, %s17149_s17  ;;  %v6079_v23 = vunpack.c.l.b16 %v5951_v61 }
 0xc06   : > { %6108 = vrot.lane.b32.xlu2 %v6096_v21, %s17149_s17  ;;  %v5950_v21 = vpack.c.bf16 %v5934_v42, %v5934_v42  ;;  %v9782_v42 = vor.u32 %v10625_v57, %v9779_v24  ;;  %v10634_v24 = vld [vmem:[%s16813_s7 + $0x16c] sm:$0xf] }
 0xc08   : > { %5407 = vmatmul.bf16.gmra.mxu2 %v9790_v38  ;;  %v6078_v40 = vunpack.c.l.b16 %v5950_v21  ;;  %v15005_v38 = vpop.permute.xlu2 %5669 }
 0xc0a   : > { %v6093_v3 = vpack.c.b16 %v6079_v23, %v6078_v40  ;;  %v9791_v23 = vld [vmem:[%s16813_s7 + $0x144] sm:$0xf0] }
 0xc0b   : > { %v14981_v37 = vpop.permute.xlu0 %5667 }
 0xc0c   : > { %v14973_v17 = vpop.permute.xlu1 %5671 }
 0xc0d   : > { %4861 = vrot.lane.b32.xlu0 %v4853_v27, %s17149_s17 }
 0xc0e   : > { %6106 = vrot.lane.b32.xlu2 %v6095_v8, %s17149_s17  ;;  %v6092_v8 = vpack.c.b16 %v6077_v52, %v6076_v18 }
 0xc0f   : > { %v15040_v5 = vpop.f32.mrf.mxu2 }
 0xc10   : > { %v5343_v34 = vpop.permute.xlu2 %5342 }
 0xc11   : > { %5446 = vmatmul.bf16.gmra.mxu3 %v9770_v43 }
 0xc13   : > { %v5341_v54 = vpop.permute.xlu0 %5340 }
 0xc14   : > { %v14985_v50 = vpop.permute.xlu1 %5344 }
 0xc15   : > { %6044 = vrot.lane.b32.xlu0 %v6036_v35, %s17144_s5 }
 0xc16   : > { %6104 = vrot.lane.b32.xlu2 %v6094_v9, %s17149_s17  ;;  %v6002_v9 = vpack.c.b16 %v5993_v11, %v5992_v31 }
 0xc18   : > { %5412 = vmatmul.bf16.gmra.mxu2 %v9802_v48  ;;  %v5676_v61 = vpop.permute.xlu2 %5675  ;;  %v10628_v48 = vld [vmem:[%s16813_s7 + $0x13c] sm:$0xf] }
 0xc19   : > { %v9794_v29 = vor.u32 %v10628_v48, %v9791_v23  ;;  %v9749_v23 = vld [vmem:[%s16813_s7 + $0xe0] sm:$0xf] }
 0xc1b   : > { %v5674_v27 = vpop.permute.xlu0 %5673 }
 0xc1c   : > { %v5678_v20 = vpop.permute.xlu1 %5677 }
 0xc1e   : > { %6102 = vrot.lane.b32.xlu2 %v6093_v3, %s17149_s17  ;;  %v9825_v3 = vld [vmem:[%s16813_s7] sm:$0xf] }
 0xc21   : > { %5451 = vmatmul.bf16.gmra.mxu3 %v9782_v42 }
 0xc23   : > { %v5347_v63 = vpop.permute.xlu0 %5346 }
 0xc24   : > { %v15012_v25 = vpop.permute.xlu1 %5665 }
 0xc26   : > { %6100 = vrot.lane.b32.xlu2 %v6092_v8, %s17149_s17  ;;  %v9806_v8 = vor.u32 %v10631_v2, %v9803_v0  ;;  %v9849_v2 = vld [vmem:[%s16813_s7 + $0x30] sm:$0xf]  ;;  %v10596_v0 = vld [vmem:[%s16813_s7 + $0x38] sm:$0xf0] }
 0xc28   : > { %5417 = vmatmul.bf16.gmra.mxu2 %v9814_v45 }
 0xc2c   : > { %v15027_v19 = vpop.permute.xlu1 %4875 }
 0xc2e   : > { %6289 = vrot.lane.b32.xlu2 %v6002_v9, %s17152_s3  ;;  %v9815_v9 = vld [vmem:[%s16813_s7 + $0x174] sm:$0xf0] }
 0xc31   : > { %5456 = vmatmul.bf16.gmra.mxu3 %v9794_v29  ;;  %v9839_v29 = vld [vmem:[%s16813_s7 + $0x24] sm:$0xf0] }
 0xc34   : > { %v15030_v41 = vpop.permute.xlu1 %6058 }
 0xc37   : > { %v5680_v35 = vpop.permute.xlu0 %5679 }
 0xc38   : > { %v5349_v21 = vpop.permute.xlu2 %5348  ;;  %5770 = vmatpush.bf16.msrb.mxu2 %v5680_v35 }
 0xc39   : > { %5472 = vmatpush.bf16.msrb.mxu0 %v5349_v21 }
 0xc3c   : > { %v15038_v36 = vpop.permute.xlu1 %6056  ;;  %5771 = vmatpush.bf16.msrb.mxu2 %v5678_v20  ;;  %v15051_v20 = vpop.f32.mrf.mxu2 }
 0xc3d   : > { %5473 = vmatpush.bf16.msrb.mxu0 %v5347_v63  ;;  %v5878_v63 = vmul.f32 %v14456_v6, %v17145_v59  ;;  %v10592_v6 = vld [vmem:[%s16813_s7 + $0x1c] sm:$0xf] }
 0xc3f   : > { %v5652_v40 = vpop.permute.xlu0 %5651 }
 0xc40   : > { %v5335_v39 = vpop.permute.xlu2 %5334  ;;  %5727 = vmatpush.bf16.msrb.mxu1 %v5652_v40  ;;  %5772 = vmatpush.bf16.msrb.mxu2 %v5676_v61  ;;  %v9818_v61 = vor.u32 %v10634_v24, %v9815_v9  ;;  %v5894_v40 = vpack.c.bf16 %v5878_v63, %v5878_v63  ;;  %v10621_v9 = vld [vmem:[%s16813_s7 + $0x100] sm:$0xf0] }
 0xc41   : > { %5474 = vmatpush.bf16.msrb.mxu0 %v14985_v50  ;;  %v9826_v50 = vor.u32 %v10590_v53, %v9825_v3  ;;  %5461 = vmatmul.bf16.gmra.mxu3 %v9806_v8 }
 0xc42   : > { %v5990_v8 = vunpack.c.l.b16 %v5894_v40 }
 0xc44   : > { %v15043_v43 = vpop.permute.xlu1 %6054  ;;  %5773 = vmatpush.bf16.msrb.mxu2 %v5674_v27  ;;  %v15066_v62 = vpop.f32.mrf.mxu2  ;;  %v10615_v27 = vld [vmem:[%s16813_s7 + $0xd0] sm:$0xf0] }
 0xc45   : > { %5475 = vmatpush.bf16.msrb.mxu0 %v5343_v34  ;;  %v9737_v34 = vld [vmem:[%s16813_s7 + $0xc8] sm:$0xf] }
 0xc46   : > { %v9738_v7 = vor.u32 %v10615_v27, %v9737_v34  ;;  %v9850_v27 = vor.u32 %v10596_v0, %v9849_v2 }
 0xc47   : > { %v5650_v26 = vpop.permute.xlu0 %5649 }
 0xc48   : > { %v15053_v18 = vpop.permute.xlu2 %6114  ;;  %5728 = vmatpush.bf16.msrb.mxu1 %v5650_v26  ;;  %5774 = vmatpush.bf16.msrb.mxu2 %v14973_v17 }
 0xc49   : > { %5476 = vmatpush.bf16.msrb.mxu0 %v5341_v54 }
 0xc4b   : > { %5729 = vmatmul.bf16.vlgmr.msrb.gmra.mxu1 %v9826_v50  ;;  %v9842_v50 = vor.u32 %v10592_v6, %v9839_v29 }
 0xc4c   : > { %v15059_v52 = vpop.permute.xlu1 %6052  ;;  %5775 = vmatpush.bf16.msrb.mxu2 %v15005_v38  ;;  %v15094_v57 = vpop.f32.mrf.mxu2 }
 0xc4d   : > { %5477 = vmatpush.bf16.msrb.mxu0 %v14949_v14  ;;  %v10589_v14 = vld [vmem:[%s16813_s7 + $0x4] sm:$0xf] }
 0xc4f   : > { %v4874_v17 = vpop.permute.xlu0 %4873 }
 0xc50   : > { %v6113_v54 = vpop.permute.xlu2 %6112  ;;  %5693 = vrot.lane.b32.xlu0 %v4874_v17, %s17147_s27  ;;  %5776 = vmatpush.bf16.msrb.mxu2 %v14981_v37  ;;  %v10593_v37 = vld [vmem:[%s16813_s7 + $0x20] sm:$0xf0] }
 0xc51   : > { %5478 = vmatpush.bf16.msrb.mxu0 %v14979_v4  ;;  %v9827_v4 = vld [vmem:[%s16813_s7 + $0xc] sm:$0xf0]  ;;  %v9838_v31 = vor.u32 %v10593_v37, %v9837_v58  ;;  %5466 = vmatmul.bf16.gmra.mxu3 %v9818_v61 }
 0xc52   : > { %v9830_v13 = vor.u32 %v10589_v14, %v9827_v4 }
 0xc54   : > { %v15083_v38 = vpop.permute.xlu1 %6050  ;;  %5777 = vmatpush.bf16.msrb.mxu2 %v15012_v25  ;;  %v5879_v25 = vmul.f32 %v14460_v28, %v17145_v59  ;;  %v10618_v28 = vld [vmem:[%s16813_s7 + $0xe8] sm:$0xf0]  ;;  %v15126_v26 = vpop.f32.mrf.mxu2 }
 0xc55   : > { %5479 = vmatpush.bf16.msrb.mxu0 %v5335_v39  ;;  %v9750_v3 = vor.u32 %v10618_v28, %v9749_v23 }
 0xc56   : > { %v5895_v21 = vpack.c.bf16 %v5879_v25, %v5879_v25 }
 0xc57   : > { %v4872_v11 = vpop.permute.xlu0 %4871  ;;  %5778 = vmatmul.bf16.vlgmr.msrb.gmra.mxu2 %v9830_v13  ;;  %v5875_v13 = vmul.f32 %v14428_v46, %v17145_v59  ;;  %v10595_v46 = vld [vmem:[%s16813_s7 + $0x34] sm:$0xf] }
 0xc58   : > { %5480 = vmatmul.bf16.vlgmr.msrb.gmra.mxu0 %v9738_v7  ;;  %v6111_v45 = vpop.permute.xlu2 %6110  ;;  %5691 = vrot.lane.b32.xlu1 %v4872_v11, %s17147_s27  ;;  %v5991_v53 = vunpack.c.l.b16 %v5895_v21  ;;  %v5874_v7 = vmul.f32 %v14442_v1, %v17145_v59  ;;  %v9761_v1 = vld [vmem:[%s16813_s7 + $0xf8] sm:$0xf] }
 0xc59   : > { %6321 = vrot.lane.b32.xlu0 %v6113_v54, %s17152_s3  ;;  %v5876_v54 = vmul.f32 %v14432_v44, %v17145_v59  ;;  %v5891_v61 = vpack.c.bf16 %v5875_v13, %v5875_v13  ;;  %v9762_v63 = vor.u32 %v10621_v9, %v9761_v1  ;;  %v5870_v1 = vmul.f32 %v14478_v10, %v17145_v59  ;;  %v10601_v10 = vld [vmem:[%s16813_s7 + $0x64] sm:$0xf] }
 0xc5a   : > { %v6001_v34 = vpack.c.b16 %v5991_v53, %v5990_v8  ;;  %v5890_v24 = vpack.c.bf16 %v5874_v7, %v5874_v7  ;;  %v10602_v7 = vld [vmem:[%s16813_s7 + $0x68] sm:$0xf0] }
 0xc5b   : > { %5734 = vmatmul.bf16.gmra.mxu1 %v9838_v31  ;;  %v5987_v23 = vunpack.c.l.b16 %v5891_v61 }
 0xc5c   : > { %v15099_v42 = vpop.permute.xlu1 %6048  ;;  %v15146_v58 = vpop.f32.mrf.mxu2 }
 0xc5f   : > { %v4870_v48 = vpop.permute.xlu0 %4869 }
 0xc60   : > { %v6109_v35 = vpop.permute.xlu2 %6108  ;;  %5689 = vrot.lane.b32.xlu2 %v4870_v48, %s17147_s27  ;;  %6319 = vrot.lane.b32.xlu1 %v6111_v45, %s17152_s3  ;;  %v9861_v48 = vld [vmem:[%s16813_s7 + $0x48] sm:$0xf] }
 0xc61   : > { %6305 = vrot.lane.b32.xlu0 %v15038_v36, %s17152_s3  ;;  %v5877_v36 = vmul.f32 %v14446_v30, %v17145_v59  ;;  %v5892_v30 = vpack.c.bf16 %v5876_v54, %v5876_v54 }
 0xc63   : > { %v5893_v14 = vpack.c.bf16 %v5877_v36, %v5877_v36  ;;  %v5988_v45 = vunpack.c.l.b16 %v5892_v30  ;;  %v5873_v36 = vmul.f32 %v14450_v60, %v17145_v59  ;;  %v10598_v60 = vld [vmem:[%s16813_s7 + $0x4c] sm:$0xf] }
 0xc64   : > { %v15124_v39 = vpop.permute.xlu1 %6046  ;;  %v5432_v37 = vpop.f32.mrf.mxu3 }
 0xc65   : > { %v5989_v44 = vunpack.c.l.b16 %v5893_v14  ;;  %v15149_v31 = vadd.f32 %v5432_v37, %v15040_v5  ;;  %v9851_v5 = vld [vmem:[%s16813_s7 + $0x3c] sm:$0xf0] }
 0xc66   : > { %v9854_v21 = vor.u32 %v10595_v46, %v9851_v5 }
 0xc67   : > { %5783 = vmatmul.bf16.gmra.mxu2 %v9842_v50  ;;  %v4868_v11 = vpop.permute.xlu0 %4867  ;;  %v6000_v25 = vpack.c.b16 %v5989_v44, %v5988_v45  ;;  %v5872_v50 = vmul.f32 %v14464_v56, %v17145_v59  ;;  %v9863_v56 = vld [vmem:[%s16813_s7 + $0x54] sm:$0xf0] }
 0xc68   : > { %5485 = vmatmul.bf16.gmra.mxu0 %v9750_v3  ;;  %v6107_v17 = vpop.permute.xlu2 %6106  ;;  %6317 = vrot.lane.b32.xlu2 %v6109_v35, %s17152_s3  ;;  %v5986_v35 = vunpack.c.l.b16 %v5890_v24  ;;  %v15177_v3 = vpop.f32.mrf.mxu2  ;;  %v5871_v24 = vmul.f32 %v14510_v33, %v17145_v59  ;;  %v9875_v33 = vld [vmem:[%s16813_s7 + $0x6c] sm:$0xf0] }
 0xc69   : > { %6287 = vrot.lane.b32.xlu0 %v6001_v34, %s17152_s3  ;;  %6303 = vrot.lane.b32.xlu1 %v15043_v43, %s17152_s3  ;;  %v5888_v54 = vpack.c.bf16 %v5872_v50, %v5872_v50  ;;  %v5889_v34 = vpack.c.bf16 %v5873_v36, %v5873_v36 }
 0xc6a   : > { %v5999_v29 = vpack.c.b16 %v5987_v23, %v5986_v35  ;;  %v5887_v5 = vpack.c.bf16 %v5871_v24, %v5871_v24  ;;  %v6516_v24 = vld [vmem:[%s16814_s8 + $0x20] sm:$0xff] }
 0xc6b   : > { %5739 = vmatmul.bf16.gmra.mxu1 %v9850_v27  ;;  %v10624_v27 = vld [vmem:[%s16813_s7 + $0x118] sm:$0xf0]  ;;  %v5984_v30 = vunpack.c.l.b16 %v5888_v54 }
 0xc6c   : > { %v6292_v4 = vpop.permute.xlu1 %6291  ;;  %v15173_v28 = vpop.f32.mrf.mxu3  ;;  %v5983_v35 = vunpack.c.l.b16 %v5887_v5  ;;  %v9899_v5 = vld [vmem:[%s16813_s7 + $0x9c] sm:$0xf0] }
 0xc6d   : > { %6349 = vmatpush.bf16.msra.mxu0 %v6292_v4  ;;  %v5985_v4 = vunpack.c.l.b16 %v5889_v34 }
 0xc6f   : > { %v4866_v53 = vpop.permute.xlu0 %4865  ;;  %v5998_v45 = vpack.c.b16 %v5985_v4, %v5984_v30  ;;  %v9897_v4 = vld [vmem:[%s16813_s7 + $0x90] sm:$0xf] }
 0xc70   : > { %v6105_v43 = vpop.permute.xlu2 %6104  ;;  %6301 = vrot.lane.b32.xlu2 %v15059_v52, %s17152_s3  ;;  %v10599_v52 = vld [vmem:[%s16813_s7 + $0x50] sm:$0xf0] }
 0xc71   : > { %5687 = vrot.lane.b32.xlu0 %v4868_v11, %s17147_s27  ;;  %6285 = vrot.lane.b32.xlu1 %v6000_v25, %s17152_s3  ;;  %v9862_v40 = vor.u32 %v10599_v52, %v9861_v48  ;;  %v9885_v48 = vld [vmem:[%s16813_s7 + $0x78] sm:$0xf]  ;;  %v10605_v52 = vld [vmem:[%s16813_s7 + $0x80] sm:$0xf0] }
 0xc74   : > { %v5437_v2 = vpop.f32.mrf.mxu3 }
 0xc75   : > { %v15187_v0 = vadd.f32 %v5437_v2, %v15066_v62  ;;  %v15205_v62 = vpop.f32.mrf.mxu2 }
 0xc77   : > { %5788 = vmatmul.bf16.gmra.mxu2 %v9854_v21  ;;  %v4864_v13 = vpop.permute.xlu0 %4863  ;;  %v5868_v21 = vmul.f32 %v14506_v22, %v17145_v59 }
 0xc78   : > { %5490 = vmatmul.bf16.gmra.mxu0 %v9762_v63  ;;  %v15175_v6 = vpop.permute.xlu2 %6102  ;;  %6283 = vrot.lane.b32.xlu2 %v5999_v29, %s17152_s3  ;;  %v9878_v63 = vor.u32 %v10601_v10, %v9875_v33 }
 0xc79   : > { %6315 = vrot.lane.b32.xlu0 %v6107_v17, %s17152_s3  ;;  %5685 = vrot.lane.b32.xlu1 %v4866_v53, %s17147_s27  ;;  %v9773_v17 = vld [vmem:[%s16813_s7 + $0x110] sm:$0xf]  ;;  %v9886_v53 = vor.u32 %v10605_v52, %v9885_v48  ;;  %v5884_v50 = vpack.c.bf16 %v5868_v21, %v5868_v21 }
 0xc7a   : > { %v9774_v14 = vor.u32 %v10624_v27, %v9773_v17 }
 0xc7b   : > { %5744 = vmatmul.bf16.gmra.mxu1 %v9862_v40  ;;  %v5869_v40 = vmul.f32 %v14470_v47, %v17145_v59  ;;  %v5980_v2 = vunpack.c.l.b16 %v5884_v50  ;;  %v6512_v47 = vld [vmem:[%s16814_s8] sm:$0xff]  ;;  %v10636_v50 = vld [vmem:[%s16813_s7 + $0x178] sm:$0xf0] }
 0xc7c   : > { %v15215_v44 = vpop.f32.mrf.mxu3 }
 0xc7d   : > { %v5885_v36 = vpack.c.bf16 %v5869_v40, %v5869_v40  ;;  %v6519_v40 = vld [vmem:[%s16814_s8 + $0x38] sm:$0xff] }
 0xc7f   : > { %v4862_v46 = vpop.permute.xlu0 %4861  ;;  %v5981_v54 = vunpack.c.l.b16 %v5885_v36 }
 0xc80   : > { %v6101_v8 = vpop.permute.xlu2 %6100  ;;  %6323 = vrot.lane.b32.xlu2 %v15053_v18, %s17152_s3  ;;  %v9866_v18 = vor.u32 %v10598_v60, %v9863_v56  ;;  %v10604_v56 = vld [vmem:[%s16813_s7 + $0x7c] sm:$0xf] }
 0xc81   : > { %6299 = vrot.lane.b32.xlu0 %v15083_v38, %s17152_s3  ;;  %5695 = vrot.lane.b32.xlu1 %v15027_v19, %s17147_s27  ;;  %v9873_v38 = vld [vmem:[%s16813_s7 + $0x60] sm:$0xf]  ;;  %v15221_v19 = vpop.f32.mrf.mxu2  ;;  %v5996_v60 = vpack.c.b16 %v5981_v54, %v5980_v2  ;;  %v10610_v2 = vld [vmem:[%s16813_s7 + $0xac] sm:$0xf] }
 0xc82   : > { %v9874_v11 = vor.u32 %v10602_v7, %v9873_v38  ;;  %v6513_v7 = vld [vmem:[%s16814_s8 + $0x8] sm:$0xff]  ;;  %v9911_v54 = vld [vmem:[%s16813_s7 + $0xb4] sm:$0xf0] }
 0xc84   : > { %v5442_v25 = vpop.f32.mrf.mxu3 }
 0xc85   : > { %v15228_v9 = vadd.f32 %v5442_v25, %v15126_v26  ;;  %v5886_v26 = vpack.c.bf16 %v5870_v1, %v5870_v1  ;;  %v9809_v1 = vld [vmem:[%s16813_s7 + $0x158] sm:$0xf] }
 0xc87   : > { %5793 = vmatmul.bf16.gmra.mxu2 %v9866_v18  ;;  %v6515_v18 = vld [vmem:[%s16814_s8 + $0x18] sm:$0xff] }
 0xc88   : > { %5495 = vmatmul.bf16.gmra.mxu0 %v9774_v14  ;;  %v6290_v37 = vpop.permute.xlu2 %6289  ;;  %6307 = vrot.lane.b32.xlu2 %v15030_v41, %s17152_s3  ;;  %v9785_v41 = vld [vmem:[%s16813_s7 + $0x128] sm:$0xf] }
 0xc89   : > { %6350 = vmatpush.bf16.msra.mxu0 %v6290_v37  ;;  %6281 = vrot.lane.b32.xlu0 %v5998_v45, %s17152_s3  ;;  %v15254_v23 = vpop.f32.mrf.mxu2  ;;  %v6045_v37 = vpop.permute.xlu0 %6044 }
 0xc8a   : > { %6313 = vrot.lane.b32.xlu1 %v6105_v43, %s17152_s3  ;;  %v10627_v43 = vld [vmem:[%s16813_s7 + $0x130] sm:$0xf0] }
 0xc8b   : > { %5749 = vmatmul.bf16.gmra.mxu1 %v9874_v11  ;;  %v9786_v61 = vor.u32 %v10627_v43, %v9785_v41  ;;  %v6514_v11 = vld [vmem:[%s16814_s8 + $0x10] sm:$0xff] }
 0xc8c   : > { %v15256_v29 = vpop.f32.mrf.mxu3  ;;  %v10607_v43 = vld [vmem:[%s16813_s7 + $0x94] sm:$0xf] }
 0xc90   : > { %5683 = vrot.lane.b32.xlu2 %v4864_v13, %s17147_s27 }
 0xc91   : > { %5681 = vrot.lane.b32.xlu0 %v4862_v46, %s17147_s27  ;;  %v5408_v17 = vpop.f32.mrf.mxu2  ;;  %v10633_v46 = vld [vmem:[%s16813_s7 + $0x160] sm:$0xf0] }
 0xc92   : > { %6297 = vrot.lane.b32.xlu1 %v15099_v42, %s17152_s3  ;;  %v5982_v42 = vunpack.c.l.b16 %v5886_v26  ;;  %v9810_v10 = vor.u32 %v10633_v46, %v9809_v1  ;;  %v9902_v26 = vor.u32 %v10607_v43, %v9899_v5 }
 0xc94   : > { %v5997_v22 = vpack.c.b16 %v5983_v35, %v5982_v42  ;;  %v5447_v34 = vpop.f32.mrf.mxu3  ;;  %v6518_v35 = vld [vmem:[%s16814_s8 + $0x30] sm:$0xff] }
 0xc95   : > { %v15268_v27 = vadd.f32 %v5447_v34, %v15177_v3  ;;  %v9887_v3 = vld [vmem:[%s16813_s7 + $0x84] sm:$0xf0] }
 0xc96   : > { %v9890_v30 = vor.u32 %v10604_v56, %v9887_v3  ;;  %v6521_v56 = vld [vmem:[%s16814_s8 + $0x48] sm:$0xff]  ;;  %v6522_v3 = vld [vmem:[%s16814_s8 + $0x50] sm:$0xff] }
 0xc97   : > { %5798 = vmatmul.bf16.gmra.mxu2 %v9878_v63  ;;  %v6517_v63 = vld [vmem:[%s16814_s8 + $0x28] sm:$0xff] }
 0xc98   : > { %5500 = vmatmul.bf16.gmra.mxu0 %v9786_v61  ;;  %6311 = vrot.lane.b32.xlu2 %v15175_v6, %s17152_s3  ;;  %v9797_v6 = vld [vmem:[%s16813_s7 + $0x140] sm:$0xf]  ;;  %v9909_v61 = vld [vmem:[%s16813_s7 + $0xa8] sm:$0xf] }
 0xc99   : > { %6309 = vrot.lane.b32.xlu0 %v6101_v8, %s17152_s3  ;;  %v10630_v8 = vld [vmem:[%s16813_s7 + $0x148] sm:$0xf0]  ;;  %v15300_v45 = vpop.f32.mrf.mxu2 }
 0xc9a   : > { %6279 = vrot.lane.b32.xlu1 %v5997_v22, %s17152_s3  ;;  %v9798_v14 = vor.u32 %v10630_v8, %v9797_v6  ;;  %v9821_v22 = vld [vmem:[%s16813_s7 + $0x170] sm:$0xf]  ;;  %v9914_v8 = vor.u32 %v10610_v2, %v9911_v54 }
 0xc9b   : > { %5754 = vmatmul.bf16.gmra.mxu1 %v9886_v53  ;;  %v6520_v53 = vld [vmem:[%s16814_s8 + $0x40] sm:$0xff]  ;;  %v9822_v6 = vor.u32 %v10636_v50, %v9821_v22 }
 0xc9c   : > { %v15294_v38 = vpop.f32.mrf.mxu3 }
 0xca0   : > { %6295 = vrot.lane.b32.xlu2 %v15124_v39, %s17152_s3  ;;  %v10608_v39 = vld [vmem:[%s16813_s7 + $0x98] sm:$0xf0] }
 0xca1   : > { %6530 = vperm.xlu0 %10822, %v6512_v47   ;;  %v9898_v13 = vor.u32 %v10608_v39, %v9897_v4  ;;  %v5413_v33 = vpop.f32.mrf.mxu2 }
 0xca2   : > { %6277 = vrot.lane.b32.xlu1 %v5996_v60, %s17152_s3 }
 0xca4   : > { %v5452_v25 = vpop.f32.mrf.mxu3 }
 0xca5   : > { %v15315_v41 = vadd.f32 %v5452_v25, %v15221_v19  ;;  %v10611_v19 = vld [vmem:[%s16813_s7 + $0xb0] sm:$0xf0] }
 0xca6   : > { %v9910_v21 = vor.u32 %v10611_v19, %v9909_v61 }
 0xca7   : > { %5803 = vmatmul.bf16.gmra.mxu2 %v9890_v30 }
 0xca8   : > { %5505 = vmatmul.bf16.gmra.mxu0 %v9798_v14  ;;  %6293 = vrot.lane.b32.xlu2 %v6045_v37, %s17152_s3 }
 0xca9   : > { %6545 = vperm.xlu0 %10822, %v6515_v18   ;;  %v15339_v42 = vpop.f32.mrf.mxu2 }
 0xcaa   : > { %6535 = vperm.xlu1 %10820, %v6513_v7   ;;  %v6523_v7 = vld [vmem:[%s16814_s8 + $0x58] sm:$0xff] }
 0xcab   : > { %5759 = vmatmul.bf16.gmra.mxu1 %v9898_v13 }
 0xcac   : > { %v15335_v48 = vpop.f32.mrf.mxu3 }
 0xcb0   : > { %6540 = vperm.xlu2 %10821, %v6514_v11  }
 0xcb1   : > { %v5418_v14 = vpop.f32.mrf.mxu2 }
 0xcb2   : > { %6550 = vperm.xlu1 %10820, %v6516_v24  }
 0xcb4   : > { %v5457_v36 = vpop.f32.mrf.mxu3 }
 0xcb5   : > { %v15359_v47 = vadd.f32 %v5457_v36, %v5408_v17 }
 0xcb7   : > { %5808 = vmatmul.bf16.gmra.mxu2 %v9902_v26 }
 0xcb8   : > { %5510 = vmatmul.bf16.gmra.mxu0 %v9810_v10  ;;  %6555 = vperm.xlu2 %10821, %v6517_v63   ;;  %v6524_v10 = vld [vmem:[%s16814_s8 + $0x60] sm:$0xff] }
 0xcb9   : > { %v15378_v37 = vpop.f32.mrf.mxu2 }
 0xcba   : > { %6560 = vperm.xlu1 %10820, %v6518_v35   ;;  %v15337_v52 = vpop.permute.xlu2 %5689 }
 0xcbb   : > { %5764 = vmatmul.bf16.gmra.mxu1 %v9910_v21 }
 0xcbc   : > { %v15369_v17 = vpop.f32.mrf.mxu3 }
 0xcc0   : > { %6565 = vperm.xlu2 %10821, %v6519_v40  }
 0xcc2   : > { %6570 = vperm.xlu1 %10820, %v6520_v53   ;;  %v15361_v34 = vpop.permute.xlu0 %5693  ;;  %v6318_v60 = vpop.permute.xlu2 %6317 }
 0xcc4   : > { %v5462_v11 = vpop.f32.mrf.mxu3 }
 0xcc5   : > { %v15380_v24 = vadd.f32 %v5462_v11, %v5413_v33 }
 0xcc7   : > { %5813 = vmatmul.bf16.gmra.mxu2 %v9914_v8 }
 0xcc8   : > { %5515 = vmatmul.bf16.gmra.mxu0 %v9822_v6  ;;  %v5730_v30 = vpop.f32.mrf.mxu1  ;;  %6575 = vperm.xlu2 %10821, %v6521_v56  }
 0xcca   : > { %6580 = vperm.xlu1 %10820, %v6522_v3   ;;  %v15371_v4 = vpop.permute.xlu1 %5691  ;;  %v6302_v18 = vpop.permute.xlu2 %6301 }
 0xccb   : > { %v6322_v39 = vpop.permute.xlu0 %6321 }
 0xccc   : > { %v15386_v19 = vpop.f32.mrf.mxu3 }
 0xcd0   : > { %v15376_v13 = vpop.f32.mrf.mxu1  ;;  %6585 = vperm.xlu2 %10821, %v6523_v7  }
 0xcd2   : > { %v6320_v1 = vpop.permute.xlu1 %6319  ;;  %v6284_v46 = vpop.permute.xlu2 %6283 }
 0xcd3   : > { %v6306_v25 = vpop.permute.xlu0 %6305 }
 0xcd4   : > { %v5467_v22 = vpop.f32.mrf.mxu3 }
 0xcd5   : > { %v5481_v43 = vpop.f32.mrf.mxu0  ;;  %v15394_v50 = vadd.f32 %v5467_v22, %v5418_v14 }
 0xcd6   : > { %v5482_v5 = vadd.f32 %v5481_v43, %v15149_v31 }
 0xcd8   : > { %v5731_v26 = vadd.f32 %v5730_v30, %v5482_v5  ;;  %v5735_v61 = vpop.f32.mrf.mxu1  ;;  %6590 = vperm.xlu2 %10821, %v6524_v10  }
 0xcda   : > { %v5779_v63 = vpop.f32.mrf.mxu2  ;;  %v6324_v40 = vpop.permute.xlu2 %6323 }
 0xcdb   : > { %v6288_v35 = vpop.permute.xlu0 %6287  ;;  %v15388_v21 = vadd.f32 %v5779_v63, %v5731_v26  ;;  %v6304_v33 = vpop.permute.xlu1 %6303  ;;  %6447 = vmatpush.bf16.msra.mxu2 %v6324_v40 }
 0xcdc   : > { %6351 = vmatpush.bf16.msra.mxu0 %v6288_v35 }
 0xcdd   : > { %v15390_v53 = vpop.f32.mrf.mxu0 }
 0xcdf   : > { %6448 = vmatpush.bf16.msra.mxu2 %v6322_v39 }
 0xce0   : > { %v15392_v31 = vpop.f32.mrf.mxu1 }
 0xce2   : > { %v15396_v36 = vpop.f32.mrf.mxu2  ;;  %v6308_v6 = vpop.permute.xlu2 %6307 }
 0xce3   : > { %v5688_v2 = vpop.permute.xlu0 %5687  ;;  %v6286_v54 = vpop.permute.xlu1 %6285  ;;  %6398 = vmatpush.bf16.msra.mxu1 %v6308_v6  ;;  %6449 = vmatpush.bf16.msra.mxu2 %v6320_v1 }
 0xce4   : > { %6352 = vmatpush.bf16.msra.mxu0 %v6286_v54 }
 0xce5   : > { %v5486_v8 = vpop.f32.mrf.mxu0 }
 0xce6   : > { %v5487_v56 = vadd.f32 %v5486_v8, %v15187_v0 }
 0xce7   : > { %6399 = vmatpush.bf16.msra.mxu1 %v6306_v25  ;;  %6450 = vmatpush.bf16.msra.mxu2 %v6318_v60 }
 0xce8   : > { %v5736_v3 = vadd.f32 %v5735_v61, %v5487_v56  ;;  %v5740_v30 = vpop.f32.mrf.mxu1  ;;  %6353 = vmatpush.bf16.msra.mxu0 %v6284_v46 }
 0xcea   : > { %v5784_v39 = vpop.f32.mrf.mxu2  ;;  %v5684_v5 = vpop.permute.xlu2 %5683 }
 0xceb   : > { %v6316_v7 = vpop.permute.xlu0 %6315  ;;  %v15399_v14 = vadd.f32 %v5784_v39, %v5736_v3  ;;  %v5686_v11 = vpop.permute.xlu1 %5685  ;;  %6400 = vmatpush.bf16.msra.mxu1 %v6304_v33 }
 0xcec   : > { %6451 = vmatpush.bf16.msra.mxu2 %v6316_v7  ;;  %v10681_v7 = vld [vmem:[%s16825_s19] sm:$0xff] }
 0xced   : > { %v15401_v43 = vpop.f32.mrf.mxu0 }
 0xcef   : > { %6401 = vmatpush.bf16.msra.mxu1 %v6302_v18 }
 0xcf0   : > { %v15403_v10 = vpop.f32.mrf.mxu1 }
 0xcf2   : > { %v15405_v1 = vpop.f32.mrf.mxu2  ;;  %v6312_v46 = vpop.permute.xlu2 %6311 }
 0xcf3   : > { %v6300_v0 = vpop.permute.xlu0 %6299  ;;  %v5696_v26 = vpop.permute.xlu1 %5695 }
 0xcf4   : > { %5819 = vmatpush.bf16.msrb.mxu3 %v5696_v26  ;;  %6402 = vmatpush.bf16.msra.mxu1 %v6300_v0 }
 0xcf5   : > { %v5491_v60 = vpop.f32.mrf.mxu0 }
 0xcf6   : > { %v5492_v25 = vadd.f32 %v5491_v60, %v15228_v9 }
 0xcf8   : > { %v5741_v61 = vadd.f32 %v5740_v30, %v5492_v25  ;;  %v5745_v63 = vpop.f32.mrf.mxu1  ;;  %5820 = vmatpush.bf16.msrb.mxu3 %v15361_v34 }
 0xcfa   : > { %v5789_v35 = vpop.f32.mrf.mxu2  ;;  %v6296_v9 = vpop.permute.xlu2 %6295 }
 0xcfb   : > { %v6282_v33 = vpop.permute.xlu0 %6281  ;;  %v15409_v40 = vadd.f32 %v5789_v35, %v5741_v61  ;;  %v9833_v35 = vld [vmem:[%s16813_s7 + $0x8] sm:$0xf] }
 0xcfc   : > { %v6314_v22 = vpop.permute.xlu1 %6313  ;;  %6354 = vmatpush.bf16.msra.mxu0 %v6282_v33  ;;  %5821 = vmatpush.bf16.msrb.mxu3 %v15371_v4  ;;  %v9961_v4 = vld [vmem:[%s16813_s7 + $0x188] sm:$0xf]  ;;  %v10591_v33 = vld [vmem:[%s16813_s7 + $0x10] sm:$0xf0] }
 0xcfd   : > { %6452 = vmatpush.bf16.msra.mxu2 %v6314_v22  ;;  %v15412_v18 = vpop.f32.mrf.mxu0  ;;  %v17153_v22 = vld [vmem:[#allocation23_spill] sm:$0xff] }
 0xd00   : > { %v15414_v54 = vpop.f32.mrf.mxu1  ;;  %5822 = vmatpush.bf16.msrb.mxu3 %v15337_v52  ;;  %v10639_v52 = vld [vmem:[%s16813_s7 + $0x190] sm:$0xf0] }
 0xd01   : > { %6453 = vmatpush.bf16.msra.mxu2 %v6312_v46  ;;  %v9962_v60 = vor.u32 %v10639_v52, %v9961_v4  ;;  %v17154_v4 = vld [vmem:[#allocation46_spill] sm:$0xff] }
 0xd02   : > { %v15417_v6 = vpop.f32.mrf.mxu2  ;;  %v6294_v46 = vpop.permute.xlu2 %6293 }
 0xd03   : > { %v5682_v34 = vpop.permute.xlu0 %5681 }
 0xd04   : > { %v6298_v8 = vpop.permute.xlu1 %6297  ;;  %5823 = vmatpush.bf16.msrb.mxu3 %v5688_v2  ;;  %v10637_v2 = vld [vmem:[%s16813_s7 + $0x184] sm:$0xf] }
 0xd05   : > { %6403 = vmatpush.bf16.msra.mxu1 %v6298_v8  ;;  %v5496_v56 = vpop.f32.mrf.mxu0  ;;  %v10638_v8 = vld [vmem:[%s16813_s7 + $0x188] sm:$0xf0] }
 0xd06   : > { %v5497_v3 = vadd.f32 %v5496_v56, %v15268_v27  ;;  %v9955_v27 = vld [vmem:[%s16813_s7 + $0x18c] sm:$0xf0] }
 0xd08   : > { %v5746_v30 = vadd.f32 %v5745_v63, %v5497_v3  ;;  %5824 = vmatpush.bf16.msrb.mxu3 %v5686_v11  ;;  %v5750_v39 = vpop.f32.mrf.mxu1  ;;  %v9958_v63 = vor.u32 %v10637_v2, %v9955_v27 }
 0xd09   : > { %6404 = vmatpush.bf16.msra.mxu1 %v6296_v9  ;;  %v9834_v9 = vor.u32 %v10591_v33, %v9833_v35 }
 0xd0a   : > { %v5794_v0 = vpop.f32.mrf.mxu2 }
 0xd0b   : > { %v6310_v26 = vpop.permute.xlu0 %6309  ;;  %v15435_v25 = vadd.f32 %v5794_v0, %v5746_v30  ;;  %v9973_v0 = vld [vmem:[%s16813_s7 + $0x1a0] sm:$0xf] }
 0xd0c   : > { %v6280_v11 = vpop.permute.xlu1 %6279  ;;  %6454 = vmatpush.bf16.msra.mxu2 %v6310_v26  ;;  %5825 = vmatpush.bf16.msrb.mxu3 %v5684_v5  ;;  %v9953_v5 = vld [vmem:[%s16813_s7 + $0x180] sm:$0xf]  ;;  %v10642_v26 = vld [vmem:[%s16813_s7 + $0x1a8] sm:$0xf0] }
 0xd0d   : > { %6355 = vmatpush.bf16.msra.mxu0 %v6280_v11  ;;  %v15437_v61 = vpop.f32.mrf.mxu0  ;;  %6405 = vmatpush.bf16.msra.mxu1 %v6294_v46  ;;  %v9954_v52 = vor.u32 %v10638_v8, %v9953_v5  ;;  %v9974_v11 = vor.u32 %v10642_v26, %v9973_v0  ;;  %v9985_v26 = vld [vmem:[%s16813_s7 + $0x1b8] sm:$0xf] }
 0xd0f   : > { %6455 = vmatmul.bf16.vlgmr.msra.gmra.mxu2 %v9962_v60  ;;  %v10640_v60 = vld [vmem:[%s16813_s7 + $0x19c] sm:$0xf] }
 0xd10   : > { %7416 = vmatpush.bf16.msrb.mxu2 %v10681_v7  ;;  %6406 = vmatmul.bf16.vlgmr.msra.gmra.mxu1 %v9958_v63  ;;  %v15454_v3 = vpop.f32.mrf.mxu1  ;;  %v17155_v7 = vld [vmem:[#allocation41_spill] sm:$0xff]  ;;  %v17156_v63 = vld [vmem:[#allocation22_spill] sm:$0xff] }
 0xd11   : > { %5826 = vmatpush.bf16.msrb.mxu3 %v5682_v34 }
 0xd12   : > { %v15452_v56 = vpop.f32.mrf.mxu2 }
 0xd14   : > { %8039 = vmatpush.bf16.msra.mxu2 %v17153_v22  ;;  %v6278_v30 = vpop.permute.xlu1 %6277  ;;  %5827 = vmatmul.bf16.vlgmr.msrb.gmra.mxu3 %v9834_v9  ;;  %v9845_v22 = vld [vmem:[%s16813_s7 + $0x20] sm:$0xf]  ;;  %v10594_v9 = vld [vmem:[%s16813_s7 + $0x28] sm:$0xf0] }
 0xd15   : > { %6356 = vmatpush.bf16.msra.mxu0 %v6278_v30  ;;  %v5501_v2 = vpop.f32.mrf.mxu0  ;;  %v9846_v8 = vor.u32 %v10594_v9, %v9845_v22  ;;  %v9965_v30 = vld [vmem:[%s16813_s7 + $0x198] sm:$0xf]  ;;  %v10597_v9 = vld [vmem:[%s16813_s7 + $0x40] sm:$0xf0] }
 0xd16   : > { %v5502_v34 = vadd.f32 %v5501_v2, %v15315_v41  ;;  %v9967_v41 = vld [vmem:[%s16813_s7 + $0x1a4] sm:$0xf0]  ;;  %v9857_v22 = vld [vmem:[%s16813_s7 + $0x38] sm:$0xf] }
 0xd17   : > { %v9970_v33 = vor.u32 %v10640_v60, %v9967_v41  ;;  %v10645_v60 = vld [vmem:[%s16813_s7 + $0x1c0] sm:$0xf0]  ;;  %v10643_v41 = vld [vmem:[%s16813_s7 + $0x1b4] sm:$0xf] }
 0xd18   : > { %8040 = vmatpush.bf16.msra.mxu2 %v17154_v4  ;;  %v5751_v27 = vadd.f32 %v5750_v39, %v5502_v34  ;;  %6357 = vmatmul.bf16.vlgmr.msra.gmra.mxu0 %v9954_v52  ;;  %v5755_v5 = vpop.f32.mrf.mxu1  ;;  %v10641_v4 = vld [vmem:[%s16813_s7 + $0x1a0] sm:$0xf0] }
 0xd19   : > { %v9966_v2 = vor.u32 %v10641_v4, %v9965_v30  ;;  %v9977_v4 = vld [vmem:[%s16813_s7 + $0x1b0] sm:$0xf] }
 0xd1a   : > { %v5799_v39 = vpop.f32.mrf.mxu2 }
 0xd1b   : > { %v15471_v46 = vadd.f32 %v5799_v39, %v5751_v27 }
 0xd1c   : > { %8041 = vmatpush.bf16.msra.mxu2 %v17155_v7 }
 0xd1d   : > { %v15474_v35 = vpop.f32.mrf.mxu0 }
 0xd1f   : > { %6460 = vmatmul.bf16.gmra.mxu2 %v9974_v11  ;;  %v9986_v11 = vor.u32 %v10645_v60, %v9985_v26 }
 0xd20   : > { %8042 = vmatpush.bf16.msra.mxu2 %v17156_v63  ;;  %6411 = vmatmul.bf16.gmra.mxu1 %v9970_v33  ;;  %v15491_v7 = vpop.f32.mrf.mxu1 }
 0xd22   : > { %v15488_v52 = vpop.f32.mrf.mxu2 }
 0xd24   : > { %5832 = vmatmul.bf16.gmra.mxu3 %v9846_v8  ;;  %v9858_v8 = vor.u32 %v10597_v9, %v9857_v22 }
 0xd25   : > { %v5506_v34 = vpop.f32.mrf.mxu0 }
 0xd26   : > { %v5507_v27 = vadd.f32 %v5506_v34, %v15359_v47  ;;  %v9979_v47 = vld [vmem:[%s16813_s7 + $0x1bc] sm:$0xf0] }
 0xd28   : > { %v5756_v0 = vadd.f32 %v5755_v5, %v5507_v27  ;;  %6362 = vmatmul.bf16.gmra.mxu0 %v9966_v2  ;;  %v9982_v5 = vor.u32 %v10643_v41, %v9979_v47  ;;  %v5760_v30 = vpop.f32.mrf.mxu1  ;;  %v10644_v2 = vld [vmem:[%s16813_s7 + $0x1b8] sm:$0xf0]  ;;  %v9997_v41 = vld [vmem:[%s16813_s7 + $0x1d0] sm:$0xf] }
 0xd29   : > { %v9978_v27 = vor.u32 %v10644_v2, %v9977_v4  ;;  %v10648_v47 = vld [vmem:[%s16813_s7 + $0x1d8] sm:$0xf0] }
 0xd2a   : > { %v5804_v39 = vpop.f32.mrf.mxu2  ;;  %v9998_v9 = vor.u32 %v10648_v47, %v9997_v41  ;;  %v10600_v4 = vld [vmem:[%s16813_s7 + $0x58] sm:$0xf0] }
 0xd2b   : > { %v15505_v63 = vadd.f32 %v5804_v39, %v5756_v0  ;;  %v10646_v39 = vld [vmem:[%s16813_s7 + $0x1cc] sm:$0xf] }
 0xd2d   : > { %v15507_v33 = vpop.f32.mrf.mxu0 }
 0xd2f   : > { %6465 = vmatmul.bf16.gmra.mxu2 %v9986_v11  ;;  %v9991_v11 = vld [vmem:[%s16813_s7 + $0x1d4] sm:$0xf0] }
 0xd30   : > { %6416 = vmatmul.bf16.gmra.mxu1 %v9982_v5  ;;  %v9994_v2 = vor.u32 %v10646_v39, %v9991_v11  ;;  %v10009_v11 = vld [vmem:[%s16813_s7 + $0x1e8] sm:$0xf] }
 0xd32   : > { %v15521_v34 = vpop.f32.mrf.mxu2 }
 0xd34   : > { %5837 = vmatmul.bf16.gmra.mxu3 %v9858_v8 }
 0xd35   : > { %v5511_v0 = vpop.f32.mrf.mxu0 }
 0xd36   : > { %v5512_v26 = vadd.f32 %v5511_v0, %v15380_v24  ;;  %v15536_v24 = vpop.f32.mrf.mxu1  ;;  %v9989_v0 = vld [vmem:[%s16813_s7 + $0x1c8] sm:$0xf] }
 0xd38   : > { %v5761_v60 = vadd.f32 %v5760_v30, %v5512_v26  ;;  %6367 = vmatmul.bf16.gmra.mxu0 %v9978_v27  ;;  %v9869_v30 = vld [vmem:[%s16813_s7 + $0x50] sm:$0xf]  ;;  %v10647_v26 = vld [vmem:[%s16813_s7 + $0x1d0] sm:$0xf0] }
 0xd39   : > { %v9870_v27 = vor.u32 %v10600_v4, %v9869_v30  ;;  %v9990_v41 = vor.u32 %v10647_v26, %v9989_v0  ;;  %v10649_v30 = vld [vmem:[%s16813_s7 + $0x1e4] sm:$0xf]  ;;  %v10003_v4 = vld [vmem:[%s16813_s7 + $0x1ec] sm:$0xf0]  ;;  %v10603_v0 = vld [vmem:[%s16813_s7 + $0x70] sm:$0xf0] }
 0xd3a   : > { %v5809_v22 = vpop.f32.mrf.mxu2  ;;  %v10006_v26 = vor.u32 %v10649_v30, %v10003_v4  ;;  %v10652_v30 = vld [vmem:[%s16813_s7 + $0x1fc] sm:$0xf]  ;;  %v10015_v4 = vld [vmem:[%s16813_s7 + $0x204] sm:$0xf0] }
 0xd3b   : > { %v15538_v5 = vadd.f32 %v5809_v22, %v5761_v60 }
 0xd3d   : > { %v15540_v8 = vpop.f32.mrf.mxu0 }
 0xd3e   : > { %v5765_v22 = vpop.f32.mrf.mxu1 }
 0xd3f   : > { %6470 = vmatmul.bf16.gmra.mxu2 %v9998_v9  ;;  %v10651_v9 = vld [vmem:[%s16813_s7 + $0x1f0] sm:$0xf0] }
 0xd40   : > { %6421 = vmatmul.bf16.gmra.mxu1 %v9994_v2 }
 0xd42   : > { %v15554_v60 = vpop.f32.mrf.mxu2 }
 0xd44   : > { %5842 = vmatmul.bf16.gmra.mxu3 %v9870_v27  ;;  %v9881_v27 = vld [vmem:[%s16813_s7 + $0x68] sm:$0xf] }
 0xd45   : > { %v5516_v47 = vpop.f32.mrf.mxu0 }
 0xd46   : > { %v5517_v59 = vadd.f32 %v5516_v47, %v15394_v50  ;;  %v10010_v50 = vor.u32 %v10651_v9, %v10009_v11  ;;  %v10001_v47 = vld [vmem:[%s16813_s7 + $0x1e0] sm:$0xf]  ;;  %v10654_v9 = vld [vmem:[%s16813_s7 + $0x208] sm:$0xf0] }
 0xd47   : > { %v10021_v11 = vld [vmem:[%s16813_s7 + $0x200] sm:$0xf] }
 0xd48   : > { %v5766_v39 = vadd.f32 %v5765_v22, %v5517_v59  ;;  %6372 = vmatmul.bf16.gmra.mxu0 %v9990_v41  ;;  %v9882_v41 = vor.u32 %v10603_v0, %v9881_v27  ;;  %v10650_v22 = vld [vmem:[%s16813_s7 + $0x1e8] sm:$0xf0]  ;;  %v10018_v0 = vor.u32 %v10652_v30, %v10015_v4  ;;  %v10027_v30 = vld [vmem:[%s16813_s7 + $0x21c] sm:$0xf0] }
 0xd49   : > { %v10606_v27 = vld [vmem:[%s16813_s7 + $0x88] sm:$0xf0] }
 0xd4a   : > { %v5814_v2 = vpop.f32.mrf.mxu2 }
 0xd4b   : > { %v15569_v59 = vadd.f32 %v5814_v2, %v5766_v39  ;;  %v10002_v39 = vor.u32 %v10650_v22, %v10001_v47  ;;  %v10022_v2 = vor.u32 %v10654_v9, %v10021_v11  ;;  %v10653_v47 = vld [vmem:[%s16813_s7 + $0x200] sm:$0xf0]  ;;  %v10655_v9 = vld [vmem:[%s16813_s7 + $0x214] sm:$0xf] }
 0xd4c   : > { %v10657_v11 = vld [vmem:[%s16813_s7 + $0x220] sm:$0xf0] }
 0xd4d   : > { %17157 = vst [vmem:[#allocation30_spill] sm:$0xff] %v15569_v59 }
 0xd4f   : > { %6475 = vmatmul.bf16.gmra.mxu2 %v10010_v50  ;;  %v9893_v50 = vld [vmem:[%s16813_s7 + $0x80] sm:$0xf] }
 0xd50   : > { %6426 = vmatmul.bf16.gmra.mxu1 %v10006_v26  ;;  %v9894_v26 = vor.u32 %v10606_v27, %v9893_v50  ;;  %v10609_v50 = vld [vmem:[%s16813_s7 + $0xa0] sm:$0xf0]  ;;  %v10030_v27 = vor.u32 %v10655_v9, %v10027_v30  ;;  %v10039_v9 = vld [vmem:[%s16813_s7 + $0x234] sm:$0xf0] }
 0xd54   : > { %5847 = vmatmul.bf16.gmra.mxu3 %v9882_v41  ;;  %v10013_v41 = vld [vmem:[%s16813_s7 + $0x1f8] sm:$0xf] }
 0xd55   : > { %v10014_v22 = vor.u32 %v10653_v47, %v10013_v41  ;;  %v10656_v41 = vld [vmem:[%s16813_s7 + $0x218] sm:$0xf0] }
 0xd58   : > { %6377 = vmatmul.bf16.gmra.mxu0 %v10002_v39  ;;  %v10033_v39 = vld [vmem:[%s16813_s7 + $0x218] sm:$0xf] }
 0xd59   : > { %v10034_v4 = vor.u32 %v10657_v11, %v10033_v39  ;;  %v10660_v39 = vld [vmem:[%s16813_s7 + $0x238] sm:$0xf0]  ;;  %v10658_v11 = vld [vmem:[%s16813_s7 + $0x22c] sm:$0xf] }
 0xd5f   : > { %6480 = vmatmul.bf16.gmra.mxu2 %v10022_v2  ;;  %v9905_v2 = vld [vmem:[%s16813_s7 + $0x98] sm:$0xf] }
 0xd60   : > { %6431 = vmatmul.bf16.gmra.mxu1 %v10018_v0  ;;  %v9906_v0 = vor.u32 %v10609_v50, %v9905_v2  ;;  %v10612_v2 = vld [vmem:[%s16813_s7 + $0xb8] sm:$0xf0]  ;;  %v10042_v50 = vor.u32 %v10658_v11, %v10039_v9  ;;  %v15661_v9 = vpop.f32.mrf.mxu3 }
 0xd64   : > { %5852 = vmatmul.bf16.gmra.mxu3 %v9894_v26  ;;  %v10025_v26 = vld [vmem:[%s16813_s7 + $0x210] sm:$0xf] }
 0xd65   : > { %v10026_v47 = vor.u32 %v10656_v41, %v10025_v26  ;;  %v10659_v26 = vld [vmem:[%s16813_s7 + $0x230] sm:$0xf0] }
 0xd68   : > { %6382 = vmatmul.bf16.gmra.mxu0 %v10014_v22  ;;  %v10045_v22 = vld [vmem:[%s16813_s7 + $0x230] sm:$0xf] }
 0xd69   : > { %v10046_v30 = vor.u32 %v10660_v39, %v10045_v22  ;;  %v15657_v22 = vpop.f32.mrf.mxu2  ;;  %v15659_v39 = vpop.f32.mrf.mxu0 }
 0xd6a   : > { %17159 = vst [vmem:[#allocation46_spill] sm:$0xff] %v15657_v22 }
 0xd6b   : > { %17160 = vst [vmem:[#allocation41_spill] sm:$0xff] %v15659_v39 }
 0xd6f   : > { %6485 = vmatmul.bf16.gmra.mxu2 %v10034_v4  ;;  %v9917_v4 = vld [vmem:[%s16813_s7 + $0xb0] sm:$0xf] }
 0xd70   : > { %6436 = vmatmul.bf16.gmra.mxu1 %v10030_v27  ;;  %v9918_v27 = vor.u32 %v10612_v2, %v9917_v4  ;;  %v5435_v2 = vadd.f32 %v15173_v28, %v15051_v20  ;;  %v6531_v28 = vpop.permute.xlu0 %6530 }
 0xd74   : > { %5857 = vmatmul.bf16.gmra.mxu3 %v9906_v0  ;;  %v10037_v0 = vld [vmem:[%s16813_s7 + $0x228] sm:$0xf] }
 0xd75   : > { %v10038_v41 = vor.u32 %v10659_v26, %v10037_v0 }
 0xd78   : > { %6387 = vmatmul.bf16.gmra.mxu0 %v10026_v47  ;;  %v15655_v47 = vpop.f32.mrf.mxu1 }
 0xd79   : > { %17158 = vst [vmem:[#allocation23_spill] sm:$0xff] %v15655_v47 }
 0xd7f   : > { %6490 = vmatmul.bf16.gmra.mxu2 %v10046_v30 }
 0xd80   : > { %6441 = vmatmul.bf16.gmra.mxu1 %v10042_v50 }
 0xd84   : > { %5862 = vmatmul.bf16.gmra.mxu3 %v9918_v27  ;;  %v5484_v27 = vadd.f32 %v15390_v53, %v5435_v2  ;;  %v6536_v53 = vpop.permute.xlu1 %6535 }
 0xd86   : > { %v5733_v15 = vadd.f32 %v15376_v13, %v5484_v27 }
 0xd88   : > { %6392 = vmatmul.bf16.gmra.mxu0 %v10038_v41  ;;  %v5782_v16 = vadd.f32 %v15396_v36, %v5733_v15 }
 0xd8d   : > { %v6407_v11 = vpop.f32.mrf.mxu1 }
 0xd92   : > { %v6456_v30 = vpop.f32.mrf.mxu2 }
 0xd95   : > { %v6358_v4 = vpop.f32.mrf.mxu0  ;;  %v6409_v12 = vpop.f32.mrf.mxu1 }
 0xd96   : > { %v6408_v51 = vadd.f32 %v6407_v11, %v6358_v4 }
 0xd97   : > { %v5828_v50 = vpop.f32.mrf.mxu3 }
 0xd98   : > { %v6457_v0 = vadd.f32 %v6456_v30, %v6408_v51  ;;  %v5829_v26 = vadd.f32 %v5828_v50, %v15388_v21  ;;  %v5440_v21 = vadd.f32 %v15215_v44, %v15094_v57 }
 0xd9a   : > { %v6458_v41 = vpop.f32.mrf.mxu2  ;;  %v6496_v55 = vadd.f32 %v6457_v0, %v5829_v26 }
 0xd9c   : > { %v6608_v11 = vadd.f32 %v6531_v28, %v6496_v55 }
 0xd9d   : > { %v6360_v49 = vpop.f32.mrf.mxu0  ;;  %v6412_v59 = vpop.f32.mrf.mxu1 }
 0xd9e   : > { %v6410_v32 = vadd.f32 %v6409_v12, %v6360_v49  ;;  %v15671_v13 = vmax.f32 %v6608_v11, 0.0  ;;  %v6546_v11 = vpop.permute.xlu0 %6545 }
 0xd9f   : > { %v5830_v22 = vpop.f32.mrf.mxu3 }
 0xda0   : > { %v6459_v47 = vadd.f32 %v6458_v41, %v6410_v32  ;;  %v5831_v20 = vadd.f32 %v5830_v22, %v5782_v16  ;;  %v5489_v32 = vadd.f32 %v15401_v43, %v5440_v21  ;;  %v6541_v41 = vpop.permute.xlu2 %6540 }
 0xda2   : > { %v6497_v4 = vadd.f32 %v6459_v47, %v5831_v20  ;;  %v6461_v39 = vpop.f32.mrf.mxu2  ;;  %v5738_v57 = vadd.f32 %v15392_v31, %v5489_v32 }
 0xda4   : > { %v6609_v51 = vadd.f32 %v6536_v53, %v6497_v4  ;;  %v5787_v22 = vadd.f32 %v15405_v1, %v5738_v57  ;;  %v5445_v53 = vadd.f32 %v15256_v29, %v15146_v58 }
 0xda5   : > { %v6363_v30 = vpop.f32.mrf.mxu0  ;;  %v6414_v12 = vpop.f32.mrf.mxu1 }
 0xda6   : > { %v15673_v2 = vmax.f32 %v6609_v51, 0.0  ;;  %v6413_v15 = vadd.f32 %v6412_v59, %v6363_v30 }
 0xda7   : > { %v5833_v49 = vpop.f32.mrf.mxu3 }
 0xda8   : > { %v10903_v16 = vpack.i.bf16 %v15673_v2, %v15671_v13  ;;  %v6462_v55 = vadd.f32 %v6461_v39, %v6413_v15  ;;  %v5834_v36 = vadd.f32 %v5833_v49, %v15399_v14  ;;  %v5494_v15 = vadd.f32 %v15412_v18, %v5445_v53 }
 0xdaa   : > { %10904 = vrot.lane.b32.xlu0 %v10903_v16, %s17161_s6  ;;  %v6463_v47 = vpop.f32.mrf.mxu2  ;;  %v6498_v50 = vadd.f32 %v6462_v55, %v5834_v36  ;;  %v5743_v58 = vadd.f32 %v15403_v10, %v5494_v15 }
 0xdac   : > { %v6610_v20 = vadd.f32 %v6541_v41, %v6498_v50  ;;  %v5792_v55 = vadd.f32 %v15417_v6, %v5743_v58  ;;  %v6551_v50 = vpop.permute.xlu1 %6550  ;;  %v5450_v41 = vadd.f32 %v15294_v38, %v15205_v62 }
 0xdad   : > { %v6365_v44 = vpop.f32.mrf.mxu0  ;;  %v6417_v27 = vpop.f32.mrf.mxu1 }
 0xdae   : > { %v6415_v59 = vadd.f32 %v6414_v12, %v6365_v44  ;;  %v15684_v31 = vmax.f32 %v6610_v20, 0.0 }
 0xdaf   : > { %v5835_v0 = vpop.f32.mrf.mxu3 }
 0xdb0   : > { %v6464_v26 = vadd.f32 %v6463_v47, %v6415_v59  ;;  %v5836_v43 = vadd.f32 %v5835_v0, %v5787_v22 }
 0xdb2   : > { %v6499_v28 = vadd.f32 %v6464_v26, %v5836_v43  ;;  %v6466_v39 = vpop.f32.mrf.mxu2 }
 0xdb4   : > { %v6611_v14 = vadd.f32 %v6546_v11, %v6499_v28  ;;  %v5499_v11 = vadd.f32 %v15437_v61, %v5450_v41  ;;  %v6561_v61 = vpop.permute.xlu1 %6560 }
 0xdb5   : > { %v6368_v4 = vpop.f32.mrf.mxu0  ;;  %v6419_v30 = vpop.f32.mrf.mxu1 }
 0xdb6   : > { %v15686_v51 = vmax.f32 %v6611_v14, 0.0  ;;  %v6418_v1 = vadd.f32 %v6417_v27, %v6368_v4  ;;  %v5748_v62 = vadd.f32 %v15414_v54, %v5499_v11 }
 0xdb7   : > { %v5838_v21 = vpop.f32.mrf.mxu3 }
 0xdb8   : > { %v10908_v12 = vpack.i.bf16 %v15686_v51, %v15684_v31  ;;  %v5839_v49 = vadd.f32 %v5838_v21, %v15409_v40  ;;  %v6467_v32 = vadd.f32 %v6466_v39, %v6418_v1  ;;  %v6556_v40 = vpop.permute.xlu2 %6555 }
 0xdba   : > { %10909 = vrot.lane.b32.xlu0 %v10908_v12, %s17161_s6  ;;  %v6468_v16 = vpop.f32.mrf.mxu2  ;;  %v6500_v36 = vadd.f32 %v6467_v32, %v5839_v49 }
 0xdbc   : > { %v6612_v59 = vadd.f32 %v6551_v50, %v6500_v36 }
 0xdbd   : > { %v6370_v29 = vpop.f32.mrf.mxu0  ;;  %v6422_v57 = vpop.f32.mrf.mxu1 }
 0xdbe   : > { %v6420_v47 = vadd.f32 %v6419_v30, %v6370_v29  ;;  %v15697_v10 = vmax.f32 %v6612_v59, 0.0  ;;  %v5797_v30 = vadd.f32 %v15452_v56, %v5748_v62 }
 0xdbf   : > { %v5840_v44 = vpop.f32.mrf.mxu3 }
 0xdc0   : > { %v5841_v22 = vadd.f32 %v5840_v44, %v5792_v55  ;;  %v6469_v18 = vadd.f32 %v6468_v16, %v6420_v47  ;;  %v6566_v55 = vpop.permute.xlu2 %6565 }
 0xdc2   : > { %v6501_v27 = vadd.f32 %v6469_v18, %v5841_v22  ;;  %v6471_v0 = vpop.f32.mrf.mxu2 }
 0xdc4   : > { %v6613_v26 = vadd.f32 %v6556_v40, %v6501_v27 }
 0xdc5   : > { %v6373_v43 = vpop.f32.mrf.mxu0  ;;  %v6424_v39 = vpop.f32.mrf.mxu1 }
 0xdc6   : > { %v15699_v20 = vmax.f32 %v6613_v26, 0.0  ;;  %v6423_v6 = vadd.f32 %v6422_v57, %v6373_v43  ;;  %v5455_v57 = vadd.f32 %v15335_v48, %v15254_v23 }
 0xdc7   : > { %v5843_v28 = vpop.f32.mrf.mxu3 }
 0xdc8   : > { %v10913_v14 = vpack.i.bf16 %v15699_v20, %v15697_v10  ;;  %v5844_v4 = vadd.f32 %v5843_v28, %v15435_v25  ;;  %v6472_v53 = vadd.f32 %v6471_v0, %v6423_v6  ;;  %v5504_v18 = vadd.f32 %v15474_v35, %v5455_v57 }
 0xdca   : > { %10914 = vrot.lane.b32.xlu0 %v10913_v14, %s17161_s6  ;;  %v6473_v1 = vpop.f32.mrf.mxu2  ;;  %v6502_v21 = vadd.f32 %v6472_v53, %v5844_v4  ;;  %v5753_v40 = vadd.f32 %v15454_v3, %v5504_v18  ;;  %v6576_v4 = vpop.permute.xlu2 %6575 }
 0xdcc   : > { %v6614_v58 = vadd.f32 %v6561_v61, %v6502_v21  ;;  %v5802_v26 = vadd.f32 %v15488_v52, %v5753_v40 }
 0xdcd   : > { %v6375_v38 = vpop.f32.mrf.mxu0  ;;  %v6427_v16 = vpop.f32.mrf.mxu1 }
 0xdce   : > { %v6425_v15 = vadd.f32 %v6424_v39, %v6375_v38  ;;  %v15710_v54 = vmax.f32 %v6614_v58, 0.0  ;;  %v6571_v39 = vpop.permute.xlu1 %6570 }
 0xdcf   : > { %v5845_v12 = vpop.f32.mrf.mxu3 }
 0xdd0   : > { %v5846_v49 = vadd.f32 %v5845_v12, %v5797_v30  ;;  %v6474_v32 = vadd.f32 %v6473_v1, %v6425_v15 }
 0xdd2   : > { %v6503_v29 = vadd.f32 %v6474_v32, %v5846_v49  ;;  %v6476_v25 = vpop.f32.mrf.mxu2  ;;  %v5460_v49 = vadd.f32 %v15369_v17, %v15300_v45 }
 0xdd4   : > { %v6615_v36 = vadd.f32 %v6566_v55, %v6503_v29 }
 0xdd5   : > { %v6378_v47 = vpop.f32.mrf.mxu0  ;;  %v6429_v0 = vpop.f32.mrf.mxu1 }
 0xdd6   : > { %v15712_v44 = vmax.f32 %v6615_v36, 0.0  ;;  %v6428_v56 = vadd.f32 %v6427_v16, %v6378_v47  ;;  %v5509_v16 = vadd.f32 %v15507_v33, %v5460_v49 }
 0xdd7   : > { %v5848_v22 = vpop.f32.mrf.mxu3 }
 0xdd8   : > { %v10923_v50 = vpack.i.bf16 %v15712_v44, %v15710_v54  ;;  %v5849_v59 = vadd.f32 %v5848_v22, %v15471_v46  ;;  %v6477_v27 = vadd.f32 %v6476_v25, %v6428_v56  ;;  %v5758_v25 = vadd.f32 %v15491_v7, %v5509_v16  ;;  %v6525_v56 = vld [vmem:[%s16814_s8 + $0x68] sm:$0xff] }
 0xdda   : > { %10924 = vrot.lane.b32.xlu1 %v10923_v50, %s17161_s6  ;;  %v6478_v48 = vpop.f32.mrf.mxu2  ;;  %v6504_v43 = vadd.f32 %v6477_v27, %v5849_v59  ;;  %v5807_v45 = vadd.f32 %v15521_v34, %v5758_v25 }
 0xddc   : > { %v6616_v11 = vadd.f32 %v6571_v39, %v6504_v43  ;;  %v6527_v39 = vld [vmem:[%s16814_s8 + $0x78] sm:$0xff] }
 0xddd   : > { %v6380_v23 = vpop.f32.mrf.mxu0  ;;  %v6432_v62 = vpop.f32.mrf.mxu1 }
 0xdde   : > { %v6430_v41 = vadd.f32 %v6429_v0, %v6380_v23  ;;  %v15721_v53 = vmax.f32 %v6616_v11, 0.0  ;;  %v6586_v23 = vpop.permute.xlu2 %6585 }
 0xddf   : > { %v5850_v6 = vpop.f32.mrf.mxu3 }
 0xde0   : > { %v5851_v28 = vadd.f32 %v5850_v6, %v5802_v26  ;;  %v6479_v35 = vadd.f32 %v6478_v48, %v6430_v41  ;;  %v6526_v26 = vld [vmem:[%s16814_s8 + $0x70] sm:$0xff]  ;;  %v6581_v41 = vpop.permute.xlu1 %6580 }
 0xde2   : > { %v6505_v14 = vadd.f32 %v6479_v35, %v5851_v28  ;;  %v6481_v30 = vpop.f32.mrf.mxu2 }
 0xde4   : > { %v6617_v46 = vadd.f32 %v6576_v4, %v6505_v14 }
 0xde5   : > { %v6383_v52 = vpop.f32.mrf.mxu0  ;;  %v6434_v55 = vpop.f32.mrf.mxu1 }
 0xde6   : > { %v15723_v1 = vmax.f32 %v6617_v46, 0.0  ;;  %v6433_v17 = vadd.f32 %v6432_v62, %v6383_v52 }
 0xde7   : > { %v5853_v38 = vpop.f32.mrf.mxu3 }
 0xde8   : > { %v10933_v3 = vpack.i.bf16 %v15723_v1, %v15721_v53  ;;  %v5854_v33 = vadd.f32 %v5853_v38, %v15505_v63  ;;  %v6482_v50 = vadd.f32 %v6481_v30, %v6433_v17  ;;  %v6591_v38 = vpop.permute.xlu2 %6590 }
 0xdea   : > { %10934 = vrot.lane.b32.xlu2 %v10933_v3, %s17161_s6  ;;  %v6483_v57 = vpop.f32.mrf.mxu2  ;;  %v6506_v40 = vadd.f32 %v6482_v50, %v5854_v33 }
 0xdec   : > { %v6618_v6 = vadd.f32 %v6581_v41, %v6506_v40 }
 0xded   : > { %v6385_v29 = vpop.f32.mrf.mxu0 }
 0xdee   : > { %v6435_v36 = vadd.f32 %v6434_v55, %v6385_v29  ;;  %v15752_v35 = vmax.f32 %v6618_v6, 0.0 }
 0xdef   : > { %v5855_v47 = vpop.f32.mrf.mxu3 }
 0xdf0   : > { %v5856_v22 = vadd.f32 %v5855_v47, %v5807_v45  ;;  %v6484_v18 = vadd.f32 %v6483_v57, %v6435_v36  ;;  %v6437_v47 = vpop.f32.mrf.mxu1 }
 0xdf2   : > { %v6507_v59 = vadd.f32 %v6484_v18, %v5856_v22  ;;  %v6486_v45 = vpop.f32.mrf.mxu2  ;;  %v5465_v22 = vadd.f32 %v15386_v19, %v15339_v42 }
 0xdf4   : > { %v6619_v43 = vadd.f32 %v6586_v23, %v6507_v59  ;;  %v5514_v33 = vadd.f32 %v15540_v8, %v5465_v22 }
 0xdf5   : > { %v6388_v36 = vpop.f32.mrf.mxu0 }
 0xdf6   : > { %v15750_v28 = vmax.f32 %v6619_v43, 0.0  ;;  %v6438_v18 = vadd.f32 %v6437_v47, %v6388_v36 }
 0xdf7   : > { %v5858_v57 = vpop.f32.mrf.mxu3 }
 0xdf8   : > { %v10943_v11 = vpack.i.bf16 %v15750_v28, %v15752_v35 }
 0xdfa   : > { %v6488_v59 = vpop.f32.mrf.mxu2 }
 0xdfd   : > { %v6390_v17 = vpop.f32.mrf.mxu0 }
 0xdff   : > { %v5860_v50 = vpop.f32.mrf.mxu3 }
 0xe1c   : > { %v10905_v21 = vpop.permute.xlu0 %10904 }
 0xe1d   : > { %v10907_v15 = vunpack.i.h.bf16 %v10905_v21  ;;  %v10906_v12 = vunpack.i.l.bf16 %v10905_v21 }
 0xe1f   : > { %v6645_v32 = vsel %vm3196_vm14, %v10907_v15, %v15673_v2  ;;  %v6642_v61 = vsel %vm3196_vm14, %v10906_v12, %v15671_v13 }
 0xe20   : > { %v10918_v58 = vpack.i.bf16 %v6645_v32, %v6642_v61 }
 0xe22   : > { %10919 = vrot.lane.b32.xlu0 %v10918_v58, %s17161_s6 }
 0xe2a   : > { %6595 = vperm.xlu0 %10822, %v6525_v56   ;;  %v6439_v56 = vpop.f32.mrf.mxu1 }
 0xe2b   : > { %v6440_v40 = vadd.f32 %v6439_v56, %v6390_v17 }
 0xe2c   : > { %v10910_v27 = vpop.permute.xlu0 %10909 }
 0xe2d   : > { %v10912_v0 = vunpack.i.h.bf16 %v10910_v27  ;;  %v10911_v7 = vunpack.i.l.bf16 %v10910_v27  ;;  %v5859_v27 = vadd.f32 %v5858_v57, %v15538_v5  ;;  %v6489_v19 = vadd.f32 %v6488_v59, %v6440_v40 }
 0xe2f   : > { %v6651_v34 = vsel %vm3196_vm14, %v10912_v0, %v15686_v51  ;;  %v6648_v48 = vsel %vm3196_vm14, %v10911_v7, %v15684_v31  ;;  %v6487_v0 = vadd.f32 %v6486_v45, %v6438_v18  ;;  %v5763_v7 = vadd.f32 %v15536_v24, %v5514_v33  ;;  %v6491_v24 = vpop.f32.mrf.mxu2 }
 0xe30   : > { %v10928_v63 = vpack.i.bf16 %v6651_v34, %v6648_v48 }
 0xe31   : > { %v5812_v34 = vadd.f32 %v15554_v60, %v5763_v7  ;;  %v6508_v43 = vadd.f32 %v6487_v0, %v5859_v27 }
 0xe32   : > { %6600 = vperm.xlu0 %10822, %v6526_v26   ;;  %10929 = vrot.lane.b32.xlu1 %v10928_v63, %s17161_s6  ;;  %v6393_v63 = vpop.f32.mrf.mxu0  ;;  %v6442_v41 = vpop.f32.mrf.mxu1 }
 0xe33   : > { %v5861_v42 = vadd.f32 %v5860_v50, %v5812_v34 }
 0xe35   : > { %v6509_v60 = vadd.f32 %v6489_v19, %v5861_v42 }
 0xe3a   : > { %6605 = vperm.xlu1 %10820, %v6527_v39   ;;  %10944 = vrot.lane.b32.xlu0 %v10943_v11, %s17161_s6  ;;  %v5863_v39 = vpop.f32.mrf.mxu3  ;;  %v6620_v11 = vadd.f32 %v6591_v38, %v6508_v43 }
 0xe3c   : > { %v10915_v14 = vpop.permute.xlu0 %10914 }
 0xe3d   : > { %v10917_v4 = vunpack.i.h.bf16 %v10915_v14  ;;  %v10916_v46 = vunpack.i.l.bf16 %v10915_v14  ;;  %v5470_v14 = vadd.f32 %v15661_v9, %v15378_v37  ;;  %v17164_v37 = vld [vmem:[#allocation46_spill] sm:$0xff] }
 0xe3f   : > { %v6657_v3 = vsel %vm3196_vm14, %v10917_v4, %v15699_v20  ;;  %v6654_v52 = vsel %vm3196_vm14, %v10916_v46, %v15697_v10 }
 0xe40   : > { %v10938_v62 = vpack.i.bf16 %v6657_v3, %v6654_v52  ;;  %v17162_v3 = vld [vmem:[#allocation41_spill] sm:$0xff] }
 0xe41   : > { %v5519_v52 = vadd.f32 %v17162_v3, %v5470_v14 }
 0xe42   : > { %10939 = vrot.lane.b32.xlu2 %v10938_v62, %s17161_s6  ;;  %v15789_v62 = vmax.f32 %v6620_v11, 0.0 }
 0xe44   : > { %v10935_v12 = vpop.permute.xlu2 %10934 }
 0xe45   : > { %v10937_v16 = vunpack.i.h.bf16 %v10935_v12  ;;  %v10936_v58 = vunpack.i.l.bf16 %v10935_v12  ;;  %v6443_v12 = vadd.f32 %v6442_v41, %v6393_v63 }
 0xe47   : > { %v6669_v29 = vsel %vm3196_vm14, %v10937_v16, %v15723_v1  ;;  %v6666_v55 = vsel %vm3196_vm14, %v10936_v58, %v15721_v53  ;;  %v5865_v16 = vpop.f32.mrf.mxu3  ;;  %v6493_v58 = vpop.f32.mrf.mxu2  ;;  %v6492_v47 = vadd.f32 %v6491_v24, %v6443_v12 }
 0xe48   : > { %v10968_v25 = vpack.i.bf16 %v6669_v29, %v6666_v55 }
 0xe4c   : > { %v10925_v30 = vpop.permute.xlu1 %10924 }
 0xe4d   : > { %v10927_v21 = vunpack.i.h.bf16 %v10925_v30  ;;  %v10926_v15 = vunpack.i.l.bf16 %v10925_v30 }
 0xe4f   : > { %v6663_v49 = vsel %vm3196_vm14, %v10927_v21, %v15712_v44  ;;  %v6660_v32 = vsel %vm3196_vm14, %v10926_v15, %v15710_v54  ;;  %v6395_v21 = vpop.f32.mrf.mxu0  ;;  %v6444_v15 = vpop.f32.mrf.mxu1 }
 0xe50   : > { %v10953_v61 = vpack.i.bf16 %v6663_v49, %v6660_v32  ;;  %v17163_v32 = vld [vmem:[#allocation23_spill] sm:$0xff] }
 0xe51   : > { %v5768_v38 = vadd.f32 %v17163_v32, %v5519_v52 }
 0xe52   : > { %10954 = vrot.lane.b32.xlu2 %v10953_v61, %s17161_s6  ;;  %v6445_v61 = vadd.f32 %v6444_v15, %v6395_v21 }
 0xe53   : > { %v5817_v9 = vadd.f32 %v17164_v37, %v5768_v38 }
 0xe54   : > { %v6494_v22 = vadd.f32 %v6493_v58, %v6445_v61 }
 0xe55   : > { %v5866_v56 = vadd.f32 %v5865_v16, %v5817_v9 }
 0xe57   : > { %v6511_v40 = vadd.f32 %v6494_v22, %v5866_v56 }
 0xe5a   : > { %10969 = vrot.lane.b32.xlu2 %v10968_v25, %s17161_s6  ;;  %v17165_v25 = vld [vmem:[#allocation30_spill] sm:$0xff] }
 0xe5b   : > { %v5864_v36 = vadd.f32 %v5863_v39, %v17165_v25 }
 0xe5d   : > { %v6510_v0 = vadd.f32 %v6492_v47, %v5864_v36 }
 0xe94   : > { %v10920_v23 = vpop.permute.xlu0 %10919 }
 0xe95   : > { %v10922_v48 = vunpack.i.h.bf16 %v10920_v23  ;;  %v10921_v26 = vunpack.i.l.bf16 %v10920_v23 }
 0xe97   : > { %v6721_v8 = vsel %vm3196_vm14, %v10922_v48, %v15673_v2  ;;  %v6720_v5 = vsel %vm3196_vm14, %v10921_v26, %v15671_v13 }
 0xe98   : > { %v10948_v6 = vpack.i.bf16 %v6721_v8, %v6720_v5 }
 0xe9a   : > { %10949 = vrot.lane.b32.xlu1 %v10948_v6, %s17144_s5 }
 0xe9c   : > { %v6596_v4 = vpop.permute.xlu0 %6595  ;;  %v10940_v57 = vpop.permute.xlu2 %10939 }
 0xe9d   : > { %v6621_v46 = vadd.f32 %v6596_v4, %v6509_v60  ;;  %v10942_v50 = vunpack.i.h.bf16 %v10940_v57  ;;  %v10941_v27 = vunpack.i.l.bf16 %v10940_v57 }
 0xe9f   : > { %v15791_v30 = vmax.f32 %v6621_v46, 0.0  ;;  %v6725_v23 = vsel %vm3196_vm14, %v10942_v50, %v15699_v20  ;;  %v6724_v26 = vsel %vm3196_vm14, %v10941_v27, %v15697_v10 }
 0xea0   : > { %v10978_v39 = vpack.i.bf16 %v6725_v23, %v6724_v26 }
 0xea1   : > { %v10958_v49 = vpack.i.bf16 %v15791_v30, %v15789_v62 }
 0xea3   : > { %10959 = vrot.lane.b32.xlu0 %v10958_v49, %s17161_s6 }
 0xea4   : > { %v6601_v29 = vpop.permute.xlu0 %6600  ;;  %v10930_v55 = vpop.permute.xlu1 %10929 }
 0xea5   : > { %v10932_v45 = vunpack.i.h.bf16 %v10930_v55  ;;  %v10931_v17 = vunpack.i.l.bf16 %v10930_v55  ;;  %v6622_v7 = vadd.f32 %v6601_v29, %v6510_v0 }
 0xea7   : > { %v6723_v18 = vsel %vm3196_vm14, %v10932_v45, %v15686_v51  ;;  %v6722_v33 = vsel %vm3196_vm14, %v10931_v17, %v15684_v31  ;;  %v15808_v19 = vmax.f32 %v6622_v7, 0.0 }
 0xea8   : > { %v10963_v59 = vpack.i.bf16 %v6723_v18, %v6722_v33 }
 0xeaa   : > { %10964 = vrot.lane.b32.xlu1 %v10963_v59, %s17144_s5 }
 0xeac   : > { %v6606_v34 = vpop.permute.xlu1 %6605  ;;  %v10945_v48 = vpop.permute.xlu0 %10944 }
 0xead   : > { %v6623_v43 = vadd.f32 %v6606_v34, %v6511_v40  ;;  %v10947_v63 = vunpack.i.h.bf16 %v10945_v48  ;;  %v10946_v41 = vunpack.i.l.bf16 %v10945_v48  ;;  %v10955_v42 = vpop.permute.xlu2 %10954 }
 0xeae   : > { %v10957_v11 = vunpack.i.h.bf16 %v10955_v42  ;;  %v10956_v60 = vunpack.i.l.bf16 %v10955_v42 }
 0xeaf   : > { %v15810_v8 = vmax.f32 %v6623_v43, 0.0  ;;  %v6675_v5 = vsel %vm3196_vm14, %v10947_v63, %v15750_v28  ;;  %v6672_v6 = vsel %vm3196_vm14, %v10946_v41, %v15752_v35 }
 0xeb0   : > { %v10983_v24 = vpack.i.bf16 %v6675_v5, %v6672_v6  ;;  %v6727_v4 = vsel %vm3196_vm14, %v10957_v11, %v15712_v44  ;;  %v6726_v46 = vsel %vm3196_vm14, %v10956_v60, %v15710_v54 }
 0xeb1   : > { %v10973_v14 = vpack.i.bf16 %v15810_v8, %v15808_v19  ;;  %v10993_v52 = vpack.i.bf16 %v6727_v4, %v6726_v46 }
 0xeb2   : > { %10979 = vrot.lane.b32.xlu1 %v10978_v39, %s17144_s5  ;;  %10984 = vrot.lane.b32.xlu2 %v10983_v24, %s17161_s6 }
 0xeb3   : > { %10974 = vrot.lane.b32.xlu0 %v10973_v14, %s17161_s6 }
 0xeb5   : > { %v10970_v3 = vpop.permute.xlu2 %10969 }
 0xeb6   : > { %v10972_v21 = vunpack.i.h.bf16 %v10970_v3  ;;  %v10971_v15 = vunpack.i.l.bf16 %v10970_v3 }
 0xeb8   : > { %v6729_v12 = vsel %vm3196_vm14, %v10972_v21, %v15723_v1  ;;  %v6728_v49 = vsel %vm3196_vm14, %v10971_v15, %v15721_v53 }
 0xeb9   : > { %v11008_v32 = vpack.i.bf16 %v6729_v12, %v6728_v49 }
 0xeba   : > { %10994 = vrot.lane.b32.xlu1 %v10993_v52, %s17144_s5 }
 0xec2   : > { %11009 = vrot.lane.b32.xlu1 %v11008_v32, %s17144_s5 }
 0xf0c   : > { %v10950_v38 = vpop.permute.xlu1 %10949  ;;  %v10985_v61 = vpop.permute.xlu2 %10984 }
 0xf0d   : > { %v10952_v16 = vunpack.i.h.bf16 %v10950_v38  ;;  %v10951_v58 = vunpack.i.l.bf16 %v10950_v38  ;;  %v10987_v37 = vunpack.i.h.bf16 %v10985_v61  ;;  %v10986_v9 = vunpack.i.l.bf16 %v10985_v61 }
 0xf0f   : > { %v15832_v29 = vmax.f32 %v15673_v2, %v10952_v16  ;;  %v15835_v55 = vmax.f32 %v15671_v13, %v10951_v58  ;;  %v6731_v25 = vsel %vm3196_vm14, %v10987_v37, %v15750_v28  ;;  %v6730_v36 = vsel %vm3196_vm14, %v10986_v9, %v15752_v35 }
 0xf10   : > { %v11023_v47 = vpack.i.bf16 %v6731_v25, %v6730_v36 }
 0xf11   : > { %v10988_v57 = vpack.i.bf16 %v15832_v29, %v15835_v55 }
 0xf12   : > { %11024 = vrot.lane.b32.xlu1 %v11023_v47, %s17144_s5 }
 0xf13   : > { %10989 = vrot.lane.b32.xlu0 %v10988_v57, %s17161_s6 }
 0xf15   : > { %v10960_v45 = vpop.permute.xlu0 %10959 }
 0xf16   : > { %v10962_v2 = vunpack.i.h.bf16 %v10960_v45  ;;  %v10961_v17 = vunpack.i.l.bf16 %v10960_v45 }
 0xf18   : > { %v6681_v13 = vsel %vm3196_vm14, %v10962_v2, %v15791_v30  ;;  %v6678_v56 = vsel %vm3196_vm14, %v10961_v17, %v15789_v62 }
 0xf19   : > { %v10998_v22 = vpack.i.bf16 %v6681_v13, %v6678_v56 }
 0xf1b   : > { %10999 = vrot.lane.b32.xlu2 %v10998_v22, %s17161_s6 }
 0xf1c   : > { %v10965_v18 = vpop.permute.xlu1 %10964 }
 0xf1d   : > { %v10967_v33 = vunpack.i.h.bf16 %v10965_v18  ;;  %v10966_v50 = vunpack.i.l.bf16 %v10965_v18 }
 0xf1f   : > { %v15851_v59 = vmax.f32 %v15686_v51, %v10967_v33  ;;  %v15854_v27 = vmax.f32 %v15684_v31, %v10966_v50 }
 0xf21   : > { %v11003_v0 = vpack.i.bf16 %v15851_v59, %v15854_v27 }
 0xf23   : > { %11004 = vrot.lane.b32.xlu0 %v11003_v0, %s17161_s6 }
 0xf24   : > { %v10980_v7 = vpop.permute.xlu1 %10979 }
 0xf25   : > { %v10982_v40 = vunpack.i.h.bf16 %v10980_v7  ;;  %v10981_v23 = vunpack.i.l.bf16 %v10980_v7  ;;  %v10975_v34 = vpop.permute.xlu0 %10974 }
 0xf26   : > { %v10977_v48 = vunpack.i.h.bf16 %v10975_v34  ;;  %v10976_v26 = vunpack.i.l.bf16 %v10975_v34 }
 0xf27   : > { %v15860_v43 = vmax.f32 %v15699_v20, %v10982_v40  ;;  %v15863_v51 = vmax.f32 %v15697_v10, %v10981_v23 }
 0xf28   : > { %v6687_v31 = vsel %vm3196_vm14, %v10977_v48, %v15810_v8  ;;  %v6684_v63 = vsel %vm3196_vm14, %v10976_v26, %v15808_v19 }
 0xf29   : > { %v11013_v41 = vpack.i.bf16 %v6687_v31, %v6684_v63  ;;  %v11018_v42 = vpack.i.bf16 %v15860_v43, %v15863_v51 }
 0xf2b   : > { %11019 = vrot.lane.b32.xlu0 %v11018_v42, %s17161_s6  ;;  %11014 = vrot.lane.b32.xlu2 %v11013_v41, %s17161_s6 }
 0xf2c   : > { %v10995_v5 = vpop.permute.xlu1 %10994 }
 0xf2d   : > { %v10997_v20 = vunpack.i.h.bf16 %v10995_v5  ;;  %v10996_v6 = vunpack.i.l.bf16 %v10995_v5 }
 0xf2f   : > { %v15874_v10 = vmax.f32 %v15712_v44, %v10997_v20  ;;  %v15877_v39 = vmax.f32 %v15710_v54, %v10996_v6 }
 0xf31   : > { %v11033_v24 = vpack.i.bf16 %v15874_v10, %v15877_v39 }
 0xf33   : > { %11034 = vrot.lane.b32.xlu0 %v11033_v24, %s17161_s6 }
 0xf34   : > { %v11010_v11 = vpop.permute.xlu1 %11009 }
 0xf35   : > { %v11012_v60 = vunpack.i.h.bf16 %v11010_v11  ;;  %v11011_v14 = vunpack.i.l.bf16 %v11010_v11 }
 0xf37   : > { %v15883_v4 = vmax.f32 %v15723_v1, %v11012_v60  ;;  %v15886_v46 = vmax.f32 %v15721_v53, %v11011_v14 }
 0xf39   : > { %v11048_v44 = vpack.i.bf16 %v15883_v4, %v15886_v46 }
 0xf3b   : > { %11049 = vrot.lane.b32.xlu0 %v11048_v44, %s17161_s6 }
 0xf75   : > { %v11000_v54 = vpop.permute.xlu2 %10999 }
 0xf76   : > { %v11002_v3 = vunpack.i.h.bf16 %v11000_v54  ;;  %v11001_v52 = vunpack.i.l.bf16 %v11000_v54 }
 0xf78   : > { %v6733_v21 = vsel %vm3196_vm14, %v11002_v3, %v15791_v30  ;;  %v6732_v15 = vsel %vm3196_vm14, %v11001_v52, %v15789_v62 }
 0xf79   : > { %v11038_v12 = vpack.i.bf16 %v6733_v21, %v6732_v15 }
 0xf7b   : > { %11039 = vrot.lane.b32.xlu1 %v11038_v12, %s17144_s5 }
 0xf84   : > { %v11025_v1 = vpop.permute.xlu1 %11024 }
 0xf85   : > { %v11027_v53 = vunpack.i.h.bf16 %v11025_v1  ;;  %v11026_v49 = vunpack.i.l.bf16 %v11025_v1  ;;  %v10990_v32 = vpop.permute.xlu0 %10989  ;;  %v11015_v38 = vpop.permute.xlu2 %11014 }
 0xf86   : > { %v10992_v61 = vunpack.i.h.bf16 %v10990_v32  ;;  %v10991_v16 = vunpack.i.l.bf16 %v10990_v32  ;;  %v11017_v58 = vunpack.i.h.bf16 %v11015_v38  ;;  %v11016_v37 = vunpack.i.l.bf16 %v11015_v38  ;;  %v10664_v38 = vld [vmem:[%s16824_s18 + $0x18] sm:$0xff] }
 0xf87   : > { %v15897_v9 = vmax.f32 %v15750_v28, %v11027_v53  ;;  %v15900_v25 = vmax.f32 %v15752_v35, %v11026_v49  ;;  %7060 = vmatpush.bf16.msra.mxu3 %v10664_v38 }
 0xf88   : > { %v6821_v36 = vsel %vm3196_vm14, %v10992_v61, %v15832_v29  ;;  %v6818_v47 = vsel %vm3196_vm14, %v10991_v16, %v15835_v55  ;;  %v6735_v57 = vsel %vm3196_vm14, %v11017_v58, %v15810_v8  ;;  %v6734_v45 = vsel %vm3196_vm14, %v11016_v37, %v15808_v19  ;;  %v10663_v16 = vld [vmem:[%s16824_s18 + $0x10] sm:$0xff] }
 0xf89   : > { %v11028_v2 = vpack.i.bf16 %v6821_v36, %v6818_v47  ;;  %v11053_v17 = vpack.i.bf16 %v6735_v57, %v6734_v45  ;;  %v11063_v28 = vpack.i.bf16 %v15897_v9, %v15900_v25  ;;  %v10662_v47 = vld [vmem:[%s16824_s18 + $0x8] sm:$0xff] }
 0xf8b   : > { %11029 = vrot.lane.b32.xlu2 %v11028_v2, %s17161_s6  ;;  %11054 = vrot.lane.b32.xlu1 %v11053_v17, %s17144_s5 }
 0xf8c   : > { %11064 = vrot.lane.b32.xlu0 %v11063_v28, %s17161_s6  ;;  %7061 = vmatpush.bf16.msra.mxu3 %v10663_v16 }
 0xf90   : > { %7062 = vmatpush.bf16.msra.mxu3 %v10662_v47 }
 0xf95   : > { %v11005_v35 = vpop.permute.xlu0 %11004 }
 0xf96   : > { %v11007_v13 = vunpack.i.h.bf16 %v11005_v35  ;;  %v11006_v56 = vunpack.i.l.bf16 %v11005_v35 }
 0xf98   : > { %v6827_v22 = vsel %vm3196_vm14, %v11007_v13, %v15851_v59  ;;  %v6824_v18 = vsel %vm3196_vm14, %v11006_v56, %v15854_v27 }
 0xf99   : > { %v11043_v33 = vpack.i.bf16 %v6827_v22, %v6824_v18 }
 0xf9b   : > { %11044 = vrot.lane.b32.xlu2 %v11043_v33, %s17161_s6 }
 0xf9d   : > { %v11020_v50 = vpop.permute.xlu0 %11019 }
 0xf9e   : > { %v11022_v0 = vunpack.i.h.bf16 %v11020_v50  ;;  %v11021_v7 = vunpack.i.l.bf16 %v11020_v50 }
 0xfa0   : > { %v6833_v40 = vsel %vm3196_vm14, %v11022_v0, %v15860_v43  ;;  %v6830_v23 = vsel %vm3196_vm14, %v11021_v7, %v15863_v51 }
 0xfa1   : > { %v11058_v34 = vpack.i.bf16 %v6833_v40, %v6830_v23 }
 0xfa3   : > { %11059 = vrot.lane.b32.xlu2 %v11058_v34, %s17161_s6 }
 0xfa5   : > { %v11035_v48 = vpop.permute.xlu0 %11034 }
 0xfa6   : > { %v11037_v26 = vunpack.i.h.bf16 %v11035_v48  ;;  %v11036_v31 = vunpack.i.l.bf16 %v11035_v48 }
 0xfa8   : > { %v6839_v63 = vsel %vm3196_vm14, %v11037_v26, %v15874_v10  ;;  %v6836_v41 = vsel %vm3196_vm14, %v11036_v31, %v15877_v39 }
 0xfa9   : > { %v11073_v42 = vpack.i.bf16 %v6839_v63, %v6836_v41 }
 0xfab   : > { %11074 = vrot.lane.b32.xlu2 %v11073_v42, %s17161_s6 }
 0xfad   : > { %v11050_v5 = vpop.permute.xlu0 %11049 }
 0xfae   : > { %v11052_v20 = vunpack.i.h.bf16 %v11050_v5  ;;  %v11051_v6 = vunpack.i.l.bf16 %v11050_v5 }
 0xfb0   : > { %v6845_v24 = vsel %vm3196_vm14, %v11052_v20, %v15883_v4  ;;  %v6842_v11 = vsel %vm3196_vm14, %v11051_v6, %v15886_v46 }
 0xfb1   : > { %v11088_v60 = vpack.i.bf16 %v6845_v24, %v6842_v11 }
 0xfb3   : > { %11089 = vrot.lane.b32.xlu2 %v11088_v60, %s17161_s6  ;;  %v10661_v60 = vld [vmem:[%s16824_s18] sm:$0xff] }
 0xfb4   : > { %7063 = vmatpush.bf16.msra.mxu3 %v10661_v60 }
 0xfe5   : > { %v11030_v14 = vpop.permute.xlu2 %11029 }
 0xfe6   : > { %v11032_v44 = vunpack.i.h.bf16 %v11030_v14  ;;  %v11031_v54 = vunpack.i.l.bf16 %v11030_v14  ;;  %v10683_v14 = vld [vmem:[%s16825_s19 + $0x10] sm:$0xff] }
 0xfe7   : > { %7470 = vmatpush.bf16.msrb.mxu3 %v10683_v14 }
 0xfe8   : > { %v6897_v3 = vsel %vm3196_vm14, %v11032_v44, %v15832_v29  ;;  %v6896_v52 = vsel %vm3196_vm14, %v11031_v54, %v15835_v55 }
 0xfe9   : > { %v11068_v21 = vpack.i.bf16 %v6897_v3, %v6896_v52 }
 0xfeb   : > { %11069 = vrot.lane.b32.xlu1 %v11068_v21, %s11287_s14 }
 0xfed   : > { %v11040_v15 = vpop.permute.xlu1 %11039 }
 0xfee   : > { %v11042_v12 = vunpack.i.h.bf16 %v11040_v15  ;;  %v11041_v1 = vunpack.i.l.bf16 %v11040_v15 }
 0xff0   : > { %v15941_v53 = vmax.f32 %v15791_v30, %v11042_v12  ;;  %v15944_v49 = vmax.f32 %v15789_v62, %v11041_v1  ;;  %v17166_v12 = vld [vmem:[#allocation20_spill] sm:$0xff] }
 0xff2   : > { %v11078_v32 = vpack.i.bf16 %v15941_v53, %v15944_v49 }
 0xff4   : > { %11079 = vrot.lane.b32.xlu0 %v11078_v32, %s17161_s6 }
 0xff5   : > { %v11045_v61 = vpop.permute.xlu2 %11044 }
 0xff6   : > { %v11047_v30 = vunpack.i.h.bf16 %v11045_v61  ;;  %v11046_v58 = vunpack.i.l.bf16 %v11045_v61 }
 0xff8   : > { %v6899_v62 = vsel %vm3196_vm14, %v11047_v30, %v15851_v59  ;;  %v6898_v37 = vsel %vm3196_vm14, %v11046_v58, %v15854_v27  ;;  %v17167_v58 = vld [vmem:[#allocation29_spill] sm:$0xff] }
 0xff9   : > { %v11083_v36 = vpack.i.bf16 %v6899_v62, %v6898_v37  ;;  %v17168_v37 = vld [vmem:[#allocation27_spill] sm:$0xff] }
 0xffb   : > { %11084 = vrot.lane.b32.xlu1 %v11083_v36, %s11287_s14 }
 0xffd   : > { %v11060_v57 = vpop.permute.xlu2 %11059  ;;  %v11055_v45 = vpop.permute.xlu1 %11054 }
 0xffe   : > { %v11062_v2 = vunpack.i.h.bf16 %v11060_v57  ;;  %v11061_v17 = vunpack.i.l.bf16 %v11060_v57  ;;  %v11057_v28 = vunpack.i.h.bf16 %v11055_v45  ;;  %v11056_v35 = vunpack.i.l.bf16 %v11055_v45  ;;  %v11065_v13 = vpop.permute.xlu0 %11064 }
 0xfff   : > { %v11067_v56 = vunpack.i.h.bf16 %v11065_v13  ;;  %v11066_v22 = vunpack.i.l.bf16 %v11065_v13 }
0x1000   : > { %v6901_v18 = vsel %vm3196_vm14, %v11062_v2, %v15860_v43  ;;  %v6900_v33 = vsel %vm3196_vm14, %v11061_v17, %v15863_v51  ;;  %v15968_v50 = vmax.f32 %v15810_v8, %v11057_v28  ;;  %v15971_v0 = vmax.f32 %v15808_v19, %v11056_v35  ;;  %v17169_v35 = vld [vmem:[#allocation21_spill] sm:$0xff] }
0x1001   : > { %v11098_v7 = vpack.i.bf16 %v6901_v18, %v6900_v33  ;;  %v6851_v40 = vsel %vm3196_vm14, %v11067_v56, %v15897_v9  ;;  %v6848_v23 = vsel %vm3196_vm14, %v11066_v22, %v15900_v25 }
0x1002   : > { %v11103_v34 = vpack.i.bf16 %v6851_v40, %v6848_v23  ;;  %v11093_v48 = vpack.i.bf16 %v15968_v50, %v15971_v0 }
0x1003   : > { %11099 = vrot.lane.b32.xlu1 %v11098_v7, %s11287_s14 }
0x1004   : > { %11104 = vrot.lane.b32.xlu2 %v11103_v34, %s17161_s6  ;;  %11094 = vrot.lane.b32.xlu0 %v11093_v48, %s17161_s6 }
0x1005   : > { %v11075_v8 = vpop.permute.xlu2 %11074 }
0x1006   : > { %v11077_v19 = vunpack.i.h.bf16 %v11075_v8  ;;  %v11076_v26 = vunpack.i.l.bf16 %v11075_v8 }
0x1008   : > { %v6903_v31 = vsel %vm3196_vm14, %v11077_v19, %v15874_v10  ;;  %v6902_v63 = vsel %vm3196_vm14, %v11076_v26, %v15877_v39  ;;  %v7567_v26 = vld [vmem:[%s16816_s10 + $0x28] sm:$0xff] }
0x1009   : > { %v11108_v41 = vpack.i.bf16 %v6903_v31, %v6902_v63 }
0x100c   : > { %11109 = vrot.lane.b32.xlu0 %v11108_v41, %s11287_s14  ;;  %v7562_v41 = vld [vmem:[%s16816_s10] sm:$0xff] }
0x100d   : > { %v11090_v42 = vpop.permute.xlu2 %11089 }
0x100e   : > { %v11092_v5 = vunpack.i.h.bf16 %v11090_v42  ;;  %v11091_v20 = vunpack.i.l.bf16 %v11090_v42 }
0x1010   : > { %v6905_v6 = vsel %vm3196_vm14, %v11092_v5, %v15883_v4  ;;  %v6904_v24 = vsel %vm3196_vm14, %v11091_v20, %v15886_v46 }
0x1011   : > { %v11118_v11 = vpack.i.bf16 %v6905_v6, %v6904_v24 }
0x1013   : > { %11119 = vrot.lane.b32.xlu2 %v11118_v11, %s11287_s14 }
0x105d   : > { %v11070_v44 = vpop.permute.xlu1 %11069 }
0x105e   : > { %v11072_v54 = vunpack.i.h.bf16 %v11070_v44  ;;  %v11071_v3 = vunpack.i.l.bf16 %v11070_v44  ;;  %v11105_v61 = vpop.permute.xlu2 %11104 }
0x105f   : > { %v11107_v62 = vunpack.i.h.bf16 %v11105_v61 }
0x1060   : > { %v6977_v52 = vmax.f32 %v15832_v29, %v11072_v54  ;;  %v6976_v21 = vmax.f32 %v15835_v55, %v11071_v3  ;;  %v11106_v55 = vunpack.i.l.bf16 %v11105_v61 }
0x1061   : > { %v6907_v45 = vsel %vm3196_vm14, %v11107_v62, %v15897_v9  ;;  %v7566_v62 = vld [vmem:[%s16816_s10 + $0x20] sm:$0xff] }
0x1062   : > { %v6992_v15 = vpack.c.bf16 %v6977_v52, %v6976_v21  ;;  %v6906_v2 = vsel %vm3196_vm14, %v11106_v55, %v15900_v25  ;;  %v7563_v55 = vld [vmem:[%s16816_s10 + $0x8] sm:$0xff] }
0x1063   : > { %v11128_v13 = vpack.i.bf16 %v6907_v45, %v6906_v2 }
0x1064   : > { %10063 = vmatmul.msk.bf16.vlgmr.msra.gmra.mxu3 %vm1976_vm13, %v6992_v15 }
0x1065   : > { %8068 = vmatpush.bf16.msra.mxu3 %v17166_v12 }
0x1066   : > { %v11080_v1 = vpop.permute.xlu0 %11079 }
0x1067   : > { %v11082_v32 = vunpack.i.h.bf16 %v11080_v1  ;;  %v11081_v38 = vunpack.i.l.bf16 %v11080_v1 }
0x1069   : > { %v6857_v16 = vsel %vm3196_vm14, %v11082_v32, %v15941_v53  ;;  %v6854_v30 = vsel %vm3196_vm14, %v11081_v38, %v15944_v49  ;;  %8069 = vmatpush.bf16.msra.mxu3 %v17167_v58  ;;  %v7569_v32 = vld [vmem:[%s16816_s10 + $0x38] sm:$0xff] }
0x106a   : > { %v11113_v29 = vpack.i.bf16 %v6857_v16, %v6854_v30 }
0x106c   : > { %11114 = vrot.lane.b32.xlu1 %v11113_v29, %s17161_s6 }
0x106d   : > { %8070 = vmatpush.bf16.msra.mxu3 %v17168_v37  ;;  %v11085_v36 = vpop.permute.xlu1 %11084  ;;  %v11120_v6 = vpop.permute.xlu2 %11119  ;;  %v7565_v37 = vld [vmem:[%s16816_s10 + $0x18] sm:$0xff] }
0x106e   : > { %v11087_v47 = vunpack.i.h.bf16 %v11085_v36  ;;  %v11086_v57 = vunpack.i.l.bf16 %v11085_v36  ;;  %v11122_v24 = vunpack.i.h.bf16 %v11120_v6  ;;  %v11121_v11 = vunpack.i.l.bf16 %v11120_v6 }
0x1070   : > { %v6979_v17 = vmax.f32 %v15851_v59, %v11087_v47  ;;  %v6978_v28 = vmax.f32 %v15854_v27, %v11086_v57  ;;  %v7568_v27 = vld [vmem:[%s16816_s10 + $0x30] sm:$0xff]  ;;  %v6985_v60 = vmax.f32 %v15883_v4, %v11122_v24  ;;  %v6984_v14 = vmax.f32 %v15886_v46, %v11121_v11  ;;  %v10665_v24 = vld [vmem:[%s16815_s9] sm:$0xff] }
0x1071   : > { %8071 = vmatpush.bf16.msra.mxu3 %v17169_v35  ;;  %v17170_v11 = vld [vmem:[#allocation14_spill] sm:$0xff] }
0x1072   : > { %v6993_v56 = vpack.c.bf16 %v6979_v17, %v6978_v28  ;;  %v6996_v44 = vpack.c.bf16 %v6985_v60, %v6984_v14  ;;  %v17171_v60 = vld [vmem:[#allocation11_spill] sm:$0xff]  ;;  %v17172_v14 = vld [vmem:[#allocation16_spill] sm:$0xff] }
0x1074   : > { %10064 = vmatmul.msk.bf16.gmra.mxu3 %vm1976_vm13, %v6993_v56  ;;  %11129 = vrot.lane.b32.xlu1 %v11128_v13, %s11287_s14 }
0x1075   : > { %v11100_v18 = vpop.permute.xlu1 %11099 }
0x1076   : > { %v11095_v22 = vpop.permute.xlu0 %11094  ;;  %v11102_v23 = vunpack.i.h.bf16 %v11100_v18  ;;  %v11101_v34 = vunpack.i.l.bf16 %v11100_v18 }
0x1077   : > { %v11097_v33 = vunpack.i.h.bf16 %v11095_v22  ;;  %v11096_v7 = vunpack.i.l.bf16 %v11095_v22 }
0x1078   : > { %v6981_v8 = vmax.f32 %v15860_v43, %v11102_v23  ;;  %v6980_v19 = vmax.f32 %v15863_v51, %v11101_v34 }
0x1079   : > { %v6863_v40 = vsel %vm3196_vm14, %v11097_v33, %v15968_v50  ;;  %v6860_v59 = vsel %vm3196_vm14, %v11096_v7, %v15971_v0 }
0x107a   : > { %v11123_v48 = vpack.i.bf16 %v6863_v40, %v6860_v59  ;;  %v6994_v31 = vpack.c.bf16 %v6981_v8, %v6980_v19 }
0x107c   : > { %11124 = vrot.lane.b32.xlu0 %v11123_v48, %s17161_s6  ;;  %7602 = vperm.xlu1 %10820, %v7568_v27  }
0x107e   : > { %v11110_v63 = vpop.permute.xlu0 %11109 }
0x107f   : > { %v11112_v42 = vunpack.i.h.bf16 %v11110_v63  ;;  %v11111_v5 = vunpack.i.l.bf16 %v11110_v63 }
0x1081   : > { %v6983_v43 = vmax.f32 %v15874_v10, %v11112_v42  ;;  %v6982_v51 = vmax.f32 %v15877_v39, %v11111_v5 }
0x1083   : > { %v6995_v20 = vpack.c.bf16 %v6983_v43, %v6982_v51 }
0x1084   : > { %10065 = vmatmul.msk.bf16.gmra.mxu3 %vm1976_vm13, %v6994_v31  ;;  %7597 = vperm.xlu1 %10820, %v7567_v26  }
0x108c   : > { %7572 = vperm.xlu1 %10820, %v7562_v41  }
0x1094   : > { %10066 = vmatmul.msk.bf16.gmra.mxu3 %vm1976_vm13, %v6995_v20 }
0x10a4   : > { %10067 = vmatmul.msk.bf16.gmra.mxu3 %vm1976_vm13, %v6996_v44  ;;  %v17173_v44 = vld [vmem:[#allocation18_spill] sm:$0xff] }
0x10de   : > { %v11115_v54 = vpop.permute.xlu1 %11114 }
0x10df   : > { %v11117_v3 = vunpack.i.h.bf16 %v11115_v54  ;;  %v11116_v52 = vunpack.i.l.bf16 %v11115_v54  ;;  %v10666_v54 = vld [vmem:[%s16815_s9 + $0x8] sm:$0xff] }
0x10e1   : > { %v6909_v10 = vsel %vm3196_vm14, %v11117_v3, %v15941_v53  ;;  %v6908_v39 = vsel %vm3196_vm14, %v11116_v52, %v15944_v49  ;;  %v10667_v3 = vld [vmem:[%s16815_s9 + $0x10] sm:$0xff]  ;;  %v10668_v52 = vld [vmem:[%s16815_s9 + $0x18] sm:$0xff] }
0x10e2   : > { %v11133_v21 = vpack.i.bf16 %v6909_v10, %v6908_v39  ;;  %v10669_v10 = vld [vmem:[%s16815_s9 + $0x20] sm:$0xff]  ;;  %v10670_v39 = vld [vmem:[%s16815_s9 + $0x28] sm:$0xff] }
0x10e4   : > { %11134 = vrot.lane.b32.xlu2 %v11133_v21, %s11287_s14  ;;  %v10671_v21 = vld [vmem:[%s16815_s9 + $0x30] sm:$0xff] }
0x10e6   : > { %v11130_v15 = vpop.permute.xlu1 %11129 }
0x10e7   : > { %v11132_v12 = vunpack.i.h.bf16 %v11130_v15  ;;  %v11131_v4 = vunpack.i.l.bf16 %v11130_v15  ;;  %v7065_v18 = vpop.f32.mrf.mxu3  ;;  %v10672_v15 = vld [vmem:[%s16815_s9 + $0x38] sm:$0xff] }
0x10e9   : > { %v6987_v46 = vmax.f32 %v15897_v9, %v11132_v12  ;;  %v6986_v1 = vmax.f32 %v15900_v25, %v11131_v4  ;;  %v7564_v9 = vld [vmem:[%s16816_s10 + $0x10] sm:$0xff]  ;;  %v10673_v12 = vld [vmem:[%s16815_s9 + $0x40] sm:$0xff] }
0x10eb   : > { %v6997_v38 = vpack.c.bf16 %v6987_v46, %v6986_v1 }
0x10ec   : > { %7607 = vperm.xlu2 %10821, %v7569_v32   ;;  %v10674_v32 = vld [vmem:[%s16815_s9 + $0x48] sm:$0xff] }
0x10ed   : > { %10068 = vmatmul.msk.bf16.gmra.mxu3 %vm1976_vm13, %v6997_v38 }
0x10ee   : > { %v11125_v61 = vpop.permute.xlu0 %11124 }
0x10ef   : > { %v11127_v16 = vunpack.i.h.bf16 %v11125_v61  ;;  %v11126_v30 = vunpack.i.l.bf16 %v11125_v61  ;;  %v7067_v7 = vpop.f32.mrf.mxu3 }
0x10f0   : > { %v7137_v6 = vpack.c.bf16 %v7067_v7, %v7065_v18  ;;  %v17177_v18 = vld [vmem:[#allocation31_spill] sm:$0xff] }
0x10f1   : > { %v6911_v58 = vsel %vm3196_vm14, %v11127_v16, %v15968_v50  ;;  %v6910_v29 = vsel %vm3196_vm14, %v11126_v30, %v15971_v0  ;;  %v10675_v30 = vld [vmem:[%s16815_s9 + $0x50] sm:$0xff] }
0x10f2   : > { %v11138_v25 = vpack.i.bf16 %v6911_v58, %v6910_v29  ;;  %v10682_v29 = vld [vmem:[%s16825_s19 + $0x8] sm:$0xff] }
0x10f3   : > { %7369 = vmatpush.bf16.msrb.mxu1 %v10682_v29 }
0x10f4   : > { %11139 = vrot.lane.b32.xlu0 %v11138_v25, %s11287_s14  ;;  %7582 = vperm.xlu2 %10821, %v7564_v9  }
0x10f7   : > { %v7070_v40 = vpop.f32.mrf.mxu3 }
0x10fc   : > { %7592 = vperm.xlu0 %10822, %v7566_v62   ;;  %7577 = vperm.xlu2 %10821, %v7563_v55   ;;  %v10684_v62 = vld [vmem:[%s16825_s19 + $0x18] sm:$0xff] }
0x10fd   : > { %7532 = vmatpush.bf16.msra.mxu1 %v10684_v62  ;;  %v10676_v55 = vld [vmem:[%s16815_s9 + $0x58] sm:$0xff] }
0x10ff   : > { %v7072_v59 = vpop.f32.mrf.mxu3 }
0x1100   : > { %v7138_v20 = vpack.c.bf16 %v7072_v59, %v7070_v40  ;;  %v10679_v40 = vld [vmem:[%s16815_s9 + $0x70] sm:$0xff] }
0x1104   : > { %7587 = vperm.xlu0 %10822, %v7565_v37  }
0x113e   : > { %v11135_v36 = vpop.permute.xlu2 %11134 }
0x113f   : > { %v11137_v47 = vunpack.i.h.bf16 %v11135_v36  ;;  %v11136_v57 = vunpack.i.l.bf16 %v11135_v36 }
0x1141   : > { %v6989_v45 = vmax.f32 %v15941_v53, %v11137_v47  ;;  %v6988_v2 = vmax.f32 %v15944_v49, %v11136_v57  ;;  %v7075_v53 = vpop.f32.mrf.mxu3  ;;  %v10677_v57 = vld [vmem:[%s16815_s9 + $0x60] sm:$0xff] }
0x1143   : > { %v6998_v17 = vpack.c.bf16 %v6989_v45, %v6988_v2 }
0x1145   : > { %10069 = vmatmul.msk.bf16.gmra.mxu3 %vm1976_vm13, %v6998_v17 }
0x1149   : > { %v7077_v27 = vpop.f32.mrf.mxu3 }
0x114a   : > { %v7139_v51 = vpack.c.bf16 %v7077_v27, %v7075_v53 }
0x1151   : > { %v7080_v49 = vpop.f32.mrf.mxu3 }
0x1159   : > { %v7082_v23 = vpop.f32.mrf.mxu3 }
0x115a   : > { %v7140_v43 = vpack.c.bf16 %v7082_v23, %v7080_v49  ;;  %v10680_v49 = vld [vmem:[%s16815_s9 + $0x78] sm:$0xff] }
0x1161   : > { %v7085_v34 = vpop.f32.mrf.mxu3 }
0x1166   : > { %v11140_v28 = vpop.permute.xlu0 %11139 }
0x1167   : > { %v11142_v35 = vunpack.i.h.bf16 %v11140_v28  ;;  %v11141_v13 = vunpack.i.l.bf16 %v11140_v28  ;;  %v17174_v28 = vld [vmem:[#allocation38_spill] sm:$0xff] }
0x1169   : > { %v6991_v56 = vmax.f32 %v15968_v50, %v11142_v35  ;;  %v6990_v22 = vmax.f32 %v15971_v0, %v11141_v13  ;;  %v7087_v48 = vpop.f32.mrf.mxu3  ;;  %v10678_v35 = vld [vmem:[%s16815_s9 + $0x68] sm:$0xff] }
0x116a   : > { %v7141_v5 = vpack.c.bf16 %v7087_v48, %v7085_v34  ;;  %v17175_v13 = vld [vmem:[#allocation51_spill] sm:$0xff] }
0x116b   : > { %v6999_v33 = vpack.c.bf16 %v6991_v56, %v6990_v22  ;;  %v17176_v22 = vld [vmem:[#allocation26_spill] sm:$0xff] }
0x116d   : > { %10070 = vmatmul.msk.bf16.gmra.mxu3 %vm1976_vm13, %v6999_v33 }
0x1171   : > { %v7090_v8 = vpop.f32.mrf.mxu3 }
0x1179   : > { %v7092_v19 = vpop.f32.mrf.mxu3 }
0x117a   : > { %v7142_v42 = vpack.c.bf16 %v7092_v19, %v7090_v8 }
0x11c8   : > { %v7095_v26 = vpop.f32.mrf.mxu3 }
0x11d0   : > { %v7097_v31 = vpop.f32.mrf.mxu3 }
0x11d1   : > { %v7143_v41 = vpack.c.bf16 %v7097_v31, %v7095_v26 }
0x11f0   : > { %v7100_v50 = vpop.f32.mrf.mxu3 }
0x11f8   : > { %v7102_v63 = vpop.f32.mrf.mxu3 }
0x11f9   : > { %v7144_v0 = vpack.c.bf16 %v7102_v63, %v7100_v50 }
0x11fb   : > { %7241 = vmatpush.bf16.msrb.mxu0 %v7144_v0 }
0x11ff   : > { %7242 = vmatpush.bf16.msrb.mxu0 %v7143_v41 }
0x1203   : > { %7243 = vmatpush.bf16.msrb.mxu0 %v7142_v42 }
0x1207   : > { %7244 = vmatpush.bf16.msrb.mxu0 %v7141_v5 }
0x120b   : > { %7245 = vmatpush.bf16.msrb.mxu0 %v7140_v43 }
0x120f   : > { %7246 = vmatpush.bf16.msrb.mxu0 %v7139_v51 }
0x1213   : > { %7247 = vmatpush.bf16.msrb.mxu0 %v7138_v20 }
0x1217   : > { %7248 = vmatpush.bf16.msrb.mxu0 %v7137_v6 }
0x121a   : > { %7249 = vmatmul.bf16.vlgmr.msrb.gmra.mxu0 %v10665_v24 }
0x121b   : > { %8612 = vmatpush.bf16.msra.mxu0 %v17170_v11 }
0x121f   : > { %8613 = vmatpush.bf16.msra.mxu0 %v17171_v60 }
0x1223   : > { %8614 = vmatpush.bf16.msra.mxu0 %v17172_v14 }
0x1227   : > { %8615 = vmatpush.bf16.msra.mxu0 %v17173_v44 }
0x122a   : > { %7254 = vmatmul.bf16.gmra.mxu0 %v10666_v54 }
0x123a   : > { %7259 = vmatmul.bf16.gmra.mxu0 %v10667_v3 }
0x124a   : > { %7264 = vmatmul.bf16.gmra.mxu0 %v10668_v52 }
0x125a   : > { %7269 = vmatmul.bf16.gmra.mxu0 %v10669_v10 }
0x126a   : > { %7274 = vmatmul.bf16.gmra.mxu0 %v10670_v39 }
0x127a   : > { %7279 = vmatmul.bf16.gmra.mxu0 %v10671_v21 }
0x128a   : > { %7284 = vmatmul.bf16.gmra.mxu0 %v10672_v15 }
0x1297   : > { %v7250_v4 = vpop.f32.mrf.mxu0 }
0x129a   : > { %7289 = vmatmul.bf16.gmra.mxu0 %v10673_v12 }
0x129f   : > { %v7252_v46 = vpop.f32.mrf.mxu0 }
0x12a0   : > { %v7330_v1 = vpack.c.bf16 %v7252_v46, %v7250_v4 }
0x12a2   : > { %10149 = vmatmul.msk.bf16.vlgmr.msrb.gmra.mxu2 %vm7349_vm15, %v7330_v1 }
0x12a7   : > { %v7255_v38 = vpop.f32.mrf.mxu0 }
0x12aa   : > { %7294 = vmatmul.bf16.gmra.mxu0 %v10674_v32 }
0x12af   : > { %v7257_v61 = vpop.f32.mrf.mxu0 }
0x12b0   : > { %v7331_v16 = vpack.c.bf16 %v7257_v61, %v7255_v38 }
0x12b2   : > { %10150 = vmatmul.msk.bf16.gmra.mxu2 %vm7349_vm15, %v7331_v16 }
0x12b7   : > { %v7260_v58 = vpop.f32.mrf.mxu0 }
0x12ba   : > { %7299 = vmatmul.bf16.gmra.mxu0 %v10675_v30 }
0x12bf   : > { %v7262_v9 = vpop.f32.mrf.mxu0 }
0x12c0   : > { %v7332_v25 = vpack.c.bf16 %v7262_v9, %v7260_v58 }
0x12c2   : > { %10151 = vmatmul.msk.bf16.gmra.mxu2 %vm7349_vm15, %v7332_v25 }
0x12c7   : > { %v7265_v37 = vpop.f32.mrf.mxu0 }
0x12ca   : > { %7304 = vmatmul.bf16.gmra.mxu0 %v10676_v55 }
0x12cf   : > { %v7267_v36 = vpop.f32.mrf.mxu0 }
0x12d0   : > { %v7333_v47 = vpack.c.bf16 %v7267_v36, %v7265_v37 }
0x12d2   : > { %10152 = vmatmul.msk.bf16.gmra.mxu2 %vm7349_vm15, %v7333_v47 }
0x12d7   : > { %v7270_v45 = vpop.f32.mrf.mxu0 }
0x12da   : > { %7309 = vmatmul.bf16.gmra.mxu0 %v10677_v57 }
0x12df   : > { %v7272_v2 = vpop.f32.mrf.mxu0 }
0x12e0   : > { %v7336_v17 = vpack.c.bf16 %v7272_v2, %v7270_v45 }
0x12e2   : > { %10141 = vmatmul.msk.bf16.vlgmr.msrb.gmra.mxu1 %vm7349_vm15, %v7336_v17 }
0x12e3   : > { %8097 = vmatpush.bf16.msrb.mxu1 %v17174_v28 }
0x12e7   : > { %8098 = vmatpush.bf16.msrb.mxu1 %v17175_v13  ;;  %v7275_v56 = vpop.f32.mrf.mxu0  ;;  %v7593_v13 = vpop.permute.xlu0 %7592 }
0x12ea   : > { %7314 = vmatmul.bf16.gmra.mxu0 %v10678_v35 }
0x12eb   : > { %8099 = vmatpush.bf16.msrb.mxu1 %v17176_v22 }
0x12ef   : > { %8100 = vmatpush.bf16.msrb.mxu1 %v17177_v18  ;;  %v7277_v33 = vpop.f32.mrf.mxu0 }
0x12f0   : > { %v7337_v7 = vpack.c.bf16 %v7277_v33, %v7275_v56 }
0x12f2   : > { %10142 = vmatmul.msk.bf16.gmra.mxu1 %vm7349_vm15, %v7337_v7 }
0x12f7   : > { %v7280_v59 = vpop.f32.mrf.mxu0 }
0x12fa   : > { %7319 = vmatmul.bf16.gmra.mxu0 %v10679_v40 }
0x12ff   : > { %v7282_v53 = vpop.f32.mrf.mxu0 }
0x1300   : > { %v7338_v27 = vpack.c.bf16 %v7282_v53, %v7280_v59 }
0x1302   : > { %10143 = vmatmul.msk.bf16.gmra.mxu1 %vm7349_vm15, %v7338_v27 }
0x1307   : > { %v7285_v23 = vpop.f32.mrf.mxu0 }
0x130a   : > { %7324 = vmatmul.bf16.gmra.mxu0 %v10680_v49 }
0x130f   : > { %v7287_v34 = vpop.f32.mrf.mxu0 }
0x1310   : > { %v7339_v48 = vpack.c.bf16 %v7287_v34, %v7285_v23  ;;  %v7588_v23 = vpop.permute.xlu0 %7587 }
0x1312   : > { %10144 = vmatmul.msk.bf16.gmra.mxu1 %vm7349_vm15, %v7339_v48 }
0x1317   : > { %v7290_v8 = vpop.f32.mrf.mxu0 }
0x131f   : > { %v7292_v19 = vpop.f32.mrf.mxu0 }
0x1320   : > { %v7438_v26 = vpack.c.bf16 %v7292_v19, %v7290_v8 }
0x1322   : > { %10159 = vmatmul.msk.bf16.vlgmr.msrb.gmra.mxu3 %vm7349_vm15, %v7438_v26  ;;  %v7603_v26 = vpop.permute.xlu1 %7602 }
0x1325   : > { %v7418_v6 = vpop.f32.mrf.mxu2 }
0x1327   : > { %v7295_v31 = vpop.f32.mrf.mxu0 }
0x132d   : > { %v7420_v58 = vpop.f32.mrf.mxu2 }
0x132f   : > { %v7297_v50 = vpop.f32.mrf.mxu0 }
0x1330   : > { %v7439_v63 = vpack.c.bf16 %v7297_v50, %v7295_v31 }
0x1332   : > { %10160 = vmatmul.msk.bf16.gmra.mxu3 %vm7349_vm15, %v7439_v63 }
0x1335   : > { %v7423_v62 = vpop.f32.mrf.mxu2 }
0x1337   : > { %v7300_v0 = vpop.f32.mrf.mxu0 }
0x133d   : > { %v7425_v47 = vpop.f32.mrf.mxu2 }
0x133f   : > { %v7302_v41 = vpop.f32.mrf.mxu0 }
0x1340   : > { %v7440_v42 = vpack.c.bf16 %v7302_v41, %v7300_v0 }
0x1342   : > { %10161 = vmatmul.msk.bf16.gmra.mxu3 %vm7349_vm15, %v7440_v42 }
0x1345   : > { %v7428_v2 = vpop.f32.mrf.mxu2 }
0x1347   : > { %v7305_v5 = vpop.f32.mrf.mxu0 }
0x134d   : > { %v7430_v56 = vpop.f32.mrf.mxu2 }
0x134f   : > { %v7307_v43 = vpop.f32.mrf.mxu0 }
0x1350   : > { %v7441_v51 = vpack.c.bf16 %v7307_v43, %v7305_v5 }
0x1352   : > { %10162 = vmatmul.msk.bf16.gmra.mxu3 %vm7349_vm15, %v7441_v51 }
0x1355   : > { %v7433_v34 = vpop.f32.mrf.mxu2 }
0x1357   : > { %v7310_v20 = vpop.f32.mrf.mxu0 }
0x135d   : > { %v7435_v42 = vpop.f32.mrf.mxu2 }
0x135f   : > { %v7312_v24 = vpop.f32.mrf.mxu0  ;;  %v7371_v11 = vpop.f32.mrf.mxu1 }
0x1360   : > { %v7500_v60 = vpack.c.bf16 %v7312_v24, %v7310_v20  ;;  %v7419_v14 = vadd.f32 %v7418_v6, %v7371_v11  ;;  %v7608_v20 = vpop.permute.xlu2 %7607  ;;  %v7598_v11 = vpop.permute.xlu1 %7597 }
0x1362   : > { %10169 = vmatmul.msk.bf16.vlgmr.msra.gmra.mxu1 %vm7349_vm15, %v7500_v60 }
0x1367   : > { %v7315_v44 = vpop.f32.mrf.mxu0  ;;  %v16153_v4 = vpop.f32.mrf.mxu1 }
0x136f   : > { %v7317_v54 = vpop.f32.mrf.mxu0  ;;  %v7376_v46 = vpop.f32.mrf.mxu1 }
0x1370   : > { %v7501_v3 = vpack.c.bf16 %v7317_v54, %v7315_v44  ;;  %v7424_v44 = vadd.f32 %v7423_v62, %v7376_v46 }
0x1372   : > { %10170 = vmatmul.msk.bf16.gmra.mxu1 %vm7349_vm15, %v7501_v3 }
0x1377   : > { %v7320_v52 = vpop.f32.mrf.mxu0  ;;  %v7378_v38 = vpop.f32.mrf.mxu1 }
0x1378   : > { %v7426_v40 = vadd.f32 %v7425_v47, %v7378_v38 }
0x137f   : > { %v7322_v10 = vpop.f32.mrf.mxu0  ;;  %v7381_v61 = vpop.f32.mrf.mxu1 }
0x1380   : > { %v7502_v39 = vpack.c.bf16 %v7322_v10, %v7320_v52  ;;  %v7429_v35 = vadd.f32 %v7428_v2, %v7381_v61 }
0x1382   : > { %10171 = vmatmul.msk.bf16.gmra.mxu1 %vm7349_vm15, %v7502_v39  ;;  %v7583_v39 = vpop.permute.xlu2 %7582 }
0x1387   : > { %v7325_v21 = vpop.f32.mrf.mxu0  ;;  %v7383_v16 = vpop.f32.mrf.mxu1 }
0x1388   : > { %v7431_v0 = vadd.f32 %v7430_v56, %v7383_v16 }
0x138a   : > { %v7578_v38 = vpop.permute.xlu2 %7577 }
0x138f   : > { %v7327_v15 = vpop.f32.mrf.mxu0  ;;  %v7386_v30 = vpop.f32.mrf.mxu1 }
0x1390   : > { %v7503_v12 = vpack.c.bf16 %v7327_v15, %v7325_v21  ;;  %v7434_v19 = vadd.f32 %v7433_v34, %v7386_v30  ;;  %v7573_v21 = vpop.permute.xlu1 %7572  ;;  %v7421_v15 = vadd.f32 %v7420_v58, %v16153_v4 }
0x1392   : > { %10172 = vmatmul.msk.bf16.gmra.mxu1 %vm7349_vm15, %v7503_v12 }
0x1397   : > { %v7388_v29 = vpop.f32.mrf.mxu1 }
0x1398   : > { %v7436_v43 = vadd.f32 %v7435_v42, %v7388_v29 }
0x13a5   : > { %v7472_v1 = vpop.f32.mrf.mxu3 }
0x13a6   : > { %v7492_v32 = vadd.f32 %v7472_v1, %v7419_v14 }
0x13ad   : > { %v7474_v9 = vpop.f32.mrf.mxu3 }
0x13ae   : > { %v7493_v46 = vadd.f32 %v7474_v9, %v7421_v15 }
0x13b5   : > { %v7477_v37 = vpop.f32.mrf.mxu3 }
0x13b6   : > { %v7494_v52 = vadd.f32 %v7477_v37, %v7424_v44 }
0x13bd   : > { %v7479_v57 = vpop.f32.mrf.mxu3 }
0x13be   : > { %v7495_v53 = vadd.f32 %v7479_v57, %v7426_v40 }
0x13c5   : > { %v7482_v17 = vpop.f32.mrf.mxu3 }
0x13c6   : > { %v7496_v22 = vadd.f32 %v7482_v17, %v7429_v35 }
0x13cd   : > { %v7484_v18 = vpop.f32.mrf.mxu3 }
0x13ce   : > { %v7497_v51 = vadd.f32 %v7484_v18, %v7431_v0 }
0x13d5   : > { %v7487_v48 = vpop.f32.mrf.mxu3 }
0x13d6   : > { %v7498_v31 = vadd.f32 %v7487_v48, %v7434_v19 }
0x13dd   : > { %v7489_v5 = vpop.f32.mrf.mxu3 }
0x13de   : > { %v7499_v6 = vadd.f32 %v7489_v5, %v7436_v43  ;;  %v17179_v5 = vld [vmem:[#allocation24_spill] sm:$0xff] }
0x13df   : > { %v7534_v25 = vpop.f32.mrf.mxu1 }
0x13e0   : > { %v7554_v55 = vadd.f32 %v7534_v25, %v7492_v32 }
0x13e2   : > { %v16176_v12 = vadd.f32 %v7573_v21, %v7554_v55 }
0x13e7   : > { %v7536_v36 = vpop.f32.mrf.mxu1 }
0x13e8   : > { %v7555_v32 = vadd.f32 %v7536_v36, %v7493_v46 }
0x13ea   : > { %v16184_v61 = vadd.f32 %v7578_v38, %v7555_v32 }
0x13ec   : > { %v7823_v56 = vpack.c.bf16 %v16184_v61, %v16184_v61 }
0x13ef   : > { %v7539_v45 = vpop.f32.mrf.mxu1 }
0x13f0   : > { %v7556_v10 = vadd.f32 %v7539_v45, %v7494_v52 }
0x13f2   : > { %v16178_v1 = vadd.f32 %v7583_v39, %v7556_v10 }
0x13f4   : > { %v7824_v40 = vpack.c.bf16 %v16178_v1, %v16178_v1 }
0x13f6   : > { %v7876_v48 = vunpack.c.l.b16 %v7824_v40 }
0x13f7   : > { %v7541_v28 = vpop.f32.mrf.mxu1 }
0x13f8   : > { %v7557_v27 = vadd.f32 %v7541_v28, %v7495_v53  ;;  %v7822_v53 = vpack.c.bf16 %v16176_v12, %v16176_v12 }
0x13fa   : > { %v16159_v8 = vadd.f32 %v7588_v23, %v7557_v27  ;;  %v7875_v23 = vunpack.c.l.b16 %v7823_v56  ;;  %v7874_v19 = vunpack.c.l.b16 %v7822_v53 }
0x13ff   : > { %v7544_v33 = vpop.f32.mrf.mxu1 }
0x1400   : > { %v7558_v7 = vadd.f32 %v7544_v33, %v7496_v22 }
0x1402   : > { %v16155_v59 = vadd.f32 %v7593_v13, %v7558_v7  ;;  %v7825_v13 = vpack.c.bf16 %v16159_v8, %v16159_v8 }
0x1404   : > { %7630 = vrot.lane.b32.xlu2 %v16155_v59, %s17161_s6  ;;  %v7826_v27 = vpack.c.bf16 %v16155_v59, %v16155_v59 }
0x1407   : > { %v7546_v49 = vpop.f32.mrf.mxu1 }
0x1408   : > { %v7559_v24 = vadd.f32 %v7546_v49, %v7497_v51  ;;  %v7877_v49 = vunpack.c.l.b16 %v7825_v13 }
0x140a   : > { %v16167_v54 = vadd.f32 %v7598_v11, %v7559_v24 }
0x140c   : > { %7627 = vrot.lane.b32.xlu2 %v16159_v8, %s17161_s6  ;;  %v7827_v7 = vpack.c.bf16 %v16167_v54, %v16167_v54 }
0x140e   : > { %v7879_v34 = vunpack.c.l.b16 %v7827_v7 }
0x140f   : > { %v7549_v50 = vpop.f32.mrf.mxu1 }
0x1410   : > { %v7560_v63 = vadd.f32 %v7549_v50, %v7498_v31  ;;  %v7883_v31 = vpack.c.b16 %v7877_v49, %v7876_v48  ;;  %v7882_v50 = vpack.c.b16 %v7875_v23, %v7874_v19 }
0x1412   : > { %v16163_v41 = vadd.f32 %v7603_v26, %v7560_v63  ;;  %v7878_v26 = vunpack.c.l.b16 %v7826_v27 }
0x1414   : > { %7636 = vrot.lane.b32.xlu0 %v16163_v41, %s17161_s6  ;;  %v7828_v45 = vpack.c.bf16 %v16163_v41, %v16163_v41  ;;  %v7884_v63 = vpack.c.b16 %v7879_v34, %v7878_v26 }
0x1416   : > { %v7880_v28 = vunpack.c.l.b16 %v7828_v45 }
0x1417   : > { %v7551_v60 = vpop.f32.mrf.mxu1 }
0x1418   : > { %v7561_v14 = vadd.f32 %v7551_v60, %v7499_v6 }
0x141a   : > { %v16169_v3 = vadd.f32 %v7608_v20, %v7561_v14 }
0x141c   : > { %7633 = vrot.lane.b32.xlu0 %v16167_v54, %s17161_s6  ;;  %7639 = vrot.lane.b32.xlu1 %v16169_v3, %s17161_s6  ;;  %v7829_v57 = vpack.c.bf16 %v16169_v3, %v16169_v3 }
0x141e   : > { %v7881_v2 = vunpack.c.l.b16 %v7829_v57 }
0x1420   : > { %v7885_v33 = vpack.c.b16 %v7881_v2, %v7880_v28  ;;  %v17180_v28 = vld [vmem:[#allocation40_spill] sm:$0xff] }
0x1424   : > { %7618 = vrot.lane.b32.xlu0 %v16176_v12, %s17161_s6  ;;  %7624 = vrot.lane.b32.xlu1 %v16178_v1, %s17161_s6 }
0x142c   : > { %7621 = vrot.lane.b32.xlu1 %v16184_v61, %s17161_s6 }
0x145e   : > { %v7631_v16 = vpop.permute.xlu2 %7630 }
0x145f   : > { %v7632_v4 = vsel %vm3196_vm14, %v7631_v16, %v16155_v59 }
0x1460   : > { %7650 = vrot.lane.b32.xlu1 %v7632_v4, %s17161_s6 }
0x1466   : > { %v7628_v30 = vpop.permute.xlu2 %7627 }
0x1467   : > { %v7629_v58 = vsel %vm3196_vm14, %v7628_v30, %v16159_v8 }
0x1468   : > { %7648 = vrot.lane.b32.xlu1 %v7629_v58, %s17161_s6 }
0x1486   : > { %v7637_v29 = vpop.permute.xlu0 %7636 }
0x1487   : > { %v7638_v36 = vsel %vm3196_vm14, %v7637_v29, %v16163_v41 }
0x148e   : > { %v7634_v9 = vpop.permute.xlu0 %7633  ;;  %v7640_v25 = vpop.permute.xlu1 %7639 }
0x148f   : > { %v7635_v62 = vsel %vm3196_vm14, %v7634_v9, %v16167_v54  ;;  %v7641_v55 = vsel %vm3196_vm14, %v7640_v25, %v16169_v3 }
0x1490   : > { %7652 = vrot.lane.b32.xlu2 %v7635_v62, %s17161_s6  ;;  %7656 = vrot.lane.b32.xlu0 %v7641_v55, %s17161_s6 }
0x1496   : > { %v7625_v37 = vpop.permute.xlu1 %7624  ;;  %v7619_v17 = vpop.permute.xlu0 %7618 }
0x1497   : > { %v7626_v47 = vsel %vm3196_vm14, %v7625_v37, %v16178_v1  ;;  %v7620_v22 = vsel %vm3196_vm14, %v7619_v17, %v16176_v12 }
0x1498   : > { %7654 = vrot.lane.b32.xlu2 %v7638_v36, %s17161_s6  ;;  %7646 = vrot.lane.b32.xlu0 %v7626_v47, %s17161_s6 }
0x149e   : > { %v7622_v35 = vpop.permute.xlu1 %7621 }
0x149f   : > { %v7623_v18 = vsel %vm3196_vm14, %v7622_v35, %v16184_v61 }
0x14a0   : > { %7642 = vrot.lane.b32.xlu0 %v7620_v22, %s17161_s6  ;;  %7644 = vrot.lane.b32.xlu1 %v7623_v18, %s17161_s6 }
0x14a1   : > { %7892 = vrot.lane.b32.xlu2 %v7885_v33, %s17178_s1 }
0x14a8   : > { %7888 = vrot.lane.b32.xlu0 %v7883_v31, %s17178_s1  ;;  %7886 = vrot.lane.b32.xlu1 %v7882_v50, %s17178_s1 }
0x14a9   : > { %7890 = vrot.lane.b32.xlu2 %v7884_v63, %s17178_s1  ;;  %v17181_v63 = vld [vmem:[#allocation25_spill] sm:$0xff] }
0x14d2   : > { %v7651_v0 = vpop.permute.xlu1 %7650 }
0x14d3   : > { %v16234_v42 = vsel %vm3196_vm14, %v7651_v0, %v16155_v59 }
0x14d4   : > { %v7810_v43 = vmul.f32 %v16234_v42, %v17179_v5  ;;  %v7686_v40 = vmul.f32 %v16234_v42, %v17180_v28 }
0x14d6   : > { %v7818_v24 = vpack.c.bf16 %v7810_v43, %v7810_v43  ;;  %v7694_v31 = vpack.c.bf16 %v7686_v40, %v7686_v40 }
0x14d8   : > { %v7858_v60 = vunpack.c.l.b16 %v7818_v24 }
0x14da   : > { %v7649_v39 = vpop.permute.xlu1 %7648 }
0x14db   : > { %v16260_v38 = vsel %vm3196_vm14, %v7649_v39, %v16159_v8 }
0x14dc   : > { %v7809_v30 = vmul.f32 %v16260_v38, %v17179_v5  ;;  %v7685_v7 = vmul.f32 %v16260_v38, %v17180_v28 }
0x14de   : > { %v7817_v25 = vpack.c.bf16 %v7809_v30, %v7809_v30  ;;  %v7693_v26 = vpack.c.bf16 %v7685_v7, %v7685_v7 }
0x14e0   : > { %v7857_v55 = vunpack.c.l.b16 %v7817_v25 }
0x14ea   : > { %v7653_v51 = vpop.permute.xlu2 %7652 }
0x14eb   : > { %v16240_v20 = vsel %vm3196_vm14, %v7653_v51, %v16167_v54 }
0x14ec   : > { %v7811_v6 = vmul.f32 %v16240_v20, %v17179_v5 }
0x14ee   : > { %v7819_v11 = vpack.c.bf16 %v7811_v6, %v7811_v6 }
0x14f0   : > { %v7859_v14 = vunpack.c.l.b16 %v7819_v11 }
0x14f2   : > { %v7655_v44 = vpop.permute.xlu2 %7654  ;;  %v7864_v52 = vpack.c.b16 %v7859_v14, %v7858_v60  ;;  %v7834_v14 = vmul.f32 %v16234_v42, %v17181_v63 }
0x14f3   : > { %v16248_v10 = vsel %vm3196_vm14, %v7655_v44, %v16163_v41  ;;  %v7745_v44 = vunpack.c.l.b16 %v7693_v26 }
0x14f4   : > { %8007 = vrot.lane.b32.xlu1 %v7864_v52, %s17141_s23  ;;  %v7812_v54 = vmul.f32 %v16248_v10, %v17179_v5  ;;  %v7688_v22 = vmul.f32 %v16248_v10, %v17180_v28  ;;  %v7836_v60 = vmul.f32 %v16248_v10, %v17181_v63  ;;  %v7746_v52 = vunpack.c.l.b16 %v7694_v31 }
0x14f6   : > { %v7820_v32 = vpack.c.bf16 %v7812_v54, %v7812_v54  ;;  %v7696_v19 = vpack.c.bf16 %v7688_v22, %v7688_v22 }
0x14f8   : > { %v7860_v41 = vunpack.c.l.b16 %v7820_v32  ;;  %v7748_v11 = vunpack.c.l.b16 %v7696_v19 }
0x14fb   : > { %v7893_v59 = vpop.permute.xlu2 %7892 }
0x14fc   : > { %8017 = vrot.lane.b32.xlu0 %v7893_v59, %s17141_s23 }
0x1502   : > { %v7657_v21 = vpop.permute.xlu0 %7656 }
0x1503   : > { %v16254_v15 = vsel %vm3196_vm14, %v7657_v21, %v16169_v3  ;;  %v7891_v57 = vpop.permute.xlu2 %7890 }
0x1504   : > { %v7813_v46 = vmul.f32 %v16254_v15, %v17179_v5  ;;  %v7689_v35 = vmul.f32 %v16254_v15, %v17180_v28  ;;  %v7837_v0 = vmul.f32 %v16254_v15, %v17181_v63 }
0x1506   : > { %v7821_v16 = vpack.c.bf16 %v7813_v46, %v7813_v46  ;;  %v7697_v53 = vpack.c.bf16 %v7689_v35, %v7689_v35  ;;  %v7845_v54 = vpack.c.bf16 %v7837_v0, %v7837_v0 }
0x1508   : > { %v7861_v4 = vunpack.c.l.b16 %v7821_v16  ;;  %v7749_v50 = vunpack.c.l.b16 %v7697_v53  ;;  %v7909_v30 = vunpack.c.l.b16 %v7845_v54 }
0x150a   : > { %v7647_v58 = vpop.permute.xlu0 %7646  ;;  %v7865_v29 = vpack.c.b16 %v7861_v4, %v7860_v41  ;;  %v7753_v59 = vpack.c.b16 %v7749_v50, %v7748_v11  ;;  %v7844_v41 = vpack.c.bf16 %v7836_v60, %v7836_v60  ;;  %v7842_v4 = vpack.c.bf16 %v7834_v14, %v7834_v14 }
0x150b   : > { %v16266_v3 = vsel %vm3196_vm14, %v7647_v58, %v16178_v1 }
0x150c   : > { %8009 = vrot.lane.b32.xlu2 %v7865_v29, %s17141_s23  ;;  %v7808_v9 = vmul.f32 %v16266_v3, %v17179_v5  ;;  %v7684_v56 = vmul.f32 %v16266_v3, %v17180_v28  ;;  %v7832_v29 = vmul.f32 %v16266_v3, %v17181_v63 }
0x150e   : > { %v7816_v8 = vpack.c.bf16 %v7808_v9, %v7808_v9  ;;  %v7692_v34 = vpack.c.bf16 %v7684_v56, %v7684_v56  ;;  %v17182_v9 = vld [vmem:[#allocation33_spill] sm:$0xff]  ;;  %v7840_v35 = vpack.c.bf16 %v7832_v29, %v7832_v29 }
0x150f   : > { %v7673_v25 = vmul.f32 %v16254_v15, %v17182_v9  ;;  %v7668_v0 = vmul.f32 %v16266_v3, %v17182_v9 }
0x1510   : > { %v7856_v62 = vunpack.c.l.b16 %v7816_v8  ;;  %v7744_v43 = vunpack.c.l.b16 %v7692_v34  ;;  %v7670_v34 = vmul.f32 %v16234_v42, %v17182_v9 }
0x1512   : > { %v7643_v37 = vpop.permute.xlu0 %7642  ;;  %v7645_v36 = vpop.permute.xlu1 %7644  ;;  %v7863_v47 = vpack.c.b16 %v7857_v55, %v7856_v62  ;;  %v7751_v21 = vpack.c.b16 %v7745_v44, %v7744_v43  ;;  %v7678_v50 = vpack.c.bf16 %v7670_v34, %v7670_v34  ;;  %v7669_v43 = vmul.f32 %v16260_v38, %v17182_v9 }
0x1513   : > { %v16273_v45 = vsel %vm3196_vm14, %v7643_v37, %v16176_v12  ;;  %v16277_v1 = vsel %vm3196_vm14, %v7645_v36, %v16184_v61  ;;  %v7687_v61 = vmul.f32 %v16240_v20, %v17180_v28  ;;  %v7908_v36 = vunpack.c.l.b16 %v7844_v41 }
0x1514   : > { %8005 = vrot.lane.b32.xlu0 %v7863_v47, %s17141_s23  ;;  %8015 = vrot.lane.b32.xlu2 %v7891_v57, %s17141_s23  ;;  %v7806_v2 = vmul.f32 %v16273_v45, %v17179_v5  ;;  %v7807_v17 = vmul.f32 %v16277_v1, %v17179_v5  ;;  %v7835_v5 = vmul.f32 %v16240_v20, %v17181_v63  ;;  %v7906_v47 = vunpack.c.l.b16 %v7842_v4 }
0x1515   : > { %v7695_v48 = vpack.c.bf16 %v7687_v61, %v7687_v61  ;;  %v7682_v6 = vmul.f32 %v16273_v45, %v17180_v28  ;;  %v7683_v24 = vmul.f32 %v16277_v1, %v17180_v28  ;;  %v7830_v55 = vmul.f32 %v16273_v45, %v17181_v63 }
0x1516   : > { %v7814_v13 = vpack.c.bf16 %v7806_v2, %v7806_v2  ;;  %v7815_v12 = vpack.c.bf16 %v7807_v17, %v7807_v17  ;;  %v7843_v39 = vpack.c.bf16 %v7835_v5, %v7835_v5  ;;  %v7831_v37 = vmul.f32 %v16277_v1, %v17181_v63 }
0x1517   : > { %v7747_v51 = vunpack.c.l.b16 %v7695_v48  ;;  %v7690_v32 = vpack.c.bf16 %v7682_v6, %v7682_v6  ;;  %v7691_v16 = vpack.c.bf16 %v7683_v24, %v7683_v24  ;;  %v7833_v57 = vmul.f32 %v16260_v38, %v17181_v63 }
0x1518   : > { %v7854_v18 = vunpack.c.l.b16 %v7814_v13  ;;  %v7855_v33 = vunpack.c.l.b16 %v7815_v12  ;;  %v7907_v58 = vunpack.c.l.b16 %v7843_v39  ;;  %v7672_v2 = vmul.f32 %v16248_v10, %v17182_v9 }
0x1519   : > { %v7752_v46 = vpack.c.b16 %v7747_v51, %v7746_v52  ;;  %v7742_v8 = vunpack.c.l.b16 %v7690_v32  ;;  %v7743_v62 = vunpack.c.l.b16 %v7691_v16  ;;  %v7913_v17 = vpack.c.b16 %v7909_v30, %v7908_v36 }
0x151a   : > { %v7889_v27 = vpop.permute.xlu0 %7888  ;;  %v7887_v49 = vpop.permute.xlu1 %7886  ;;  %v7862_v23 = vpack.c.b16 %v7855_v33, %v7854_v18  ;;  %v7912_v28 = vpack.c.b16 %v7907_v58, %v7906_v47  ;;  %v7681_v12 = vpack.c.bf16 %v7673_v25, %v7673_v25  ;;  %v7838_v56 = vpack.c.bf16 %v7830_v55, %v7830_v55  ;;  %v17183_v25 = vld [vmem:[#allocation34_spill] sm:$0xff] }
0x151b   : > { %8013 = vrot.lane.b32.xlu1 %v7889_v27, %s17141_s23  ;;  %v7750_v13 = vpack.c.b16 %v7743_v62, %v7742_v8  ;;  %v7839_v61 = vpack.c.bf16 %v7831_v37, %v7831_v37  ;;  %v7841_v22 = vpack.c.bf16 %v7833_v57, %v7833_v57  ;;  %v7680_v18 = vpack.c.bf16 %v7672_v2, %v7672_v2  ;;  %v17184_v62 = vld [vmem:[#allocation36_spill] sm:$0xff] }
0x151c   : > { %8011 = vrot.lane.b32.xlu0 %v7887_v49, %s17141_s23  ;;  %8003 = vrot.lane.b32.xlu2 %v7862_v23, %s17141_s23  ;;  %v7904_v33 = vunpack.c.l.b16 %v7840_v35  ;;  %v7729_v7 = vunpack.c.l.b16 %v7681_v12  ;;  %v7902_v40 = vunpack.c.l.b16 %v7838_v56  ;;  %v7671_v27 = vmul.f32 %v16240_v20, %v17182_v9  ;;  %v17185_v2 = vld [vmem:[#allocation44_spill] sm:$0xff]  ;;  %v10191_v12 = vld [vmem:[%s16817_s11 + $0x60] sm:$0xf]  ;;  %v10698_v56 = vld [vmem:[%s16817_s11 + $0x68] sm:$0xf0] }
0x151d   : > { %v7903_v53 = vunpack.c.l.b16 %v7839_v61  ;;  %v7905_v49 = vunpack.c.l.b16 %v7841_v22  ;;  %v7728_v23 = vunpack.c.l.b16 %v7680_v18  ;;  %v7726_v5 = vunpack.c.l.b16 %v7678_v50  ;;  %v17187_v61 = vld [vmem:[#allocation49_spill] sm:$0xff]  ;;  %v17191_v50 = vld [vmem:[#allocation39_spill] sm:$0xff] }
0x151e   : > { %v7679_v31 = vpack.c.bf16 %v7671_v27, %v7671_v27  ;;  %v7676_v6 = vpack.c.bf16 %v7668_v0, %v7668_v0  ;;  %v7677_v24 = vpack.c.bf16 %v7669_v43, %v7669_v43  ;;  %v7666_v60 = vmul.f32 %v16273_v45, %v17182_v9 }
0x151f   : > { %v7911_v48 = vpack.c.b16 %v7905_v49, %v7904_v33  ;;  %v7733_v19 = vpack.c.b16 %v7729_v7, %v7728_v23  ;;  %v7910_v26 = vpack.c.b16 %v7903_v53, %v7902_v40  ;;  %v7667_v14 = vmul.f32 %v16277_v1, %v17182_v9  ;;  %v17188_v49 = vld [vmem:[#allocation42_spill] sm:$0xff]  ;;  %v17189_v23 = vld [vmem:[#allocation32_spill] sm:$0xff] }
0x1520   : > { %v7727_v63 = vunpack.c.l.b16 %v7679_v31  ;;  %v7724_v11 = vunpack.c.l.b16 %v7676_v6  ;;  %v7725_v44 = vunpack.c.l.b16 %v7677_v24  ;;  %v7705_v8 = vmul.f32 %v16254_v15, %v17183_v25 }
0x1521   : > { %v7675_v54 = vpack.c.bf16 %v7667_v14, %v7667_v14  ;;  %v7704_v55 = vmul.f32 %v16248_v10, %v17183_v25  ;;  %v7703_v35 = vmul.f32 %v16240_v20, %v17183_v25  ;;  %v7702_v18 = vmul.f32 %v16234_v42, %v17183_v25  ;;  %v17192_v14 = vld [vmem:[#allocation12_spill] sm:$0xff] }
0x1522   : > { %v7732_v51 = vpack.c.b16 %v7727_v63, %v7726_v5  ;;  %v7731_v52 = vpack.c.b16 %v7725_v44, %v7724_v11  ;;  %v7713_v57 = vpack.c.bf16 %v7705_v8, %v7705_v8  ;;  %v10192_v33 = vor.u32 %v10698_v56, %v10191_v12 }
0x1523   : > { %7760 = vrot.lane.b32.xlu1 %v7753_v59, %s17144_s5  ;;  %v7674_v59 = vpack.c.bf16 %v7666_v60, %v7666_v60  ;;  %v7711_v27 = vpack.c.bf16 %v7703_v35, %v7703_v35  ;;  %v7710_v34 = vpack.c.bf16 %v7702_v18, %v7702_v18  ;;  %v7700_v31 = vmul.f32 %v16266_v3, %v17183_v25  ;;  %v17194_v35 = vld [vmem:[#allocation35_spill] sm:$0xff] }
0x1524   : > { %7756 = vrot.lane.b32.xlu0 %v7751_v21, %s17144_s5  ;;  %7758 = vrot.lane.b32.xlu2 %v7752_v46, %s17144_s5  ;;  %v7723_v21 = vunpack.c.l.b16 %v7675_v54  ;;  %v7701_v5 = vmul.f32 %v16260_v38, %v17183_v25  ;;  %v8317_v56 = vmul.f32 %v16234_v42, %v17194_v35 }
0x1525   : > { %v7722_v39 = vunpack.c.l.b16 %v7674_v59  ;;  %v7774_v0 = vunpack.c.l.b16 %v7710_v34  ;;  %v7708_v60 = vpack.c.bf16 %v7700_v31, %v7700_v31 }
0x1527   : > { %v7730_v46 = vpack.c.b16 %v7723_v21, %v7722_v39  ;;  %v7772_v39 = vunpack.c.l.b16 %v7708_v60  ;;  %v17193_v21 = vld [vmem:[#allocation28_spill] sm:$0xff] }
0x1528   : > { %v8348_v31 = vmul.f32 %v16260_v38, %v17193_v21 }
0x152b   : > { %7920 = vrot.lane.b32.xlu1 %v7913_v17, %s17146_s24  ;;  %v7712_v17 = vpack.c.bf16 %v7704_v55, %v7704_v55 }
0x152c   : > { %7918 = vrot.lane.b32.xlu0 %v7912_v28, %s17146_s24  ;;  %7754 = vrot.lane.b32.xlu2 %v7750_v13, %s17144_s5  ;;  %v7777_v28 = vunpack.c.l.b16 %v7713_v57  ;;  %v17186_v13 = vld [vmem:[#allocation43_spill] sm:$0xff] }
0x152d   : > { %v7776_v22 = vunpack.c.l.b16 %v7712_v17 }
0x152f   : > { %v7781_v53 = vpack.c.b16 %v7777_v28, %v7776_v22 }
0x1533   : > { %7916 = vrot.lane.b32.xlu1 %v7911_v48, %s17146_s24  ;;  %v17190_v48 = vld [vmem:[#allocation45_spill] sm:$0xff] }
0x1534   : > { %8196 = vrot.lane.b32.xlu0 %v7733_v19, %s17147_s27  ;;  %7914 = vrot.lane.b32.xlu2 %v7910_v26, %s17146_s24  ;;  %v8336_v19 = vmul.f32 %v16254_v15, %v17190_v48  ;;  %v7775_v26 = vunpack.c.l.b16 %v7711_v27  ;;  %v8335_v63 = vmul.f32 %v16248_v10, %v17190_v48  ;;  %v8331_v54 = vmul.f32 %v16266_v3, %v17190_v48 }
0x1535   : > { %v8329_v57 = vmul.f32 %v16273_v45, %v17190_v48 }
0x1536   : > { %v7780_v11 = vpack.c.b16 %v7775_v26, %v7774_v0  ;;  %v8343_v44 = vpack.c.bf16 %v8335_v63, %v8335_v63  ;;  %v8315_v26 = vmul.f32 %v16266_v3, %v17194_v35  ;;  %v8316_v0 = vmul.f32 %v16260_v38, %v17194_v35 }
0x1537   : > { %v8337_v22 = vpack.c.bf16 %v8329_v57, %v8329_v57 }
0x1538   : > { %v8324_v60 = vpack.c.bf16 %v8316_v0, %v8316_v0 }
0x1539   : > { %v8389_v27 = vunpack.c.l.b16 %v8337_v22  ;;  %v7699_v22 = vmul.f32 %v16277_v1, %v17183_v25 }
0x153c   : > { %8194 = vrot.lane.b32.xlu2 %v7732_v51, %s17147_s27  ;;  %v8344_v51 = vpack.c.bf16 %v8336_v19, %v8336_v19 }
0x153e   : > { %v8396_v59 = vunpack.c.l.b16 %v8344_v51 }
0x1544   : > { %8192 = vrot.lane.b32.xlu2 %v7731_v52, %s17147_s27  ;;  %v7709_v52 = vpack.c.bf16 %v7701_v5, %v7701_v5 }
0x154c   : > { %8190 = vrot.lane.b32.xlu2 %v7730_v46, %s17147_s27  ;;  %v8345_v46 = vmul.f32 %v16273_v45, %v17193_v21 }
0x1566   : > { %v8010_v32 = vpop.permute.xlu2 %8009  ;;  %v8008_v16 = vpop.permute.xlu1 %8007 }
0x1567   : > { %8043 = vmatpush.bf16.msra.mxu2 %v8010_v32  ;;  %v8346_v32 = vmul.f32 %v16277_v1, %v17193_v21 }
0x1569   : > { %v8354_v55 = vpack.c.bf16 %v8346_v32, %v8346_v32 }
0x156b   : > { %8044 = vmatpush.bf16.msra.mxu2 %v8008_v16  ;;  %v8395_v16 = vunpack.c.l.b16 %v8343_v44  ;;  %v8418_v28 = vunpack.c.l.b16 %v8354_v55  ;;  %v8351_v55 = vmul.f32 %v16248_v10, %v17193_v21 }
0x156d   : > { %v8359_v57 = vpack.c.bf16 %v8351_v55, %v8351_v55  ;;  %v17201_v55 = vld [vmem:[#allocation13_spill] sm:$0xff] }
0x156e   : > { %v8018_v41 = vpop.permute.xlu0 %8017  ;;  %v8016_v4 = vpop.permute.xlu2 %8015 }
0x156f   : > { %8072 = vmatpush.bf16.msra.mxu3 %v8018_v41  ;;  %v8332_v41 = vmul.f32 %v16260_v38, %v17190_v48  ;;  %v8320_v38 = vmul.f32 %v16254_v15, %v17194_v35 }
0x1573   : > { %8073 = vmatpush.bf16.msra.mxu3 %v8016_v4  ;;  %v7773_v4 = vunpack.c.l.b16 %v7709_v52 }
0x1575   : > { %v7779_v8 = vpack.c.b16 %v7773_v4, %v7772_v39  ;;  %v17197_v39 = vld [vmem:[#allocation55_spill] sm:$0xff] }
0x1576   : > { %v8004_v30 = vpop.permute.xlu2 %8003 }
0x157e   : > { %v7759_v58 = vpop.permute.xlu2 %7758 }
0x1586   : > { %v8006_v29 = vpop.permute.xlu0 %8005  ;;  %v7755_v9 = vpop.permute.xlu2 %7754 }
0x1587   : > { %8045 = vmatpush.bf16.msra.mxu2 %v8006_v29  ;;  %8198 = vrot.lane.b32.xlu0 %v7755_v9, %s17147_s27  ;;  %v8339_v29 = vpack.c.bf16 %v8331_v54, %v8331_v54  ;;  %v8319_v54 = vmul.f32 %v16248_v10, %v17194_v35 }
0x158b   : > { %8046 = vmatpush.bf16.msra.mxu2 %v8004_v30 }
0x158d   : > { %v8014_v37 = vpop.permute.xlu1 %8013 }
0x158e   : > { %v8012_v36 = vpop.permute.xlu0 %8011  ;;  %8074 = vmatpush.bf16.msra.mxu3 %v8014_v37  ;;  %v7915_v47 = vpop.permute.xlu2 %7914  ;;  %8047 = vmatmul.bf16.vlgmr.msra.gmra.mxu2 %v10192_v33  ;;  %v8340_v37 = vpack.c.bf16 %v8332_v41, %v8332_v41  ;;  %v8328_v41 = vpack.c.bf16 %v8320_v38, %v8320_v38  ;;  %v10205_v38 = vld [vmem:[%s16817_s11 + $0x84] sm:$0xf0] }
0x158f   : > { %8226 = vmatpush.bf16.msrb.mxu2 %v17184_v62  ;;  %8019 = vrot.lane.b32.xlu2 %v7915_v47, %s17141_s23  ;;  %v8353_v62 = vpack.c.bf16 %v8345_v46, %v8345_v46  ;;  %v8391_v47 = vunpack.c.l.b16 %v8339_v29  ;;  %v8372_v46 = vunpack.c.l.b16 %v8324_v60 }
0x1590   : > { %v8392_v12 = vunpack.c.l.b16 %v8340_v37 }
0x1591   : > { %v8417_v17 = vunpack.c.l.b16 %v8353_v62 }
0x1592   : > { %8075 = vmatpush.bf16.msra.mxu3 %v8012_v36 }
0x1593   : > { %8227 = vmatpush.bf16.msrb.mxu2 %v17185_v2  ;;  %v8330_v2 = vmul.f32 %v16277_v1, %v17190_v48  ;;  %v8425_v33 = vpack.c.b16 %v8418_v28, %v8417_v17  ;;  %v8350_v17 = vmul.f32 %v16240_v20, %v17193_v21  ;;  %v8423_v28 = vunpack.c.l.b16 %v8359_v57 }
0x1595   : > { %v16368_v7 = vpop.permute.xlu1 %7760  ;;  %v8338_v18 = vpack.c.bf16 %v8330_v2, %v8330_v2 }
0x1596   : > { %8255 = vmatpush.bf16.msrb.mxu3 %v17186_v13  ;;  %v7757_v40 = vpop.permute.xlu0 %7756  ;;  %v8195_v6 = vpop.permute.xlu2 %8194  ;;  %v8318_v13 = vmul.f32 %v16240_v20, %v17194_v35 }
0x1597   : > { %8228 = vmatpush.bf16.msrb.mxu2 %v17187_v61  ;;  %8200 = vrot.lane.b32.xlu0 %v7757_v40, %s17147_s27  ;;  %v8398_v61 = vpack.c.b16 %v8392_v12, %v8391_v47  ;;  %v8358_v12 = vpack.c.bf16 %v8350_v17, %v8350_v17  ;;  %v10227_v17 = vld [vmem:[%s16817_s11 + $0xa8] sm:$0xf] }
0x1598   : > { %7788 = vrot.lane.b32.xlu2 %v7781_v53, %s17149_s17  ;;  %v8326_v40 = vpack.c.bf16 %v8318_v13, %v8318_v13  ;;  %v8325_v53 = vpack.c.bf16 %v8317_v56, %v8317_v56 }
0x1599   : > { %v8422_v56 = vunpack.c.l.b16 %v8358_v12 }
0x159a   : > { %8256 = vmatpush.bf16.msrb.mxu3 %v17188_v49  ;;  %v8390_v49 = vunpack.c.l.b16 %v8338_v18  ;;  %v8374_v19 = vunpack.c.l.b16 %v8326_v40  ;;  %v8373_v63 = vunpack.c.l.b16 %v8325_v53 }
0x159b   : > { %8229 = vmatpush.bf16.msrb.mxu2 %v17189_v23  ;;  %v8347_v23 = vmul.f32 %v16266_v3, %v17193_v21  ;;  %v8356_v3 = vpack.c.bf16 %v8348_v31, %v8348_v31  ;;  %v10193_v31 = vld [vmem:[%s16817_s11 + $0x6c] sm:$0xf0] }
0x159c   : > { %v8397_v5 = vpack.c.b16 %v8390_v49, %v8389_v27 }
0x159d   : > { %v16383_v43 = vpop.permute.xlu1 %7920  ;;  %v8355_v51 = vpack.c.bf16 %v8347_v23, %v8347_v23 }
0x159e   : > { %8257 = vmatpush.bf16.msrb.mxu3 %v17191_v50  ;;  %v7919_v24 = vpop.permute.xlu0 %7918  ;;  %v8193_v36 = vpop.permute.xlu2 %8192  ;;  %v17195_v50 = vld [vmem:[#allocation54_spill] sm:$0xff] }
0x159f   : > { %8202 = vrot.lane.b32.xlu0 %v7759_v58, %s17147_s27  ;;  %v8400_v58 = vpack.c.b16 %v8396_v59, %v8395_v16  ;;  %v8419_v44 = vunpack.c.l.b16 %v8355_v51  ;;  %v8420_v59 = vunpack.c.l.b16 %v8356_v3  ;;  %v10203_v3 = vld [vmem:[%s16817_s11 + $0x78] sm:$0xf] }
0x15a0   : > { %7786 = vrot.lane.b32.xlu2 %v7780_v11, %s17149_s17  ;;  %v17196_v11 = vld [vmem:[#allocation47_spill] sm:$0xff] }
0x15a1   : > { %v8426_v16 = vpack.c.b16 %v8420_v59, %v8419_v44  ;;  %v10700_v44 = vld [vmem:[%s16817_s11 + $0x7c] sm:$0xf] }
0x15a2   : > { %8258 = vmatpush.bf16.msrb.mxu3 %v17192_v14  ;;  %v8334_v14 = vmul.f32 %v16240_v20, %v17190_v48  ;;  %v7707_v20 = vpack.c.bf16 %v7699_v22, %v7699_v22  ;;  %v10229_v22 = vld [vmem:[%s16817_s11 + $0xb4] sm:$0xf0] }
0x15a4   : > { %v8342_v32 = vpack.c.bf16 %v8334_v14, %v8334_v14 }
0x15a5   : > { %v7917_v30 = vpop.permute.xlu1 %7916 }
0x15a6   : > { %8021 = vrot.lane.b32.xlu1 %v7917_v30, %s17141_s23  ;;  %v8197_v9 = vpop.permute.xlu0 %8196  ;;  %v8191_v34 = vpop.permute.xlu2 %8190  ;;  %v8394_v29 = vunpack.c.l.b16 %v8342_v32  ;;  %v17199_v32 = vld [vmem:[#allocation48_spill] sm:$0xff] }
0x15a7   : > { %8230 = vmatpush.bf16.msrb.mxu2 %v8197_v9  ;;  %8407 = vrot.lane.b32.xlu0 %v8400_v58, %s17144_s5  ;;  %v8327_v58 = vpack.c.bf16 %v8319_v54, %v8319_v54  ;;  %v8352_v9 = vmul.f32 %v16254_v15, %v17193_v21  ;;  %v8349_v15 = vmul.f32 %v16234_v42, %v17193_v21 }
0x15a8   : > { %7784 = vrot.lane.b32.xlu2 %v7779_v8, %s17149_s17  ;;  %v8376_v8 = vunpack.c.l.b16 %v8328_v41 }
0x15a9   : > { %v8375_v37 = vunpack.c.l.b16 %v8327_v58  ;;  %v8357_v10 = vpack.c.bf16 %v8349_v15, %v8349_v15  ;;  %v10703_v58 = vld [vmem:[%s16817_s11 + $0x94] sm:$0xf]  ;;  %v17205_v15 = vld [vmem:[#allocation53_spill] sm:$0xff] }
0x15ab   : > { %8231 = vmatpush.bf16.msrb.mxu2 %v8195_v6  ;;  %v8379_v6 = vpack.c.b16 %v8374_v19, %v8373_v63  ;;  %v8380_v47 = vpack.c.b16 %v8376_v8, %v8375_v37  ;;  %v8421_v18 = vunpack.c.l.b16 %v8357_v10  ;;  %v8313_v8 = vmul.f32 %v16273_v45, %v17194_v35  ;;  %v17202_v37 = vld [vmem:[#allocation52_spill] sm:$0xff] }
0x15ae   : > { %8023 = vrot.lane.b32.xlu1 %v7919_v24, %s17141_s23  ;;  %v8323_v24 = vpack.c.bf16 %v8315_v26, %v8315_v26 }
0x15af   : > { %8403 = vrot.lane.b32.xlu0 %v8398_v61, %s17144_s5  ;;  %8232 = vmatpush.bf16.msrb.mxu2 %v8193_v36  ;;  %v8360_v36 = vpack.c.bf16 %v8352_v9, %v8352_v9  ;;  %v7698_v61 = vmul.f32 %v16273_v45, %v17183_v25  ;;  %v10697_v25 = vld [vmem:[%s16817_s11 + $0x64] sm:$0xf]  ;;  %v17204_v45 = vld [vmem:[#allocation15_spill] sm:$0xff] }
0x15b0   : > { %8429 = vrot.lane.b32.xlu2 %v8425_v33, %s17149_s17  ;;  %v8371_v52 = vunpack.c.l.b16 %v8323_v24  ;;  %v8427_v33 = vpack.c.b16 %v8422_v56, %v8421_v18  ;;  %v10706_v56 = vld [vmem:[%s16817_s11 + $0xac] sm:$0xf] }
0x15b1   : > { %v8424_v2 = vunpack.c.l.b16 %v8360_v36  ;;  %v7706_v40 = vpack.c.bf16 %v7698_v61, %v7698_v61  ;;  %v17206_v61 = vld [vmem:[#allocation17_spill] sm:$0xff]  ;;  %v10232_v18 = vor.u32 %v10706_v56, %v10229_v22  ;;  %v10709_v56 = vld [vmem:[%s16817_s11 + $0xc4] sm:$0xf] }
0x15b2   : > { %v8378_v4 = vpack.c.b16 %v8372_v46, %v8371_v52  ;;  %v10208_v52 = vor.u32 %v10700_v44, %v10205_v38  ;;  %v10704_v46 = vld [vmem:[%s16817_s11 + $0x98] sm:$0xf0] }
0x15b3   : > { %8233 = vmatpush.bf16.msrb.mxu2 %v8191_v34  ;;  %v8428_v13 = vpack.c.b16 %v8424_v2, %v8423_v28  ;;  %v7770_v53 = vunpack.c.l.b16 %v7706_v40  ;;  %v17203_v2 = vld [vmem:[#allocation37_spill] sm:$0xff]  ;;  %v10707_v28 = vld [vmem:[%s16817_s11 + $0xb0] sm:$0xf0] }
0x15b4   : > { %v10228_v12 = vor.u32 %v10707_v28, %v10227_v17  ;;  %v8655_v40 = vld [vmem:[%s16818_s12 + $0x30] sm:$0xff] }
0x15b6   : > { %8204 = vrot.lane.b32.xlu1 %v16368_v7, %s17147_s27  ;;  %v8333_v7 = vmul.f32 %v16234_v42, %v17190_v48  ;;  %v17198_v48 = vld [vmem:[#allocation19_spill] sm:$0xff]  ;;  %v7771_v42 = vunpack.c.l.b16 %v7707_v20 }
0x15b7   : > { %8554 = vmatpush.bf16.msra.mxu2 %v17195_v50  ;;  %8401 = vrot.lane.b32.xlu0 %v8397_v5, %s17144_s5  ;;  %v10196_v50 = vor.u32 %v10697_v25, %v10193_v31  ;;  %v10199_v20 = vld [vmem:[%s16817_s11 + $0x68] sm:$0xf]  ;;  %v8651_v31 = vld [vmem:[%s16818_s12 + $0x10] sm:$0xff] }
0x15b8   : > { %8522 = vrot.lane.b32.xlu2 %v8379_v6, %s17152_s3  ;;  %v8341_v30 = vpack.c.bf16 %v8333_v7, %v8333_v7  ;;  %v7778_v21 = vpack.c.b16 %v7771_v42, %v7770_v53  ;;  %v10699_v53 = vld [vmem:[%s16817_s11 + $0x70] sm:$0xf0]  ;;  %v10239_v42 = vld [vmem:[%s16817_s11] sm:$0xf] }
0x15b9   : > { %8076 = vmatmul.bf16.vlgmr.msra.gmra.mxu3 %v10196_v50  ;;  %v8653_v50 = vld [vmem:[%s16818_s12 + $0x20] sm:$0xff] }
0x15ba   : > { %v8393_v62 = vunpack.c.l.b16 %v8341_v30 }
0x15bb   : > { %8555 = vmatpush.bf16.msra.mxu2 %v17196_v11  ;;  %v10701_v11 = vld [vmem:[%s16817_s11 + $0x80] sm:$0xf0] }
0x15bc   : > { %v10204_v14 = vor.u32 %v10701_v11, %v10203_v3  ;;  %v8650_v3 = vld [vmem:[%s16818_s12 + $0x8] sm:$0xff]  ;;  %v8652_v11 = vld [vmem:[%s16818_s12 + $0x18] sm:$0xff] }
0x15be   : > { %8025 = vrot.lane.b32.xlu1 %v16383_v43, %s17141_s23  ;;  %v8399_v43 = vpack.c.b16 %v8394_v29, %v8393_v62  ;;  %8052 = vmatmul.bf16.gmra.mxu2 %v10204_v14  ;;  %v17200_v29 = vld [vmem:[#allocation50_spill] sm:$0xff]  ;;  %v8314_v62 = vmul.f32 %v16277_v1, %v17194_v35 }
0x15bf   : > { %8556 = vmatpush.bf16.msra.mxu2 %v17197_v39  ;;  %8431 = vrot.lane.b32.xlu0 %v8426_v16, %s17149_s17  ;;  %v10215_v39 = vld [vmem:[%s16817_s11 + $0x90] sm:$0xf]  ;;  %v10253_v14 = vld [vmem:[%s16817_s11 + $0x24] sm:$0xf0] }
0x15c0   : > { %8520 = vrot.lane.b32.xlu2 %v8378_v4, %s17152_s3  ;;  %v10216_v41 = vor.u32 %v10704_v46, %v10215_v39  ;;  %v8322_v36 = vpack.c.bf16 %v8314_v62, %v8314_v62  ;;  %v10265_v39 = vld [vmem:[%s16817_s11 + $0x3c] sm:$0xf0]  ;;  %v10235_v62 = vld [vmem:[%s16817_s11 + $0xb0] sm:$0xf] }
0x15c2   : > { %v8370_v35 = vunpack.c.l.b16 %v8322_v36 }
0x15c3   : > { %8557 = vmatpush.bf16.msra.mxu2 %v17198_v48  ;;  %v10217_v48 = vld [vmem:[%s16817_s11 + $0x9c] sm:$0xf0] }
0x15c4   : > { %v10220_v9 = vor.u32 %v10703_v58, %v10217_v48  ;;  %v10695_v58 = vld [vmem:[%s16817_s11 + $0x50] sm:$0xf0]  ;;  %v10694_v48 = vld [vmem:[%s16817_s11 + $0x4c] sm:$0xf] }
0x15c6   : > { %8405 = vrot.lane.b32.xlu1 %v8399_v43, %s17144_s5  ;;  %v8321_v43 = vpack.c.bf16 %v8313_v8, %v8313_v8 }
0x15c7   : > { %8524 = vrot.lane.b32.xlu0 %v8380_v47, %s17152_s3 }
0x15c8   : > { %v8369_v1 = vunpack.c.l.b16 %v8321_v43 }
0x15c9   : > { %8081 = vmatmul.bf16.gmra.mxu3 %v10208_v52  ;;  %v9047_v52 = vld [vmem:[#allocation2] sm:$0x1] }
0x15ce   : > { %8435 = vrot.lane.b32.xlu1 %v8428_v13, %s17149_s17  ;;  %8057 = vmatmul.bf16.gmra.mxu2 %v10216_v41  ;;  %v8377_v13 = vpack.c.b16 %v8370_v35, %v8369_v1  ;;  %v10705_v41 = vld [vmem:[%s16817_s11 + $0xa0] sm:$0xf0] }
0x15d6   : > { %8433 = vrot.lane.b32.xlu1 %v8427_v33, %s17149_s17 }
0x15d9   : > { %8086 = vmatmul.bf16.gmra.mxu3 %v10220_v9 }
0x15de   : > { %7782 = vrot.lane.b32.xlu1 %v7778_v21, %s17149_s17  ;;  %8062 = vmatmul.bf16.gmra.mxu2 %v10228_v12  ;;  %v10686_v21 = vld [vmem:[%s16817_s11 + $0x8] sm:$0xf0] }
0x15e9   : > { %v8020_v27 = vpop.permute.xlu2 %8019  ;;  %8091 = vmatmul.bf16.gmra.mxu3 %v10232_v18 }
0x15f2   : > { %v7789_v49 = vpop.permute.xlu2 %7788 }
0x15f9   : > { %v8199_v34 = vpop.permute.xlu0 %8198 }
0x15fa   : > { %v7787_v23 = vpop.permute.xlu2 %7786 }
0x15fb   : > { %8210 = vrot.lane.b32.xlu2 %v7787_v23, %s17147_s27  ;;  %v10685_v23 = vld [vmem:[%s16817_s11 + $0x4] sm:$0xf] }
0x1602   : > { %v16462_v6 = vpop.permute.xlu2 %7784 }
0x1609   : > { %v8201_v19 = vpop.permute.xlu0 %8200 }
0x160a   : > { %v16477_v7 = vpop.permute.xlu2 %8429 }
0x1611   : > { %v8203_v26 = vpop.permute.xlu0 %8202  ;;  %v8048_v43 = vpop.f32.mrf.mxu2 }
0x1612   : > { %v8523_v16 = vpop.permute.xlu2 %8522 }
0x1618   : > { %v8022_v63 = vpop.permute.xlu1 %8021 }
0x1619   : > { %v8408_v0 = vpop.permute.xlu0 %8407 }
0x161a   : > { %v8521_v57 = vpop.permute.xlu2 %8520 }
0x1620   : > { %v8024_v5 = vpop.permute.xlu1 %8023 }
0x1621   : > { %v8404_v51 = vpop.permute.xlu0 %8403 }
0x1628   : > { %v8205_v24 = vpop.permute.xlu1 %8204 }
0x1629   : > { %8259 = vmatpush.bf16.msrb.mxu3 %v8205_v24  ;;  %v8402_v60 = vpop.permute.xlu0 %8401  ;;  %v10689_v24 = vld [vmem:[%s16817_s11 + $0x20] sm:$0xf0] }
0x162a   : > { %8526 = vrot.lane.b32.xlu1 %v8402_v60, %s17152_s3  ;;  %v10688_v60 = vld [vmem:[%s16817_s11 + $0x1c] sm:$0xf] }
0x162b   : > { %v10256_v38 = vor.u32 %v10688_v60, %v10253_v14  ;;  %v10315_v60 = vld [vmem:[%s16817_s11 + $0xd8] sm:$0xf]  ;;  %v10713_v14 = vld [vmem:[%s16817_s11 + $0xe0] sm:$0xf0] }
0x162d   : > { %8260 = vmatpush.bf16.msrb.mxu3 %v8203_v26  ;;  %v8654_v26 = vld [vmem:[%s16818_s12 + $0x28] sm:$0xff] }
0x1630   : > { %v8026_v59 = vpop.permute.xlu1 %8025 }
0x1631   : > { %8101 = vmatpush.bf16.msrb.mxu1 %v8026_v59  ;;  %8261 = vmatpush.bf16.msrb.mxu3 %v8201_v19  ;;  %v8432_v54 = vpop.permute.xlu0 %8431  ;;  %v10240_v19 = vor.u32 %v10686_v21, %v10239_v42  ;;  %v10692_v59 = vld [vmem:[%s16817_s11 + $0x38] sm:$0xf0] }
0x1632   : > { %8532 = vrot.lane.b32.xlu1 %v8408_v0, %s17152_s3  ;;  %v10702_v0 = vld [vmem:[%s16817_s11 + $0x88] sm:$0xf0] }
0x1633   : > { %8234 = vmatmul.bf16.vlgmr.msrb.gmra.mxu2 %v10240_v19 }
0x1635   : > { %8102 = vmatpush.bf16.msrb.mxu1 %v8024_v5  ;;  %8262 = vmatpush.bf16.msrb.mxu3 %v8199_v34  ;;  %v10241_v34 = vld [vmem:[%s16817_s11 + $0xc] sm:$0xf0]  ;;  %v8649_v5 = vld [vmem:[%s16818_s12] sm:$0xff] }
0x1636   : > { %v10244_v25 = vor.u32 %v10685_v23, %v10241_v34 }
0x1638   : > { %v8406_v4 = vpop.permute.xlu1 %8405  ;;  %8263 = vmatmul.bf16.vlgmr.msrb.gmra.mxu3 %v10244_v25  ;;  %v10247_v25 = vld [vmem:[%s16817_s11 + $0x8] sm:$0xf] }
0x1639   : > { %8583 = vmatpush.bf16.msra.mxu3 %v17199_v32  ;;  %8103 = vmatpush.bf16.msrb.mxu1 %v8022_v63  ;;  %v8525_v30 = vpop.permute.xlu0 %8524  ;;  %v10211_v63 = vld [vmem:[%s16817_s11 + $0x80] sm:$0xf] }
0x163a   : > { %8530 = vrot.lane.b32.xlu0 %v8406_v4, %s17152_s3  ;;  %8558 = vmatpush.bf16.msra.mxu2 %v8525_v30  ;;  %v10275_v30 = vld [vmem:[%s16817_s11 + $0x48] sm:$0xf] }
0x163b   : > { %8212 = vrot.lane.b32.xlu1 %v7789_v49, %s17147_s27  ;;  %v8656_v49 = vld [vmem:[%s16818_s12 + $0x38] sm:$0xff]  ;;  %v10276_v9 = vor.u32 %v10695_v58, %v10275_v30 }
0x163d   : > { %8584 = vmatpush.bf16.msra.mxu3 %v17200_v29  ;;  %8104 = vmatpush.bf16.msrb.mxu1 %v8020_v27  ;;  %v10200_v27 = vor.u32 %v10699_v53, %v10199_v20  ;;  %v10277_v29 = vld [vmem:[%s16817_s11 + $0x54] sm:$0xf0]  ;;  %v10303_v20 = vld [vmem:[%s16817_s11 + $0xc0] sm:$0xf]  ;;  %v10710_v53 = vld [vmem:[%s16817_s11 + $0xc8] sm:$0xf0] }
0x163e   : > { %8559 = vmatpush.bf16.msra.mxu2 %v8523_v16  ;;  %v10223_v16 = vld [vmem:[%s16817_s11 + $0x98] sm:$0xf]  ;;  %v10280_v8 = vor.u32 %v10694_v48, %v10277_v29  ;;  %v10323_v48 = vld [vmem:[%s16817_s11 + $0xe0] sm:$0xf] }
0x163f   : > { %v10224_v4 = vor.u32 %v10705_v41, %v10223_v16  ;;  %v10715_v16 = vld [vmem:[%s16817_s11 + $0xf4] sm:$0xf]  ;;  %v10329_v41 = vld [vmem:[%s16817_s11 + $0xfc] sm:$0xf0] }
0x1640   : > { %v8436_v47 = vpop.permute.xlu1 %8435  ;;  %8105 = vmatmul.bf16.vlgmr.msrb.gmra.mxu1 %v10200_v27  ;;  %v10304_v27 = vor.u32 %v10710_v53, %v10303_v20  ;;  %v10332_v29 = vor.u32 %v10715_v16, %v10329_v41 }
0x1641   : > { %8284 = vmatpush.bf16.msra.mxu1 %v17201_v55  ;;  %8585 = vmatpush.bf16.msra.mxu3 %v17202_v37  ;;  %v10708_v55 = vld [vmem:[%s16817_s11 + $0xb8] sm:$0xf0] }
0x1642   : > { %8528 = vrot.lane.b32.xlu0 %v8404_v51, %s17152_s3  ;;  %8560 = vmatpush.bf16.msra.mxu2 %v8521_v57  ;;  %v10212_v51 = vor.u32 %v10702_v0, %v10211_v63  ;;  %v10236_v37 = vor.u32 %v10708_v55, %v10235_v62  ;;  %v10317_v63 = vld [vmem:[%s16817_s11 + $0xe4] sm:$0xf0]  ;;  %v10716_v62 = vld [vmem:[%s16817_s11 + $0xf8] sm:$0xf0] }
0x1643   : > { %8540 = vrot.lane.b32.xlu1 %v8436_v47, %s17152_s3  ;;  %v8077_v47 = vpop.f32.mrf.mxu3 }
0x1644   : > { %v16624_v57 = vadd.f32 %v8077_v47, %v8048_v43 }
0x1645   : > { %8285 = vmatpush.bf16.msra.mxu1 %v17203_v2  ;;  %8586 = vmatpush.bf16.msra.mxu3 %v17204_v45  ;;  %v16626_v45 = vpop.f32.mrf.mxu2 }
0x1648   : > { %v8434_v10 = vpop.permute.xlu1 %8433  ;;  %8268 = vmatmul.bf16.gmra.mxu3 %v10256_v38 }
0x1649   : > { %8286 = vmatpush.bf16.msra.mxu1 %v17205_v15  ;;  %8538 = vrot.lane.b32.xlu2 %v8434_v10, %s17152_s3 }
0x164a   : > { %8518 = vrot.lane.b32.xlu0 %v8377_v13, %s17152_s3 }
0x164b   : > { %8536 = vrot.lane.b32.xlu1 %v8432_v54, %s17152_s3  ;;  %v10691_v54 = vld [vmem:[%s16817_s11 + $0x34] sm:$0xf]  ;;  %v16628_v1 = vpop.f32.mrf.mxu3 }
0x164c   : > { %v10268_v32 = vor.u32 %v10691_v54, %v10265_v39  ;;  %v10259_v39 = vld [vmem:[%s16817_s11 + $0x20] sm:$0xf] }
0x164d   : > { %8287 = vmatpush.bf16.msra.mxu1 %v17206_v61  ;;  %v8053_v28 = vpop.f32.mrf.mxu2  ;;  %v10305_v61 = vld [vmem:[%s16817_s11 + $0xcc] sm:$0xf0] }
0x1650   : > { %v7783_v33 = vpop.permute.xlu1 %7782  ;;  %8110 = vmatmul.bf16.gmra.mxu1 %v10212_v51 }
0x1651   : > { %8206 = vrot.lane.b32.xlu2 %v7783_v33, %s17147_s27  ;;  %v10308_v33 = vor.u32 %v10709_v56, %v10305_v61 }
0x1652   : > { %8208 = vrot.lane.b32.xlu0 %v16462_v6, %s17147_s27  ;;  %v10251_v6 = vld [vmem:[%s16817_s11 + $0x18] sm:$0xf]  ;;  %s9174_s27 = sshll.u32 %s17210_s29, 1 }
0x1653   : > { %8689 = vperm.xlu1 %10820, %v8655_v40   ;;  %v10252_v44 = vor.u32 %v10689_v24, %v10251_v6  ;;  %v8082_v15 = vpop.f32.mrf.mxu3  ;;  %v10311_v6 = vld [vmem:[%s16817_s11 + $0xc8] sm:$0xf]  ;;  %s706_s24 = scalar_lea.vmem %s16827_s21, %s9174_s27 }
0x1654   : > { %v16630_v13 = vadd.f32 %v8082_v15, %v8053_v28  ;;  %v10271_v15 = vld [vmem:[%s16817_s11 + $0x38] sm:$0xf] }
0x1655   : > { %8239 = vmatmul.bf16.gmra.mxu2 %v10252_v44  ;;  %v8211_v12 = vpop.permute.xlu2 %8210  ;;  %v16638_v18 = vpop.f32.mrf.mxu2 }
0x1658   : > { %8273 = vmatmul.bf16.gmra.mxu3 %v10268_v32  ;;  %v10690_v32 = vld [vmem:[%s16817_s11 + $0x28] sm:$0xf0] }
0x1659   : > { %8694 = vperm.xlu2 %10821, %v8656_v49   ;;  %v10260_v58 = vor.u32 %v10690_v32, %v10259_v39 }
0x165a   : > { %8534 = vrot.lane.b32.xlu0 %v16477_v7, %s17152_s3  ;;  %v10263_v7 = vld [vmem:[%s16817_s11 + $0x30] sm:$0xf] }
0x165b   : > { %8684 = vperm.xlu1 %10820, %v8654_v26   ;;  %v10264_v46 = vor.u32 %v10692_v59, %v10263_v7  ;;  %v16640_v40 = vpop.f32.mrf.mxu3 }
0x165d   : > { %v8058_v23 = vpop.f32.mrf.mxu2 }
0x1660   : > { %8115 = vmatmul.bf16.gmra.mxu1 %v10224_v4 }
0x1661   : > { %8669 = vperm.xlu2 %10821, %v8651_v31   ;;  %v10687_v31 = vld [vmem:[%s16817_s11 + $0x10] sm:$0xf0] }
0x1662   : > { %8679 = vperm.xlu0 %10822, %v8653_v50   ;;  %v10712_v50 = vld [vmem:[%s16817_s11 + $0xdc] sm:$0xf]  ;;  %v10248_v51 = vor.u32 %v10687_v31, %v10247_v25 }
0x1663   : > { %8659 = vperm.xlu1 %10820, %v8649_v5   ;;  %v8087_v34 = vpop.f32.mrf.mxu3  ;;  %v10320_v24 = vor.u32 %v10712_v50, %v10317_v63  ;;  %v8085_v50 = vadd.f32 %v16640_v40, %v16638_v18  ;;  %v10347_v18 = vld [vmem:[%s16817_s11 + $0x110] sm:$0xf]  ;;  %v10720_v40 = vld [vmem:[%s16817_s11 + $0x118] sm:$0xf0] }
0x1664   : > { %v16648_v19 = vadd.f32 %v8087_v34, %v8058_v23 }
0x1665   : > { %8244 = vmatmul.bf16.gmra.mxu2 %v10264_v46  ;;  %v16662_v0 = vpop.f32.mrf.mxu2 }
0x1668   : > { %8278 = vmatmul.bf16.gmra.mxu3 %v10280_v8  ;;  %v10327_v8 = vld [vmem:[%s16817_s11 + $0xf0] sm:$0xf] }
0x1669   : > { %8664 = vperm.xlu2 %10821, %v8650_v3  }
0x166a   : > { %8674 = vperm.xlu0 %10822, %v8652_v11   ;;  %v10711_v11 = vld [vmem:[%s16817_s11 + $0xd0] sm:$0xf0] }
0x166b   : > { %v16667_v3 = vpop.f32.mrf.mxu3  ;;  %v10312_v38 = vor.u32 %v10711_v11, %v10311_v6  ;;  %v10696_v11 = vld [vmem:[%s16817_s11 + $0x58] sm:$0xf0] }
0x166c   : > { %v8090_v41 = vadd.f32 %v16667_v3, %v16662_v0 }
0x166d   : > { %v8063_v7 = vpop.f32.mrf.mxu2 }
0x1670   : > { %8120 = vmatmul.bf16.gmra.mxu1 %v10236_v37 }
0x1672   : > { %9050 = vperm.xlu0 %10822, %v9047_v52   ;;  %v10316_v52 = vor.u32 %v10713_v14, %v10315_v60 }
0x1673   : > { %v8092_v59 = vpop.f32.mrf.mxu3 }
0x1674   : > { %v16678_v54 = vadd.f32 %v8092_v59, %v8063_v7  ;;  %v10348_v7 = vor.u32 %v10720_v40, %v10347_v18 }
0x1675   : > { %8249 = vmatmul.bf16.gmra.mxu2 %v10276_v9  ;;  %v8065_v30 = vpop.f32.mrf.mxu2  ;;  %v10714_v9 = vld [vmem:[%s16817_s11 + $0xe8] sm:$0xf0] }
0x1676   : > { %v10324_v43 = vor.u32 %v10714_v9, %v10323_v48 }
0x167b   : > { %v8094_v55 = vpop.f32.mrf.mxu3 }
0x167c   : > { %v16705_v37 = vadd.f32 %v8094_v55, %v8065_v30 }
0x169c   : > { %v8527_v36 = vpop.permute.xlu1 %8526 }
0x16a3   : > { %v8539_v42 = vpop.permute.xlu2 %8538 }
0x16a4   : > { %v8533_v2 = vpop.permute.xlu1 %8532 }
0x16a5   : > { %8587 = vmatpush.bf16.msra.mxu3 %v8533_v2 }
0x16ab   : > { %v8207_v5 = vpop.permute.xlu2 %8206 }
0x16ac   : > { %v8531_v35 = vpop.permute.xlu0 %8530 }
0x16ad   : > { %8588 = vmatpush.bf16.msra.mxu3 %v8531_v35  ;;  %v8213_v17 = vpop.permute.xlu1 %8212 }
0x16ae   : > { %8288 = vmatpush.bf16.msra.mxu1 %v8213_v17 }
0x16b2   : > { %8289 = vmatpush.bf16.msra.mxu1 %v8211_v12 }
0x16b4   : > { %v8529_v10 = vpop.permute.xlu0 %8528 }
0x16b5   : > { %8589 = vmatpush.bf16.msra.mxu3 %v8529_v10  ;;  %v8541_v22 = vpop.permute.xlu1 %8540  ;;  %v10693_v10 = vld [vmem:[%s16817_s11 + $0x40] sm:$0xf0] }
0x16b6   : > { %8616 = vmatpush.bf16.msra.mxu0 %v8541_v22  ;;  %v8235_v47 = vpop.f32.mrf.mxu2  ;;  %v10272_v61 = vor.u32 %v10693_v10, %v10271_v15  ;;  %v10335_v22 = vld [vmem:[%s16817_s11 + $0xf8] sm:$0xf] }
0x16b9   : > { %8590 = vmatpush.bf16.msra.mxu3 %v8527_v36  ;;  %v10328_v36 = vor.u32 %v10716_v62, %v10327_v8 }
0x16ba   : > { %8617 = vmatpush.bf16.msra.mxu0 %v8539_v42  ;;  %v10717_v42 = vld [vmem:[%s16817_s11 + $0x100] sm:$0xf0] }
0x16bb   : > { %v8264_v17 = vpop.f32.mrf.mxu3 }
0x16bc   : > { %v8519_v21 = vpop.permute.xlu0 %8518  ;;  %8591 = vmatmul.bf16.vlgmr.msra.gmra.mxu3 %v10308_v33 }
0x16bd   : > { %8561 = vmatpush.bf16.msra.mxu2 %v8519_v21  ;;  %v8537_v49 = vpop.permute.xlu1 %8536  ;;  %v8106_v46 = vpop.f32.mrf.mxu1  ;;  %v10339_v21 = vld [vmem:[%s16817_s11 + $0x108] sm:$0xf] }
0x16be   : > { %8618 = vmatpush.bf16.msra.mxu0 %v8537_v49  ;;  %v8107_v4 = vadd.f32 %v8106_v46, %v16624_v57  ;;  %v8080_v57 = vadd.f32 %v16628_v1, %v16626_v45  ;;  %v10718_v45 = vld [vmem:[%s16817_s11 + $0x10c] sm:$0xf]  ;;  %v10341_v1 = vld [vmem:[%s16817_s11 + $0x114] sm:$0xf0]  ;;  %v8237_v56 = vpop.f32.mrf.mxu2 }
0x16bf   : > { %v10344_v33 = vor.u32 %v10718_v45, %v10341_v1 }
0x16c0   : > { %8562 = vmatmul.bf16.vlgmr.msra.gmra.mxu2 %v10304_v27  ;;  %v8236_v2 = vadd.f32 %v8235_v47, %v8107_v4  ;;  %v10719_v27 = vld [vmem:[%s16817_s11 + $0x110] sm:$0xf0] }
0x16c1   : > { %v10340_v25 = vor.u32 %v10719_v27, %v10339_v21 }
0x16c2   : > { %v16709_v28 = vadd.f32 %v8264_v17, %v8236_v2 }
0x16c3   : > { %v8266_v49 = vpop.f32.mrf.mxu3 }
0x16c4   : > { %v8209_v26 = vpop.permute.xlu0 %8208 }
0x16c5   : > { %8290 = vmatpush.bf16.msra.mxu1 %v8209_v26  ;;  %v8108_v35 = vpop.f32.mrf.mxu1  ;;  %v10336_v26 = vor.u32 %v10717_v42, %v10335_v22 }
0x16c6   : > { %v8109_v12 = vadd.f32 %v8108_v35, %v8080_v57 }
0x16c8   : > { %v8238_v20 = vadd.f32 %v8237_v56, %v8109_v12 }
0x16c9   : > { %8291 = vmatpush.bf16.msra.mxu1 %v8207_v5 }
0x16ca   : > { %v16736_v34 = vadd.f32 %v8266_v49, %v8238_v20 }
0x16cb   : > { %v8269_v5 = vpop.f32.mrf.mxu3 }
0x16cc   : > { %v8535_v44 = vpop.permute.xlu0 %8534  ;;  %8292 = vmatmul.bf16.vlgmr.msra.gmra.mxu1 %v10248_v51  ;;  %8596 = vmatmul.bf16.gmra.mxu3 %v10320_v24 }
0x16cd   : > { %8619 = vmatpush.bf16.msra.mxu0 %v8535_v44  ;;  %v8111_v53 = vpop.f32.mrf.mxu1 }
0x16ce   : > { %v8112_v23 = vadd.f32 %v8111_v53, %v16630_v13  ;;  %v10283_v13 = vld [vmem:[%s16817_s11 + $0x50] sm:$0xf] }
0x16cf   : > { %v10284_v14 = vor.u32 %v10696_v11, %v10283_v13 }
0x16d0   : > { %8620 = vmatmul.bf16.vlgmr.msra.gmra.mxu0 %v10312_v38  ;;  %8567 = vmatmul.bf16.gmra.mxu2 %v10316_v52 }
0x16d3   : > { %v8271_v38 = vpop.f32.mrf.mxu3 }
0x16d5   : > { %v8113_v51 = vpop.f32.mrf.mxu1 }
0x16d6   : > { %v8114_v24 = vadd.f32 %v8113_v51, %v8085_v50  ;;  %v8680_v50 = vpop.permute.xlu0 %8679 }
0x16d8   : > { %v8240_v31 = vpop.f32.mrf.mxu2 }
0x16d9   : > { %v8241_v63 = vadd.f32 %v8240_v31, %v8112_v23  ;;  %v16768_v23 = vpop.permute.xlu2 %8694 }
0x16db   : > { %v16740_v6 = vadd.f32 %v8269_v5, %v8241_v63  ;;  %v8274_v16 = vpop.f32.mrf.mxu3 }
0x16dc   : > { %8297 = vmatmul.bf16.gmra.mxu1 %v10260_v58  ;;  %8601 = vmatmul.bf16.gmra.mxu3 %v10332_v29 }
0x16dd   : > { %v8116_v59 = vpop.f32.mrf.mxu1 }
0x16de   : > { %v8117_v39 = vadd.f32 %v8116_v59, %v16648_v19 }
0x16e0   : > { %8625 = vmatmul.bf16.gmra.mxu0 %v10324_v43  ;;  %8572 = vmatmul.bf16.gmra.mxu2 %v10328_v36  ;;  %v8242_v60 = vpop.f32.mrf.mxu2 }
0x16e1   : > { %v8243_v44 = vadd.f32 %v8242_v60, %v8114_v24  ;;  %v8670_v11 = vpop.permute.xlu2 %8669 }
0x16e3   : > { %v8272_v52 = vadd.f32 %v8271_v38, %v8243_v44  ;;  %v8276_v9 = vpop.f32.mrf.mxu3 }
0x16e5   : > { %v8118_v30 = vpop.f32.mrf.mxu1 }
0x16e6   : > { %v8119_v58 = vadd.f32 %v8118_v30, %v8090_v41 }
0x16e8   : > { %v8245_v46 = vpop.f32.mrf.mxu2 }
0x16e9   : > { %v8246_v32 = vadd.f32 %v8245_v46, %v8117_v39  ;;  %v8675_v39 = vpop.permute.xlu0 %8674 }
0x16eb   : > { %v16757_v4 = vadd.f32 %v8274_v16, %v8246_v32  ;;  %v8279_v36 = vpop.f32.mrf.mxu3 }
0x16ec   : > { %8302 = vmatmul.bf16.gmra.mxu1 %v10272_v61  ;;  %8606 = vmatmul.bf16.gmra.mxu3 %v10344_v33 }
0x16ed   : > { %v8121_v62 = vpop.f32.mrf.mxu1 }
0x16ee   : > { %v8122_v55 = vadd.f32 %v8121_v62, %v16678_v54 }
0x16f0   : > { %8630 = vmatmul.bf16.gmra.mxu0 %v10336_v26  ;;  %8577 = vmatmul.bf16.gmra.mxu2 %v10340_v25  ;;  %v8247_v48 = vpop.f32.mrf.mxu2  ;;  %v16770_v25 = vpop.permute.xlu1 %8689 }
0x16f1   : > { %v8248_v29 = vadd.f32 %v8247_v48, %v8119_v58 }
0x16f3   : > { %v16759_v8 = vadd.f32 %v8276_v9, %v8248_v29  ;;  %v8281_v35 = vpop.f32.mrf.mxu3 }
0x16f5   : > { %v8123_v57 = vpop.f32.mrf.mxu1 }
0x16f6   : > { %v8124_v0 = vadd.f32 %v8123_v57, %v16705_v37 }
0x16f8   : > { %v8250_v19 = vpop.f32.mrf.mxu2  ;;  %v8685_v18 = vpop.permute.xlu1 %8684 }
0x16f9   : > { %v8251_v43 = vadd.f32 %v8250_v19, %v8122_v55 }
0x16fb   : > { %v16762_v47 = vadd.f32 %v8279_v36, %v8251_v43 }
0x16fc   : > { %8307 = vmatmul.bf16.gmra.mxu1 %v10284_v14 }
0x1700   : > { %8635 = vmatmul.bf16.gmra.mxu0 %v10348_v7  ;;  %v8252_v3 = vpop.f32.mrf.mxu2  ;;  %v8660_v43 = vpop.permute.xlu1 %8659 }
0x1701   : > { %v8253_v2 = vadd.f32 %v8252_v3, %v8124_v0 }
0x1703   : > { %v16765_v17 = vadd.f32 %v8281_v35, %v8253_v2 }
0x173f   : > { %v8592_v15 = vpop.f32.mrf.mxu3 }
0x1743   : > { %v8563_v12 = vpop.f32.mrf.mxu2 }
0x1744   : > { %v8593_v10 = vadd.f32 %v8592_v15, %v8563_v12 }
0x1747   : > { %v8594_v45 = vpop.f32.mrf.mxu3 }
0x1749   : > { %v8293_v1 = vpop.f32.mrf.mxu1 }
0x174a   : > { %v8294_v54 = vadd.f32 %v8293_v1, %v16709_v28 }
0x174b   : > { %v8565_v56 = vpop.f32.mrf.mxu2 }
0x174c   : > { %v8595_v60 = vadd.f32 %v8594_v45, %v8565_v56 }
0x174d   : > { %v8621_v61 = vpop.f32.mrf.mxu0 }
0x174e   : > { %v8622_v22 = vadd.f32 %v8621_v61, %v8593_v10 }
0x174f   : > { %v8597_v33 = vpop.f32.mrf.mxu3 }
0x1750   : > { %v8641_v20 = vadd.f32 %v8622_v22, %v8294_v54 }
0x1751   : > { %v8295_v53 = vpop.f32.mrf.mxu1 }
0x1752   : > { %v8296_v46 = vadd.f32 %v8295_v53, %v16736_v34  ;;  %v8697_v36 = vadd.f32 %v8660_v43, %v8641_v20  ;;  %v10736_v53 = vld [vmem:[#allocation7 + $0x74] sm:$0xf0]  ;;  %v10735_v20 = vld [vmem:[#allocation7 + $0x74] sm:$0xf] }
0x1753   : > { %v8568_v42 = vpop.f32.mrf.mxu2  ;;  %v10728_v43 = vld [vmem:[#allocation7 + $0x34] sm:$0xf0] }
0x1754   : > { %v8598_v5 = vadd.f32 %v8597_v33, %v8568_v42  ;;  %v10376_v33 = vld [vmem:[#allocation7 + $0x70] sm:$0xf] }
0x1755   : > { %v8623_v37 = vpop.f32.mrf.mxu0 }
0x1756   : > { %v8624_v38 = vadd.f32 %v8623_v37, %v8595_v60  ;;  %v10378_v37 = vld [vmem:[#allocation7 + $0x78] sm:$0xf0] }
0x1757   : > { %v8599_v21 = vpop.f32.mrf.mxu3 }
0x1758   : > { %v8642_v58 = vadd.f32 %v8624_v38, %v8296_v46 }
0x1759   : > { %v8298_v27 = vpop.f32.mrf.mxu1 }
0x175a   : > { %v8299_v7 = vadd.f32 %v8298_v27, %v16740_v6  ;;  %v10734_v27 = vld [vmem:[#allocation7 + $0x64] sm:$0xf0] }
0x175b   : > { %v8570_v49 = vpop.f32.mrf.mxu2 }
0x175c   : > { %v8600_v51 = vadd.f32 %v8599_v21, %v8570_v49  ;;  %v10368_v21 = vld [vmem:[#allocation7 + $0x60] sm:$0xf]  ;;  %v10381_v49 = vor.u32 %v10735_v20, %v10378_v37  ;;  %v10721_v20 = vld [vmem:[#allocation7 + $0x4] sm:$0xf] }
0x175d   : > { %v8626_v26 = vpop.f32.mrf.mxu0  ;;  %v10420_v37 = vld [vmem:[#allocation7 + $0x80] sm:$0xf] }
0x175e   : > { %v8627_v14 = vadd.f32 %v8626_v26, %v8598_v5  ;;  %v10370_v26 = vld [vmem:[#allocation7 + $0x68] sm:$0xf0]  ;;  %8807 = vmatpush.bf16.msrb.mxu3 %v10381_v49  ;;  %v10360_v5 = vld [vmem:[#allocation7 + $0x50] sm:$0xf] }
0x175f   : > { %v8602_v63 = vpop.f32.mrf.mxu3 }
0x1760   : > { %v8643_v32 = vadd.f32 %v8627_v14, %v8299_v7 }
0x1761   : > { %v8300_v31 = vpop.f32.mrf.mxu1 }
0x1762   : > { %v8301_v44 = vadd.f32 %v8300_v31, %v8272_v52  ;;  %v16776_v9 = vadd.f32 %v8670_v11, %v8643_v32  ;;  %v8665_v52 = vpop.permute.xlu2 %8664  ;;  %v10369_v31 = vor.u32 %v10734_v27, %v10368_v21  ;;  %v10362_v11 = vld [vmem:[#allocation7 + $0x58] sm:$0xf0]  ;;  %v10738_v21 = vld [vmem:[#allocation7 + $0x84] sm:$0xf0] }
0x1763   : > { %v8573_v28 = vpop.f32.mrf.mxu2  ;;  %v8698_v55 = vadd.f32 %v8665_v52, %v8642_v58  ;;  %v10729_v58 = vld [vmem:[#allocation7 + $0x44] sm:$0xf]  ;;  %v10421_v49 = vor.u32 %v10738_v21, %v10420_v37 }
0x1764   : > { %v8603_v29 = vadd.f32 %v8602_v63, %v8573_v28 }
0x1765   : > { %v8628_v24 = vpop.f32.mrf.mxu0  ;;  %v8706_v15 = vpack.c.bf16 %v8698_v55, %v8697_v36  ;;  %v10744_v55 = vld [vmem:[#allocation7 + $0xb4] sm:$0xf0]  ;;  %v10725_v36 = vld [vmem:[#allocation7 + $0x24] sm:$0xf] }
0x1766   : > { %v8629_v13 = vadd.f32 %v8628_v24, %v8600_v51  ;;  %v10732_v51 = vld [vmem:[#allocation7 + $0x54] sm:$0xf0] }
0x1767   : > { %v8604_v16 = vpop.f32.mrf.mxu3 }
0x1768   : > { %v8644_v59 = vadd.f32 %v8629_v13, %v8301_v44  ;;  %v10731_v13 = vld [vmem:[#allocation7 + $0x54] sm:$0xf] }
0x1769   : > { %v8303_v40 = vpop.f32.mrf.mxu1  ;;  %v10365_v38 = vor.u32 %v10731_v13, %v10362_v11  ;;  %v10739_v13 = vld [vmem:[#allocation7 + $0x94] sm:$0xf]  ;;  %v10430_v11 = vld [vmem:[#allocation7 + $0x98] sm:$0xf0] }
0x176a   : > { %v16774_v48 = vadd.f32 %v8675_v39, %v8644_v59  ;;  %v8304_v34 = vadd.f32 %v8303_v40, %v16757_v4  ;;  %v10377_v4 = vor.u32 %v10736_v53, %v10376_v33 }
0x176b   : > { %v8575_v30 = vpop.f32.mrf.mxu2 }
0x176c   : > { %v8707_v6 = vpack.c.bf16 %v16774_v48, %v16776_v9  ;;  %v8605_v57 = vadd.f32 %v8604_v16, %v8575_v30  ;;  %8794 = vmatpush.bf16.msrb.mxu2 %v10377_v4  ;;  %v10730_v30 = vld [vmem:[#allocation7 + $0x44] sm:$0xf0]  ;;  %v10727_v9 = vld [vmem:[#allocation7 + $0x34] sm:$0xf] }
0x176d   : > { %v8631_v41 = vpop.f32.mrf.mxu0 }
0x176e   : > { %v8632_v19 = vadd.f32 %v8631_v41, %v8603_v29  ;;  %v10354_v29 = vld [vmem:[#allocation7 + $0x48] sm:$0xf0] }
0x176f   : > { %v8607_v10 = vpop.f32.mrf.mxu3  ;;  %v10357_v52 = vor.u32 %v10729_v58, %v10354_v29  ;;  %v10462_v29 = vld [vmem:[#allocation7 + $0xd0] sm:$0xf] }
0x1770   : > { %v8645_v3 = vadd.f32 %v8632_v19, %v8304_v34  ;;  %8795 = vmatpush.bf16.msrb.mxu2 %v10369_v31  ;;  %v10410_v19 = vld [vmem:[#allocation7 + $0x30] sm:$0xf]  ;;  %v10404_v34 = vld [vmem:[#allocation7 + $0x28] sm:$0xf0] }
0x1771   : > { %v8305_v62 = vpop.f32.mrf.mxu1 }
0x1772   : > { %v8306_v2 = vadd.f32 %v8305_v62, %v16759_v8  ;;  %v8701_v54 = vadd.f32 %v8680_v50, %v8645_v3  ;;  %v10733_v8 = vld [vmem:[#allocation7 + $0x64] sm:$0xf]  ;;  %v10444_v62 = vld [vmem:[#allocation7 + $0xb0] sm:$0xf]  ;;  %v10436_v3 = vld [vmem:[#allocation7 + $0xa0] sm:$0xf] }
0x1773   : > { %v8578_v12 = vpop.f32.mrf.mxu2  ;;  %v10373_v50 = vor.u32 %v10733_v8, %v10370_v26  ;;  %v10386_v8 = vld [vmem:[#allocation7] sm:$0xf]  ;;  %v10722_v26 = vld [vmem:[#allocation7 + $0x4] sm:$0xf0] }
0x1774   : > { %v8608_v42 = vadd.f32 %v8607_v10, %v8578_v12  ;;  %v10726_v12 = vld [vmem:[#allocation7 + $0x24] sm:$0xf0]  ;;  %v10723_v10 = vld [vmem:[#allocation7 + $0x14] sm:$0xf]  ;;  %v10387_v31 = vor.u32 %v10722_v26, %v10386_v8 }
0x1775   : > { %v8633_v0 = vpop.f32.mrf.mxu0  ;;  %8808 = vmatpush.bf16.msrb.mxu3 %v10373_v50 }
0x1776   : > { %v8634_v35 = vadd.f32 %v8633_v0, %v8605_v57  ;;  %v10411_v57 = vor.u32 %v10728_v43, %v10410_v19  ;;  %v10407_v0 = vor.u32 %v10725_v36, %v10404_v34  ;;  %v10746_v43 = vld [vmem:[#allocation7 + $0xc4] sm:$0xf0]  ;;  %v10745_v36 = vld [vmem:[#allocation7 + $0xc4] sm:$0xf]  ;;  %v10456_v34 = vld [vmem:[#allocation7 + $0xc8] sm:$0xf0] }
0x1777   : > { %v8609_v28 = vpop.f32.mrf.mxu3 }
0x1778   : > { %v8646_v45 = vadd.f32 %v8634_v35, %v8306_v2  ;;  %v10742_v2 = vld [vmem:[#allocation7 + $0xa4] sm:$0xf0]  ;;  %v10402_v35 = vld [vmem:[#allocation7 + $0x20] sm:$0xf] }
0x1779   : > { %v8308_v1 = vpop.f32.mrf.mxu1  ;;  %8809 = vmatpush.bf16.msrb.mxu3 %v10365_v38 }
0x177a   : > { %v8702_v56 = vadd.f32 %v8685_v18, %v8646_v45  ;;  %v8309_v14 = vadd.f32 %v8308_v1, %v16762_v47  ;;  %v10361_v18 = vor.u32 %v10732_v51, %v10360_v5  ;;  %v8705_v47 = vld [vmem:[%s16819_s13] sm:$0x3]  ;;  %v10396_v45 = vld [vmem:[#allocation7 + $0x18] sm:$0xf0]  ;;  %v10403_v1 = vor.u32 %v10726_v12, %v10402_v35  ;;  %v10741_v5 = vld [vmem:[#allocation7 + $0xa4] sm:$0xf] }
0x177b   : > { %v8580_v63 = vpop.f32.mrf.mxu2  ;;  %v10399_v33 = vor.u32 %v10723_v10, %v10396_v45  ;;  %v10438_v51 = vld [vmem:[#allocation7 + $0xa8] sm:$0xf0] }
0x177c   : > { %v8708_v61 = vpack.c.bf16 %v8702_v56, %v8701_v54  ;;  %v8610_v44 = vadd.f32 %v8609_v28, %v8580_v63  ;;  %8796 = vmatpush.bf16.msrb.mxu2 %v10361_v18  ;;  %v10428_v54 = vld [vmem:[#allocation7 + $0x90] sm:$0xf]  ;;  %v10740_v56 = vld [vmem:[#allocation7 + $0x94] sm:$0xf0]  ;;  %v10743_v63 = vld [vmem:[#allocation7 + $0xb4] sm:$0xf] }
0x177d   : > { %v8636_v22 = vpop.f32.mrf.mxu0  ;;  %8810 = vmatpush.bf16.msrb.mxu3 %v10357_v52  ;;  %v10429_v53 = vor.u32 %v10740_v56, %v10428_v54  ;;  %v10446_v28 = vld [vmem:[#allocation7 + $0xb8] sm:$0xf0]  ;;  %v10751_v18 = vld [vmem:[#allocation7 + $0xf4] sm:$0xf] }
0x177e   : > { %v8637_v24 = vadd.f32 %v8636_v22, %v8608_v42  ;;  %v10724_v22 = vld [vmem:[#allocation7 + $0x14] sm:$0xf0]  ;;  %v10388_v42 = vld [vmem:[#allocation7 + $0x8] sm:$0xf0]  ;;  %v10449_v50 = vor.u32 %v10743_v63, %v10446_v28  ;;  %v10747_v52 = vld [vmem:[#allocation7 + $0xd4] sm:$0xf] }
0x177f   : > { %v10391_v27 = vor.u32 %v10721_v20, %v10388_v42 }
0x1780   : > { %v8647_v7 = vadd.f32 %v8637_v24, %v8309_v14  ;;  %v10441_v24 = vor.u32 %v10741_v5, %v10438_v51  ;;  %v10433_v14 = vor.u32 %v10739_v13, %v10430_v11 }
0x1781   : > { %v8310_v60 = vpop.f32.mrf.mxu1 }
0x1782   : > { %v8311_v59 = vadd.f32 %v8310_v60, %v16765_v17  ;;  %v8703_v32 = vadd.f32 %v16770_v25, %v8647_v7  ;;  %v10352_v17 = vld [vmem:[#allocation7 + $0x40] sm:$0xf]  ;;  %v10412_v25 = vld [vmem:[#allocation7 + $0x38] sm:$0xf0]  ;;  %v10478_v60 = vld [vmem:[#allocation7 + $0xf0] sm:$0xf] }
0x1783   : > { %v10353_v48 = vor.u32 %v10730_v30, %v10352_v17  ;;  %v10737_v17 = vld [vmem:[#allocation7 + $0x84] sm:$0xf]  ;;  %v10422_v30 = vld [vmem:[#allocation7 + $0x88] sm:$0xf0] }
0x1785   : > { %v8638_v40 = vpop.f32.mrf.mxu0  ;;  %8797 = vmatpush.bf16.msrb.mxu2 %v10353_v48 }
0x1786   : > { %v8639_v39 = vadd.f32 %v8638_v40, %v8610_v44  ;;  %v10752_v44 = vld [vmem:[#allocation7 + $0xf4] sm:$0xf0]  ;;  %v10480_v40 = vld [vmem:[#allocation7 + $0xf8] sm:$0xf0] }
0x1788   : > { %v8648_v46 = vadd.f32 %v8639_v39, %v8311_v59  ;;  %v10479_v59 = vor.u32 %v10752_v44, %v10478_v60  ;;  %v10483_v39 = vor.u32 %v10751_v18, %v10480_v40 }
0x178a   : > { %v8704_v16 = vadd.f32 %v16768_v23, %v8648_v46  ;;  %v10415_v23 = vor.u32 %v10727_v9, %v10412_v25  ;;  %v10470_v46 = vld [vmem:[#allocation7 + $0xe0] sm:$0xf]  ;;  %v10425_v9 = vor.u32 %v10737_v17, %v10422_v30  ;;  %v10748_v25 = vld [vmem:[#allocation7 + $0xd4] sm:$0xf0] }
0x178c   : > { %v8709_v41 = vpack.c.bf16 %v8704_v16, %v8703_v32  ;;  %8875 = vmatpush.bf16.msra.mxu2 %v10415_v23  ;;  %v10750_v32 = vld [vmem:[#allocation7 + $0xe4] sm:$0xf0]  ;;  %v10464_v23 = vld [vmem:[#allocation7 + $0xd8] sm:$0xf0] }
0x178d   : > { %v10471_v58 = vor.u32 %v10750_v32, %v10470_v46  ;;  %v10467_v19 = vor.u32 %v10747_v52, %v10464_v23 }
0x178e   : > { %8717 = vmatpush.bf16.msrb.mxu1 %v8709_v41  ;;  %v10749_v41 = vld [vmem:[#allocation7 + $0xe4] sm:$0xf] }
0x1790   : > { %8876 = vmatpush.bf16.msra.mxu2 %v10407_v0  ;;  %v10459_v0 = vor.u32 %v10745_v36, %v10456_v34 }
0x1792   : > { %8718 = vmatpush.bf16.msrb.mxu1 %v8708_v61  ;;  %v10394_v61 = vld [vmem:[#allocation7 + $0x10] sm:$0xf] }
0x1793   : > { %v10395_v4 = vor.u32 %v10724_v22, %v10394_v61 }
0x1794   : > { %8877 = vmatpush.bf16.msra.mxu2 %v10399_v33 }
0x1796   : > { %8719 = vmatpush.bf16.msrb.mxu1 %v8707_v6  ;;  %v10445_v6 = vor.u32 %v10744_v55, %v10444_v62  ;;  %v10463_v55 = vor.u32 %v10748_v25, %v10462_v29 }
0x1798   : > { %8942 = vmatpush.bf16.msra.mxu3 %v10445_v6  ;;  %8878 = vmatpush.bf16.msra.mxu2 %v10391_v27  ;;  %v10454_v6 = vld [vmem:[#allocation7 + $0xc0] sm:$0xf] }
0x179a   : > { %8720 = vmatpush.bf16.msrb.mxu1 %v8706_v15  ;;  %v10437_v15 = vor.u32 %v10742_v2, %v10436_v3 }
0x179c   : > { %8943 = vmatpush.bf16.msra.mxu3 %v10437_v15 }
0x179d   : > { %10349 = vmatmul.msk.bf16.vlgmr.msrb.gmra.mxu1 %vm1976_vm13, %v8705_v47  ;;  %v10472_v47 = vld [vmem:[#allocation7 + $0xe8] sm:$0xf0] }
0x179e   : > { %8862 = vmatpush.bf16.msra.mxu1 %v10411_v57  ;;  %v10475_v48 = vor.u32 %v10749_v41, %v10472_v47  ;;  %v10455_v57 = vor.u32 %v10746_v43, %v10454_v6 }
0x17a0   : > { %8944 = vmatpush.bf16.msra.mxu3 %v10429_v53 }
0x17a2   : > { %8863 = vmatpush.bf16.msra.mxu1 %v10403_v1 }
0x17a4   : > { %8945 = vmatpush.bf16.msra.mxu3 %v10421_v49 }
0x17a6   : > { %8864 = vmatpush.bf16.msra.mxu1 %v10395_v4  ;;  %v9051_v4 = vpop.permute.xlu0 %9050 }
0x17a7   : > { %v9053_v8 = vperm.slane %v9051_v4, 0 }
0x17aa   : > { %8865 = vmatpush.bf16.msra.mxu1 %v10387_v31 }
0x17ae   : > { %8955 = vmatpush.bf16.msrb.mxu1 %v10449_v50 }
0x17b2   : > { %8956 = vmatpush.bf16.msrb.mxu1 %v10441_v24 }
0x17b6   : > { %8957 = vmatpush.bf16.msrb.mxu1 %v10433_v14 }
0x17ba   : > { %8958 = vmatpush.bf16.msrb.mxu1 %v10425_v9 }
0x181a   : > { %v8722_v38 = vpop.f32.mrf.mxu1 }
0x181b   : > { %v8726_v7 = vpack.c.bf16 %v8722_v38, %v8722_v38 }
0x181d   : > { %v8745_v16 = vshrl.u32 %v8726_v7, 16  ;;  %10416 = vmatmul.msk.bf16.vlgmr.msra.gmra.mxu1 %vm1976_vm13, %v8726_v7  ;;  %v8894_v3 = vrot.slane %v8726_v7, 1 }
0x181f   : > { %10382 = vmatmul.msk.bf16.vlgmr.msrb.gmra.mxu2 %vm1976_vm13, %v8745_v16  ;;  %10383 = vmatmul.msk.bf16.vlgmr.msrb.gmra.mxu3 %vm1976_vm13, %v8745_v16  ;;  %v8975_v2 = vrot.slane %v8745_v16, 1 }
0x1820   : > { %9023 = vmatpush.bf16.msrb.mxu2 %v10479_v59  ;;  %9036 = vmatpush.bf16.msrb.mxu3 %v10483_v39 }
0x1822   : > { %v8724_v62 = vpop.f32.mrf.mxu1 }
0x1824   : > { %9024 = vmatpush.bf16.msrb.mxu2 %v10471_v58  ;;  %9037 = vmatpush.bf16.msrb.mxu3 %v10475_v48 }
0x1828   : > { %9025 = vmatpush.bf16.msrb.mxu2 %v10463_v55  ;;  %9038 = vmatpush.bf16.msrb.mxu3 %v10467_v19 }
0x182c   : > { %9026 = vmatpush.bf16.msrb.mxu2 %v10455_v57  ;;  %9039 = vmatpush.bf16.msrb.mxu3 %v10459_v0 }
0x182d   : > { %10451 = vmatmul.msk.bf16.vlgmr.msrb.gmra.mxu1 %vm1976_vm13, %v8894_v3 }
0x182f   : > { %10417 = vmatmul.msk.bf16.vlgmr.msra.gmra.mxu2 %vm1976_vm13, %v8726_v7  ;;  %10450 = vmatmul.msk.bf16.vlgmr.msra.gmra.mxu3 %vm1976_vm13, %v8894_v3  ;;  %v17207_v7 = vlaneseq }
0x1831   : > { %vm9074_vm1 = vcmp.lt.s32.totalorder %v17207_v7, 256 }
0x183f   : > { %10484 = vmatmul.msk.bf16.vlgmr.msrb.gmra.mxu2 %vm1976_vm13, %v8975_v2  ;;  %10485 = vmatmul.msk.bf16.vlgmr.msrb.gmra.mxu3 %vm1976_vm13, %v8975_v2 }
0x189a   : > { %v8867_v35 = vpop.f32.mrf.mxu1 }
0x18a2   : > { %v8799_v15 = vpop.f32.mrf.mxu2  ;;  %v8812_v12 = vpop.f32.mrf.mxu3 }
0x18a3   : > { %v8869_v10 = vpop.f32.mrf.mxu1  ;;  %v8868_v42 = vadd.f32 %v8867_v35, %v8799_v15 }
0x18aa   : > { %v8801_v45 = vpop.f32.mrf.mxu2  ;;  %v8814_v1 = vpop.f32.mrf.mxu3 }
0x18ab   : > { %v8960_v54 = vpop.f32.mrf.mxu1 }
0x18b2   : > { %v8880_v56 = vpop.f32.mrf.mxu2  ;;  %v8947_v61 = vpop.f32.mrf.mxu3 }
0x18b3   : > { %v8962_v22 = vpop.f32.mrf.mxu1  ;;  %v8881_v20 = vadd.f32 %v8880_v56, %v8812_v12  ;;  %v8964_v37 = vadd.f32 %v8947_v61, %v8868_v42 }
0x18b5   : > { %v8965_v21 = vadd.f32 %v8960_v54, %v8881_v20 }
0x18ba   : > { %v8882_v33 = vpop.f32.mrf.mxu2  ;;  %v8949_v53 = vpop.f32.mrf.mxu3 }
0x18c2   : > { %v9028_v27 = vpop.f32.mrf.mxu2  ;;  %v9041_v49 = vpop.f32.mrf.mxu3 }
0x18c3   : > { %v9045_v26 = vadd.f32 %v9028_v27, %v8964_v37  ;;  %v9046_v31 = vadd.f32 %v9041_v49, %v8965_v21 }
0x18c5   : > { %v9054_v63 = vadd.f32 %v9053_v8, %v9045_v26  ;;  %v9055_v28 = vadd.f32 %v9053_v8, %v9046_v31 }
0x18c7   : > { %v9056_v50 = vsub.f32 0.0, %v9054_v63  ;;  %v9057_v5 = vsub.f32 0.0, %v9055_v28 }
0x18c9   : > { %v9058_v51 = vmul.f32 1.442695, %v9056_v50  ;;  %v9060_v24 = vmul.f32 1.442695, %v9057_v5 }
0x18ca   : > { %v9030_v13 = vpop.f32.mrf.mxu2  ;;  %v9043_v11 = vpop.f32.mrf.mxu3 }
0x18cb   : > { %11143 = vpow2.f32 %v9058_v51 }
0x18cc   : > { %11145 = vpow2.f32 %v9060_v24 }
0x18d1   : > { %v11144_v60 = vpop.eup %11143 }
0x18d2   : > { %v11146_v14 = vpop.eup %11145  ;;  %v9062_v44 = vadd.f32 1.0, %v11144_v60 }
0x18d3   : > { %v9063_v18 = vadd.f32 1.0, %v11146_v14 }
0x18d5   : > { %11147 = vrcp.f32 %v9063_v18 }
0x18d6   : > { %11149 = vrcp.f32 %v9062_v44 }
0x18db   : > { %v11148_v40 = vpop.eup %11147 }
0x18dc   : > { %v9068_v38 = vrot.slane %v11148_v40, 7  ;;  %v11150_v59 = vpop.eup %11149 }
0x18de   : > { %v9070_v39 = vsel %vm9069_vm0, %v11150_v59, %v9068_v38 }
0x18df   : > { %9076 = vst.msk [vmem:[%s706_s24] sm:$0x3] %vm9074_vm1, %v9070_v39 }
0x18e0 PF: > { %s17208_s6 = sld [smem:[#allocation10_spill]] }
0x18e6   : > { %s35_s26 = sadd.s32 1, %s17208_s6  }
0x18e7   : > { %p32_p7 = scmp.ge.s32.totalorder %s35_s26, 4  }
0x18e9   :  { %34 = sbr.rel (!%p32_p7) target bundleno = 13 (0xd), region = 163 }
0x18ee   :  { %9096 = vsyncpa [#allocation4], 1 }
0x18ef   :  { %9098 = vsyncpa [#allocation4 + $0x1], 1 }
0x18f0   :  { %9099 = vsyncpa [#allocation6], 1 }

</bundles_post_ra>
